<compile_context>
chip_gen: v5e
topology: v5e:2x2
jax: 0.10.0
libtpu: 0.0.40
codegen_flags: <defaults>
</compile_context>

<pallas_src>
import functools
import math

import jax
import jax.numpy as jnp
from jax.experimental import pallas as pl
from jax.experimental.pallas import tpu as pltpu


DT_RANK = 8
_VMEM_LIMIT = 32 * 1024 * 1024  # explicit scoped-VMEM cap; tiles stay well below


def _round_up(n, m):
    return ((n + m - 1) // m) * m


def _pick_tile(n, target, quantum):
    """Largest multiple of `quantum` <= target that divides n; n itself if
    n <= target (full-extent block) or no aligned divisor exists."""
    if n <= target:
        return n
    t = (target // quantum) * quantum
    while t >= quantum:
        if n % t == 0:
            return t
        t -= quantum
    return n  # full-extent fallback (only for non-aligned odd sizes)


# ----------------------------- tiled linear ---------------------------------

def _linear_kernel(x_ref, w_ref, b_ref, o_ref, acc_ref, *, activation):
    k = pl.program_id(2)

    @pl.when(k == 0)
    def _():
        acc_ref[...] = jnp.broadcast_to(b_ref[...], acc_ref.shape)

    acc_ref[...] += jnp.dot(x_ref[...].astype(jnp.bfloat16), w_ref[...],
                            preferred_element_type=jnp.float32)

    @pl.when(k == pl.num_programs(2) - 1)
    def _():
        r = acc_ref[...]
        if activation == "silu":
            r = r * jax.nn.sigmoid(r)
        o_ref[...] = r.astype(o_ref.dtype)


def pallas_linear(x, w, b=None, *, activation=None, tm=256, tn=512, tk=512):
    """x: (M,K) f32, w: (K,N) bf16 -> (M,N) f32.  bf16 MXU operands (cast
    in-kernel), f32 VMEM accumulator, trailing 'arbitrary' K reduction axis,
    optional fused epilogue activation."""
    M, K = x.shape
    K2, N = w.shape
    assert K == K2
    if b is None:
        b = jnp.zeros((N,), jnp.float32)
    tm = _pick_tile(M, tm, 8)
    tn = _pick_tile(N, tn, 128)
    tk = _pick_tile(K, tk, 128)
    grid = (M // tm, N // tn, K // tk)
    kern = functools.partial(_linear_kernel, activation=activation)
    return pl.pallas_call(
        kern,
        out_shape=jax.ShapeDtypeStruct((M, N), jnp.float32),
        grid=grid,
        in_specs=[pl.BlockSpec((tm, tk), lambda i, j, k: (i, k)),
                  pl.BlockSpec((tk, tn), lambda i, j, k: (k, j)),
                  pl.BlockSpec((1, tn), lambda i, j, k: (0, j))],
        out_specs=pl.BlockSpec((tm, tn), lambda i, j, k: (i, j)),
        scratch_shapes=[pltpu.VMEM((tm, tn), jnp.float32)],
        compiler_params=pltpu.CompilerParams(
            dimension_semantics=("parallel", "parallel", "arbitrary"),
            vmem_limit_bytes=_VMEM_LIMIT),
    )(x, w, b.reshape(1, N).astype(jnp.float32))


def _linear2_kernel(x1_ref, x2_ref, w1_ref, w2_ref, b_ref, o_ref, acc_ref, *,
                    activation):
    k = pl.program_id(2)

    @pl.when(k == 0)
    def _():
        acc_ref[...] = jnp.broadcast_to(b_ref[...], acc_ref.shape)

    acc_ref[...] += (
        jnp.dot(x1_ref[...].astype(jnp.bfloat16), w1_ref[...],
                preferred_element_type=jnp.float32)
        + jnp.dot(x2_ref[...].astype(jnp.bfloat16), w2_ref[...],
                  preferred_element_type=jnp.float32))

    @pl.when(k == pl.num_programs(2) - 1)
    def _():
        r = acc_ref[...]
        if activation == "silu":
            r = r * jax.nn.sigmoid(r)
        o_ref[...] = r.astype(o_ref.dtype)


def pallas_linear2(x1, x2, w1, w2, b, *, activation=None, tm=256, tn=512,
                   tk=512):
    """y = x1 @ w1 + x2 @ w2 + b (two-input accumulating matmul; replaces a
    concat(x1,x2) @ W without the HBM concat copy)."""
    M, K = x1.shape
    N = w1.shape[1]
    tm = _pick_tile(M, tm, 8)
    tn = _pick_tile(N, tn, 128)
    tk = _pick_tile(K, tk, 128)
    grid = (M // tm, N // tn, K // tk)
    kern = functools.partial(_linear2_kernel, activation=activation)
    return pl.pallas_call(
        kern,
        out_shape=jax.ShapeDtypeStruct((M, N), jnp.float32),
        grid=grid,
        in_specs=[pl.BlockSpec((tm, tk), lambda i, j, k: (i, k)),
                  pl.BlockSpec((tm, tk), lambda i, j, k: (i, k)),
                  pl.BlockSpec((tk, tn), lambda i, j, k: (k, j)),
                  pl.BlockSpec((tk, tn), lambda i, j, k: (k, j)),
                  pl.BlockSpec((1, tn), lambda i, j, k: (0, j))],
        out_specs=pl.BlockSpec((tm, tn), lambda i, j, k: (i, j)),
        scratch_shapes=[pltpu.VMEM((tm, tn), jnp.float32)],
        compiler_params=pltpu.CompilerParams(
            dimension_semantics=("parallel", "parallel", "arbitrary"),
            vmem_limit_bytes=_VMEM_LIMIT),
    )(x1, x2, w1, w2, b.reshape(1, N).astype(jnp.float32))


# ------------------------- fused RMSNorm + matmul ----------------------------

def _rmsnorm_linear_kernel(x_ref, g_ref, w_ref, o_ref, xn_ref):
    # Normalized tile cached in bf16 scratch at j == 0, reused across N-tiles.
    @pl.when(pl.program_id(1) == 0)
    def _():
        x = x_ref[...]
        ms = jnp.mean(x * x, axis=-1, keepdims=True)
        # eps = 1e-5 (common RMSNorm default; MambaBlock source not provided).
        xn_ref[...] = ((x * jax.lax.rsqrt(ms + 1e-5))
                       * g_ref[...]).astype(jnp.bfloat16)

    o_ref[...] = jnp.dot(xn_ref[...], w_ref[...],
                         preferred_element_type=jnp.float32)


def pallas_rmsnorm_linear(x, gamma, w, *, tm=256, tn=512):
    """RMSNorm over the last dim fused with a (D->N) matmul (no bias)."""
    M, D = x.shape
    N = w.shape[1]
    tm = _pick_tile(M, tm, 8)
    tn = _pick_tile(N, tn, 128)
    return pl.pallas_call(
        _rmsnorm_linear_kernel,
        out_shape=jax.ShapeDtypeStruct((M, N), jnp.float32),
        grid=(M // tm, N // tn),
        in_specs=[pl.BlockSpec((tm, D), lambda i, j: (i, 0)),
                  pl.BlockSpec((1, D), lambda i, j: (0, 0)),
                  pl.BlockSpec((D, tn), lambda i, j: (0, j))],
        out_specs=pl.BlockSpec((tm, tn), lambda i, j: (i, j)),
        scratch_shapes=[pltpu.VMEM((tm, D), jnp.bfloat16)],
        compiler_params=pltpu.CompilerParams(
            # N-tiles must run in order per row tile (xn cache) -> "arbitrary".
            dimension_semantics=("parallel", "arbitrary"),
            vmem_limit_bytes=_VMEM_LIMIT),
    )(x, gamma, w)


# ------------------------- causal depthwise conv + SiLU ----------------------

def _conv_silu_kernel(x_ref, w_ref, b_ref, o_ref, carry_ref):
    """T-tiled causal depthwise conv; the (K-1)-row left halo is carried in
    VMEM scratch across the trailing T-chunk grid axis (no pad copy in HBM)."""
    Tt, tc = o_ref.shape
    K = w_ref.shape[0]

    @pl.when(pl.program_id(2) == 0)
    def _():
        carry_ref[...] = jnp.zeros_like(carry_ref)

    x = x_ref[...]
    work = jnp.concatenate([carry_ref[...], x], axis=0)     # (Tt + K - 1, tc)
    acc = jnp.broadcast_to(b_ref[...], (Tt, tc))
    for k in range(K):                                       # K static taps
        acc = acc + w_ref[k:k + 1, :] * work[k:k + Tt, :]
    o_ref[...] = acc * jax.nn.sigmoid(acc)                   # fused SiLU
    carry_ref[...] = work[Tt:, :]                            # halo for next chunk


def pallas_conv_silu(x, w, b, *, tt=512, tc=256):
    """x: (B, T, C) f32, w: (K, C), b: (1, C) -> (B, T, C)."""
    B, T, C = x.shape
    K = w.shape[0]
    tt = _pick_tile(T, tt, 8)
    tc = _pick_tile(C, tc, 128)
    return pl.pallas_call(
        _conv_silu_kernel,
        out_shape=jax.ShapeDtypeStruct((B, T, C), jnp.float32),
        grid=(B, C // tc, T // tt),
        in_specs=[pl.BlockSpec((None, tt, tc), lambda b_, c, t: (b_, t, c)),
                  pl.BlockSpec((K, tc), lambda b_, c, t: (0, c)),
                  pl.BlockSpec((1, tc), lambda b_, c, t: (0, c))],
        out_specs=pl.BlockSpec((None, tt, tc), lambda b_, c, t: (b_, t, c)),
        scratch_shapes=[pltpu.VMEM((K - 1, tc), jnp.float32)],
        compiler_params=pltpu.CompilerParams(
            dimension_semantics=("parallel", "parallel", "arbitrary"),
            vmem_limit_bytes=_VMEM_LIMIT),
    )(x, w, b)


# ------------------------------ selective scan -------------------------------

def _scan_kernel(dtlr_ref, dtw_ref, dtb_ref, b_ref, c_ref, x_ref, z_ref,
                 a_ref, d_ref, o_ref, h_ref, *, group):
    """One (batch, channel-tile, time-chunk) step of the selective SSM.

    dtlr: (Tc, R); dtw: (R, tI) bf16; dtb/d: (1, tI); b/c: (S, Tc);
    x/z/o: (Tc, tI); a: (S, tI); h scratch: (S, tI) carried across T-chunks.

    Fused here: dt_proj matmul + stable softplus, dt*x, SiLU output gate and
    the D skip.  Per-group (8-step) work that does not depend on the
    recurrence is hoisted ahead of the serial h-chain; outputs are written as
    full (group, tI) slabs (no per-timestep masked stores).
    """
    @pl.when(pl.program_id(2) == 0)
    def _():
        h_ref[...] = jnp.zeros_like(h_ref)

    Tc, _ = o_ref.shape
    a = a_ref[...]                                   # (S, tI)
    d = d_ref[...]                                   # (1, tI)
    bT = b_ref[...]                                  # (S, Tc)
    cT = c_ref[...]                                  # (S, Tc)
    dtw = dtw_ref[...]                               # (R, tI) bf16
    dtb = dtb_ref[...]                               # (1, tI)
    h = h_ref[...]                                   # (S, tI)

    for g in range(Tc // group):                     # static, bounded unroll
        t0 = g * group
        # ---- hoisted per-group work (independent of the recurrence) ----
        x_g = x_ref[t0:t0 + group, :]                # (group, tI)
        z_g = z_ref[t0:t0 + group, :]
        r = jnp.dot(dtlr_ref[t0:t0 + group, :].astype(jnp.bfloat16), dtw,
                    preferred_element_type=jnp.float32) + dtb
        # numerically stable softplus
        dt_g = jnp.maximum(r, 0.0) + jnp.log(1.0 + jnp.exp(-jnp.abs(r)))
        dtx_g = dt_g * x_g
        # ---- serial recurrence: critical path is one FMA per step ----
        ys = []
        for j in range(group):
            dA = jnp.exp(dt_g[j:j + 1, :] * a)                      # off-chain
            dBx = bT[:, t0 + j:t0 + j + 1] * dtx_g[j:j + 1, :]      # off-chain
            h = dA * h + dBx                                        # (S, tI)
            ys.append(jnp.sum(cT[:, t0 + j:t0 + j + 1] * h,
                              axis=0, keepdims=True))               # VPU + XLU
        # ---- fused epilogue, one full-width (group, tI) store ----
        y_g = jnp.concatenate(ys, axis=0)
        o_ref[t0:t0 + group, :] = (y_g + d * x_g) * (z_g * jax.nn.sigmoid(z_g))

    h_ref[...] = h


def pallas_selective_scan(dt_lr, dtw, dtb, Bc4, Cc4, xs, z, A_T, Dvec, *,
                          Tc, tI):
    """dt_lr: (B,T,R); dtw: (R,I) bf16; dtb/Dvec: (1,I); Bc4/Cc4:
    (B, T//Tc, S, Tc); xs/z: (B,T,I); A_T: (S,I) -> (B,T,I)."""
    B, T, I = xs.shape
    S = A_T.shape[0]
    R = dt_lr.shape[-1]
    group = 8 if (Tc >= 8 and Tc % 8 == 0) else Tc
    grid = (B, I // tI, T // Tc)
    kern = functools.partial(_scan_kernel, group=group)
    return pl.pallas_call(
        kern,
        out_shape=jax.ShapeDtypeStruct((B, T, I), jnp.float32),
        grid=grid,
        in_specs=[
            pl.BlockSpec((None, Tc, R), lambda b, i, t: (b, t, 0)),
            pl.BlockSpec((R, tI), lambda b, i, t: (0, i)),
            pl.BlockSpec((1, tI), lambda b, i, t: (0, i)),
            pl.BlockSpec((None, None, S, Tc), lambda b, i, t: (b, t, 0, 0)),
            pl.BlockSpec((None, None, S, Tc), lambda b, i, t: (b, t, 0, 0)),
            pl.BlockSpec((None, Tc, tI), lambda b, i, t: (b, t, i)),
            pl.BlockSpec((None, Tc, tI), lambda b, i, t: (b, t, i)),
            pl.BlockSpec((S, tI), lambda b, i, t: (0, i)),
            pl.BlockSpec((1, tI), lambda b, i, t: (0, i)),
        ],
        out_specs=pl.BlockSpec((None, Tc, tI), lambda b, i, t: (b, t, i)),
        scratch_shapes=[pltpu.VMEM((S, tI), jnp.float32)],
        compiler_params=pltpu.CompilerParams(
            dimension_semantics=("parallel", "parallel", "arbitrary"),
            vmem_limit_bytes=_VMEM_LIMIT),
    )(dt_lr, dtw, dtb, Bc4, Cc4, xs, z, A_T, Dvec)


# ------------------------------ parameter init -------------------------------

def init_linear(key, din, dout, bias=True):
    kw, kb = jax.random.split(key)
    w = (jax.random.normal(kw, (din, dout), jnp.float32)
         / math.sqrt(din)).astype(jnp.bfloat16)
    b = (0.01 * jax.random.normal(kb, (dout,), jnp.float32)) if bias else None
    return {"w": w, "b": b}


def apply_linear(p, x2d, activation=None):
    return pallas_linear(x2d, p["w"], p["b"], activation=activation)


def apply_linear3d(p, x, activation=None):
    B, T, D = x.shape
    return apply_linear(p, x.reshape(B * T, D), activation).reshape(B, T, -1)


# TODO(synk): MambaBlock source not provided in the reference module; using the
# standard Mamba-SSM block (RMSNorm -> in_proj -> causal depthwise conv + SiLU
# -> selective scan -> SiLU gate -> out_proj, residual).
def init_mamba(key, dim, state, conv, expand):
    d_inner = expand * dim
    nw_raw = DT_RANK + 2 * state
    nw = _round_up(nw_raw, 128)          # pad x_proj width to 128 lanes
    k1, k2, k3, k4, k5 = jax.random.split(key, 5)
    A = jnp.broadcast_to(jnp.arange(1, state + 1, dtype=jnp.float32)[:, None],
                         (state, d_inner))
    xw = jax.random.normal(k3, (d_inner, nw_raw), jnp.float32) / math.sqrt(d_inner)
    xw = jnp.pad(xw, ((0, 0), (0, nw - nw_raw)))
    return {
        "dim": dim, "d_inner": d_inner, "d_state": state, "d_conv": conv,
        "norm_w": jnp.ones((1, dim), jnp.float32),
        "in_proj_w": (jax.random.normal(k1, (dim, 2 * d_inner), jnp.float32)
                      / math.sqrt(dim)).astype(jnp.bfloat16),
        "conv_w": 0.1 * jax.random.normal(k2, (conv, d_inner), jnp.float32),
        "conv_b": jnp.zeros((1, d_inner), jnp.float32),
        "x_proj_w": xw.astype(jnp.bfloat16),
        "dt_proj_w": (jax.random.normal(k4, (DT_RANK, d_inner), jnp.float32)
                      / math.sqrt(DT_RANK)).astype(jnp.bfloat16),
        "dt_proj_b": jnp.zeros((1, d_inner), jnp.float32),
        "A_log_T": jnp.log(A),                              # (S, I)
        "D": jnp.ones((1, d_inner), jnp.float32),
        "out_proj_w": (jax.random.normal(k5, (d_inner, dim), jnp.float32)
                       / math.sqrt(d_inner)).astype(jnp.bfloat16),
    }


def mamba_block(p, x, *, scan_tc=64, scan_ti=256):
    B, T, D = x.shape
    I, S = p["d_inner"], p["d_state"]
    R = DT_RANK
    # fused RMSNorm + in_proj (normalized tile cached across N-tiles)
    xz = pallas_rmsnorm_linear(x.reshape(B * T, D), p["norm_w"],
                               p["in_proj_w"]).reshape(B, T, 2 * I)
    xs_in, zg = xz[..., :I], xz[..., I:]
    # causal depthwise conv + SiLU, T-tiled with a (K-1)-row carried halo
    xs = pallas_conv_silu(xs_in, p["conv_w"], p["conv_b"])          # (B,T,I)
    # x_proj (output width padded to 128 lanes at init -> unmasked stores)
    xdbl = pallas_linear(xs.reshape(B * T, I), p["x_proj_w"], None)
    Tc = _pick_tile(T, scan_tc, 8)
    tI = _pick_tile(I, scan_ti, 128)
    dt_lr = xdbl[:, :R].reshape(B, T, R)
    # B/C are tiny ((B,T,S)); pre-chunk them to (B, T//Tc, S, Tc) so the scan
    # reads (S, Tc) blocks and every in-loop slice is static.
    Bc4 = xdbl[:, R:R + S].reshape(B, T // Tc, Tc, S).swapaxes(2, 3)
    Cc4 = xdbl[:, R + S:R + 2 * S].reshape(B, T // Tc, Tc, S).swapaxes(2, 3)
    A_T = -jnp.exp(p["A_log_T"])                                    # (S, I)
    y = pallas_selective_scan(dt_lr, p["dt_proj_w"], p["dt_proj_b"], Bc4, Cc4,
                              xs, zg, A_T, p["D"], Tc=Tc, tI=tI)    # (B,T,I)
    out = pallas_linear(y.reshape(B * T, I), p["out_proj_w"],
                        None).reshape(B, T, D)
    return x + out


def init_ngram(key, dim):
    k1, k2, k3 = jax.random.split(key, 3)
    s = 1.0 / math.sqrt(2 * dim)
    return {
        "w_hi": (s * jax.random.normal(k1, (dim, dim), jnp.float32)).astype(jnp.bfloat16),
        "w_lo": (s * jax.random.normal(k2, (dim, dim), jnp.float32)).astype(jnp.bfloat16),
        "b": 0.01 * jax.random.normal(k3, (dim,), jnp.float32),
    }


def ngram_block(p, x, n):
    # TODO(synk): Ngram source not provided in reference; stand-in = residual
    # causal n-gram mixing: h = x @ W_hi + x_{t-n} @ W_lo + b, SiLU (no concat).
    B, T, D = x.shape
    shifted = jnp.pad(x, ((0, 0), (n, 0), (0, 0)))[:, :T, :]
    h = pallas_linear2(x.reshape(B * T, D), shifted.reshape(B * T, D),
                       p["w_hi"], p["w_lo"], p["b"], activation="silu")
    return x + h.reshape(B, T, D)


def token_merger(p, x):
    B, T, D = x.shape
    assert T % 2 == 0, "num_tokens must be even"
    return apply_linear3d(p, x.reshape(B, T // 2, 2 * D))


def token_expander(p, x):
    # TODO(synk): reference view() is element-count inconsistent; implementing
    # the evident intent (B,T,2D) -> (B,2T,D).
    B, T, D = x.shape
    y = apply_linear3d(p, x)                    # (B, T, 2D)
    return y.reshape(B, 2 * T, D)


# ------------------------------- full model ----------------------------------

def init_model(key, cfg):
    dim, state, conv, expand = cfg["dim"], cfg["state"], cfg["conv"], cfg["expand"]
    half = dim // 2
    ks = iter(jax.random.split(key, 64))
    p = {}
    emb = (0.02 * jax.random.normal(
        next(ks), (cfg["vocab_size"], dim), jnp.float32)).astype(jnp.bfloat16)
    p["embedding"] = emb                                   # (V, D) for gather
    p["lm_head_wT"] = emb.T                                # tied, one-time (D, V)
    p["enc_mamba0"] = init_mamba(next(ks), dim, state, conv, expand)
    p["ngram1"] = init_ngram(next(ks), dim)
    p["ngram2"] = init_ngram(next(ks), dim)
    p["ngram3"] = init_ngram(next(ks), dim)
    p["enc_mamba1"] = init_mamba(next(ks), dim, state, conv, expand)
    p["merge0"] = init_linear(next(ks), 2 * dim, dim)
    p["enc_mamba2"] = init_mamba(next(ks), dim, state, conv, expand)
    p["merge1"] = init_linear(next(ks), 2 * dim, dim)
    p["enc_mamba3"] = init_mamba(next(ks), dim, state, conv, expand)
    p["enc_down"] = init_linear(next(ks), dim, half)
    p["enc_mamba4"] = init_mamba(next(ks), half, state, conv, expand)
    p["body"] = []
    for _ in range(cfg["layers"]):
        p["body"].append((init_mamba(next(ks), half, state, conv, expand),
                          init_mamba(next(ks), half, state, conv, expand)))
    p["dec_mamba0"] = init_mamba(next(ks), half, state, conv, expand)
    p["dec_up"] = init_linear(next(ks), half, dim)
    p["dec_mamba1"] = init_mamba(next(ks), dim, state, conv, expand)
    p["expand0"] = init_linear(next(ks), dim, 2 * dim)
    p["dec_mamba2"] = init_mamba(next(ks), dim, state, conv, expand)
    p["expand1"] = init_linear(next(ks), dim, 2 * dim)
    p["dec_mamba3"] = init_mamba(next(ks), dim, state, conv, expand)
    p["lm_head_b"] = jnp.zeros((cfg["vocab_size"],), jnp.float32)
    return p


def latent_language_forward(p, tokens):
    # ---- encoder ----
    x = p["embedding"][tokens].astype(jnp.float32)      # (B, T, dim)
    x = mamba_block(p["enc_mamba0"], x)
    x = ngram_block(p["ngram1"], x, 1)
    x = ngram_block(p["ngram2"], x, 2)
    x = ngram_block(p["ngram3"], x, 3)
    x = mamba_block(p["enc_mamba1"], x)
    x = token_merger(p["merge0"], x)
    x = mamba_block(p["enc_mamba2"], x)
    x = token_merger(p["merge1"], x)
    x = mamba_block(p["enc_mamba3"], x)
    x = apply_linear3d(p["enc_down"], x)                 # dim -> dim//2
    x = mamba_block(p["enc_mamba4"], x)
    # ---- body (fixed permutation; reference shuffles randomly) ----
    for ml0, ml1 in p["body"]:
        x = mamba_block(ml0, x)
        x = mamba_block(ml1, x)
    # ---- decoder ----
    x = mamba_block(p["dec_mamba0"], x)
    x = apply_linear3d(p["dec_up"], x)                   # dim//2 -> dim
    x = mamba_block(p["dec_mamba1"], x)
    x = token_expander(p["expand0"], x)
    x = mamba_block(p["dec_mamba2"], x)
    x = token_expander(p["expand1"], x)
    x = mamba_block(p["dec_mamba3"], x)
    # lm_head: weight tied to the embedding via a one-time (D, V) transposed
    # copy built at init (no per-call transpose, no in-kernel XLU transpose).
    B, T, D = x.shape
    logits = pallas_linear(x.reshape(B * T, D), p["lm_head_wT"], p["lm_head_b"])
    return logits.reshape(B, T, -1)


if __name__ == "__main__":
    cfg = dict(vocab_size=256, dim=128, state=8, conv=4, expand=2, layers=1)
    key = jax.random.PRNGKey(0)
    kp, kt = jax.random.split(key)
    params = init_model(kp, cfg)
    tokens = jax.random.randint(kt, (2, 8), 0, cfg["vocab_size"], dtype=jnp.int32)

    fwd = jax.jit(functools.partial(latent_language_forward, params))
    logits = jax.block_until_ready(fwd(tokens))

    assert logits.shape == (2, 8, cfg["vocab_size"]), logits.shape
    assert bool(jnp.all(jnp.isfinite(logits)))
    print("KERNEL_OK")
</pallas_src>

<mosaic_0001>
module attributes {stable_mosaic.version = 11 : i64} {
  func.func @_rmsnorm_linear_kernel(%arg0: i32, %arg1: i32, %arg2: memref<16x128xf32, #tpu.memory_space<vmem>>, %arg3: memref<1x128xf32, #tpu.memory_space<vmem>>, %arg4: memref<128x512xbf16, #tpu.memory_space<vmem>>, %arg5: memref<16x512xf32, #tpu.memory_space<vmem>>, %arg6: memref<16x128xbf16, #tpu.memory_space<vmem>>) attributes {dimension_semantics = [#tpu.dimension_semantics<parallel>, #tpu.dimension_semantics<arbitrary>], iteration_bounds = array<i64: 1, 1>, scalar_prefetch = 0 : i64, scratch_operands = 1 : i64, tpu.core_type = #tpu.core_type<tc>, window_params = [{transform_indices = @transform_0, window_bounds = array<i64: 16, 128>}, {pipeline_mode = #tpu.pipeline_mode<synchronous>, transform_indices = @transform_1, window_bounds = array<i64: 1, 128>}, {transform_indices = @transform_2, window_bounds = array<i64: 128, 512>}, {transform_indices = @transform_3, window_bounds = array<i64: 16, 512>}]} {
    %c0_i32 = arith.constant 0 : i32
    %0 = arith.cmpi eq, %arg1, %c0_i32 : i32
    %1 = arith.extui %0 : i1 to i32
    %c0_i32_0 = arith.constant 0 : i32
    %2 = arith.cmpi ne, %1, %c0_i32_0 : i32
    scf.if %2 {
      %c0_6 = arith.constant 0 : index
      %c0_7 = arith.constant 0 : index
      %7 = vector.load %arg2[%c0_6, %c0_7] : memref<16x128xf32, #tpu.memory_space<vmem>>, vector<16x128xf32>
      %8 = arith.mulf %7, %7 : vector<16x128xf32>
      %cst_8 = arith.constant dense<0.000000e+00> : vector<16xf32>
      %9 = vector.multi_reduction <add>, %8, %cst_8 [1] : vector<16x128xf32> to vector<16xf32>
      %10 = vector.shape_cast %9 : vector<16xf32> to vector<16x1xf32>
      %cst_9 = arith.constant 1.280000e+02 : f32
      %11 = vector.broadcast %cst_9 : f32 to vector<16x1xf32>
      %12 = arith.divf %10, %11 : vector<16x1xf32>
      %cst_10 = arith.constant 9.99999974E-6 : f32
      %13 = vector.broadcast %cst_10 : f32 to vector<16x1xf32>
      %14 = arith.addf %12, %13 : vector<16x1xf32>
      %15 = math.rsqrt %14 : vector<16x1xf32>
      %16 = vector.broadcast %15 : vector<16x1xf32> to vector<16x128xf32>
      %17 = arith.mulf %7, %16 : vector<16x128xf32>
      %c0_11 = arith.constant 0 : index
      %c0_12 = arith.constant 0 : index
      %18 = vector.load %arg3[%c0_11, %c0_12] : memref<1x128xf32, #tpu.memory_space<vmem>>, vector<1x128xf32>
      %19 = vector.broadcast %18 : vector<1x128xf32> to vector<16x128xf32>
      %20 = arith.mulf %17, %19 : vector<16x128xf32>
      %21 = arith.truncf %20 : vector<16x128xf32> to vector<16x128xbf16>
      %c0_13 = arith.constant 0 : index
      %c0_14 = arith.constant 0 : index
      %22 = vector.load %arg6[%c0_13, %c0_14] : memref<16x128xbf16, #tpu.memory_space<vmem>>, vector<16x128xbf16>
      tpu.vector_store %arg6[%c0_13, %c0_14], %21 {strides = array<i32>} : memref<16x128xbf16, #tpu.memory_space<vmem>>, vector<16x128xbf16>,
    } else {
    }
    %c0 = arith.constant 0 : index
    %c0_1 = arith.constant 0 : index
    %3 = vector.load %arg6[%c0, %c0_1] : memref<16x128xbf16, #tpu.memory_space<vmem>>, vector<16x128xbf16>
    %c0_2 = arith.constant 0 : index
    %c0_3 = arith.constant 0 : index
    %4 = vector.load %arg4[%c0_2, %c0_3] : memref<128x512xbf16, #tpu.memory_space<vmem>>, vector<128x512xbf16>
    %cst = arith.constant dense<0.000000e+00> : vector<16x512xf32>
    %5 = tpu.matmul %3, %4, %cst {dimension_numbers = #tpu.dot_dimension_numbers<[1], [0], [0], [1], [0, 0, 1, 1], [], []>} : vector<16x128xbf16>, vector<128x512xbf16>, vector<16x512xf32> -> vector<16x512xf32>
    %c0_4 = arith.constant 0 : index
    %c0_5 = arith.constant 0 : index
    %6 = vector.load %arg5[%c0_4, %c0_5] : memref<16x512xf32, #tpu.memory_space<vmem>>, vector<16x512xf32>
    tpu.vector_store %arg5[%c0_4, %c0_5], %5 {strides = array<i32>} : memref<16x512xf32, #tpu.memory_space<vmem>>, vector<16x512xf32>,
    return
  }
  func.func @transform_0(%arg0: i32, %arg1: i32) -> (i32, i32) {
    %c0_i32 = arith.constant 0 : i32
    %c0_i32_0 = arith.constant 0 : i32
    return %arg0, %c0_i32 : i32, i32
  }
  func.func @transform_1(%arg0: i32, %arg1: i32) -> (i32, i32) {
    %c0_i32 = arith.constant 0 : i32
    %c0_i32_0 = arith.constant 0 : i32
    %c0_i32_1 = arith.constant 0 : i32
    return %c0_i32, %c0_i32_0 : i32, i32
  }
  func.func @transform_2(%arg0: i32, %arg1: i32) -> (i32, i32) {
    %c0_i32 = arith.constant 0 : i32
    %c0_i32_0 = arith.constant 0 : i32
    return %c0_i32, %arg1 : i32, i32
  }
  func.func @transform_3(%arg0: i32, %arg1: i32) -> (i32, i32) {
    %c0_i32 = arith.constant 0 : i32
    return %arg0, %arg1 : i32, i32
  }
}

module attributes {stable_mosaic.version = 11 : i64} {
  func.func @_conv_silu_kernel(%arg0: i32, %arg1: i32, %arg2: i32, %arg3: memref<1x8x256xf32, #tpu.memory_space<vmem>>, %arg4: memref<4x256xf32, #tpu.memory_space<vmem>>, %arg5: memref<1x256xf32, #tpu.memory_space<vmem>>, %arg6: memref<1x8x256xf32, #tpu.memory_space<vmem>>, %arg7: memref<3x256xf32, #tpu.memory_space<vmem>>) attributes {dimension_semantics = [#tpu.dimension_semantics<parallel>, #tpu.dimension_semantics<parallel>, #tpu.dimension_semantics<arbitrary>], iteration_bounds = array<i64: 2, 1, 1>, scalar_prefetch = 0 : i64, scratch_operands = 1 : i64, tpu.core_type = #tpu.core_type<tc>, window_params = [{transform_indices = @transform_0, window_bounds = array<i64: 1, 8, 256>}, {transform_indices = @transform_1, window_bounds = array<i64: 4, 256>}, {transform_indices = @transform_2, window_bounds = array<i64: 1, 256>}, {transform_indices = @transform_3, window_bounds = array<i64: 1, 8, 256>}]} {
    %c0_i32 = arith.constant 0 : i32
    %0 = arith.cmpi eq, %arg2, %c0_i32 : i32
    %1 = arith.extui %0 : i1 to i32
    %c0_i32_0 = arith.constant 0 : i32
    %2 = arith.cmpi ne, %1, %c0_i32_0 : i32
    scf.if %2 {
      %cst_17 = arith.constant 0.000000e+00 : f32
      %41 = vector.broadcast %cst_17 : f32 to vector<3x256xf32>
      %c0_18 = arith.constant 0 : index
      %c0_19 = arith.constant 0 : index
      %42 = vector.load %arg7[%c0_18, %c0_19] : memref<3x256xf32, #tpu.memory_space<vmem>>, vector<3x256xf32>
      tpu.vector_store %arg7[%c0_18, %c0_19], %41 {strides = array<i32>} : memref<3x256xf32, #tpu.memory_space<vmem>>, vector<3x256xf32>,
    } else {
    }
    %c0 = arith.constant 0 : index
    %c0_1 = arith.constant 0 : index
    %c0_2 = arith.constant 0 : index
    %3 = vector.load %arg3[%c0, %c0_1, %c0_2] : memref<1x8x256xf32, #tpu.memory_space<vmem>>, vector<1x8x256xf32>
    %4 = vector.shape_cast %3 : vector<1x8x256xf32> to vector<8x256xf32>
    %c0_3 = arith.constant 0 : index
    %c0_4 = arith.constant 0 : index
    %5 = vector.load %arg7[%c0_3, %c0_4] : memref<3x256xf32, #tpu.memory_space<vmem>>, vector<3x256xf32>
    %6 = tpu.concatenate %5, %4 in 0 : vector<3x256xf32>, vector<8x256xf32> -> vector<11x256xf32>
    %c0_5 = arith.constant 0 : index
    %c0_6 = arith.constant 0 : index
    %7 = vector.load %arg5[%c0_5, %c0_6] : memref<1x256xf32, #tpu.memory_space<vmem>>, vector<1x256xf32>
    %8 = vector.shape_cast %7 : vector<1x256xf32> to vector<1x256xf32>
    %9 = vector.broadcast %8 : vector<1x256xf32> to vector<8x256xf32>
    %c0_7 = arith.constant 0 : index
    %c0_8 = arith.constant 0 : index
    %10 = vector.load %arg4[%c0_7, %c0_8] : memref<4x256xf32, #tpu.memory_space<vmem>>, vector<1x256xf32>
    %11 = vector.extract_strided_slice %6 {offsets = [0, 0], sizes = [8, 256], strides = [1, 1]} : vector<11x256xf32> to vector<8x256xf32>
    %12 = vector.broadcast %10 : vector<1x256xf32> to vector<8x256xf32>
    %13 = arith.mulf %12, %11 : vector<8x256xf32>
    %14 = arith.addf %9, %13 : vector<8x256xf32>
    %c1 = arith.constant 1 : index
    %c0_9 = arith.constant 0 : index
    %15 = vector.load %arg4[%c1, %c0_9] : memref<4x256xf32, #tpu.memory_space<vmem>>, vector<1x256xf32>
    %16 = vector.extract_strided_slice %6 {offsets = [1, 0], sizes = [8, 256], strides = [1, 1]} : vector<11x256xf32> to vector<8x256xf32>
    %17 = vector.broadcast %15 : vector<1x256xf32> to vector<8x256xf32>
    %18 = arith.mulf %17, %16 : vector<8x256xf32>
    %19 = arith.addf %14, %18 : vector<8x256xf32>
    %c2 = arith.constant 2 : index
    %c0_10 = arith.constant 0 : index
    %20 = vector.load %arg4[%c2, %c0_10] : memref<4x256xf32, #tpu.memory_space<vmem>>, vector<1x256xf32>
    %21 = vector.extract_strided_slice %6 {offsets = [2, 0], sizes = [8, 256], strides = [1, 1]} : vector<11x256xf32> to vector<8x256xf32>
    %22 = vector.broadcast %20 : vector<1x256xf32> to vector<8x256xf32>
    %23 = arith.mulf %22, %21 : vector<8x256xf32>
    %24 = arith.addf %19, %23 : vector<8x256xf32>
    %c3 = arith.constant 3 : index
    %c0_11 = arith.constant 0 : index
    %25 = vector.load %arg4[%c3, %c0_11] : memref<4x256xf32, #tpu.memory_space<vmem>>, vector<1x256xf32>
    %26 = vector.extract_strided_slice %6 {offsets = [3, 0], sizes = [8, 256], strides = [1, 1]} : vector<11x256xf32> to vector<8x256xf32>
    %27 = vector.broadcast %25 : vector<1x256xf32> to vector<8x256xf32>
    %28 = arith.mulf %27, %26 : vector<8x256xf32>
    %29 = arith.addf %24, %28 : vector<8x256xf32>
    %30 = arith.negf %29 : vector<8x256xf32>
    %31 = math.exp %30 : vector<8x256xf32>
    %cst = arith.constant 1.000000e+00 : f32
    %32 = vector.broadcast %cst : f32 to vector<8x256xf32>
    %33 = arith.addf %32, %31 : vector<8x256xf32>
    %34 = arith.divf %32, %33 : vector<8x256xf32>
    %35 = arith.mulf %29, %34 : vector<8x256xf32>
    %c0_12 = arith.constant 0 : index
    %c0_13 = arith.constant 0 : index
    %c0_14 = arith.constant 0 : index
    %36 = vector.load %arg6[%c0_12, %c0_13, %c0_14] : memref<1x8x256xf32, #tpu.memory_space<vmem>>, vector<1x8x256xf32>
    %37 = vector.shape_cast %36 : vector<1x8x256xf32> to vector<8x256xf32>
    %38 = vector.shape_cast %35 : vector<8x256xf32> to vector<1x8x256xf32>
    tpu.vector_store %arg6[%c0_12, %c0_13, %c0_14], %38 {strides = array<i32>} : memref<1x8x256xf32, #tpu.memory_space<vmem>>, vector<1x8x256xf32>,
    %39 = vector.extract_strided_slice %6 {offsets = [8, 0], sizes = [3, 256], strides = [1, 1]} : vector<11x256xf32> to vector<3x256xf32>
    %c0_15 = arith.constant 0 : index
    %c0_16 = arith.constant 0 : index
    %40 = vector.load %arg7[%c0_15, %c0_16] : memref<3x256xf32, #tpu.memory_space<vmem>>, vector<3x256xf32>
    tpu.vector_store %arg7[%c0_15, %c0_16], %39 {strides = array<i32>} : memref<3x256xf32, #tpu.memory_space<vmem>>, vector<3x256xf32>,
    return
  }
  func.func @transform_0(%arg0: i32, %arg1: i32, %arg2: i32) -> (i32, i32, i32) {
    %c0_i32 = arith.constant 0 : i32
    return %arg0, %arg2, %arg1 : i32, i32, i32
  }
  func.func @transform_1(%arg0: i32, %arg1: i32, %arg2: i32) -> (i32, i32) {
    %c0_i32 = arith.constant 0 : i32
    %c0_i32_0 = arith.constant 0 : i32
    return %c0_i32, %arg1 : i32, i32
  }
  func.func @transform_2(%arg0: i32, %arg1: i32, %arg2: i32) -> (i32, i32) {
    %c0_i32 = arith.constant 0 : i32
    %c0_i32_0 = arith.constant 0 : i32
    return %c0_i32, %arg1 : i32, i32
  }
  func.func @transform_3(%arg0: i32, %arg1: i32, %arg2: i32) -> (i32, i32, i32) {
    %c0_i32 = arith.constant 0 : i32
    return %arg0, %arg2, %arg1 : i32, i32, i32
  }
}

module attributes {stable_mosaic.version = 11 : i64} {
  func.func @_linear_kernel(%arg0: i32, %arg1: i32, %arg2: i32, %arg3: memref<16x256xf32, #tpu.memory_space<vmem>>, %arg4: memref<256x128xbf16, #tpu.memory_space<vmem>>, %arg5: memref<1x128xf32, #tpu.memory_space<vmem>>, %arg6: memref<16x128xf32, #tpu.memory_space<vmem>>, %arg7: memref<16x128xf32, #tpu.memory_space<vmem>>) attributes {dimension_semantics = [#tpu.dimension_semantics<parallel>, #tpu.dimension_semantics<parallel>, #tpu.dimension_semantics<arbitrary>], iteration_bounds = array<i64: 1, 1, 1>, scalar_prefetch = 0 : i64, scratch_operands = 1 : i64, tpu.core_type = #tpu.core_type<tc>, window_params = [{transform_indices = @transform_0, window_bounds = array<i64: 16, 256>}, {transform_indices = @transform_1, window_bounds = array<i64: 256, 128>}, {transform_indices = @transform_2, window_bounds = array<i64: 1, 128>}, {transform_indices = @transform_3, window_bounds = array<i64: 16, 128>}]} {
    %c0_i32 = arith.constant 0 : i32
    %0 = arith.cmpi eq, %arg2, %c0_i32 : i32
    %1 = arith.extui %0 : i1 to i32
    %c0_i32_0 = arith.constant 0 : i32
    %2 = arith.cmpi ne, %1, %c0_i32_0 : i32
    scf.if %2 {
      %c0_10 = arith.constant 0 : index
      %c0_11 = arith.constant 0 : index
      %13 = vector.load %arg5[%c0_10, %c0_11] : memref<1x128xf32, #tpu.memory_space<vmem>>, vector<1x128xf32>
      %14 = vector.shape_cast %13 : vector<1x128xf32> to vector<1x128xf32>
      %15 = vector.broadcast %14 : vector<1x128xf32> to vector<16x128xf32>
      %c0_12 = arith.constant 0 : index
      %c0_13 = arith.constant 0 : index
      %16 = vector.load %arg7[%c0_12, %c0_13] : memref<16x128xf32, #tpu.memory_space<vmem>>, vector<16x128xf32>
      tpu.vector_store %arg7[%c0_12, %c0_13], %15 {strides = array<i32>} : memref<16x128xf32, #tpu.memory_space<vmem>>, vector<16x128xf32>,
    } else {
    }
    %c0 = arith.constant 0 : index
    %c0_1 = arith.constant 0 : index
    %3 = vector.load %arg7[%c0, %c0_1] : memref<16x128xf32, #tpu.memory_space<vmem>>, vector<16x128xf32>
    %c0_2 = arith.constant 0 : index
    %c0_3 = arith.constant 0 : index
    %4 = vector.load %arg3[%c0_2, %c0_3] : memref<16x256xf32, #tpu.memory_space<vmem>>, vector<16x256xf32>
    %5 = arith.truncf %4 : vector<16x256xf32> to vector<16x256xbf16>
    %c0_4 = arith.constant 0 : index
    %c0_5 = arith.constant 0 : index
    %6 = vector.load %arg4[%c0_4, %c0_5] : memref<256x128xbf16, #tpu.memory_space<vmem>>, vector<256x128xbf16>
    %cst = arith.constant dense<0.000000e+00> : vector<16x128xf32>
    %7 = tpu.matmul %5, %6, %cst {dimension_numbers = #tpu.dot_dimension_numbers<[1], [0], [0], [1], [0, 0, 1, 1], [], []>} : vector<16x256xbf16>, vector<256x128xbf16>, vector<16x128xf32> -> vector<16x128xf32>
    %8 = arith.addf %3, %7 : vector<16x128xf32>
    %c0_6 = arith.constant 0 : index
    %c0_7 = arith.constant 0 : index
    %9 = vector.load %arg7[%c0_6, %c0_7] : memref<16x128xf32, #tpu.memory_space<vmem>>, vector<16x128xf32>
    tpu.vector_store %arg7[%c0_6, %c0_7], %8 {strides = array<i32>} : memref<16x128xf32, #tpu.memory_space<vmem>>, vector<16x128xf32>,
    %c0_i32_8 = arith.constant 0 : i32
    %10 = arith.cmpi eq, %arg2, %c0_i32_8 : i32
    %11 = arith.extui %10 : i1 to i32
    %c0_i32_9 = arith.constant 0 : i32
    %12 = arith.cmpi ne, %11, %c0_i32_9 : i32
    scf.if %12 {
      %c0_10 = arith.constant 0 : index
      %c0_11 = arith.constant 0 : index
      %13 = vector.load %arg7[%c0_10, %c0_11] : memref<16x128xf32, #tpu.memory_space<vmem>>, vector<16x128xf32>
      %c0_12 = arith.constant 0 : index
      %c0_13 = arith.constant 0 : index
      %14 = vector.load %arg6[%c0_12, %c0_13] : memref<16x128xf32, #tpu.memory_space<vmem>>, vector<16x128xf32>
      tpu.vector_store %arg6[%c0_12, %c0_13], %13 {strides = array<i32>} : memref<16x128xf32, #tpu.memory_space<vmem>>, vector<16x128xf32>,
    } else {
    }
    return
  }
  func.func @transform_0(%arg0: i32, %arg1: i32, %arg2: i32) -> (i32, i32) {
    %c0_i32 = arith.constant 0 : i32
    return %arg0, %arg2 : i32, i32
  }
  func.func @transform_1(%arg0: i32, %arg1: i32, %arg2: i32) -> (i32, i32) {
    %c0_i32 = arith.constant 0 : i32
    return %arg2, %arg1 : i32, i32
  }
  func.func @transform_2(%arg0: i32, %arg1: i32, %arg2: i32) -> (i32, i32) {
    %c0_i32 = arith.constant 0 : i32
    %c0_i32_0 = arith.constant 0 : i32
    return %c0_i32, %arg1 : i32, i32
  }
  func.func @transform_3(%arg0: i32, %arg1: i32, %arg2: i32) -> (i32, i32) {
    %c0_i32 = arith.constant 0 : i32
    return %arg0, %arg1 : i32, i32
  }
}

module attributes {stable_mosaic.version = 11 : i64} {
  func.func @_scan_kernel(%arg0: i32, %arg1: i32, %arg2: i32, %arg3: memref<1x8x8xf32, #tpu.memory_space<vmem>>, %arg4: memref<8x256xbf16, #tpu.memory_space<vmem>>, %arg5: memref<1x256xf32, #tpu.memory_space<vmem>>, %arg6: memref<1x1x8x8xf32, #tpu.memory_space<vmem>>, %arg7: memref<1x1x8x8xf32, #tpu.memory_space<vmem>>, %arg8: memref<1x8x256xf32, #tpu.memory_space<vmem>>, %arg9: memref<1x8x256xf32, #tpu.memory_space<vmem>>, %arg10: memref<8x256xf32, #tpu.memory_space<vmem>>, %arg11: memref<1x256xf32, #tpu.memory_space<vmem>>, %arg12: memref<1x8x256xf32, #tpu.memory_space<vmem>>, %arg13: memref<8x256xf32, #tpu.memory_space<vmem>>) attributes {dimension_semantics = [#tpu.dimension_semantics<parallel>, #tpu.dimension_semantics<parallel>, #tpu.dimension_semantics<arbitrary>], iteration_bounds = array<i64: 2, 1, 1>, scalar_prefetch = 0 : i64, scratch_operands = 1 : i64, tpu.core_type = #tpu.core_type<tc>, window_params = [{transform_indices = @transform_0, window_bounds = array<i64: 1, 8, 8>}, {transform_indices = @transform_1, window_bounds = array<i64: 8, 256>}, {transform_indices = @transform_2, window_bounds = array<i64: 1, 256>}, {transform_indices = @transform_3, window_bounds = array<i64: 1, 1, 8, 8>}, {transform_indices = @transform_4, window_bounds = array<i64: 1, 1, 8, 8>}, {transform_indices = @transform_5, window_bounds = array<i64: 1, 8, 256>}, {transform_indices = @transform_6, window_bounds = array<i64: 1, 8, 256>}, {transform_indices = @transform_7, window_bounds = array<i64: 8, 256>}, {transform_indices = @transform_8, window_bounds = array<i64: 1, 256>}, {transform_indices = @transform_9, window_bounds = array<i64: 1, 8, 256>}]} {
    %c0_i32 = arith.constant 0 : i32
    %0 = arith.cmpi eq, %arg2, %c0_i32 : i32
    %1 = arith.extui %0 : i1 to i32
    %c0_i32_0 = arith.constant 0 : i32
    %2 = arith.cmpi ne, %1, %c0_i32_0 : i32
    scf.if %2 {
      %cst_44 = arith.constant 0.000000e+00 : f32
      %176 = vector.broadcast %cst_44 : f32 to vector<8x256xf32>
      %c0_45 = arith.constant 0 : index
      %c0_46 = arith.constant 0 : index
      %177 = vector.load %arg13[%c0_45, %c0_46] : memref<8x256xf32, #tpu.memory_space<vmem>>, vector<8x256xf32>
      tpu.vector_store %arg13[%c0_45, %c0_46], %176 {strides = array<i32>} : memref<8x256xf32, #tpu.memory_space<vmem>>, vector<8x256xf32>,
    } else {
    }
    %c0 = arith.constant 0 : index
    %c0_1 = arith.constant 0 : index
    %3 = vector.load %arg10[%c0, %c0_1] : memref<8x256xf32, #tpu.memory_space<vmem>>, vector<8x256xf32>
    %c0_2 = arith.constant 0 : index
    %c0_3 = arith.constant 0 : index
    %4 = vector.load %arg11[%c0_2, %c0_3] : memref<1x256xf32, #tpu.memory_space<vmem>>, vector<1x256xf32>
    %c0_4 = arith.constant 0 : index
    %c0_5 = arith.constant 0 : index
    %c0_6 = arith.constant 0 : index
    %c0_7 = arith.constant 0 : index
    %5 = vector.load %arg6[%c0_4, %c0_5, %c0_6, %c0_7] : memref<1x1x8x8xf32, #tpu.memory_space<vmem>>, vector<1x1x8x8xf32>
    %6 = vector.shape_cast %5 : vector<1x1x8x8xf32> to vector<8x8xf32>
    %c0_8 = arith.constant 0 : index
    %c0_9 = arith.constant 0 : index
    %c0_10 = arith.constant 0 : index
    %c0_11 = arith.constant 0 : index
    %7 = vector.load %arg7[%c0_8, %c0_9, %c0_10, %c0_11] : memref<1x1x8x8xf32, #tpu.memory_space<vmem>>, vector<1x1x8x8xf32>
    %8 = vector.shape_cast %7 : vector<1x1x8x8xf32> to vector<8x8xf32>
    %c0_12 = arith.constant 0 : index
    %c0_13 = arith.constant 0 : index
    %9 = vector.load %arg4[%c0_12, %c0_13] : memref<8x256xbf16, #tpu.memory_space<vmem>>, vector<8x256xbf16>
    %c0_14 = arith.constant 0 : index
    %c0_15 = arith.constant 0 : index
    %10 = vector.load %arg5[%c0_14, %c0_15] : memref<1x256xf32, #tpu.memory_space<vmem>>, vector<1x256xf32>
    %c0_16 = arith.constant 0 : index
    %c0_17 = arith.constant 0 : index
    %11 = vector.load %arg13[%c0_16, %c0_17] : memref<8x256xf32, #tpu.memory_space<vmem>>, vector<8x256xf32>
    %c0_18 = arith.constant 0 : index
    %c0_19 = arith.constant 0 : index
    %c0_20 = arith.constant 0 : index
    %12 = vector.load %arg8[%c0_18, %c0_19, %c0_20] : memref<1x8x256xf32, #tpu.memory_space<vmem>>, vector<1x8x256xf32>
    %13 = vector.shape_cast %12 : vector<1x8x256xf32> to vector<8x256xf32>
    %c0_21 = arith.constant 0 : index
    %c0_22 = arith.constant 0 : index
    %c0_23 = arith.constant 0 : index
    %14 = vector.load %arg9[%c0_21, %c0_22, %c0_23] : memref<1x8x256xf32, #tpu.memory_space<vmem>>, vector<1x8x256xf32>
    %15 = vector.shape_cast %14 : vector<1x8x256xf32> to vector<8x256xf32>
    %c0_24 = arith.constant 0 : index
    %c0_25 = arith.constant 0 : index
    %c0_26 = arith.constant 0 : index
    %16 = vector.load %arg3[%c0_24, %c0_25, %c0_26] : memref<1x8x8xf32, #tpu.memory_space<vmem>>, vector<1x8x8xf32>
    %17 = vector.shape_cast %16 : vector<1x8x8xf32> to vector<8x8xf32>
    %18 = arith.truncf %17 : vector<8x8xf32> to vector<8x8xbf16>
    %cst = arith.constant dense<0.000000e+00> : vector<8x256xf32>
    %19 = tpu.matmul %18, %9, %cst {dimension_numbers = #tpu.dot_dimension_numbers<[1], [0], [0], [1], [0, 0, 1, 1], [], []>} : vector<8x8xbf16>, vector<8x256xbf16>, vector<8x256xf32> -> vector<8x256xf32>
    %20 = vector.broadcast %10 : vector<1x256xf32> to vector<8x256xf32>
    %21 = arith.addf %19, %20 : vector<8x256xf32>
    %cst_27 = arith.constant 0.000000e+00 : f32
    %22 = vector.broadcast %cst_27 : f32 to vector<8x256xf32>
    %23 = arith.maximumf %21, %22 : vector<8x256xf32>
    %24 = math.absf %21 : vector<8x256xf32>
    %cst_28 = arith.constant 0.000000e+00 : f32
    %25 = vector.broadcast %cst_28 : f32 to vector<8x256xf32>
    %26 = arith.subf %25, %24 : vector<8x256xf32>
    %27 = math.exp %26 : vector<8x256xf32>
    %cst_29 = arith.constant 1.000000e+00 : f32
    %28 = vector.broadcast %cst_29 : f32 to vector<8x256xf32>
    %29 = arith.addf %28, %27 : vector<8x256xf32>
    %30 = math.log %29 : vector<8x256xf32>
    %31 = arith.addf %23, %30 : vector<8x256xf32>
    %32 = arith.mulf %31, %13 : vector<8x256xf32>
    %33 = vector.extract_strided_slice %31 {offsets = [0, 0], sizes = [1, 256], strides = [1, 1]} : vector<8x256xf32> to vector<1x256xf32>
    %34 = vector.broadcast %33 : vector<1x256xf32> to vector<8x256xf32>
    %35 = arith.mulf %34, %3 : vector<8x256xf32>
    %36 = math.exp %35 : vector<8x256xf32>
    %37 = vector.extract_strided_slice %6 {offsets = [0, 0], sizes = [8, 1], strides = [1, 1]} : vector<8x8xf32> to vector<8x1xf32>
    %38 = vector.extract_strided_slice %32 {offsets = [0, 0], sizes = [1, 256], strides = [1, 1]} : vector<8x256xf32> to vector<1x256xf32>
    %39 = vector.broadcast %37 : vector<8x1xf32> to vector<8x256xf32>
    %40 = vector.broadcast %38 : vector<1x256xf32> to vector<8x256xf32>
    %41 = arith.mulf %39, %40 : vector<8x256xf32>
    %42 = arith.mulf %36, %11 : vector<8x256xf32>
    %43 = arith.addf %42, %41 : vector<8x256xf32>
    %44 = vector.extract_strided_slice %8 {offsets = [0, 0], sizes = [8, 1], strides = [1, 1]} : vector<8x8xf32> to vector<8x1xf32>
    %45 = vector.broadcast %44 : vector<8x1xf32> to vector<8x256xf32>
    %46 = arith.mulf %45, %43 : vector<8x256xf32>
    %cst_30 = arith.constant dense<0.000000e+00> : vector<256xf32>
    %47 = vector.multi_reduction <add>, %46, %cst_30 [0] : vector<8x256xf32> to vector<256xf32>
    %48 = vector.shape_cast %47 : vector<256xf32> to vector<1x256xf32>
    %49 = vector.extract_strided_slice %31 {offsets = [1, 0], sizes = [1, 256], strides = [1, 1]} : vector<8x256xf32> to vector<1x256xf32>
    %50 = vector.broadcast %49 : vector<1x256xf32> to vector<8x256xf32>
    %51 = arith.mulf %50, %3 : vector<8x256xf32>
    %52 = math.exp %51 : vector<8x256xf32>
    %53 = vector.extract_strided_slice %6 {offsets = [0, 1], sizes = [8, 1], strides = [1, 1]} : vector<8x8xf32> to vector<8x1xf32>
    %54 = vector.extract_strided_slice %32 {offsets = [1, 0], sizes = [1, 256], strides = [1, 1]} : vector<8x256xf32> to vector<1x256xf32>
    %55 = vector.broadcast %53 : vector<8x1xf32> to vector<8x256xf32>
    %56 = vector.broadcast %54 : vector<1x256xf32> to vector<8x256xf32>
    %57 = arith.mulf %55, %56 : vector<8x256xf32>
    %58 = arith.mulf %52, %43 : vector<8x256xf32>
    %59 = arith.addf %58, %57 : vector<8x256xf32>
    %60 = vector.extract_strided_slice %8 {offsets = [0, 1], sizes = [8, 1], strides = [1, 1]} : vector<8x8xf32> to vector<8x1xf32>
    %61 = vector.broadcast %60 : vector<8x1xf32> to vector<8x256xf32>
    %62 = arith.mulf %61, %59 : vector<8x256xf32>
    %cst_31 = arith.constant dense<0.000000e+00> : vector<256xf32>
    %63 = vector.multi_reduction <add>, %62, %cst_31 [0] : vector<8x256xf32> to vector<256xf32>
    %64 = vector.shape_cast %63 : vector<256xf32> to vector<1x256xf32>
    %65 = vector.extract_strided_slice %31 {offsets = [2, 0], sizes = [1, 256], strides = [1, 1]} : vector<8x256xf32> to vector<1x256xf32>
    %66 = vector.broadcast %65 : vector<1x256xf32> to vector<8x256xf32>
    %67 = arith.mulf %66, %3 : vector<8x256xf32>
    %68 = math.exp %67 : vector<8x256xf32>
    %69 = vector.extract_strided_slice %6 {offsets = [0, 2], sizes = [8, 1], strides = [1, 1]} : vector<8x8xf32> to vector<8x1xf32>
    %70 = vector.extract_strided_slice %32 {offsets = [2, 0], sizes = [1, 256], strides = [1, 1]} : vector<8x256xf32> to vector<1x256xf32>
    %71 = vector.broadcast %69 : vector<8x1xf32> to vector<8x256xf32>
    %72 = vector.broadcast %70 : vector<1x256xf32> to vector<8x256xf32>
    %73 = arith.mulf %71, %72 : vector<8x256xf32>
    %74 = arith.mulf %68, %59 : vector<8x256xf32>
    %75 = arith.addf %74, %73 : vector<8x256xf32>
    %76 = vector.extract_strided_slice %8 {offsets = [0, 2], sizes = [8, 1], strides = [1, 1]} : vector<8x8xf32> to vector<8x1xf32>
    %77 = vector.broadcast %76 : vector<8x1xf32> to vector<8x256xf32>
    %78 = arith.mulf %77, %75 : vector<8x256xf32>
    %cst_32 = arith.constant dense<0.000000e+00> : vector<256xf32>
    %79 = vector.multi_reduction <add>, %78, %cst_32 [0] : vector<8x256xf32> to vector<256xf32>
    %80 = vector.shape_cast %79 : vector<256xf32> to vector<1x256xf32>
    %81 = vector.extract_strided_slice %31 {offsets = [3, 0], sizes = [1, 256], strides = [1, 1]} : vector<8x256xf32> to vector<1x256xf32>
    %82 = vector.broadcast %81 : vector<1x256xf32> to vector<8x256xf32>
    %83 = arith.mulf %82, %3 : vector<8x256xf32>
    %84 = math.exp %83 : vector<8x256xf32>
    %85 = vector.extract_strided_slice %6 {offsets = [0, 3], sizes = [8, 1], strides = [1, 1]} : vector<8x8xf32> to vector<8x1xf32>
    %86 = vector.extract_strided_slice %32 {offsets = [3, 0], sizes = [1, 256], strides = [1, 1]} : vector<8x256xf32> to vector<1x256xf32>
    %87 = vector.broadcast %85 : vector<8x1xf32> to vector<8x256xf32>
    %88 = vector.broadcast %86 : vector<1x256xf32> to vector<8x256xf32>
    %89 = arith.mulf %87, %88 : vector<8x256xf32>
    %90 = arith.mulf %84, %75 : vector<8x256xf32>
    %91 = arith.addf %90, %89 : vector<8x256xf32>
    %92 = vector.extract_strided_slice %8 {offsets = [0, 3], sizes = [8, 1], strides = [1, 1]} : vector<8x8xf32> to vector<8x1xf32>
    %93 = vector.broadcast %92 : vector<8x1xf32> to vector<8x256xf32>
    %94 = arith.mulf %93, %91 : vector<8x256xf32>
    %cst_33 = arith.constant dense<0.000000e+00> : vector<256xf32>
    %95 = vector.multi_reduction <add>, %94, %cst_33 [0] : vector<8x256xf32> to vector<256xf32>
    %96 = vector.shape_cast %95 : vector<256xf32> to vector<1x256xf32>
    %97 = vector.extract_strided_slice %31 {offsets = [4, 0], sizes = [1, 256], strides = [1, 1]} : vector<8x256xf32> to vector<1x256xf32>
    %98 = vector.broadcast %97 : vector<1x256xf32> to vector<8x256xf32>
    %99 = arith.mulf %98, %3 : vector<8x256xf32>
    %100 = math.exp %99 : vector<8x256xf32>
    %101 = vector.extract_strided_slice %6 {offsets = [0, 4], sizes = [8, 1], strides = [1, 1]} : vector<8x8xf32> to vector<8x1xf32>
    %102 = vector.extract_strided_slice %32 {offsets = [4, 0], sizes = [1, 256], strides = [1, 1]} : vector<8x256xf32> to vector<1x256xf32>
    %103 = vector.broadcast %101 : vector<8x1xf32> to vector<8x256xf32>
    %104 = vector.broadcast %102 : vector<1x256xf32> to vector<8x256xf32>
    %105 = arith.mulf %103, %104 : vector<8x256xf32>
    %106 = arith.mulf %100, %91 : vector<8x256xf32>
    %107 = arith.addf %106, %105 : vector<8x256xf32>
    %108 = vector.extract_strided_slice %8 {offsets = [0, 4], sizes = [8, 1], strides = [1, 1]} : vector<8x8xf32> to vector<8x1xf32>
    %109 = vector.broadcast %108 : vector<8x1xf32> to vector<8x256xf32>
    %110 = arith.mulf %109, %107 : vector<8x256xf32>
    %cst_34 = arith.constant dense<0.000000e+00> : vector<256xf32>
    %111 = vector.multi_reduction <add>, %110, %cst_34 [0] : vector<8x256xf32> to vector<256xf32>
    %112 = vector.shape_cast %111 : vector<256xf32> to vector<1x256xf32>
    %113 = vector.extract_strided_slice %31 {offsets = [5, 0], sizes = [1, 256], strides = [1, 1]} : vector<8x256xf32> to vector<1x256xf32>
    %114 = vector.broadcast %113 : vector<1x256xf32> to vector<8x256xf32>
    %115 = arith.mulf %114, %3 : vector<8x256xf32>
    %116 = math.exp %115 : vector<8x256xf32>
    %117 = vector.extract_strided_slice %6 {offsets = [0, 5], sizes = [8, 1], strides = [1, 1]} : vector<8x8xf32> to vector<8x1xf32>
    %118 = vector.extract_strided_slice %32 {offsets = [5, 0], sizes = [1, 256], strides = [1, 1]} : vector<8x256xf32> to vector<1x256xf32>
    %119 = vector.broadcast %117 : vector<8x1xf32> to vector<8x256xf32>
    %120 = vector.broadcast %118 : vector<1x256xf32> to vector<8x256xf32>
    %121 = arith.mulf %119, %120 : vector<8x256xf32>
    %122 = arith.mulf %116, %107 : vector<8x256xf32>
    %123 = arith.addf %122, %121 : vector<8x256xf32>
    %124 = vector.extract_strided_slice %8 {offsets = [0, 5], sizes = [8, 1], strides = [1, 1]} : vector<8x8xf32> to vector<8x1xf32>
    %125 = vector.broadcast %124 : vector<8x1xf32> to vector<8x256xf32>
    %126 = arith.mulf %125, %123 : vector<8x256xf32>
    %cst_35 = arith.constant dense<0.000000e+00> : vector<256xf32>
    %127 = vector.multi_reduction <add>, %126, %cst_35 [0] : vector<8x256xf32> to vector<256xf32>
    %128 = vector.shape_cast %127 : vector<256xf32> to vector<1x256xf32>
    %129 = vector.extract_strided_slice %31 {offsets = [6, 0], sizes = [1, 256], strides = [1, 1]} : vector<8x256xf32> to vector<1x256xf32>
    %130 = vector.broadcast %129 : vector<1x256xf32> to vector<8x256xf32>
    %131 = arith.mulf %130, %3 : vector<8x256xf32>
    %132 = math.exp %131 : vector<8x256xf32>
    %133 = vector.extract_strided_slice %6 {offsets = [0, 6], sizes = [8, 1], strides = [1, 1]} : vector<8x8xf32> to vector<8x1xf32>
    %134 = vector.extract_strided_slice %32 {offsets = [6, 0], sizes = [1, 256], strides = [1, 1]} : vector<8x256xf32> to vector<1x256xf32>
    %135 = vector.broadcast %133 : vector<8x1xf32> to vector<8x256xf32>
    %136 = vector.broadcast %134 : vector<1x256xf32> to vector<8x256xf32>
    %137 = arith.mulf %135, %136 : vector<8x256xf32>
    %138 = arith.mulf %132, %123 : vector<8x256xf32>
    %139 = arith.addf %138, %137 : vector<8x256xf32>
    %140 = vector.extract_strided_slice %8 {offsets = [0, 6], sizes = [8, 1], strides = [1, 1]} : vector<8x8xf32> to vector<8x1xf32>
    %141 = vector.broadcast %140 : vector<8x1xf32> to vector<8x256xf32>
    %142 = arith.mulf %141, %139 : vector<8x256xf32>
    %cst_36 = arith.constant dense<0.000000e+00> : vector<256xf32>
    %143 = vector.multi_reduction <add>, %142, %cst_36 [0] : vector<8x256xf32> to vector<256xf32>
    %144 = vector.shape_cast %143 : vector<256xf32> to vector<1x256xf32>
    %145 = vector.extract_strided_slice %31 {offsets = [7, 0], sizes = [1, 256], strides = [1, 1]} : vector<8x256xf32> to vector<1x256xf32>
    %146 = vector.broadcast %145 : vector<1x256xf32> to vector<8x256xf32>
    %147 = arith.mulf %146, %3 : vector<8x256xf32>
    %148 = math.exp %147 : vector<8x256xf32>
    %149 = vector.extract_strided_slice %6 {offsets = [0, 7], sizes = [8, 1], strides = [1, 1]} : vector<8x8xf32> to vector<8x1xf32>
    %150 = vector.extract_strided_slice %32 {offsets = [7, 0], sizes = [1, 256], strides = [1, 1]} : vector<8x256xf32> to vector<1x256xf32>
    %151 = vector.broadcast %149 : vector<8x1xf32> to vector<8x256xf32>
    %152 = vector.broadcast %150 : vector<1x256xf32> to vector<8x256xf32>
    %153 = arith.mulf %151, %152 : vector<8x256xf32>
    %154 = arith.mulf %148, %139 : vector<8x256xf32>
    %155 = arith.addf %154, %153 : vector<8x256xf32>
    %156 = vector.extract_strided_slice %8 {offsets = [0, 7], sizes = [8, 1], strides = [1, 1]} : vector<8x8xf32> to vector<8x1xf32>
    %157 = vector.broadcast %156 : vector<8x1xf32> to vector<8x256xf32>
    %158 = arith.mulf %157, %155 : vector<8x256xf32>
    %cst_37 = arith.constant dense<0.000000e+00> : vector<256xf32>
    %159 = vector.multi_reduction <add>, %158, %cst_37 [0] : vector<8x256xf32> to vector<256xf32>
    %160 = vector.shape_cast %159 : vector<256xf32> to vector<1x256xf32>
    %161 = tpu.concatenate %48, %64, %80, %96, %112, %128, %144, %160 in 0 : vector<1x256xf32>, vector<1x256xf32>, vector<1x256xf32>, vector<1x256xf32>, vector<1x256xf32>, vector<1x256xf32>, vector<1x256xf32>, vector<1x256xf32> -> vector<8x256xf32>
    %162 = vector.broadcast %4 : vector<1x256xf32> to vector<8x256xf32>
    %163 = arith.mulf %162, %13 : vector<8x256xf32>
    %164 = arith.addf %161, %163 : vector<8x256xf32>
    %165 = arith.negf %15 : vector<8x256xf32>
    %166 = math.exp %165 : vector<8x256xf32>
    %cst_38 = arith.constant 1.000000e+00 : f32
    %167 = vector.broadcast %cst_38 : f32 to vector<8x256xf32>
    %168 = arith.addf %167, %166 : vector<8x256xf32>
    %169 = arith.divf %167, %168 : vector<8x256xf32>
    %170 = arith.mulf %15, %169 : vector<8x256xf32>
    %171 = arith.mulf %164, %170 : vector<8x256xf32>
    %c0_39 = arith.constant 0 : index
    %c0_40 = arith.constant 0 : index
    %c0_41 = arith.constant 0 : index
    %172 = vector.load %arg12[%c0_39, %c0_40, %c0_41] : memref<1x8x256xf32, #tpu.memory_space<vmem>>, vector<1x8x256xf32>
    %173 = vector.shape_cast %172 : vector<1x8x256xf32> to vector<8x256xf32>
    %174 = vector.shape_cast %171 : vector<8x256xf32> to vector<1x8x256xf32>
    tpu.vector_store %arg12[%c0_39, %c0_40, %c0_41], %174 {strides = array<i32>} : memref<1x8x256xf32, #tpu.memory_space<vmem>>, vector<1x8x256xf32>,
    %c0_42 = arith.constant 0 : index
    %c0_43 = arith.constant 0 : index
    %175 = vector.load %arg13[%c0_42, %c0_43] : memref<8x256xf32, #tpu.memory_space<vmem>>, vector<8x256xf32>
    tpu.vector_store %arg13[%c0_42, %c0_43], %155 {strides = array<i32>} : memref<8x256xf32, #tpu.memory_space<vmem>>, vector<8x256xf32>,
    return
  }
  func.func @transform_0(%arg0: i32, %arg1: i32, %arg2: i32) -> (i32, i32, i32) {
    %c0_i32 = arith.constant 0 : i32
    %c0_i32_0 = arith.constant 0 : i32
    return %arg0, %arg2, %c0_i32 : i32, i32, i32
  }
  func.func @transform_1(%arg0: i32, %arg1: i32, %arg2: i32) -> (i32, i32) {
    %c0_i32 = arith.constant 0 : i32
    %c0_i32_0 = arith.constant 0 : i32
    return %c0_i32, %arg1 : i32, i32
  }
  func.func @transform_2(%arg0: i32, %arg1: i32, %arg2: i32) -> (i32, i32) {
    %c0_i32 = arith.constant 0 : i32
    %c0_i32_0 = arith.constant 0 : i32
    return %c0_i32, %arg1 : i32, i32
  }
  func.func @transform_3(%arg0: i32, %arg1: i32, %arg2: i32) -> (i32, i32, i32, i32) {
    %c0_i32 = arith.constant 0 : i32
    %c0_i32_0 = arith.constant 0 : i32
    %c0_i32_1 = arith.constant 0 : i32
    return %arg0, %arg2, %c0_i32, %c0_i32_0 : i32, i32, i32, i32
  }
  func.func @transform_4(%arg0: i32, %arg1: i32, %arg2: i32) -> (i32, i32, i32, i32) {
    %c0_i32 = arith.constant 0 : i32
    %c0_i32_0 = arith.constant 0 : i32
    %c0_i32_1 = arith.constant 0 : i32
    return %arg0, %arg2, %c0_i32, %c0_i32_0 : i32, i32, i32, i32
  }
  func.func @transform_5(%arg0: i32, %arg1: i32, %arg2: i32) -> (i32, i32, i32) {
    %c0_i32 = arith.constant 0 : i32
    return %arg0, %arg2, %arg1 : i32, i32, i32
  }
  func.func @transform_6(%arg0: i32, %arg1: i32, %arg2: i32) -> (i32, i32, i32) {
    %c0_i32 = arith.constant 0 : i32
    return %arg0, %arg2, %arg1 : i32, i32, i32
  }
  func.func @transform_7(%arg0: i32, %arg1: i32, %arg2: i32) -> (i32, i32) {
    %c0_i32 = arith.constant 0 : i32
    %c0_i32_0 = arith.constant 0 : i32
    return %c0_i32, %arg1 : i32, i32
  }
  func.func @transform_8(%arg0: i32, %arg1: i32, %arg2: i32) -> (i32, i32) {
    %c0_i32 = arith.constant 0 : i32
    %c0_i32_0 = arith.constant 0 : i32
    return %c0_i32, %arg1 : i32, i32
  }
  func.func @transform_9(%arg0: i32, %arg1: i32, %arg2: i32) -> (i32, i32, i32) {
    %c0_i32 = arith.constant 0 : i32
    return %arg0, %arg2, %arg1 : i32, i32, i32
  }
}

module attributes {stable_mosaic.version = 11 : i64} {
  func.func @_linear2_kernel(%arg0: i32, %arg1: i32, %arg2: i32, %arg3: memref<16x128xf32, #tpu.memory_space<vmem>>, %arg4: memref<16x128xf32, #tpu.memory_space<vmem>>, %arg5: memref<128x128xbf16, #tpu.memory_space<vmem>>, %arg6: memref<128x128xbf16, #tpu.memory_space<vmem>>, %arg7: memref<1x128xf32, #tpu.memory_space<vmem>>, %arg8: memref<16x128xf32, #tpu.memory_space<vmem>>, %arg9: memref<16x128xf32, #tpu.memory_space<vmem>>) attributes {dimension_semantics = [#tpu.dimension_semantics<parallel>, #tpu.dimension_semantics<parallel>, #tpu.dimension_semantics<arbitrary>], iteration_bounds = array<i64: 1, 1, 1>, scalar_prefetch = 0 : i64, scratch_operands = 1 : i64, tpu.core_type = #tpu.core_type<tc>, window_params = [{transform_indices = @transform_0, window_bounds = array<i64: 16, 128>}, {transform_indices = @transform_1, window_bounds = array<i64: 16, 128>}, {transform_indices = @transform_2, window_bounds = array<i64: 128, 128>}, {transform_indices = @transform_3, window_bounds = array<i64: 128, 128>}, {transform_indices = @transform_4, window_bounds = array<i64: 1, 128>}, {transform_indices = @transform_5, window_bounds = array<i64: 16, 128>}]} {
    %c0_i32 = arith.constant 0 : i32
    %0 = arith.cmpi eq, %arg2, %c0_i32 : i32
    %1 = arith.extui %0 : i1 to i32
    %c0_i32_0 = arith.constant 0 : i32
    %2 = arith.cmpi ne, %1, %c0_i32_0 : i32
    scf.if %2 {
      %c0_15 = arith.constant 0 : index
      %c0_16 = arith.constant 0 : index
      %18 = vector.load %arg7[%c0_15, %c0_16] : memref<1x128xf32, #tpu.memory_space<vmem>>, vector<1x128xf32>
      %19 = vector.shape_cast %18 : vector<1x128xf32> to vector<1x128xf32>
      %20 = vector.broadcast %19 : vector<1x128xf32> to vector<16x128xf32>
      %c0_17 = arith.constant 0 : index
      %c0_18 = arith.constant 0 : index
      %21 = vector.load %arg9[%c0_17, %c0_18] : memref<16x128xf32, #tpu.memory_space<vmem>>, vector<16x128xf32>
      tpu.vector_store %arg9[%c0_17, %c0_18], %20 {strides = array<i32>} : memref<16x128xf32, #tpu.memory_space<vmem>>, vector<16x128xf32>,
    } else {
    }
    %c0 = arith.constant 0 : index
    %c0_1 = arith.constant 0 : index
    %3 = vector.load %arg9[%c0, %c0_1] : memref<16x128xf32, #tpu.memory_space<vmem>>, vector<16x128xf32>
    %c0_2 = arith.constant 0 : index
    %c0_3 = arith.constant 0 : index
    %4 = vector.load %arg3[%c0_2, %c0_3] : memref<16x128xf32, #tpu.memory_space<vmem>>, vector<16x128xf32>
    %5 = arith.truncf %4 : vector<16x128xf32> to vector<16x128xbf16>
    %c0_4 = arith.constant 0 : index
    %c0_5 = arith.constant 0 : index
    %6 = vector.load %arg5[%c0_4, %c0_5] : memref<128x128xbf16, #tpu.memory_space<vmem>>, vector<128x128xbf16>
    %cst = arith.constant dense<0.000000e+00> : vector<16x128xf32>
    %7 = tpu.matmul %5, %6, %cst {dimension_numbers = #tpu.dot_dimension_numbers<[1], [0], [0], [1], [0, 0, 1, 1], [], []>} : vector<16x128xbf16>, vector<128x128xbf16>, vector<16x128xf32> -> vector<16x128xf32>
    %c0_6 = arith.constant 0 : index
    %c0_7 = arith.constant 0 : index
    %8 = vector.load %arg4[%c0_6, %c0_7] : memref<16x128xf32, #tpu.memory_space<vmem>>, vector<16x128xf32>
    %9 = arith.truncf %8 : vector<16x128xf32> to vector<16x128xbf16>
    %c0_8 = arith.constant 0 : index
    %c0_9 = arith.constant 0 : index
    %10 = vector.load %arg6[%c0_8, %c0_9] : memref<128x128xbf16, #tpu.memory_space<vmem>>, vector<128x128xbf16>
    %cst_10 = arith.constant dense<0.000000e+00> : vector<16x128xf32>
    %11 = tpu.matmul %9, %10, %cst_10 {dimension_numbers = #tpu.dot_dimension_numbers<[1], [0], [0], [1], [0, 0, 1, 1], [], []>} : vector<16x128xbf16>, vector<128x128xbf16>, vector<16x128xf32> -> vector<16x128xf32>
    %12 = arith.addf %7, %11 : vector<16x128xf32>
    %13 = arith.addf %3, %12 : vector<16x128xf32>
    %c0_11 = arith.constant 0 : index
    %c0_12 = arith.constant 0 : index
    %14 = vector.load %arg9[%c0_11, %c0_12] : memref<16x128xf32, #tpu.memory_space<vmem>>, vector<16x128xf32>
    tpu.vector_store %arg9[%c0_11, %c0_12], %13 {strides = array<i32>} : memref<16x128xf32, #tpu.memory_space<vmem>>, vector<16x128xf32>,
    %c0_i32_13 = arith.constant 0 : i32
    %15 = arith.cmpi eq, %arg2, %c0_i32_13 : i32
    %16 = arith.extui %15 : i1 to i32
    %c0_i32_14 = arith.constant 0 : i32
    %17 = arith.cmpi ne, %16, %c0_i32_14 : i32
    scf.if %17 {
      %c0_15 = arith.constant 0 : index
      %c0_16 = arith.constant 0 : index
      %18 = vector.load %arg9[%c0_15, %c0_16] : memref<16x128xf32, #tpu.memory_space<vmem>>, vector<16x128xf32>
      %19 = arith.negf %18 : vector<16x128xf32>
      %20 = math.exp %19 : vector<16x128xf32>
      %cst_17 = arith.constant 1.000000e+00 : f32
      %21 = vector.broadcast %cst_17 : f32 to vector<16x128xf32>
      %22 = arith.addf %21, %20 : vector<16x128xf32>
      %23 = arith.divf %21, %22 : vector<16x128xf32>
      %24 = arith.mulf %18, %23 : vector<16x128xf32>
      %c0_18 = arith.constant 0 : index
      %c0_19 = arith.constant 0 : index
      %25 = vector.load %arg8[%c0_18, %c0_19] : memref<16x128xf32, #tpu.memory_space<vmem>>, vector<16x128xf32>
      tpu.vector_store %arg8[%c0_18, %c0_19], %24 {strides = array<i32>} : memref<16x128xf32, #tpu.memory_space<vmem>>, vector<16x128xf32>,
    } else {
    }
    return
  }
  func.func @transform_0(%arg0: i32, %arg1: i32, %arg2: i32) -> (i32, i32) {
    %c0_i32 = arith.constant 0 : i32
    return %arg0, %arg2 : i32, i32
  }
  func.func @transform_1(%arg0: i32, %arg1: i32, %arg2: i32) -> (i32, i32) {
    %c0_i32 = arith.constant 0 : i32
    return %arg0, %arg2 : i32, i32
  }
  func.func @transform_2(%arg0: i32, %arg1: i32, %arg2: i32) -> (i32, i32) {
    %c0_i32 = arith.constant 0 : i32
    return %arg2, %arg1 : i32, i32
  }
  func.func @transform_3(%arg0: i32, %arg1: i32, %arg2: i32) -> (i32, i32) {
    %c0_i32 = arith.constant 0 : i32
    return %arg2, %arg1 : i32, i32
  }
  func.func @transform_4(%arg0: i32, %arg1: i32, %arg2: i32) -> (i32, i32) {
    %c0_i32 = arith.constant 0 : i32
    %c0_i32_0 = arith.constant 0 : i32
    return %c0_i32, %arg1 : i32, i32
  }
  func.func @transform_5(%arg0: i32, %arg1: i32, %arg2: i32) -> (i32, i32) {
    %c0_i32 = arith.constant 0 : i32
    return %arg0, %arg1 : i32, i32
  }
}

module attributes {stable_mosaic.version = 11 : i64} {
  func.func @_conv_silu_kernel(%arg0: i32, %arg1: i32, %arg2: i32, %arg3: memref<1x8x256xf32, #tpu.memory_space<vmem>>, %arg4: memref<4x256xf32, #tpu.memory_space<vmem>>, %arg5: memref<1x256xf32, #tpu.memory_space<vmem>>, %arg6: memref<1x8x256xf32, #tpu.memory_space<vmem>>, %arg7: memref<3x256xf32, #tpu.memory_space<vmem>>) attributes {dimension_semantics = [#tpu.dimension_semantics<parallel>, #tpu.dimension_semantics<parallel>, #tpu.dimension_semantics<arbitrary>], iteration_bounds = array<i64: 2, 1, 1>, scalar_prefetch = 0 : i64, scratch_operands = 1 : i64, tpu.core_type = #tpu.core_type<tc>, window_params = [{transform_indices = @transform_0, window_bounds = array<i64: 1, 8, 256>}, {transform_indices = @transform_1, window_bounds = array<i64: 4, 256>}, {transform_indices = @transform_2, window_bounds = array<i64: 1, 256>}, {transform_indices = @transform_3, window_bounds = array<i64: 1, 8, 256>}]} {
    %c0_i32 = arith.constant 0 : i32
    %0 = arith.cmpi eq, %arg2, %c0_i32 : i32
    %1 = arith.extui %0 : i1 to i32
    %c0_i32_0 = arith.constant 0 : i32
    %2 = arith.cmpi ne, %1, %c0_i32_0 : i32
    scf.if %2 {
      %cst_17 = arith.constant 0.000000e+00 : f32
      %41 = vector.broadcast %cst_17 : f32 to vector<3x256xf32>
      %c0_18 = arith.constant 0 : index
      %c0_19 = arith.constant 0 : index
      %42 = vector.load %arg7[%c0_18, %c0_19] : memref<3x256xf32, #tpu.memory_space<vmem>>, vector<3x256xf32>
      tpu.vector_store %arg7[%c0_18, %c0_19], %41 {strides = array<i32>} : memref<3x256xf32, #tpu.memory_space<vmem>>, vector<3x256xf32>,
    } else {
    }
    %c0 = arith.constant 0 : index
    %c0_1 = arith.constant 0 : index
    %c0_2 = arith.constant 0 : index
    %3 = vector.load %arg3[%c0, %c0_1, %c0_2] : memref<1x8x256xf32, #tpu.memory_space<vmem>>, vector<1x8x256xf32>
    %4 = vector.shape_cast %3 : vector<1x8x256xf32> to vector<8x256xf32>
    %c0_3 = arith.constant 0 : index
    %c0_4 = arith.constant 0 : index
    %5 = vector.load %arg7[%c0_3, %c0_4] : memref<3x256xf32, #tpu.memory_space<vmem>>, vector<3x256xf32>
    %6 = tpu.concatenate %5, %4 in 0 : vector<3x256xf32>, vector<8x256xf32> -> vector<11x256xf32>
    %c0_5 = arith.constant 0 : index
    %c0_6 = arith.constant 0 : index
    %7 = vector.load %arg5[%c0_5, %c0_6] : memref<1x256xf32, #tpu.memory_space<vmem>>, vector<1x256xf32>
    %8 = vector.shape_cast %7 : vector<1x256xf32> to vector<1x256xf32>
    %9 = vector.broadcast %8 : vector<1x256xf32> to vector<8x256xf32>
    %c0_7 = arith.constant 0 : index
    %c0_8 = arith.constant 0 : index
    %10 = vector.load %arg4[%c0_7, %c0_8] : memref<4x256xf32, #tpu.memory_space<vmem>>, vector<1x256xf32>
    %11 = vector.extract_strided_slice %6 {offsets = [0, 0], sizes = [8, 256], strides = [1, 1]} : vector<11x256xf32> to vector<8x256xf32>
    %12 = vector.broadcast %10 : vector<1x256xf32> to vector<8x256xf32>
    %13 = arith.mulf %12, %11 : vector<8x256xf32>
    %14 = arith.addf %9, %13 : vector<8x256xf32>
    %c1 = arith.constant 1 : index
    %c0_9 = arith.constant 0 : index
    %15 = vector.load %arg4[%c1, %c0_9] : memref<4x256xf32, #tpu.memory_space<vmem>>, vector<1x256xf32>
    %16 = vector.extract_strided_slice %6 {offsets = [1, 0], sizes = [8, 256], strides = [1, 1]} : vector<11x256xf32> to vector<8x256xf32>
    %17 = vector.broadcast %15 : vector<1x256xf32> to vector<8x256xf32>
    %18 = arith.mulf %17, %16 : vector<8x256xf32>
    %19 = arith.addf %14, %18 : vector<8x256xf32>
    %c2 = arith.constant 2 : index
    %c0_10 = arith.constant 0 : index
    %20 = vector.load %arg4[%c2, %c0_10] : memref<4x256xf32, #tpu.memory_space<vmem>>, vector<1x256xf32>
    %21 = vector.extract_strided_slice %6 {offsets = [2, 0], sizes = [8, 256], strides = [1, 1]} : vector<11x256xf32> to vector<8x256xf32>
    %22 = vector.broadcast %20 : vector<1x256xf32> to vector<8x256xf32>
    %23 = arith.mulf %22, %21 : vector<8x256xf32>
    %24 = arith.addf %19, %23 : vector<8x256xf32>
    %c3 = arith.constant 3 : index
    %c0_11 = arith.constant 0 : index
    %25 = vector.load %arg4[%c3, %c0_11] : memref<4x256xf32, #tpu.memory_space<vmem>>, vector<1x256xf32>
    %26 = vector.extract_strided_slice %6 {offsets = [3, 0], sizes = [8, 256], strides = [1, 1]} : vector<11x256xf32> to vector<8x256xf32>
    %27 = vector.broadcast %25 : vector<1x256xf32> to vector<8x256xf32>
    %28 = arith.mulf %27, %26 : vector<8x256xf32>
    %29 = arith.addf %24, %28 : vector<8x256xf32>
    %30 = arith.negf %29 : vector<8x256xf32>
    %31 = math.exp %30 : vector<8x256xf32>
    %cst = arith.constant 1.000000e+00 : f32
    %32 = vector.broadcast %cst : f32 to vector<8x256xf32>
    %33 = arith.addf %32, %31 : vector<8x256xf32>
    %34 = arith.divf %32, %33 : vector<8x256xf32>
    %35 = arith.mulf %29, %34 : vector<8x256xf32>
    %c0_12 = arith.constant 0 : index
    %c0_13 = arith.constant 0 : index
    %c0_14 = arith.constant 0 : index
    %36 = vector.load %arg6[%c0_12, %c0_13, %c0_14] : memref<1x8x256xf32, #tpu.memory_space<vmem>>, vector<1x8x256xf32>
    %37 = vector.shape_cast %36 : vector<1x8x256xf32> to vector<8x256xf32>
    %38 = vector.shape_cast %35 : vector<8x256xf32> to vector<1x8x256xf32>
    tpu.vector_store %arg6[%c0_12, %c0_13, %c0_14], %38 {strides = array<i32>} : memref<1x8x256xf32, #tpu.memory_space<vmem>>, vector<1x8x256xf32>,
    %39 = vector.extract_strided_slice %6 {offsets = [8, 0], sizes = [3, 256], strides = [1, 1]} : vector<11x256xf32> to vector<3x256xf32>
    %c0_15 = arith.constant 0 : index
    %c0_16 = arith.constant 0 : index
    %40 = vector.load %arg7[%c0_15, %c0_16] : memref<3x256xf32, #tpu.memory_space<vmem>>, vector<3x256xf32>
    tpu.vector_store %arg7[%c0_15, %c0_16], %39 {strides = array<i32>} : memref<3x256xf32, #tpu.memory_space<vmem>>, vector<3x256xf32>,
    return
  }
  func.func @transform_0(%arg0: i32, %arg1: i32, %arg2: i32) -> (i32, i32, i32) {
    %c0_i32 = arith.constant 0 : i32
    return %arg0, %arg2, %arg1 : i32, i32, i32
  }
  func.func @transform_1(%arg0: i32, %arg1: i32, %arg2: i32) -> (i32, i32) {
    %c0_i32 = arith.constant 0 : i32
    %c0_i32_0 = arith.constant 0 : i32
    return %c0_i32, %arg1 : i32, i32
  }
  func.func @transform_2(%arg0: i32, %arg1: i32, %arg2: i32) -> (i32, i32) {
    %c0_i32 = arith.constant 0 : i32
    %c0_i32_0 = arith.constant 0 : i32
    return %c0_i32, %arg1 : i32, i32
  }
  func.func @transform_3(%arg0: i32, %arg1: i32, %arg2: i32) -> (i32, i32, i32) {
    %c0_i32 = arith.constant 0 : i32
    return %arg0, %arg2, %arg1 : i32, i32, i32
  }
}

module attributes {stable_mosaic.version = 11 : i64} {
  func.func @_rmsnorm_linear_kernel(%arg0: i32, %arg1: i32, %arg2: memref<16x128xf32, #tpu.memory_space<vmem>>, %arg3: memref<1x128xf32, #tpu.memory_space<vmem>>, %arg4: memref<128x512xbf16, #tpu.memory_space<vmem>>, %arg5: memref<16x512xf32, #tpu.memory_space<vmem>>, %arg6: memref<16x128xbf16, #tpu.memory_space<vmem>>) attributes {dimension_semantics = [#tpu.dimension_semantics<parallel>, #tpu.dimension_semantics<arbitrary>], iteration_bounds = array<i64: 1, 1>, scalar_prefetch = 0 : i64, scratch_operands = 1 : i64, tpu.core_type = #tpu.core_type<tc>, window_params = [{transform_indices = @transform_0, window_bounds = array<i64: 16, 128>}, {pipeline_mode = #tpu.pipeline_mode<synchronous>, transform_indices = @transform_1, window_bounds = array<i64: 1, 128>}, {transform_indices = @transform_2, window_bounds = array<i64: 128, 512>}, {transform_indices = @transform_3, window_bounds = array<i64: 16, 512>}]} {
    %c0_i32 = arith.constant 0 : i32
    %0 = arith.cmpi eq, %arg1, %c0_i32 : i32
    %1 = arith.extui %0 : i1 to i32
    %c0_i32_0 = arith.constant 0 : i32
    %2 = arith.cmpi ne, %1, %c0_i32_0 : i32
    scf.if %2 {
      %c0_6 = arith.constant 0 : index
      %c0_7 = arith.constant 0 : index
      %7 = vector.load %arg2[%c0_6, %c0_7] : memref<16x128xf32, #tpu.memory_space<vmem>>, vector<16x128xf32>
      %8 = arith.mulf %7, %7 : vector<16x128xf32>
      %cst_8 = arith.constant dense<0.000000e+00> : vector<16xf32>
      %9 = vector.multi_reduction <add>, %8, %cst_8 [1] : vector<16x128xf32> to vector<16xf32>
      %10 = vector.shape_cast %9 : vector<16xf32> to vector<16x1xf32>
      %cst_9 = arith.constant 1.280000e+02 : f32
      %11 = vector.broadcast %cst_9 : f32 to vector<16x1xf32>
      %12 = arith.divf %10, %11 : vector<16x1xf32>
      %cst_10 = arith.constant 9.99999974E-6 : f32
      %13 = vector.broadcast %cst_10 : f32 to vector<16x1xf32>
      %14 = arith.addf %12, %13 : vector<16x1xf32>
      %15 = math.rsqrt %14 : vector<16x1xf32>
      %16 = vector.broadcast %15 : vector<16x1xf32> to vector<16x128xf32>
      %17 = arith.mulf %7, %16 : vector<16x128xf32>
      %c0_11 = arith.constant 0 : index
      %c0_12 = arith.constant 0 : index
      %18 = vector.load %arg3[%c0_11, %c0_12] : memref<1x128xf32, #tpu.memory_space<vmem>>, vector<1x128xf32>
      %19 = vector.broadcast %18 : vector<1x128xf32> to vector<16x128xf32>
      %20 = arith.mulf %17, %19 : vector<16x128xf32>
      %21 = arith.truncf %20 : vector<16x128xf32> to vector<16x128xbf16>
      %c0_13 = arith.constant 0 : index
      %c0_14 = arith.constant 0 : index
      %22 = vector.load %arg6[%c0_13, %c0_14] : memref<16x128xbf16, #tpu.memory_space<vmem>>, vector<16x128xbf16>
      tpu.vector_store %arg6[%c0_13, %c0_14], %21 {strides = array<i32>} : memref<16x128xbf16, #tpu.memory_space<vmem>>, vector<16x128xbf16>,
    } else {
    }
    %c0 = arith.constant 0 : index
    %c0_1 = arith.constant 0 : index
    %3 = vector.load %arg6[%c0, %c0_1] : memref<16x128xbf16, #tpu.memory_space<vmem>>, vector<16x128xbf16>
    %c0_2 = arith.constant 0 : index
    %c0_3 = arith.constant 0 : index
    %4 = vector.load %arg4[%c0_2, %c0_3] : memref<128x512xbf16, #tpu.memory_space<vmem>>, vector<128x512xbf16>
    %cst = arith.constant dense<0.000000e+00> : vector<16x512xf32>
    %5 = tpu.matmul %3, %4, %cst {dimension_numbers = #tpu.dot_dimension_numbers<[1], [0], [0], [1], [0, 0, 1, 1], [], []>} : vector<16x128xbf16>, vector<128x512xbf16>, vector<16x512xf32> -> vector<16x512xf32>
    %c0_4 = arith.constant 0 : index
    %c0_5 = arith.constant 0 : index
    %6 = vector.load %arg5[%c0_4, %c0_5] : memref<16x512xf32, #tpu.memory_space<vmem>>, vector<16x512xf32>
    tpu.vector_store %arg5[%c0_4, %c0_5], %5 {strides = array<i32>} : memref<16x512xf32, #tpu.memory_space<vmem>>, vector<16x512xf32>,
    return
  }
  func.func @transform_0(%arg0: i32, %arg1: i32) -> (i32, i32) {
    %c0_i32 = arith.constant 0 : i32
    %c0_i32_0 = arith.constant 0 : i32
    return %arg0, %c0_i32 : i32, i32
  }
  func.func @transform_1(%arg0: i32, %arg1: i32) -> (i32, i32) {
    %c0_i32 = arith.constant 0 : i32
    %c0_i32_0 = arith.constant 0 : i32
    %c0_i32_1 = arith.constant 0 : i32
    return %c0_i32, %c0_i32_0 : i32, i32
  }
  func.func @transform_2(%arg0: i32, %arg1: i32) -> (i32, i32) {
    %c0_i32 = arith.constant 0 : i32
    %c0_i32_0 = arith.constant 0 : i32
    return %c0_i32, %arg1 : i32, i32
  }
  func.func @transform_3(%arg0: i32, %arg1: i32) -> (i32, i32) {
    %c0_i32 = arith.constant 0 : i32
    return %arg0, %arg1 : i32, i32
  }
}

module attributes {stable_mosaic.version = 11 : i64} {
  func.func @_linear_kernel(%arg0: i32, %arg1: i32, %arg2: i32, %arg3: memref<8x256xf32, #tpu.memory_space<vmem>>, %arg4: memref<256x128xbf16, #tpu.memory_space<vmem>>, %arg5: memref<1x128xf32, #tpu.memory_space<vmem>>, %arg6: memref<8x128xf32, #tpu.memory_space<vmem>>, %arg7: memref<8x128xf32, #tpu.memory_space<vmem>>) attributes {dimension_semantics = [#tpu.dimension_semantics<parallel>, #tpu.dimension_semantics<parallel>, #tpu.dimension_semantics<arbitrary>], iteration_bounds = array<i64: 1, 1, 1>, scalar_prefetch = 0 : i64, scratch_operands = 1 : i64, tpu.core_type = #tpu.core_type<tc>, window_params = [{transform_indices = @transform_0, window_bounds = array<i64: 8, 256>}, {transform_indices = @transform_1, window_bounds = array<i64: 256, 128>}, {transform_indices = @transform_2, window_bounds = array<i64: 1, 128>}, {transform_indices = @transform_3, window_bounds = array<i64: 8, 128>}]} {
    %c0_i32 = arith.constant 0 : i32
    %0 = arith.cmpi eq, %arg2, %c0_i32 : i32
    %1 = arith.extui %0 : i1 to i32
    %c0_i32_0 = arith.constant 0 : i32
    %2 = arith.cmpi ne, %1, %c0_i32_0 : i32
    scf.if %2 {
      %c0_10 = arith.constant 0 : index
      %c0_11 = arith.constant 0 : index
      %13 = vector.load %arg5[%c0_10, %c0_11] : memref<1x128xf32, #tpu.memory_space<vmem>>, vector<1x128xf32>
      %14 = vector.shape_cast %13 : vector<1x128xf32> to vector<1x128xf32>
      %15 = vector.broadcast %14 : vector<1x128xf32> to vector<8x128xf32>
      %c0_12 = arith.constant 0 : index
      %c0_13 = arith.constant 0 : index
      %16 = vector.load %arg7[%c0_12, %c0_13] : memref<8x128xf32, #tpu.memory_space<vmem>>, vector<8x128xf32>
      tpu.vector_store %arg7[%c0_12, %c0_13], %15 {strides = array<i32>} : memref<8x128xf32, #tpu.memory_space<vmem>>, vector<8x128xf32>,
    } else {
    }
    %c0 = arith.constant 0 : index
    %c0_1 = arith.constant 0 : index
    %3 = vector.load %arg7[%c0, %c0_1] : memref<8x128xf32, #tpu.memory_space<vmem>>, vector<8x128xf32>
    %c0_2 = arith.constant 0 : index
    %c0_3 = arith.constant 0 : index
    %4 = vector.load %arg3[%c0_2, %c0_3] : memref<8x256xf32, #tpu.memory_space<vmem>>, vector<8x256xf32>
    %5 = arith.truncf %4 : vector<8x256xf32> to vector<8x256xbf16>
    %c0_4 = arith.constant 0 : index
    %c0_5 = arith.constant 0 : index
    %6 = vector.load %arg4[%c0_4, %c0_5] : memref<256x128xbf16, #tpu.memory_space<vmem>>, vector<256x128xbf16>
    %cst = arith.constant dense<0.000000e+00> : vector<8x128xf32>
    %7 = tpu.matmul %5, %6, %cst {dimension_numbers = #tpu.dot_dimension_numbers<[1], [0], [0], [1], [0, 0, 1, 1], [], []>} : vector<8x256xbf16>, vector<256x128xbf16>, vector<8x128xf32> -> vector<8x128xf32>
    %8 = arith.addf %3, %7 : vector<8x128xf32>
    %c0_6 = arith.constant 0 : index
    %c0_7 = arith.constant 0 : index
    %9 = vector.load %arg7[%c0_6, %c0_7] : memref<8x128xf32, #tpu.memory_space<vmem>>, vector<8x128xf32>
    tpu.vector_store %arg7[%c0_6, %c0_7], %8 {strides = array<i32>} : memref<8x128xf32, #tpu.memory_space<vmem>>, vector<8x128xf32>,
    %c0_i32_8 = arith.constant 0 : i32
    %10 = arith.cmpi eq, %arg2, %c0_i32_8 : i32
    %11 = arith.extui %10 : i1 to i32
    %c0_i32_9 = arith.constant 0 : i32
    %12 = arith.cmpi ne, %11, %c0_i32_9 : i32
    scf.if %12 {
      %c0_10 = arith.constant 0 : index
      %c0_11 = arith.constant 0 : index
      %13 = vector.load %arg7[%c0_10, %c0_11] : memref<8x128xf32, #tpu.memory_space<vmem>>, vector<8x128xf32>
      %c0_12 = arith.constant 0 : index
      %c0_13 = arith.constant 0 : index
      %14 = vector.load %arg6[%c0_12, %c0_13] : memref<8x128xf32, #tpu.memory_space<vmem>>, vector<8x128xf32>
      tpu.vector_store %arg6[%c0_12, %c0_13], %13 {strides = array<i32>} : memref<8x128xf32, #tpu.memory_space<vmem>>, vector<8x128xf32>,
    } else {
    }
    return
  }
  func.func @transform_0(%arg0: i32, %arg1: i32, %arg2: i32) -> (i32, i32) {
    %c0_i32 = arith.constant 0 : i32
    return %arg0, %arg2 : i32, i32
  }
  func.func @transform_1(%arg0: i32, %arg1: i32, %arg2: i32) -> (i32, i32) {
    %c0_i32 = arith.constant 0 : i32
    return %arg2, %arg1 : i32, i32
  }
  func.func @transform_2(%arg0: i32, %arg1: i32, %arg2: i32) -> (i32, i32) {
    %c0_i32 = arith.constant 0 : i32
    %c0_i32_0 = arith.constant 0 : i32
    return %c0_i32, %arg1 : i32, i32
  }
  func.func @transform_3(%arg0: i32, %arg1: i32, %arg2: i32) -> (i32, i32) {
    %c0_i32 = arith.constant 0 : i32
    return %arg0, %arg1 : i32, i32
  }
}

module attributes {stable_mosaic.version = 11 : i64} {
  func.func @_rmsnorm_linear_kernel(%arg0: i32, %arg1: i32, %arg2: memref<8x128xf32, #tpu.memory_space<vmem>>, %arg3: memref<1x128xf32, #tpu.memory_space<vmem>>, %arg4: memref<128x512xbf16, #tpu.memory_space<vmem>>, %arg5: memref<8x512xf32, #tpu.memory_space<vmem>>, %arg6: memref<8x128xbf16, #tpu.memory_space<vmem>>) attributes {dimension_semantics = [#tpu.dimension_semantics<parallel>, #tpu.dimension_semantics<arbitrary>], iteration_bounds = array<i64: 1, 1>, scalar_prefetch = 0 : i64, scratch_operands = 1 : i64, tpu.core_type = #tpu.core_type<tc>, window_params = [{transform_indices = @transform_0, window_bounds = array<i64: 8, 128>}, {pipeline_mode = #tpu.pipeline_mode<synchronous>, transform_indices = @transform_1, window_bounds = array<i64: 1, 128>}, {transform_indices = @transform_2, window_bounds = array<i64: 128, 512>}, {transform_indices = @transform_3, window_bounds = array<i64: 8, 512>}]} {
    %c0_i32 = arith.constant 0 : i32
    %0 = arith.cmpi eq, %arg1, %c0_i32 : i32
    %1 = arith.extui %0 : i1 to i32
    %c0_i32_0 = arith.constant 0 : i32
    %2 = arith.cmpi ne, %1, %c0_i32_0 : i32
    scf.if %2 {
      %c0_6 = arith.constant 0 : index
      %c0_7 = arith.constant 0 : index
      %7 = vector.load %arg2[%c0_6, %c0_7] : memref<8x128xf32, #tpu.memory_space<vmem>>, vector<8x128xf32>
      %8 = arith.mulf %7, %7 : vector<8x128xf32>
      %cst_8 = arith.constant dense<0.000000e+00> : vector<8xf32>
      %9 = vector.multi_reduction <add>, %8, %cst_8 [1] : vector<8x128xf32> to vector<8xf32>
      %10 = vector.shape_cast %9 : vector<8xf32> to vector<8x1xf32>
      %cst_9 = arith.constant 1.280000e+02 : f32
      %11 = vector.broadcast %cst_9 : f32 to vector<8x1xf32>
      %12 = arith.divf %10, %11 : vector<8x1xf32>
      %cst_10 = arith.constant 9.99999974E-6 : f32
      %13 = vector.broadcast %cst_10 : f32 to vector<8x1xf32>
      %14 = arith.addf %12, %13 : vector<8x1xf32>
      %15 = math.rsqrt %14 : vector<8x1xf32>
      %16 = vector.broadcast %15 : vector<8x1xf32> to vector<8x128xf32>
      %17 = arith.mulf %7, %16 : vector<8x128xf32>
      %c0_11 = arith.constant 0 : index
      %c0_12 = arith.constant 0 : index
      %18 = vector.load %arg3[%c0_11, %c0_12] : memref<1x128xf32, #tpu.memory_space<vmem>>, vector<1x128xf32>
      %19 = vector.broadcast %18 : vector<1x128xf32> to vector<8x128xf32>
      %20 = arith.mulf %17, %19 : vector<8x128xf32>
      %21 = arith.truncf %20 : vector<8x128xf32> to vector<8x128xbf16>
      %c0_13 = arith.constant 0 : index
      %c0_14 = arith.constant 0 : index
      %22 = vector.load %arg6[%c0_13, %c0_14] : memref<8x128xbf16, #tpu.memory_space<vmem>>, vector<8x128xbf16>
      tpu.vector_store %arg6[%c0_13, %c0_14], %21 {strides = array<i32>} : memref<8x128xbf16, #tpu.memory_space<vmem>>, vector<8x128xbf16>,
    } else {
    }
    %c0 = arith.constant 0 : index
    %c0_1 = arith.constant 0 : index
    %3 = vector.load %arg6[%c0, %c0_1] : memref<8x128xbf16, #tpu.memory_space<vmem>>, vector<8x128xbf16>
    %c0_2 = arith.constant 0 : index
    %c0_3 = arith.constant 0 : index
    %4 = vector.load %arg4[%c0_2, %c0_3] : memref<128x512xbf16, #tpu.memory_space<vmem>>, vector<128x512xbf16>
    %cst = arith.constant dense<0.000000e+00> : vector<8x512xf32>
    %5 = tpu.matmul %3, %4, %cst {dimension_numbers = #tpu.dot_dimension_numbers<[1], [0], [0], [1], [0, 0, 1, 1], [], []>} : vector<8x128xbf16>, vector<128x512xbf16>, vector<8x512xf32> -> vector<8x512xf32>
    %c0_4 = arith.constant 0 : index
    %c0_5 = arith.constant 0 : index
    %6 = vector.load %arg5[%c0_4, %c0_5] : memref<8x512xf32, #tpu.memory_space<vmem>>, vector<8x512xf32>
    tpu.vector_store %arg5[%c0_4, %c0_5], %5 {strides = array<i32>} : memref<8x512xf32, #tpu.memory_space<vmem>>, vector<8x512xf32>,
    return
  }
  func.func @transform_0(%arg0: i32, %arg1: i32) -> (i32, i32) {
    %c0_i32 = arith.constant 0 : i32
    %c0_i32_0 = arith.constant 0 : i32
    return %arg0, %c0_i32 : i32, i32
  }
  func.func @transform_1(%arg0: i32, %arg1: i32) -> (i32, i32) {
    %c0_i32 = arith.constant 0 : i32
    %c0_i32_0 = arith.constant 0 : i32
    %c0_i32_1 = arith.constant 0 : i32
    return %c0_i32, %c0_i32_0 : i32, i32
  }
  func.func @transform_2(%arg0: i32, %arg1: i32) -> (i32, i32) {
    %c0_i32 = arith.constant 0 : i32
    %c0_i32_0 = arith.constant 0 : i32
    return %c0_i32, %arg1 : i32, i32
  }
  func.func @transform_3(%arg0: i32, %arg1: i32) -> (i32, i32) {
    %c0_i32 = arith.constant 0 : i32
    return %arg0, %arg1 : i32, i32
  }
}

module attributes {stable_mosaic.version = 11 : i64} {
  func.func @_linear_kernel(%arg0: i32, %arg1: i32, %arg2: i32, %arg3: memref<8x256xf32, #tpu.memory_space<vmem>>, %arg4: memref<256x128xbf16, #tpu.memory_space<vmem>>, %arg5: memref<1x128xf32, #tpu.memory_space<vmem>>, %arg6: memref<8x128xf32, #tpu.memory_space<vmem>>, %arg7: memref<8x128xf32, #tpu.memory_space<vmem>>) attributes {dimension_semantics = [#tpu.dimension_semantics<parallel>, #tpu.dimension_semantics<parallel>, #tpu.dimension_semantics<arbitrary>], iteration_bounds = array<i64: 1, 1, 1>, scalar_prefetch = 0 : i64, scratch_operands = 1 : i64, tpu.core_type = #tpu.core_type<tc>, window_params = [{transform_indices = @transform_0, window_bounds = array<i64: 8, 256>}, {transform_indices = @transform_1, window_bounds = array<i64: 256, 128>}, {transform_indices = @transform_2, window_bounds = array<i64: 1, 128>}, {transform_indices = @transform_3, window_bounds = array<i64: 8, 128>}]} {
    %c0_i32 = arith.constant 0 : i32
    %0 = arith.cmpi eq, %arg2, %c0_i32 : i32
    %1 = arith.extui %0 : i1 to i32
    %c0_i32_0 = arith.constant 0 : i32
    %2 = arith.cmpi ne, %1, %c0_i32_0 : i32
    scf.if %2 {
      %c0_10 = arith.constant 0 : index
      %c0_11 = arith.constant 0 : index
      %13 = vector.load %arg5[%c0_10, %c0_11] : memref<1x128xf32, #tpu.memory_space<vmem>>, vector<1x128xf32>
      %14 = vector.shape_cast %13 : vector<1x128xf32> to vector<1x128xf32>
      %15 = vector.broadcast %14 : vector<1x128xf32> to vector<8x128xf32>
      %c0_12 = arith.constant 0 : index
      %c0_13 = arith.constant 0 : index
      %16 = vector.load %arg7[%c0_12, %c0_13] : memref<8x128xf32, #tpu.memory_space<vmem>>, vector<8x128xf32>
      tpu.vector_store %arg7[%c0_12, %c0_13], %15 {strides = array<i32>} : memref<8x128xf32, #tpu.memory_space<vmem>>, vector<8x128xf32>,
    } else {
    }
    %c0 = arith.constant 0 : index
    %c0_1 = arith.constant 0 : index
    %3 = vector.load %arg7[%c0, %c0_1] : memref<8x128xf32, #tpu.memory_space<vmem>>, vector<8x128xf32>
    %c0_2 = arith.constant 0 : index
    %c0_3 = arith.constant 0 : index
    %4 = vector.load %arg3[%c0_2, %c0_3] : memref<8x256xf32, #tpu.memory_space<vmem>>, vector<8x256xf32>
    %5 = arith.truncf %4 : vector<8x256xf32> to vector<8x256xbf16>
    %c0_4 = arith.constant 0 : index
    %c0_5 = arith.constant 0 : index
    %6 = vector.load %arg4[%c0_4, %c0_5] : memref<256x128xbf16, #tpu.memory_space<vmem>>, vector<256x128xbf16>
    %cst = arith.constant dense<0.000000e+00> : vector<8x128xf32>
    %7 = tpu.matmul %5, %6, %cst {dimension_numbers = #tpu.dot_dimension_numbers<[1], [0], [0], [1], [0, 0, 1, 1], [], []>} : vector<8x256xbf16>, vector<256x128xbf16>, vector<8x128xf32> -> vector<8x128xf32>
    %8 = arith.addf %3, %7 : vector<8x128xf32>
    %c0_6 = arith.constant 0 : index
    %c0_7 = arith.constant 0 : index
    %9 = vector.load %arg7[%c0_6, %c0_7] : memref<8x128xf32, #tpu.memory_space<vmem>>, vector<8x128xf32>
    tpu.vector_store %arg7[%c0_6, %c0_7], %8 {strides = array<i32>} : memref<8x128xf32, #tpu.memory_space<vmem>>, vector<8x128xf32>,
    %c0_i32_8 = arith.constant 0 : i32
    %10 = arith.cmpi eq, %arg2, %c0_i32_8 : i32
    %11 = arith.extui %10 : i1 to i32
    %c0_i32_9 = arith.constant 0 : i32
    %12 = arith.cmpi ne, %11, %c0_i32_9 : i32
    scf.if %12 {
      %c0_10 = arith.constant 0 : index
      %c0_11 = arith.constant 0 : index
      %13 = vector.load %arg7[%c0_10, %c0_11] : memref<8x128xf32, #tpu.memory_space<vmem>>, vector<8x128xf32>
      %c0_12 = arith.constant 0 : index
      %c0_13 = arith.constant 0 : index
      %14 = vector.load %arg6[%c0_12, %c0_13] : memref<8x128xf32, #tpu.memory_space<vmem>>, vector<8x128xf32>
      tpu.vector_store %arg6[%c0_12, %c0_13], %13 {strides = array<i32>} : memref<8x128xf32, #tpu.memory_space<vmem>>, vector<8x128xf32>,
    } else {
    }
    return
  }
  func.func @transform_0(%arg0: i32, %arg1: i32, %arg2: i32) -> (i32, i32) {
    %c0_i32 = arith.constant 0 : i32
    return %arg0, %arg2 : i32, i32
  }
  func.func @transform_1(%arg0: i32, %arg1: i32, %arg2: i32) -> (i32, i32) {
    %c0_i32 = arith.constant 0 : i32
    return %arg2, %arg1 : i32, i32
  }
  func.func @transform_2(%arg0: i32, %arg1: i32, %arg2: i32) -> (i32, i32) {
    %c0_i32 = arith.constant 0 : i32
    %c0_i32_0 = arith.constant 0 : i32
    return %c0_i32, %arg1 : i32, i32
  }
  func.func @transform_3(%arg0: i32, %arg1: i32, %arg2: i32) -> (i32, i32) {
    %c0_i32 = arith.constant 0 : i32
    return %arg0, %arg1 : i32, i32
  }
}

module attributes {stable_mosaic.version = 11 : i64} {
  func.func @_conv_silu_kernel(%arg0: i32, %arg1: i32, %arg2: i32, %arg3: memref<1x4x256xf32, #tpu.memory_space<vmem>>, %arg4: memref<4x256xf32, #tpu.memory_space<vmem>>, %arg5: memref<1x256xf32, #tpu.memory_space<vmem>>, %arg6: memref<1x4x256xf32, #tpu.memory_space<vmem>>, %arg7: memref<3x256xf32, #tpu.memory_space<vmem>>) attributes {dimension_semantics = [#tpu.dimension_semantics<parallel>, #tpu.dimension_semantics<parallel>, #tpu.dimension_semantics<arbitrary>], iteration_bounds = array<i64: 2, 1, 1>, scalar_prefetch = 0 : i64, scratch_operands = 1 : i64, tpu.core_type = #tpu.core_type<tc>, window_params = [{transform_indices = @transform_0, window_bounds = array<i64: 1, 4, 256>}, {transform_indices = @transform_1, window_bounds = array<i64: 4, 256>}, {transform_indices = @transform_2, window_bounds = array<i64: 1, 256>}, {transform_indices = @transform_3, window_bounds = array<i64: 1, 4, 256>}]} {
    %c0_i32 = arith.constant 0 : i32
    %0 = arith.cmpi eq, %arg2, %c0_i32 : i32
    %1 = arith.extui %0 : i1 to i32
    %c0_i32_0 = arith.constant 0 : i32
    %2 = arith.cmpi ne, %1, %c0_i32_0 : i32
    scf.if %2 {
      %cst_17 = arith.constant 0.000000e+00 : f32
      %41 = vector.broadcast %cst_17 : f32 to vector<3x256xf32>
      %c0_18 = arith.constant 0 : index
      %c0_19 = arith.constant 0 : index
      %42 = vector.load %arg7[%c0_18, %c0_19] : memref<3x256xf32, #tpu.memory_space<vmem>>, vector<3x256xf32>
      tpu.vector_store %arg7[%c0_18, %c0_19], %41 {strides = array<i32>} : memref<3x256xf32, #tpu.memory_space<vmem>>, vector<3x256xf32>,
    } else {
    }
    %c0 = arith.constant 0 : index
    %c0_1 = arith.constant 0 : index
    %c0_2 = arith.constant 0 : index
    %3 = vector.load %arg3[%c0, %c0_1, %c0_2] : memref<1x4x256xf32, #tpu.memory_space<vmem>>, vector<1x4x256xf32>
    %4 = vector.shape_cast %3 : vector<1x4x256xf32> to vector<4x256xf32>
    %c0_3 = arith.constant 0 : index
    %c0_4 = arith.constant 0 : index
    %5 = vector.load %arg7[%c0_3, %c0_4] : memref<3x256xf32, #tpu.memory_space<vmem>>, vector<3x256xf32>
    %6 = tpu.concatenate %5, %4 in 0 : vector<3x256xf32>, vector<4x256xf32> -> vector<7x256xf32>
    %c0_5 = arith.constant 0 : index
    %c0_6 = arith.constant 0 : index
    %7 = vector.load %arg5[%c0_5, %c0_6] : memref<1x256xf32, #tpu.memory_space<vmem>>, vector<1x256xf32>
    %8 = vector.shape_cast %7 : vector<1x256xf32> to vector<1x256xf32>
    %9 = vector.broadcast %8 : vector<1x256xf32> to vector<4x256xf32>
    %c0_7 = arith.constant 0 : index
    %c0_8 = arith.constant 0 : index
    %10 = vector.load %arg4[%c0_7, %c0_8] : memref<4x256xf32, #tpu.memory_space<vmem>>, vector<1x256xf32>
    %11 = vector.extract_strided_slice %6 {offsets = [0, 0], sizes = [4, 256], strides = [1, 1]} : vector<7x256xf32> to vector<4x256xf32>
    %12 = vector.broadcast %10 : vector<1x256xf32> to vector<4x256xf32>
    %13 = arith.mulf %12, %11 : vector<4x256xf32>
    %14 = arith.addf %9, %13 : vector<4x256xf32>
    %c1 = arith.constant 1 : index
    %c0_9 = arith.constant 0 : index
    %15 = vector.load %arg4[%c1, %c0_9] : memref<4x256xf32, #tpu.memory_space<vmem>>, vector<1x256xf32>
    %16 = vector.extract_strided_slice %6 {offsets = [1, 0], sizes = [4, 256], strides = [1, 1]} : vector<7x256xf32> to vector<4x256xf32>
    %17 = vector.broadcast %15 : vector<1x256xf32> to vector<4x256xf32>
    %18 = arith.mulf %17, %16 : vector<4x256xf32>
    %19 = arith.addf %14, %18 : vector<4x256xf32>
    %c2 = arith.constant 2 : index
    %c0_10 = arith.constant 0 : index
    %20 = vector.load %arg4[%c2, %c0_10] : memref<4x256xf32, #tpu.memory_space<vmem>>, vector<1x256xf32>
    %21 = vector.extract_strided_slice %6 {offsets = [2, 0], sizes = [4, 256], strides = [1, 1]} : vector<7x256xf32> to vector<4x256xf32>
    %22 = vector.broadcast %20 : vector<1x256xf32> to vector<4x256xf32>
    %23 = arith.mulf %22, %21 : vector<4x256xf32>
    %24 = arith.addf %19, %23 : vector<4x256xf32>
    %c3 = arith.constant 3 : index
    %c0_11 = arith.constant 0 : index
    %25 = vector.load %arg4[%c3, %c0_11] : memref<4x256xf32, #tpu.memory_space<vmem>>, vector<1x256xf32>
    %26 = vector.extract_strided_slice %6 {offsets = [3, 0], sizes = [4, 256], strides = [1, 1]} : vector<7x256xf32> to vector<4x256xf32>
    %27 = vector.broadcast %25 : vector<1x256xf32> to vector<4x256xf32>
    %28 = arith.mulf %27, %26 : vector<4x256xf32>
    %29 = arith.addf %24, %28 : vector<4x256xf32>
    %30 = arith.negf %29 : vector<4x256xf32>
    %31 = math.exp %30 : vector<4x256xf32>
    %cst = arith.constant 1.000000e+00 : f32
    %32 = vector.broadcast %cst : f32 to vector<4x256xf32>
    %33 = arith.addf %32, %31 : vector<4x256xf32>
    %34 = arith.divf %32, %33 : vector<4x256xf32>
    %35 = arith.mulf %29, %34 : vector<4x256xf32>
    %c0_12 = arith.constant 0 : index
    %c0_13 = arith.constant 0 : index
    %c0_14 = arith.constant 0 : index
    %36 = vector.load %arg6[%c0_12, %c0_13, %c0_14] : memref<1x4x256xf32, #tpu.memory_space<vmem>>, vector<1x4x256xf32>
    %37 = vector.shape_cast %36 : vector<1x4x256xf32> to vector<4x256xf32>
    %38 = vector.shape_cast %35 : vector<4x256xf32> to vector<1x4x256xf32>
    tpu.vector_store %arg6[%c0_12, %c0_13, %c0_14], %38 {strides = array<i32>} : memref<1x4x256xf32, #tpu.memory_space<vmem>>, vector<1x4x256xf32>,
    %39 = vector.extract_strided_slice %6 {offsets = [4, 0], sizes = [3, 256], strides = [1, 1]} : vector<7x256xf32> to vector<3x256xf32>
    %c0_15 = arith.constant 0 : index
    %c0_16 = arith.constant 0 : index
    %40 = vector.load %arg7[%c0_15, %c0_16] : memref<3x256xf32, #tpu.memory_space<vmem>>, vector<3x256xf32>
    tpu.vector_store %arg7[%c0_15, %c0_16], %39 {strides = array<i32>} : memref<3x256xf32, #tpu.memory_space<vmem>>, vector<3x256xf32>,
    return
  }
  func.func @transform_0(%arg0: i32, %arg1: i32, %arg2: i32) -> (i32, i32, i32) {
    %c0_i32 = arith.constant 0 : i32
    return %arg0, %arg2, %arg1 : i32, i32, i32
  }
  func.func @transform_1(%arg0: i32, %arg1: i32, %arg2: i32) -> (i32, i32) {
    %c0_i32 = arith.constant 0 : i32
    %c0_i32_0 = arith.constant 0 : i32
    return %c0_i32, %arg1 : i32, i32
  }
  func.func @transform_2(%arg0: i32, %arg1: i32, %arg2: i32) -> (i32, i32) {
    %c0_i32 = arith.constant 0 : i32
    %c0_i32_0 = arith.constant 0 : i32
    return %c0_i32, %arg1 : i32, i32
  }
  func.func @transform_3(%arg0: i32, %arg1: i32, %arg2: i32) -> (i32, i32, i32) {
    %c0_i32 = arith.constant 0 : i32
    return %arg0, %arg2, %arg1 : i32, i32, i32
  }
}

module attributes {stable_mosaic.version = 11 : i64} {
  func.func @_scan_kernel(%arg0: i32, %arg1: i32, %arg2: i32, %arg3: memref<1x4x8xf32, #tpu.memory_space<vmem>>, %arg4: memref<8x256xbf16, #tpu.memory_space<vmem>>, %arg5: memref<1x256xf32, #tpu.memory_space<vmem>>, %arg6: memref<1x1x8x4xf32, #tpu.memory_space<vmem>>, %arg7: memref<1x1x8x4xf32, #tpu.memory_space<vmem>>, %arg8: memref<1x4x256xf32, #tpu.memory_space<vmem>>, %arg9: memref<1x4x256xf32, #tpu.memory_space<vmem>>, %arg10: memref<8x256xf32, #tpu.memory_space<vmem>>, %arg11: memref<1x256xf32, #tpu.memory_space<vmem>>, %arg12: memref<1x4x256xf32, #tpu.memory_space<vmem>>, %arg13: memref<8x256xf32, #tpu.memory_space<vmem>>) attributes {dimension_semantics = [#tpu.dimension_semantics<parallel>, #tpu.dimension_semantics<parallel>, #tpu.dimension_semantics<arbitrary>], iteration_bounds = array<i64: 2, 1, 1>, scalar_prefetch = 0 : i64, scratch_operands = 1 : i64, tpu.core_type = #tpu.core_type<tc>, window_params = [{transform_indices = @transform_0, window_bounds = array<i64: 1, 4, 8>}, {transform_indices = @transform_1, window_bounds = array<i64: 8, 256>}, {transform_indices = @transform_2, window_bounds = array<i64: 1, 256>}, {transform_indices = @transform_3, window_bounds = array<i64: 1, 1, 8, 4>}, {transform_indices = @transform_4, window_bounds = array<i64: 1, 1, 8, 4>}, {transform_indices = @transform_5, window_bounds = array<i64: 1, 4, 256>}, {transform_indices = @transform_6, window_bounds = array<i64: 1, 4, 256>}, {transform_indices = @transform_7, window_bounds = array<i64: 8, 256>}, {transform_indices = @transform_8, window_bounds = array<i64: 1, 256>}, {transform_indices = @transform_9, window_bounds = array<i64: 1, 4, 256>}]} {
    %c0_i32 = arith.constant 0 : i32
    %0 = arith.cmpi eq, %arg2, %c0_i32 : i32
    %1 = arith.extui %0 : i1 to i32
    %c0_i32_0 = arith.constant 0 : i32
    %2 = arith.cmpi ne, %1, %c0_i32_0 : i32
    scf.if %2 {
      %cst_40 = arith.constant 0.000000e+00 : f32
      %112 = vector.broadcast %cst_40 : f32 to vector<8x256xf32>
      %c0_41 = arith.constant 0 : index
      %c0_42 = arith.constant 0 : index
      %113 = vector.load %arg13[%c0_41, %c0_42] : memref<8x256xf32, #tpu.memory_space<vmem>>, vector<8x256xf32>
      tpu.vector_store %arg13[%c0_41, %c0_42], %112 {strides = array<i32>} : memref<8x256xf32, #tpu.memory_space<vmem>>, vector<8x256xf32>,
    } else {
    }
    %c0 = arith.constant 0 : index
    %c0_1 = arith.constant 0 : index
    %3 = vector.load %arg10[%c0, %c0_1] : memref<8x256xf32, #tpu.memory_space<vmem>>, vector<8x256xf32>
    %c0_2 = arith.constant 0 : index
    %c0_3 = arith.constant 0 : index
    %4 = vector.load %arg11[%c0_2, %c0_3] : memref<1x256xf32, #tpu.memory_space<vmem>>, vector<1x256xf32>
    %c0_4 = arith.constant 0 : index
    %c0_5 = arith.constant 0 : index
    %c0_6 = arith.constant 0 : index
    %c0_7 = arith.constant 0 : index
    %5 = vector.load %arg6[%c0_4, %c0_5, %c0_6, %c0_7] : memref<1x1x8x4xf32, #tpu.memory_space<vmem>>, vector<1x1x8x4xf32>
    %6 = vector.shape_cast %5 : vector<1x1x8x4xf32> to vector<8x4xf32>
    %c0_8 = arith.constant 0 : index
    %c0_9 = arith.constant 0 : index
    %c0_10 = arith.constant 0 : index
    %c0_11 = arith.constant 0 : index
    %7 = vector.load %arg7[%c0_8, %c0_9, %c0_10, %c0_11] : memref<1x1x8x4xf32, #tpu.memory_space<vmem>>, vector<1x1x8x4xf32>
    %8 = vector.shape_cast %7 : vector<1x1x8x4xf32> to vector<8x4xf32>
    %c0_12 = arith.constant 0 : index
    %c0_13 = arith.constant 0 : index
    %9 = vector.load %arg4[%c0_12, %c0_13] : memref<8x256xbf16, #tpu.memory_space<vmem>>, vector<8x256xbf16>
    %c0_14 = arith.constant 0 : index
    %c0_15 = arith.constant 0 : index
    %10 = vector.load %arg5[%c0_14, %c0_15] : memref<1x256xf32, #tpu.memory_space<vmem>>, vector<1x256xf32>
    %c0_16 = arith.constant 0 : index
    %c0_17 = arith.constant 0 : index
    %11 = vector.load %arg13[%c0_16, %c0_17] : memref<8x256xf32, #tpu.memory_space<vmem>>, vector<8x256xf32>
    %c0_18 = arith.constant 0 : index
    %c0_19 = arith.constant 0 : index
    %c0_20 = arith.constant 0 : index
    %12 = vector.load %arg8[%c0_18, %c0_19, %c0_20] : memref<1x4x256xf32, #tpu.memory_space<vmem>>, vector<1x4x256xf32>
    %13 = vector.shape_cast %12 : vector<1x4x256xf32> to vector<4x256xf32>
    %c0_21 = arith.constant 0 : index
    %c0_22 = arith.constant 0 : index
    %c0_23 = arith.constant 0 : index
    %14 = vector.load %arg9[%c0_21, %c0_22, %c0_23] : memref<1x4x256xf32, #tpu.memory_space<vmem>>, vector<1x4x256xf32>
    %15 = vector.shape_cast %14 : vector<1x4x256xf32> to vector<4x256xf32>
    %c0_24 = arith.constant 0 : index
    %c0_25 = arith.constant 0 : index
    %c0_26 = arith.constant 0 : index
    %16 = vector.load %arg3[%c0_24, %c0_25, %c0_26] : memref<1x4x8xf32, #tpu.memory_space<vmem>>, vector<1x4x8xf32>
    %17 = vector.shape_cast %16 : vector<1x4x8xf32> to vector<4x8xf32>
    %18 = arith.truncf %17 : vector<4x8xf32> to vector<4x8xbf16>
    %cst = arith.constant dense<0.000000e+00> : vector<4x256xf32>
    %19 = tpu.matmul %18, %9, %cst {dimension_numbers = #tpu.dot_dimension_numbers<[1], [0], [0], [1], [0, 0, 1, 1], [], []>} : vector<4x8xbf16>, vector<8x256xbf16>, vector<4x256xf32> -> vector<4x256xf32>
    %20 = vector.broadcast %10 : vector<1x256xf32> to vector<4x256xf32>
    %21 = arith.addf %19, %20 : vector<4x256xf32>
    %cst_27 = arith.constant 0.000000e+00 : f32
    %22 = vector.broadcast %cst_27 : f32 to vector<4x256xf32>
    %23 = arith.maximumf %21, %22 : vector<4x256xf32>
    %24 = math.absf %21 : vector<4x256xf32>
    %cst_28 = arith.constant 0.000000e+00 : f32
    %25 = vector.broadcast %cst_28 : f32 to vector<4x256xf32>
    %26 = arith.subf %25, %24 : vector<4x256xf32>
    %27 = math.exp %26 : vector<4x256xf32>
    %cst_29 = arith.constant 1.000000e+00 : f32
    %28 = vector.broadcast %cst_29 : f32 to vector<4x256xf32>
    %29 = arith.addf %28, %27 : vector<4x256xf32>
    %30 = math.log %29 : vector<4x256xf32>
    %31 = arith.addf %23, %30 : vector<4x256xf32>
    %32 = arith.mulf %31, %13 : vector<4x256xf32>
    %33 = vector.extract_strided_slice %31 {offsets = [0, 0], sizes = [1, 256], strides = [1, 1]} : vector<4x256xf32> to vector<1x256xf32>
    %34 = vector.broadcast %33 : vector<1x256xf32> to vector<8x256xf32>
    %35 = arith.mulf %34, %3 : vector<8x256xf32>
    %36 = math.exp %35 : vector<8x256xf32>
    %37 = vector.extract_strided_slice %6 {offsets = [0, 0], sizes = [8, 1], strides = [1, 1]} : vector<8x4xf32> to vector<8x1xf32>
    %38 = vector.extract_strided_slice %32 {offsets = [0, 0], sizes = [1, 256], strides = [1, 1]} : vector<4x256xf32> to vector<1x256xf32>
    %39 = vector.broadcast %37 : vector<8x1xf32> to vector<8x256xf32>
    %40 = vector.broadcast %38 : vector<1x256xf32> to vector<8x256xf32>
    %41 = arith.mulf %39, %40 : vector<8x256xf32>
    %42 = arith.mulf %36, %11 : vector<8x256xf32>
    %43 = arith.addf %42, %41 : vector<8x256xf32>
    %44 = vector.extract_strided_slice %8 {offsets = [0, 0], sizes = [8, 1], strides = [1, 1]} : vector<8x4xf32> to vector<8x1xf32>
    %45 = vector.broadcast %44 : vector<8x1xf32> to vector<8x256xf32>
    %46 = arith.mulf %45, %43 : vector<8x256xf32>
    %cst_30 = arith.constant dense<0.000000e+00> : vector<256xf32>
    %47 = vector.multi_reduction <add>, %46, %cst_30 [0] : vector<8x256xf32> to vector<256xf32>
    %48 = vector.shape_cast %47 : vector<256xf32> to vector<1x256xf32>
    %49 = vector.extract_strided_slice %31 {offsets = [1, 0], sizes = [1, 256], strides = [1, 1]} : vector<4x256xf32> to vector<1x256xf32>
    %50 = vector.broadcast %49 : vector<1x256xf32> to vector<8x256xf32>
    %51 = arith.mulf %50, %3 : vector<8x256xf32>
    %52 = math.exp %51 : vector<8x256xf32>
    %53 = vector.extract_strided_slice %6 {offsets = [0, 1], sizes = [8, 1], strides = [1, 1]} : vector<8x4xf32> to vector<8x1xf32>
    %54 = vector.extract_strided_slice %32 {offsets = [1, 0], sizes = [1, 256], strides = [1, 1]} : vector<4x256xf32> to vector<1x256xf32>
    %55 = vector.broadcast %53 : vector<8x1xf32> to vector<8x256xf32>
    %56 = vector.broadcast %54 : vector<1x256xf32> to vector<8x256xf32>
    %57 = arith.mulf %55, %56 : vector<8x256xf32>
    %58 = arith.mulf %52, %43 : vector<8x256xf32>
    %59 = arith.addf %58, %57 : vector<8x256xf32>
    %60 = vector.extract_strided_slice %8 {offsets = [0, 1], sizes = [8, 1], strides = [1, 1]} : vector<8x4xf32> to vector<8x1xf32>
    %61 = vector.broadcast %60 : vector<8x1xf32> to vector<8x256xf32>
    %62 = arith.mulf %61, %59 : vector<8x256xf32>
    %cst_31 = arith.constant dense<0.000000e+00> : vector<256xf32>
    %63 = vector.multi_reduction <add>, %62, %cst_31 [0] : vector<8x256xf32> to vector<256xf32>
    %64 = vector.shape_cast %63 : vector<256xf32> to vector<1x256xf32>
    %65 = vector.extract_strided_slice %31 {offsets = [2, 0], sizes = [1, 256], strides = [1, 1]} : vector<4x256xf32> to vector<1x256xf32>
    %66 = vector.broadcast %65 : vector<1x256xf32> to vector<8x256xf32>
    %67 = arith.mulf %66, %3 : vector<8x256xf32>
    %68 = math.exp %67 : vector<8x256xf32>
    %69 = vector.extract_strided_slice %6 {offsets = [0, 2], sizes = [8, 1], strides = [1, 1]} : vector<8x4xf32> to vector<8x1xf32>
    %70 = vector.extract_strided_slice %32 {offsets = [2, 0], sizes = [1, 256], strides = [1, 1]} : vector<4x256xf32> to vector<1x256xf32>
    %71 = vector.broadcast %69 : vector<8x1xf32> to vector<8x256xf32>
    %72 = vector.broadcast %70 : vector<1x256xf32> to vector<8x256xf32>
    %73 = arith.mulf %71, %72 : vector<8x256xf32>
    %74 = arith.mulf %68, %59 : vector<8x256xf32>
    %75 = arith.addf %74, %73 : vector<8x256xf32>
    %76 = vector.extract_strided_slice %8 {offsets = [0, 2], sizes = [8, 1], strides = [1, 1]} : vector<8x4xf32> to vector<8x1xf32>
    %77 = vector.broadcast %76 : vector<8x1xf32> to vector<8x256xf32>
    %78 = arith.mulf %77, %75 : vector<8x256xf32>
    %cst_32 = arith.constant dense<0.000000e+00> : vector<256xf32>
    %79 = vector.multi_reduction <add>, %78, %cst_32 [0] : vector<8x256xf32> to vector<256xf32>
    %80 = vector.shape_cast %79 : vector<256xf32> to vector<1x256xf32>
    %81 = vector.extract_strided_slice %31 {offsets = [3, 0], sizes = [1, 256], strides = [1, 1]} : vector<4x256xf32> to vector<1x256xf32>
    %82 = vector.broadcast %81 : vector<1x256xf32> to vector<8x256xf32>
    %83 = arith.mulf %82, %3 : vector<8x256xf32>
    %84 = math.exp %83 : vector<8x256xf32>
    %85 = vector.extract_strided_slice %6 {offsets = [0, 3], sizes = [8, 1], strides = [1, 1]} : vector<8x4xf32> to vector<8x1xf32>
    %86 = vector.extract_strided_slice %32 {offsets = [3, 0], sizes = [1, 256], strides = [1, 1]} : vector<4x256xf32> to vector<1x256xf32>
    %87 = vector.broadcast %85 : vector<8x1xf32> to vector<8x256xf32>
    %88 = vector.broadcast %86 : vector<1x256xf32> to vector<8x256xf32>
    %89 = arith.mulf %87, %88 : vector<8x256xf32>
    %90 = arith.mulf %84, %75 : vector<8x256xf32>
    %91 = arith.addf %90, %89 : vector<8x256xf32>
    %92 = vector.extract_strided_slice %8 {offsets = [0, 3], sizes = [8, 1], strides = [1, 1]} : vector<8x4xf32> to vector<8x1xf32>
    %93 = vector.broadcast %92 : vector<8x1xf32> to vector<8x256xf32>
    %94 = arith.mulf %93, %91 : vector<8x256xf32>
    %cst_33 = arith.constant dense<0.000000e+00> : vector<256xf32>
    %95 = vector.multi_reduction <add>, %94, %cst_33 [0] : vector<8x256xf32> to vector<256xf32>
    %96 = vector.shape_cast %95 : vector<256xf32> to vector<1x256xf32>
    %97 = tpu.concatenate %48, %64, %80, %96 in 0 : vector<1x256xf32>, vector<1x256xf32>, vector<1x256xf32>, vector<1x256xf32> -> vector<4x256xf32>
    %98 = vector.broadcast %4 : vector<1x256xf32> to vector<4x256xf32>
    %99 = arith.mulf %98, %13 : vector<4x256xf32>
    %100 = arith.addf %97, %99 : vector<4x256xf32>
    %101 = arith.negf %15 : vector<4x256xf32>
    %102 = math.exp %101 : vector<4x256xf32>
    %cst_34 = arith.constant 1.000000e+00 : f32
    %103 = vector.broadcast %cst_34 : f32 to vector<4x256xf32>
    %104 = arith.addf %103, %102 : vector<4x256xf32>
    %105 = arith.divf %103, %104 : vector<4x256xf32>
    %106 = arith.mulf %15, %105 : vector<4x256xf32>
    %107 = arith.mulf %100, %106 : vector<4x256xf32>
    %c0_35 = arith.constant 0 : index
    %c0_36 = arith.constant 0 : index
    %c0_37 = arith.constant 0 : index
    %108 = vector.load %arg12[%c0_35, %c0_36, %c0_37] : memref<1x4x256xf32, #tpu.memory_space<vmem>>, vector<1x4x256xf32>
    %109 = vector.shape_cast %108 : vector<1x4x256xf32> to vector<4x256xf32>
    %110 = vector.shape_cast %107 : vector<4x256xf32> to vector<1x4x256xf32>
    tpu.vector_store %arg12[%c0_35, %c0_36, %c0_37], %110 {strides = array<i32>} : memref<1x4x256xf32, #tpu.memory_space<vmem>>, vector<1x4x256xf32>,
    %c0_38 = arith.constant 0 : index
    %c0_39 = arith.constant 0 : index
    %111 = vector.load %arg13[%c0_38, %c0_39] : memref<8x256xf32, #tpu.memory_space<vmem>>, vector<8x256xf32>
    tpu.vector_store %arg13[%c0_38, %c0_39], %91 {strides = array<i32>} : memref<8x256xf32, #tpu.memory_space<vmem>>, vector<8x256xf32>,
    return
  }
  func.func @transform_0(%arg0: i32, %arg1: i32, %arg2: i32) -> (i32, i32, i32) {
    %c0_i32 = arith.constant 0 : i32
    %c0_i32_0 = arith.constant 0 : i32
    return %arg0, %arg2, %c0_i32 : i32, i32, i32
  }
  func.func @transform_1(%arg0: i32, %arg1: i32, %arg2: i32) -> (i32, i32) {
    %c0_i32 = arith.constant 0 : i32
    %c0_i32_0 = arith.constant 0 : i32
    return %c0_i32, %arg1 : i32, i32
  }
  func.func @transform_2(%arg0: i32, %arg1: i32, %arg2: i32) -> (i32, i32) {
    %c0_i32 = arith.constant 0 : i32
    %c0_i32_0 = arith.constant 0 : i32
    return %c0_i32, %arg1 : i32, i32
  }
  func.func @transform_3(%arg0: i32, %arg1: i32, %arg2: i32) -> (i32, i32, i32, i32) {
    %c0_i32 = arith.constant 0 : i32
    %c0_i32_0 = arith.constant 0 : i32
    %c0_i32_1 = arith.constant 0 : i32
    return %arg0, %arg2, %c0_i32, %c0_i32_0 : i32, i32, i32, i32
  }
  func.func @transform_4(%arg0: i32, %arg1: i32, %arg2: i32) -> (i32, i32, i32, i32) {
    %c0_i32 = arith.constant 0 : i32
    %c0_i32_0 = arith.constant 0 : i32
    %c0_i32_1 = arith.constant 0 : i32
    return %arg0, %arg2, %c0_i32, %c0_i32_0 : i32, i32, i32, i32
  }
  func.func @transform_5(%arg0: i32, %arg1: i32, %arg2: i32) -> (i32, i32, i32) {
    %c0_i32 = arith.constant 0 : i32
    return %arg0, %arg2, %arg1 : i32, i32, i32
  }
  func.func @transform_6(%arg0: i32, %arg1: i32, %arg2: i32) -> (i32, i32, i32) {
    %c0_i32 = arith.constant 0 : i32
    return %arg0, %arg2, %arg1 : i32, i32, i32
  }
  func.func @transform_7(%arg0: i32, %arg1: i32, %arg2: i32) -> (i32, i32) {
    %c0_i32 = arith.constant 0 : i32
    %c0_i32_0 = arith.constant 0 : i32
    return %c0_i32, %arg1 : i32, i32
  }
  func.func @transform_8(%arg0: i32, %arg1: i32, %arg2: i32) -> (i32, i32) {
    %c0_i32 = arith.constant 0 : i32
    %c0_i32_0 = arith.constant 0 : i32
    return %c0_i32, %arg1 : i32, i32
  }
  func.func @transform_9(%arg0: i32, %arg1: i32, %arg2: i32) -> (i32, i32, i32) {
    %c0_i32 = arith.constant 0 : i32
    return %arg0, %arg2, %arg1 : i32, i32, i32
  }
}

module attributes {stable_mosaic.version = 11 : i64} {
  func.func @_linear_kernel(%arg0: i32, %arg1: i32, %arg2: i32, %arg3: memref<8x256xf32, #tpu.memory_space<vmem>>, %arg4: memref<256x128xbf16, #tpu.memory_space<vmem>>, %arg5: memref<1x128xf32, #tpu.memory_space<vmem>>, %arg6: memref<8x128xf32, #tpu.memory_space<vmem>>, %arg7: memref<8x128xf32, #tpu.memory_space<vmem>>) attributes {dimension_semantics = [#tpu.dimension_semantics<parallel>, #tpu.dimension_semantics<parallel>, #tpu.dimension_semantics<arbitrary>], iteration_bounds = array<i64: 1, 1, 1>, scalar_prefetch = 0 : i64, scratch_operands = 1 : i64, tpu.core_type = #tpu.core_type<tc>, window_params = [{transform_indices = @transform_0, window_bounds = array<i64: 8, 256>}, {transform_indices = @transform_1, window_bounds = array<i64: 256, 128>}, {transform_indices = @transform_2, window_bounds = array<i64: 1, 128>}, {transform_indices = @transform_3, window_bounds = array<i64: 8, 128>}]} {
    %c0_i32 = arith.constant 0 : i32
    %0 = arith.cmpi eq, %arg2, %c0_i32 : i32
    %1 = arith.extui %0 : i1 to i32
    %c0_i32_0 = arith.constant 0 : i32
    %2 = arith.cmpi ne, %1, %c0_i32_0 : i32
    scf.if %2 {
      %c0_10 = arith.constant 0 : index
      %c0_11 = arith.constant 0 : index
      %13 = vector.load %arg5[%c0_10, %c0_11] : memref<1x128xf32, #tpu.memory_space<vmem>>, vector<1x128xf32>
      %14 = vector.shape_cast %13 : vector<1x128xf32> to vector<1x128xf32>
      %15 = vector.broadcast %14 : vector<1x128xf32> to vector<8x128xf32>
      %c0_12 = arith.constant 0 : index
      %c0_13 = arith.constant 0 : index
      %16 = vector.load %arg7[%c0_12, %c0_13] : memref<8x128xf32, #tpu.memory_space<vmem>>, vector<8x128xf32>
      tpu.vector_store %arg7[%c0_12, %c0_13], %15 {strides = array<i32>} : memref<8x128xf32, #tpu.memory_space<vmem>>, vector<8x128xf32>,
    } else {
    }
    %c0 = arith.constant 0 : index
    %c0_1 = arith.constant 0 : index
    %3 = vector.load %arg7[%c0, %c0_1] : memref<8x128xf32, #tpu.memory_space<vmem>>, vector<8x128xf32>
    %c0_2 = arith.constant 0 : index
    %c0_3 = arith.constant 0 : index
    %4 = vector.load %arg3[%c0_2, %c0_3] : memref<8x256xf32, #tpu.memory_space<vmem>>, vector<8x256xf32>
    %5 = arith.truncf %4 : vector<8x256xf32> to vector<8x256xbf16>
    %c0_4 = arith.constant 0 : index
    %c0_5 = arith.constant 0 : index
    %6 = vector.load %arg4[%c0_4, %c0_5] : memref<256x128xbf16, #tpu.memory_space<vmem>>, vector<256x128xbf16>
    %cst = arith.constant dense<0.000000e+00> : vector<8x128xf32>
    %7 = tpu.matmul %5, %6, %cst {dimension_numbers = #tpu.dot_dimension_numbers<[1], [0], [0], [1], [0, 0, 1, 1], [], []>} : vector<8x256xbf16>, vector<256x128xbf16>, vector<8x128xf32> -> vector<8x128xf32>
    %8 = arith.addf %3, %7 : vector<8x128xf32>
    %c0_6 = arith.constant 0 : index
    %c0_7 = arith.constant 0 : index
    %9 = vector.load %arg7[%c0_6, %c0_7] : memref<8x128xf32, #tpu.memory_space<vmem>>, vector<8x128xf32>
    tpu.vector_store %arg7[%c0_6, %c0_7], %8 {strides = array<i32>} : memref<8x128xf32, #tpu.memory_space<vmem>>, vector<8x128xf32>,
    %c0_i32_8 = arith.constant 0 : i32
    %10 = arith.cmpi eq, %arg2, %c0_i32_8 : i32
    %11 = arith.extui %10 : i1 to i32
    %c0_i32_9 = arith.constant 0 : i32
    %12 = arith.cmpi ne, %11, %c0_i32_9 : i32
    scf.if %12 {
      %c0_10 = arith.constant 0 : index
      %c0_11 = arith.constant 0 : index
      %13 = vector.load %arg7[%c0_10, %c0_11] : memref<8x128xf32, #tpu.memory_space<vmem>>, vector<8x128xf32>
      %c0_12 = arith.constant 0 : index
      %c0_13 = arith.constant 0 : index
      %14 = vector.load %arg6[%c0_12, %c0_13] : memref<8x128xf32, #tpu.memory_space<vmem>>, vector<8x128xf32>
      tpu.vector_store %arg6[%c0_12, %c0_13], %13 {strides = array<i32>} : memref<8x128xf32, #tpu.memory_space<vmem>>, vector<8x128xf32>,
    } else {
    }
    return
  }
  func.func @transform_0(%arg0: i32, %arg1: i32, %arg2: i32) -> (i32, i32) {
    %c0_i32 = arith.constant 0 : i32
    return %arg0, %arg2 : i32, i32
  }
  func.func @transform_1(%arg0: i32, %arg1: i32, %arg2: i32) -> (i32, i32) {
    %c0_i32 = arith.constant 0 : i32
    return %arg2, %arg1 : i32, i32
  }
  func.func @transform_2(%arg0: i32, %arg1: i32, %arg2: i32) -> (i32, i32) {
    %c0_i32 = arith.constant 0 : i32
    %c0_i32_0 = arith.constant 0 : i32
    return %c0_i32, %arg1 : i32, i32
  }
  func.func @transform_3(%arg0: i32, %arg1: i32, %arg2: i32) -> (i32, i32) {
    %c0_i32 = arith.constant 0 : i32
    return %arg0, %arg1 : i32, i32
  }
}

module attributes {stable_mosaic.version = 11 : i64} {
  func.func @_linear_kernel(%arg0: i32, %arg1: i32, %arg2: i32, %arg3: memref<4x256xf32, #tpu.memory_space<vmem>>, %arg4: memref<256x128xbf16, #tpu.memory_space<vmem>>, %arg5: memref<1x128xf32, #tpu.memory_space<vmem>>, %arg6: memref<4x128xf32, #tpu.memory_space<vmem>>, %arg7: memref<4x128xf32, #tpu.memory_space<vmem>>) attributes {dimension_semantics = [#tpu.dimension_semantics<parallel>, #tpu.dimension_semantics<parallel>, #tpu.dimension_semantics<arbitrary>], iteration_bounds = array<i64: 1, 1, 1>, scalar_prefetch = 0 : i64, scratch_operands = 1 : i64, tpu.core_type = #tpu.core_type<tc>, window_params = [{transform_indices = @transform_0, window_bounds = array<i64: 4, 256>}, {transform_indices = @transform_1, window_bounds = array<i64: 256, 128>}, {transform_indices = @transform_2, window_bounds = array<i64: 1, 128>}, {transform_indices = @transform_3, window_bounds = array<i64: 4, 128>}]} {
    %c0_i32 = arith.constant 0 : i32
    %0 = arith.cmpi eq, %arg2, %c0_i32 : i32
    %1 = arith.extui %0 : i1 to i32
    %c0_i32_0 = arith.constant 0 : i32
    %2 = arith.cmpi ne, %1, %c0_i32_0 : i32
    scf.if %2 {
      %c0_10 = arith.constant 0 : index
      %c0_11 = arith.constant 0 : index
      %13 = vector.load %arg5[%c0_10, %c0_11] : memref<1x128xf32, #tpu.memory_space<vmem>>, vector<1x128xf32>
      %14 = vector.shape_cast %13 : vector<1x128xf32> to vector<1x128xf32>
      %15 = vector.broadcast %14 : vector<1x128xf32> to vector<4x128xf32>
      %c0_12 = arith.constant 0 : index
      %c0_13 = arith.constant 0 : index
      %16 = vector.load %arg7[%c0_12, %c0_13] : memref<4x128xf32, #tpu.memory_space<vmem>>, vector<4x128xf32>
      tpu.vector_store %arg7[%c0_12, %c0_13], %15 {strides = array<i32>} : memref<4x128xf32, #tpu.memory_space<vmem>>, vector<4x128xf32>,
    } else {
    }
    %c0 = arith.constant 0 : index
    %c0_1 = arith.constant 0 : index
    %3 = vector.load %arg7[%c0, %c0_1] : memref<4x128xf32, #tpu.memory_space<vmem>>, vector<4x128xf32>
    %c0_2 = arith.constant 0 : index
    %c0_3 = arith.constant 0 : index
    %4 = vector.load %arg3[%c0_2, %c0_3] : memref<4x256xf32, #tpu.memory_space<vmem>>, vector<4x256xf32>
    %5 = arith.truncf %4 : vector<4x256xf32> to vector<4x256xbf16>
    %c0_4 = arith.constant 0 : index
    %c0_5 = arith.constant 0 : index
    %6 = vector.load %arg4[%c0_4, %c0_5] : memref<256x128xbf16, #tpu.memory_space<vmem>>, vector<256x128xbf16>
    %cst = arith.constant dense<0.000000e+00> : vector<4x128xf32>
    %7 = tpu.matmul %5, %6, %cst {dimension_numbers = #tpu.dot_dimension_numbers<[1], [0], [0], [1], [0, 0, 1, 1], [], []>} : vector<4x256xbf16>, vector<256x128xbf16>, vector<4x128xf32> -> vector<4x128xf32>
    %8 = arith.addf %3, %7 : vector<4x128xf32>
    %c0_6 = arith.constant 0 : index
    %c0_7 = arith.constant 0 : index
    %9 = vector.load %arg7[%c0_6, %c0_7] : memref<4x128xf32, #tpu.memory_space<vmem>>, vector<4x128xf32>
    tpu.vector_store %arg7[%c0_6, %c0_7], %8 {strides = array<i32>} : memref<4x128xf32, #tpu.memory_space<vmem>>, vector<4x128xf32>,
    %c0_i32_8 = arith.constant 0 : i32
    %10 = arith.cmpi eq, %arg2, %c0_i32_8 : i32
    %11 = arith.extui %10 : i1 to i32
    %c0_i32_9 = arith.constant 0 : i32
    %12 = arith.cmpi ne, %11, %c0_i32_9 : i32
    scf.if %12 {
      %c0_10 = arith.constant 0 : index
      %c0_11 = arith.constant 0 : index
      %13 = vector.load %arg7[%c0_10, %c0_11] : memref<4x128xf32, #tpu.memory_space<vmem>>, vector<4x128xf32>
      %c0_12 = arith.constant 0 : index
      %c0_13 = arith.constant 0 : index
      %14 = vector.load %arg6[%c0_12, %c0_13] : memref<4x128xf32, #tpu.memory_space<vmem>>, vector<4x128xf32>
      tpu.vector_store %arg6[%c0_12, %c0_13], %13 {strides = array<i32>} : memref<4x128xf32, #tpu.memory_space<vmem>>, vector<4x128xf32>,
    } else {
    }
    return
  }
  func.func @transform_0(%arg0: i32, %arg1: i32, %arg2: i32) -> (i32, i32) {
    %c0_i32 = arith.constant 0 : i32
    return %arg0, %arg2 : i32, i32
  }
  func.func @transform_1(%arg0: i32, %arg1: i32, %arg2: i32) -> (i32, i32) {
    %c0_i32 = arith.constant 0 : i32
    return %arg2, %arg1 : i32, i32
  }
  func.func @transform_2(%arg0: i32, %arg1: i32, %arg2: i32) -> (i32, i32) {
    %c0_i32 = arith.constant 0 : i32
    %c0_i32_0 = arith.constant 0 : i32
    return %c0_i32, %arg1 : i32, i32
  }
  func.func @transform_3(%arg0: i32, %arg1: i32, %arg2: i32) -> (i32, i32) {
    %c0_i32 = arith.constant 0 : i32
    return %arg0, %arg1 : i32, i32
  }
}

module attributes {stable_mosaic.version = 11 : i64} {
  func.func @_rmsnorm_linear_kernel(%arg0: i32, %arg1: i32, %arg2: memref<4x128xf32, #tpu.memory_space<vmem>>, %arg3: memref<1x128xf32, #tpu.memory_space<vmem>>, %arg4: memref<128x512xbf16, #tpu.memory_space<vmem>>, %arg5: memref<4x512xf32, #tpu.memory_space<vmem>>, %arg6: memref<4x128xbf16, #tpu.memory_space<vmem>>) attributes {dimension_semantics = [#tpu.dimension_semantics<parallel>, #tpu.dimension_semantics<arbitrary>], iteration_bounds = array<i64: 1, 1>, scalar_prefetch = 0 : i64, scratch_operands = 1 : i64, tpu.core_type = #tpu.core_type<tc>, window_params = [{transform_indices = @transform_0, window_bounds = array<i64: 4, 128>}, {pipeline_mode = #tpu.pipeline_mode<synchronous>, transform_indices = @transform_1, window_bounds = array<i64: 1, 128>}, {transform_indices = @transform_2, window_bounds = array<i64: 128, 512>}, {transform_indices = @transform_3, window_bounds = array<i64: 4, 512>}]} {
    %c0_i32 = arith.constant 0 : i32
    %0 = arith.cmpi eq, %arg1, %c0_i32 : i32
    %1 = arith.extui %0 : i1 to i32
    %c0_i32_0 = arith.constant 0 : i32
    %2 = arith.cmpi ne, %1, %c0_i32_0 : i32
    scf.if %2 {
      %c0_6 = arith.constant 0 : index
      %c0_7 = arith.constant 0 : index
      %7 = vector.load %arg2[%c0_6, %c0_7] : memref<4x128xf32, #tpu.memory_space<vmem>>, vector<4x128xf32>
      %8 = arith.mulf %7, %7 : vector<4x128xf32>
      %cst_8 = arith.constant dense<0.000000e+00> : vector<4xf32>
      %9 = vector.multi_reduction <add>, %8, %cst_8 [1] : vector<4x128xf32> to vector<4xf32>
      %10 = vector.shape_cast %9 : vector<4xf32> to vector<4x1xf32>
      %cst_9 = arith.constant 1.280000e+02 : f32
      %11 = vector.broadcast %cst_9 : f32 to vector<4x1xf32>
      %12 = arith.divf %10, %11 : vector<4x1xf32>
      %cst_10 = arith.constant 9.99999974E-6 : f32
      %13 = vector.broadcast %cst_10 : f32 to vector<4x1xf32>
      %14 = arith.addf %12, %13 : vector<4x1xf32>
      %15 = math.rsqrt %14 : vector<4x1xf32>
      %16 = vector.broadcast %15 : vector<4x1xf32> to vector<4x128xf32>
      %17 = arith.mulf %7, %16 : vector<4x128xf32>
      %c0_11 = arith.constant 0 : index
      %c0_12 = arith.constant 0 : index
      %18 = vector.load %arg3[%c0_11, %c0_12] : memref<1x128xf32, #tpu.memory_space<vmem>>, vector<1x128xf32>
      %19 = vector.broadcast %18 : vector<1x128xf32> to vector<4x128xf32>
      %20 = arith.mulf %17, %19 : vector<4x128xf32>
      %21 = arith.truncf %20 : vector<4x128xf32> to vector<4x128xbf16>
      %c0_13 = arith.constant 0 : index
      %c0_14 = arith.constant 0 : index
      %22 = vector.load %arg6[%c0_13, %c0_14] : memref<4x128xbf16, #tpu.memory_space<vmem>>, vector<4x128xbf16>
      tpu.vector_store %arg6[%c0_13, %c0_14], %21 {strides = array<i32>} : memref<4x128xbf16, #tpu.memory_space<vmem>>, vector<4x128xbf16>,
    } else {
    }
    %c0 = arith.constant 0 : index
    %c0_1 = arith.constant 0 : index
    %3 = vector.load %arg6[%c0, %c0_1] : memref<4x128xbf16, #tpu.memory_space<vmem>>, vector<4x128xbf16>
    %c0_2 = arith.constant 0 : index
    %c0_3 = arith.constant 0 : index
    %4 = vector.load %arg4[%c0_2, %c0_3] : memref<128x512xbf16, #tpu.memory_space<vmem>>, vector<128x512xbf16>
    %cst = arith.constant dense<0.000000e+00> : vector<4x512xf32>
    %5 = tpu.matmul %3, %4, %cst {dimension_numbers = #tpu.dot_dimension_numbers<[1], [0], [0], [1], [0, 0, 1, 1], [], []>} : vector<4x128xbf16>, vector<128x512xbf16>, vector<4x512xf32> -> vector<4x512xf32>
    %c0_4 = arith.constant 0 : index
    %c0_5 = arith.constant 0 : index
    %6 = vector.load %arg5[%c0_4, %c0_5] : memref<4x512xf32, #tpu.memory_space<vmem>>, vector<4x512xf32>
    tpu.vector_store %arg5[%c0_4, %c0_5], %5 {strides = array<i32>} : memref<4x512xf32, #tpu.memory_space<vmem>>, vector<4x512xf32>,
    return
  }
  func.func @transform_0(%arg0: i32, %arg1: i32) -> (i32, i32) {
    %c0_i32 = arith.constant 0 : i32
    %c0_i32_0 = arith.constant 0 : i32
    return %arg0, %c0_i32 : i32, i32
  }
  func.func @transform_1(%arg0: i32, %arg1: i32) -> (i32, i32) {
    %c0_i32 = arith.constant 0 : i32
    %c0_i32_0 = arith.constant 0 : i32
    %c0_i32_1 = arith.constant 0 : i32
    return %c0_i32, %c0_i32_0 : i32, i32
  }
  func.func @transform_2(%arg0: i32, %arg1: i32) -> (i32, i32) {
    %c0_i32 = arith.constant 0 : i32
    %c0_i32_0 = arith.constant 0 : i32
    return %c0_i32, %arg1 : i32, i32
  }
  func.func @transform_3(%arg0: i32, %arg1: i32) -> (i32, i32) {
    %c0_i32 = arith.constant 0 : i32
    return %arg0, %arg1 : i32, i32
  }
}

module attributes {stable_mosaic.version = 11 : i64} {
  func.func @_conv_silu_kernel(%arg0: i32, %arg1: i32, %arg2: i32, %arg3: memref<1x2x256xf32, #tpu.memory_space<vmem>>, %arg4: memref<4x256xf32, #tpu.memory_space<vmem>>, %arg5: memref<1x256xf32, #tpu.memory_space<vmem>>, %arg6: memref<1x2x256xf32, #tpu.memory_space<vmem>>, %arg7: memref<3x256xf32, #tpu.memory_space<vmem>>) attributes {dimension_semantics = [#tpu.dimension_semantics<parallel>, #tpu.dimension_semantics<parallel>, #tpu.dimension_semantics<arbitrary>], iteration_bounds = array<i64: 2, 1, 1>, scalar_prefetch = 0 : i64, scratch_operands = 1 : i64, tpu.core_type = #tpu.core_type<tc>, window_params = [{transform_indices = @transform_0, window_bounds = array<i64: 1, 2, 256>}, {transform_indices = @transform_1, window_bounds = array<i64: 4, 256>}, {transform_indices = @transform_2, window_bounds = array<i64: 1, 256>}, {transform_indices = @transform_3, window_bounds = array<i64: 1, 2, 256>}]} {
    %c0_i32 = arith.constant 0 : i32
    %0 = arith.cmpi eq, %arg2, %c0_i32 : i32
    %1 = arith.extui %0 : i1 to i32
    %c0_i32_0 = arith.constant 0 : i32
    %2 = arith.cmpi ne, %1, %c0_i32_0 : i32
    scf.if %2 {
      %cst_17 = arith.constant 0.000000e+00 : f32
      %41 = vector.broadcast %cst_17 : f32 to vector<3x256xf32>
      %c0_18 = arith.constant 0 : index
      %c0_19 = arith.constant 0 : index
      %42 = vector.load %arg7[%c0_18, %c0_19] : memref<3x256xf32, #tpu.memory_space<vmem>>, vector<3x256xf32>
      tpu.vector_store %arg7[%c0_18, %c0_19], %41 {strides = array<i32>} : memref<3x256xf32, #tpu.memory_space<vmem>>, vector<3x256xf32>,
    } else {
    }
    %c0 = arith.constant 0 : index
    %c0_1 = arith.constant 0 : index
    %c0_2 = arith.constant 0 : index
    %3 = vector.load %arg3[%c0, %c0_1, %c0_2] : memref<1x2x256xf32, #tpu.memory_space<vmem>>, vector<1x2x256xf32>
    %4 = vector.shape_cast %3 : vector<1x2x256xf32> to vector<2x256xf32>
    %c0_3 = arith.constant 0 : index
    %c0_4 = arith.constant 0 : index
    %5 = vector.load %arg7[%c0_3, %c0_4] : memref<3x256xf32, #tpu.memory_space<vmem>>, vector<3x256xf32>
    %6 = tpu.concatenate %5, %4 in 0 : vector<3x256xf32>, vector<2x256xf32> -> vector<5x256xf32>
    %c0_5 = arith.constant 0 : index
    %c0_6 = arith.constant 0 : index
    %7 = vector.load %arg5[%c0_5, %c0_6] : memref<1x256xf32, #tpu.memory_space<vmem>>, vector<1x256xf32>
    %8 = vector.shape_cast %7 : vector<1x256xf32> to vector<1x256xf32>
    %9 = vector.broadcast %8 : vector<1x256xf32> to vector<2x256xf32>
    %c0_7 = arith.constant 0 : index
    %c0_8 = arith.constant 0 : index
    %10 = vector.load %arg4[%c0_7, %c0_8] : memref<4x256xf32, #tpu.memory_space<vmem>>, vector<1x256xf32>
    %11 = vector.extract_strided_slice %6 {offsets = [0, 0], sizes = [2, 256], strides = [1, 1]} : vector<5x256xf32> to vector<2x256xf32>
    %12 = vector.broadcast %10 : vector<1x256xf32> to vector<2x256xf32>
    %13 = arith.mulf %12, %11 : vector<2x256xf32>
    %14 = arith.addf %9, %13 : vector<2x256xf32>
    %c1 = arith.constant 1 : index
    %c0_9 = arith.constant 0 : index
    %15 = vector.load %arg4[%c1, %c0_9] : memref<4x256xf32, #tpu.memory_space<vmem>>, vector<1x256xf32>
    %16 = vector.extract_strided_slice %6 {offsets = [1, 0], sizes = [2, 256], strides = [1, 1]} : vector<5x256xf32> to vector<2x256xf32>
    %17 = vector.broadcast %15 : vector<1x256xf32> to vector<2x256xf32>
    %18 = arith.mulf %17, %16 : vector<2x256xf32>
    %19 = arith.addf %14, %18 : vector<2x256xf32>
    %c2 = arith.constant 2 : index
    %c0_10 = arith.constant 0 : index
    %20 = vector.load %arg4[%c2, %c0_10] : memref<4x256xf32, #tpu.memory_space<vmem>>, vector<1x256xf32>
    %21 = vector.extract_strided_slice %6 {offsets = [2, 0], sizes = [2, 256], strides = [1, 1]} : vector<5x256xf32> to vector<2x256xf32>
    %22 = vector.broadcast %20 : vector<1x256xf32> to vector<2x256xf32>
    %23 = arith.mulf %22, %21 : vector<2x256xf32>
    %24 = arith.addf %19, %23 : vector<2x256xf32>
    %c3 = arith.constant 3 : index
    %c0_11 = arith.constant 0 : index
    %25 = vector.load %arg4[%c3, %c0_11] : memref<4x256xf32, #tpu.memory_space<vmem>>, vector<1x256xf32>
    %26 = vector.extract_strided_slice %6 {offsets = [3, 0], sizes = [2, 256], strides = [1, 1]} : vector<5x256xf32> to vector<2x256xf32>
    %27 = vector.broadcast %25 : vector<1x256xf32> to vector<2x256xf32>
    %28 = arith.mulf %27, %26 : vector<2x256xf32>
    %29 = arith.addf %24, %28 : vector<2x256xf32>
    %30 = arith.negf %29 : vector<2x256xf32>
    %31 = math.exp %30 : vector<2x256xf32>
    %cst = arith.constant 1.000000e+00 : f32
    %32 = vector.broadcast %cst : f32 to vector<2x256xf32>
    %33 = arith.addf %32, %31 : vector<2x256xf32>
    %34 = arith.divf %32, %33 : vector<2x256xf32>
    %35 = arith.mulf %29, %34 : vector<2x256xf32>
    %c0_12 = arith.constant 0 : index
    %c0_13 = arith.constant 0 : index
    %c0_14 = arith.constant 0 : index
    %36 = vector.load %arg6[%c0_12, %c0_13, %c0_14] : memref<1x2x256xf32, #tpu.memory_space<vmem>>, vector<1x2x256xf32>
    %37 = vector.shape_cast %36 : vector<1x2x256xf32> to vector<2x256xf32>
    %38 = vector.shape_cast %35 : vector<2x256xf32> to vector<1x2x256xf32>
    tpu.vector_store %arg6[%c0_12, %c0_13, %c0_14], %38 {strides = array<i32>} : memref<1x2x256xf32, #tpu.memory_space<vmem>>, vector<1x2x256xf32>,
    %39 = vector.extract_strided_slice %6 {offsets = [2, 0], sizes = [3, 256], strides = [1, 1]} : vector<5x256xf32> to vector<3x256xf32>
    %c0_15 = arith.constant 0 : index
    %c0_16 = arith.constant 0 : index
    %40 = vector.load %arg7[%c0_15, %c0_16] : memref<3x256xf32, #tpu.memory_space<vmem>>, vector<3x256xf32>
    tpu.vector_store %arg7[%c0_15, %c0_16], %39 {strides = array<i32>} : memref<3x256xf32, #tpu.memory_space<vmem>>, vector<3x256xf32>,
    return
  }
  func.func @transform_0(%arg0: i32, %arg1: i32, %arg2: i32) -> (i32, i32, i32) {
    %c0_i32 = arith.constant 0 : i32
    return %arg0, %arg2, %arg1 : i32, i32, i32
  }
  func.func @transform_1(%arg0: i32, %arg1: i32, %arg2: i32) -> (i32, i32) {
    %c0_i32 = arith.constant 0 : i32
    %c0_i32_0 = arith.constant 0 : i32
    return %c0_i32, %arg1 : i32, i32
  }
  func.func @transform_2(%arg0: i32, %arg1: i32, %arg2: i32) -> (i32, i32) {
    %c0_i32 = arith.constant 0 : i32
    %c0_i32_0 = arith.constant 0 : i32
    return %c0_i32, %arg1 : i32, i32
  }
  func.func @transform_3(%arg0: i32, %arg1: i32, %arg2: i32) -> (i32, i32, i32) {
    %c0_i32 = arith.constant 0 : i32
    return %arg0, %arg2, %arg1 : i32, i32, i32
  }
}

module attributes {stable_mosaic.version = 11 : i64} {
  func.func @_linear_kernel(%arg0: i32, %arg1: i32, %arg2: i32, %arg3: memref<4x256xf32, #tpu.memory_space<vmem>>, %arg4: memref<256x128xbf16, #tpu.memory_space<vmem>>, %arg5: memref<1x128xf32, #tpu.memory_space<vmem>>, %arg6: memref<4x128xf32, #tpu.memory_space<vmem>>, %arg7: memref<4x128xf32, #tpu.memory_space<vmem>>) attributes {dimension_semantics = [#tpu.dimension_semantics<parallel>, #tpu.dimension_semantics<parallel>, #tpu.dimension_semantics<arbitrary>], iteration_bounds = array<i64: 1, 1, 1>, scalar_prefetch = 0 : i64, scratch_operands = 1 : i64, tpu.core_type = #tpu.core_type<tc>, window_params = [{transform_indices = @transform_0, window_bounds = array<i64: 4, 256>}, {transform_indices = @transform_1, window_bounds = array<i64: 256, 128>}, {transform_indices = @transform_2, window_bounds = array<i64: 1, 128>}, {transform_indices = @transform_3, window_bounds = array<i64: 4, 128>}]} {
    %c0_i32 = arith.constant 0 : i32
    %0 = arith.cmpi eq, %arg2, %c0_i32 : i32
    %1 = arith.extui %0 : i1 to i32
    %c0_i32_0 = arith.constant 0 : i32
    %2 = arith.cmpi ne, %1, %c0_i32_0 : i32
    scf.if %2 {
      %c0_10 = arith.constant 0 : index
      %c0_11 = arith.constant 0 : index
      %13 = vector.load %arg5[%c0_10, %c0_11] : memref<1x128xf32, #tpu.memory_space<vmem>>, vector<1x128xf32>
      %14 = vector.shape_cast %13 : vector<1x128xf32> to vector<1x128xf32>
      %15 = vector.broadcast %14 : vector<1x128xf32> to vector<4x128xf32>
      %c0_12 = arith.constant 0 : index
      %c0_13 = arith.constant 0 : index
      %16 = vector.load %arg7[%c0_12, %c0_13] : memref<4x128xf32, #tpu.memory_space<vmem>>, vector<4x128xf32>
      tpu.vector_store %arg7[%c0_12, %c0_13], %15 {strides = array<i32>} : memref<4x128xf32, #tpu.memory_space<vmem>>, vector<4x128xf32>,
    } else {
    }
    %c0 = arith.constant 0 : index
    %c0_1 = arith.constant 0 : index
    %3 = vector.load %arg7[%c0, %c0_1] : memref<4x128xf32, #tpu.memory_space<vmem>>, vector<4x128xf32>
    %c0_2 = arith.constant 0 : index
    %c0_3 = arith.constant 0 : index
    %4 = vector.load %arg3[%c0_2, %c0_3] : memref<4x256xf32, #tpu.memory_space<vmem>>, vector<4x256xf32>
    %5 = arith.truncf %4 : vector<4x256xf32> to vector<4x256xbf16>
    %c0_4 = arith.constant 0 : index
    %c0_5 = arith.constant 0 : index
    %6 = vector.load %arg4[%c0_4, %c0_5] : memref<256x128xbf16, #tpu.memory_space<vmem>>, vector<256x128xbf16>
    %cst = arith.constant dense<0.000000e+00> : vector<4x128xf32>
    %7 = tpu.matmul %5, %6, %cst {dimension_numbers = #tpu.dot_dimension_numbers<[1], [0], [0], [1], [0, 0, 1, 1], [], []>} : vector<4x256xbf16>, vector<256x128xbf16>, vector<4x128xf32> -> vector<4x128xf32>
    %8 = arith.addf %3, %7 : vector<4x128xf32>
    %c0_6 = arith.constant 0 : index
    %c0_7 = arith.constant 0 : index
    %9 = vector.load %arg7[%c0_6, %c0_7] : memref<4x128xf32, #tpu.memory_space<vmem>>, vector<4x128xf32>
    tpu.vector_store %arg7[%c0_6, %c0_7], %8 {strides = array<i32>} : memref<4x128xf32, #tpu.memory_space<vmem>>, vector<4x128xf32>,
    %c0_i32_8 = arith.constant 0 : i32
    %10 = arith.cmpi eq, %arg2, %c0_i32_8 : i32
    %11 = arith.extui %10 : i1 to i32
    %c0_i32_9 = arith.constant 0 : i32
    %12 = arith.cmpi ne, %11, %c0_i32_9 : i32
    scf.if %12 {
      %c0_10 = arith.constant 0 : index
      %c0_11 = arith.constant 0 : index
      %13 = vector.load %arg7[%c0_10, %c0_11] : memref<4x128xf32, #tpu.memory_space<vmem>>, vector<4x128xf32>
      %c0_12 = arith.constant 0 : index
      %c0_13 = arith.constant 0 : index
      %14 = vector.load %arg6[%c0_12, %c0_13] : memref<4x128xf32, #tpu.memory_space<vmem>>, vector<4x128xf32>
      tpu.vector_store %arg6[%c0_12, %c0_13], %13 {strides = array<i32>} : memref<4x128xf32, #tpu.memory_space<vmem>>, vector<4x128xf32>,
    } else {
    }
    return
  }
  func.func @transform_0(%arg0: i32, %arg1: i32, %arg2: i32) -> (i32, i32) {
    %c0_i32 = arith.constant 0 : i32
    return %arg0, %arg2 : i32, i32
  }
  func.func @transform_1(%arg0: i32, %arg1: i32, %arg2: i32) -> (i32, i32) {
    %c0_i32 = arith.constant 0 : i32
    return %arg2, %arg1 : i32, i32
  }
  func.func @transform_2(%arg0: i32, %arg1: i32, %arg2: i32) -> (i32, i32) {
    %c0_i32 = arith.constant 0 : i32
    %c0_i32_0 = arith.constant 0 : i32
    return %c0_i32, %arg1 : i32, i32
  }
  func.func @transform_3(%arg0: i32, %arg1: i32, %arg2: i32) -> (i32, i32) {
    %c0_i32 = arith.constant 0 : i32
    return %arg0, %arg1 : i32, i32
  }
}

module attributes {stable_mosaic.version = 11 : i64} {
  func.func @_scan_kernel(%arg0: i32, %arg1: i32, %arg2: i32, %arg3: memref<1x2x8xf32, #tpu.memory_space<vmem>>, %arg4: memref<8x256xbf16, #tpu.memory_space<vmem>>, %arg5: memref<1x256xf32, #tpu.memory_space<vmem>>, %arg6: memref<1x1x8x2xf32, #tpu.memory_space<vmem>>, %arg7: memref<1x1x8x2xf32, #tpu.memory_space<vmem>>, %arg8: memref<1x2x256xf32, #tpu.memory_space<vmem>>, %arg9: memref<1x2x256xf32, #tpu.memory_space<vmem>>, %arg10: memref<8x256xf32, #tpu.memory_space<vmem>>, %arg11: memref<1x256xf32, #tpu.memory_space<vmem>>, %arg12: memref<1x2x256xf32, #tpu.memory_space<vmem>>, %arg13: memref<8x256xf32, #tpu.memory_space<vmem>>) attributes {dimension_semantics = [#tpu.dimension_semantics<parallel>, #tpu.dimension_semantics<parallel>, #tpu.dimension_semantics<arbitrary>], iteration_bounds = array<i64: 2, 1, 1>, scalar_prefetch = 0 : i64, scratch_operands = 1 : i64, tpu.core_type = #tpu.core_type<tc>, window_params = [{transform_indices = @transform_0, window_bounds = array<i64: 1, 2, 8>}, {transform_indices = @transform_1, window_bounds = array<i64: 8, 256>}, {transform_indices = @transform_2, window_bounds = array<i64: 1, 256>}, {transform_indices = @transform_3, window_bounds = array<i64: 1, 1, 8, 2>}, {transform_indices = @transform_4, window_bounds = array<i64: 1, 1, 8, 2>}, {transform_indices = @transform_5, window_bounds = array<i64: 1, 2, 256>}, {transform_indices = @transform_6, window_bounds = array<i64: 1, 2, 256>}, {transform_indices = @transform_7, window_bounds = array<i64: 8, 256>}, {transform_indices = @transform_8, window_bounds = array<i64: 1, 256>}, {transform_indices = @transform_9, window_bounds = array<i64: 1, 2, 256>}]} {
    %c0_i32 = arith.constant 0 : i32
    %0 = arith.cmpi eq, %arg2, %c0_i32 : i32
    %1 = arith.extui %0 : i1 to i32
    %c0_i32_0 = arith.constant 0 : i32
    %2 = arith.cmpi ne, %1, %c0_i32_0 : i32
    scf.if %2 {
      %cst_38 = arith.constant 0.000000e+00 : f32
      %80 = vector.broadcast %cst_38 : f32 to vector<8x256xf32>
      %c0_39 = arith.constant 0 : index
      %c0_40 = arith.constant 0 : index
      %81 = vector.load %arg13[%c0_39, %c0_40] : memref<8x256xf32, #tpu.memory_space<vmem>>, vector<8x256xf32>
      tpu.vector_store %arg13[%c0_39, %c0_40], %80 {strides = array<i32>} : memref<8x256xf32, #tpu.memory_space<vmem>>, vector<8x256xf32>,
    } else {
    }
    %c0 = arith.constant 0 : index
    %c0_1 = arith.constant 0 : index
    %3 = vector.load %arg10[%c0, %c0_1] : memref<8x256xf32, #tpu.memory_space<vmem>>, vector<8x256xf32>
    %c0_2 = arith.constant 0 : index
    %c0_3 = arith.constant 0 : index
    %4 = vector.load %arg11[%c0_2, %c0_3] : memref<1x256xf32, #tpu.memory_space<vmem>>, vector<1x256xf32>
    %c0_4 = arith.constant 0 : index
    %c0_5 = arith.constant 0 : index
    %c0_6 = arith.constant 0 : index
    %c0_7 = arith.constant 0 : index
    %5 = vector.load %arg6[%c0_4, %c0_5, %c0_6, %c0_7] : memref<1x1x8x2xf32, #tpu.memory_space<vmem>>, vector<1x1x8x2xf32>
    %6 = vector.shape_cast %5 : vector<1x1x8x2xf32> to vector<8x2xf32>
    %c0_8 = arith.constant 0 : index
    %c0_9 = arith.constant 0 : index
    %c0_10 = arith.constant 0 : index
    %c0_11 = arith.constant 0 : index
    %7 = vector.load %arg7[%c0_8, %c0_9, %c0_10, %c0_11] : memref<1x1x8x2xf32, #tpu.memory_space<vmem>>, vector<1x1x8x2xf32>
    %8 = vector.shape_cast %7 : vector<1x1x8x2xf32> to vector<8x2xf32>
    %c0_12 = arith.constant 0 : index
    %c0_13 = arith.constant 0 : index
    %9 = vector.load %arg4[%c0_12, %c0_13] : memref<8x256xbf16, #tpu.memory_space<vmem>>, vector<8x256xbf16>
    %c0_14 = arith.constant 0 : index
    %c0_15 = arith.constant 0 : index
    %10 = vector.load %arg5[%c0_14, %c0_15] : memref<1x256xf32, #tpu.memory_space<vmem>>, vector<1x256xf32>
    %c0_16 = arith.constant 0 : index
    %c0_17 = arith.constant 0 : index
    %11 = vector.load %arg13[%c0_16, %c0_17] : memref<8x256xf32, #tpu.memory_space<vmem>>, vector<8x256xf32>
    %c0_18 = arith.constant 0 : index
    %c0_19 = arith.constant 0 : index
    %c0_20 = arith.constant 0 : index
    %12 = vector.load %arg8[%c0_18, %c0_19, %c0_20] : memref<1x2x256xf32, #tpu.memory_space<vmem>>, vector<1x2x256xf32>
    %13 = vector.shape_cast %12 : vector<1x2x256xf32> to vector<2x256xf32>
    %c0_21 = arith.constant 0 : index
    %c0_22 = arith.constant 0 : index
    %c0_23 = arith.constant 0 : index
    %14 = vector.load %arg9[%c0_21, %c0_22, %c0_23] : memref<1x2x256xf32, #tpu.memory_space<vmem>>, vector<1x2x256xf32>
    %15 = vector.shape_cast %14 : vector<1x2x256xf32> to vector<2x256xf32>
    %c0_24 = arith.constant 0 : index
    %c0_25 = arith.constant 0 : index
    %c0_26 = arith.constant 0 : index
    %16 = vector.load %arg3[%c0_24, %c0_25, %c0_26] : memref<1x2x8xf32, #tpu.memory_space<vmem>>, vector<1x2x8xf32>
    %17 = vector.shape_cast %16 : vector<1x2x8xf32> to vector<2x8xf32>
    %18 = arith.truncf %17 : vector<2x8xf32> to vector<2x8xbf16>
    %cst = arith.constant dense<0.000000e+00> : vector<2x256xf32>
    %19 = tpu.matmul %18, %9, %cst {dimension_numbers = #tpu.dot_dimension_numbers<[1], [0], [0], [1], [0, 0, 1, 1], [], []>} : vector<2x8xbf16>, vector<8x256xbf16>, vector<2x256xf32> -> vector<2x256xf32>
    %20 = vector.broadcast %10 : vector<1x256xf32> to vector<2x256xf32>
    %21 = arith.addf %19, %20 : vector<2x256xf32>
    %cst_27 = arith.constant 0.000000e+00 : f32
    %22 = vector.broadcast %cst_27 : f32 to vector<2x256xf32>
    %23 = arith.maximumf %21, %22 : vector<2x256xf32>
    %24 = math.absf %21 : vector<2x256xf32>
    %cst_28 = arith.constant 0.000000e+00 : f32
    %25 = vector.broadcast %cst_28 : f32 to vector<2x256xf32>
    %26 = arith.subf %25, %24 : vector<2x256xf32>
    %27 = math.exp %26 : vector<2x256xf32>
    %cst_29 = arith.constant 1.000000e+00 : f32
    %28 = vector.broadcast %cst_29 : f32 to vector<2x256xf32>
    %29 = arith.addf %28, %27 : vector<2x256xf32>
    %30 = math.log %29 : vector<2x256xf32>
    %31 = arith.addf %23, %30 : vector<2x256xf32>
    %32 = arith.mulf %31, %13 : vector<2x256xf32>
    %33 = vector.extract_strided_slice %31 {offsets = [0, 0], sizes = [1, 256], strides = [1, 1]} : vector<2x256xf32> to vector<1x256xf32>
    %34 = vector.broadcast %33 : vector<1x256xf32> to vector<8x256xf32>
    %35 = arith.mulf %34, %3 : vector<8x256xf32>
    %36 = math.exp %35 : vector<8x256xf32>
    %37 = vector.extract_strided_slice %6 {offsets = [0, 0], sizes = [8, 1], strides = [1, 1]} : vector<8x2xf32> to vector<8x1xf32>
    %38 = vector.extract_strided_slice %32 {offsets = [0, 0], sizes = [1, 256], strides = [1, 1]} : vector<2x256xf32> to vector<1x256xf32>
    %39 = vector.broadcast %37 : vector<8x1xf32> to vector<8x256xf32>
    %40 = vector.broadcast %38 : vector<1x256xf32> to vector<8x256xf32>
    %41 = arith.mulf %39, %40 : vector<8x256xf32>
    %42 = arith.mulf %36, %11 : vector<8x256xf32>
    %43 = arith.addf %42, %41 : vector<8x256xf32>
    %44 = vector.extract_strided_slice %8 {offsets = [0, 0], sizes = [8, 1], strides = [1, 1]} : vector<8x2xf32> to vector<8x1xf32>
    %45 = vector.broadcast %44 : vector<8x1xf32> to vector<8x256xf32>
    %46 = arith.mulf %45, %43 : vector<8x256xf32>
    %cst_30 = arith.constant dense<0.000000e+00> : vector<256xf32>
    %47 = vector.multi_reduction <add>, %46, %cst_30 [0] : vector<8x256xf32> to vector<256xf32>
    %48 = vector.shape_cast %47 : vector<256xf32> to vector<1x256xf32>
    %49 = vector.extract_strided_slice %31 {offsets = [1, 0], sizes = [1, 256], strides = [1, 1]} : vector<2x256xf32> to vector<1x256xf32>
    %50 = vector.broadcast %49 : vector<1x256xf32> to vector<8x256xf32>
    %51 = arith.mulf %50, %3 : vector<8x256xf32>
    %52 = math.exp %51 : vector<8x256xf32>
    %53 = vector.extract_strided_slice %6 {offsets = [0, 1], sizes = [8, 1], strides = [1, 1]} : vector<8x2xf32> to vector<8x1xf32>
    %54 = vector.extract_strided_slice %32 {offsets = [1, 0], sizes = [1, 256], strides = [1, 1]} : vector<2x256xf32> to vector<1x256xf32>
    %55 = vector.broadcast %53 : vector<8x1xf32> to vector<8x256xf32>
    %56 = vector.broadcast %54 : vector<1x256xf32> to vector<8x256xf32>
    %57 = arith.mulf %55, %56 : vector<8x256xf32>
    %58 = arith.mulf %52, %43 : vector<8x256xf32>
    %59 = arith.addf %58, %57 : vector<8x256xf32>
    %60 = vector.extract_strided_slice %8 {offsets = [0, 1], sizes = [8, 1], strides = [1, 1]} : vector<8x2xf32> to vector<8x1xf32>
    %61 = vector.broadcast %60 : vector<8x1xf32> to vector<8x256xf32>
    %62 = arith.mulf %61, %59 : vector<8x256xf32>
    %cst_31 = arith.constant dense<0.000000e+00> : vector<256xf32>
    %63 = vector.multi_reduction <add>, %62, %cst_31 [0] : vector<8x256xf32> to vector<256xf32>
    %64 = vector.shape_cast %63 : vector<256xf32> to vector<1x256xf32>
    %65 = tpu.concatenate %48, %64 in 0 : vector<1x256xf32>, vector<1x256xf32> -> vector<2x256xf32>
    %66 = vector.broadcast %4 : vector<1x256xf32> to vector<2x256xf32>
    %67 = arith.mulf %66, %13 : vector<2x256xf32>
    %68 = arith.addf %65, %67 : vector<2x256xf32>
    %69 = arith.negf %15 : vector<2x256xf32>
    %70 = math.exp %69 : vector<2x256xf32>
    %cst_32 = arith.constant 1.000000e+00 : f32
    %71 = vector.broadcast %cst_32 : f32 to vector<2x256xf32>
    %72 = arith.addf %71, %70 : vector<2x256xf32>
    %73 = arith.divf %71, %72 : vector<2x256xf32>
    %74 = arith.mulf %15, %73 : vector<2x256xf32>
    %75 = arith.mulf %68, %74 : vector<2x256xf32>
    %c0_33 = arith.constant 0 : index
    %c0_34 = arith.constant 0 : index
    %c0_35 = arith.constant 0 : index
    %76 = vector.load %arg12[%c0_33, %c0_34, %c0_35] : memref<1x2x256xf32, #tpu.memory_space<vmem>>, vector<1x2x256xf32>
    %77 = vector.shape_cast %76 : vector<1x2x256xf32> to vector<2x256xf32>
    %78 = vector.shape_cast %75 : vector<2x256xf32> to vector<1x2x256xf32>
    tpu.vector_store %arg12[%c0_33, %c0_34, %c0_35], %78 {strides = array<i32>} : memref<1x2x256xf32, #tpu.memory_space<vmem>>, vector<1x2x256xf32>,
    %c0_36 = arith.constant 0 : index
    %c0_37 = arith.constant 0 : index
    %79 = vector.load %arg13[%c0_36, %c0_37] : memref<8x256xf32, #tpu.memory_space<vmem>>, vector<8x256xf32>
    tpu.vector_store %arg13[%c0_36, %c0_37], %59 {strides = array<i32>} : memref<8x256xf32, #tpu.memory_space<vmem>>, vector<8x256xf32>,
    return
  }
  func.func @transform_0(%arg0: i32, %arg1: i32, %arg2: i32) -> (i32, i32, i32) {
    %c0_i32 = arith.constant 0 : i32
    %c0_i32_0 = arith.constant 0 : i32
    return %arg0, %arg2, %c0_i32 : i32, i32, i32
  }
  func.func @transform_1(%arg0: i32, %arg1: i32, %arg2: i32) -> (i32, i32) {
    %c0_i32 = arith.constant 0 : i32
    %c0_i32_0 = arith.constant 0 : i32
    return %c0_i32, %arg1 : i32, i32
  }
  func.func @transform_2(%arg0: i32, %arg1: i32, %arg2: i32) -> (i32, i32) {
    %c0_i32 = arith.constant 0 : i32
    %c0_i32_0 = arith.constant 0 : i32
    return %c0_i32, %arg1 : i32, i32
  }
  func.func @transform_3(%arg0: i32, %arg1: i32, %arg2: i32) -> (i32, i32, i32, i32) {
    %c0_i32 = arith.constant 0 : i32
    %c0_i32_0 = arith.constant 0 : i32
    %c0_i32_1 = arith.constant 0 : i32
    return %arg0, %arg2, %c0_i32, %c0_i32_0 : i32, i32, i32, i32
  }
  func.func @transform_4(%arg0: i32, %arg1: i32, %arg2: i32) -> (i32, i32, i32, i32) {
    %c0_i32 = arith.constant 0 : i32
    %c0_i32_0 = arith.constant 0 : i32
    %c0_i32_1 = arith.constant 0 : i32
    return %arg0, %arg2, %c0_i32, %c0_i32_0 : i32, i32, i32, i32
  }
  func.func @transform_5(%arg0: i32, %arg1: i32, %arg2: i32) -> (i32, i32, i32) {
    %c0_i32 = arith.constant 0 : i32
    return %arg0, %arg2, %arg1 : i32, i32, i32
  }
  func.func @transform_6(%arg0: i32, %arg1: i32, %arg2: i32) -> (i32, i32, i32) {
    %c0_i32 = arith.constant 0 : i32
    return %arg0, %arg2, %arg1 : i32, i32, i32
  }
  func.func @transform_7(%arg0: i32, %arg1: i32, %arg2: i32) -> (i32, i32) {
    %c0_i32 = arith.constant 0 : i32
    %c0_i32_0 = arith.constant 0 : i32
    return %c0_i32, %arg1 : i32, i32
  }
  func.func @transform_8(%arg0: i32, %arg1: i32, %arg2: i32) -> (i32, i32) {
    %c0_i32 = arith.constant 0 : i32
    %c0_i32_0 = arith.constant 0 : i32
    return %c0_i32, %arg1 : i32, i32
  }
  func.func @transform_9(%arg0: i32, %arg1: i32, %arg2: i32) -> (i32, i32, i32) {
    %c0_i32 = arith.constant 0 : i32
    return %arg0, %arg2, %arg1 : i32, i32, i32
  }
}

module attributes {stable_mosaic.version = 11 : i64} {
  func.func @_rmsnorm_linear_kernel(%arg0: i32, %arg1: i32, %arg2: memref<4x64xf32, #tpu.memory_space<vmem>>, %arg3: memref<1x64xf32, #tpu.memory_space<vmem>>, %arg4: memref<64x256xbf16, #tpu.memory_space<vmem>>, %arg5: memref<4x256xf32, #tpu.memory_space<vmem>>, %arg6: memref<4x64xbf16, #tpu.memory_space<vmem>>) attributes {dimension_semantics = [#tpu.dimension_semantics<parallel>, #tpu.dimension_semantics<arbitrary>], iteration_bounds = array<i64: 1, 1>, scalar_prefetch = 0 : i64, scratch_operands = 1 : i64, tpu.core_type = #tpu.core_type<tc>, window_params = [{transform_indices = @transform_0, window_bounds = array<i64: 4, 64>}, {pipeline_mode = #tpu.pipeline_mode<synchronous>, transform_indices = @transform_1, window_bounds = array<i64: 1, 64>}, {transform_indices = @transform_2, window_bounds = array<i64: 64, 256>}, {transform_indices = @transform_3, window_bounds = array<i64: 4, 256>}]} {
    %c0_i32 = arith.constant 0 : i32
    %0 = arith.cmpi eq, %arg1, %c0_i32 : i32
    %1 = arith.extui %0 : i1 to i32
    %c0_i32_0 = arith.constant 0 : i32
    %2 = arith.cmpi ne, %1, %c0_i32_0 : i32
    scf.if %2 {
      %c0_6 = arith.constant 0 : index
      %c0_7 = arith.constant 0 : index
      %7 = vector.load %arg2[%c0_6, %c0_7] : memref<4x64xf32, #tpu.memory_space<vmem>>, vector<4x64xf32>
      %8 = arith.mulf %7, %7 : vector<4x64xf32>
      %cst_8 = arith.constant dense<0.000000e+00> : vector<4xf32>
      %9 = vector.multi_reduction <add>, %8, %cst_8 [1] : vector<4x64xf32> to vector<4xf32>
      %10 = vector.shape_cast %9 : vector<4xf32> to vector<4x1xf32>
      %cst_9 = arith.constant 6.400000e+01 : f32
      %11 = vector.broadcast %cst_9 : f32 to vector<4x1xf32>
      %12 = arith.divf %10, %11 : vector<4x1xf32>
      %cst_10 = arith.constant 9.99999974E-6 : f32
      %13 = vector.broadcast %cst_10 : f32 to vector<4x1xf32>
      %14 = arith.addf %12, %13 : vector<4x1xf32>
      %15 = math.rsqrt %14 : vector<4x1xf32>
      %16 = vector.broadcast %15 : vector<4x1xf32> to vector<4x64xf32>
      %17 = arith.mulf %7, %16 : vector<4x64xf32>
      %c0_11 = arith.constant 0 : index
      %c0_12 = arith.constant 0 : index
      %18 = vector.load %arg3[%c0_11, %c0_12] : memref<1x64xf32, #tpu.memory_space<vmem>>, vector<1x64xf32>
      %19 = vector.broadcast %18 : vector<1x64xf32> to vector<4x64xf32>
      %20 = arith.mulf %17, %19 : vector<4x64xf32>
      %21 = arith.truncf %20 : vector<4x64xf32> to vector<4x64xbf16>
      %c0_13 = arith.constant 0 : index
      %c0_14 = arith.constant 0 : index
      %22 = vector.load %arg6[%c0_13, %c0_14] : memref<4x64xbf16, #tpu.memory_space<vmem>>, vector<4x64xbf16>
      tpu.vector_store %arg6[%c0_13, %c0_14], %21 {strides = array<i32>} : memref<4x64xbf16, #tpu.memory_space<vmem>>, vector<4x64xbf16>,
    } else {
    }
    %c0 = arith.constant 0 : index
    %c0_1 = arith.constant 0 : index
    %3 = vector.load %arg6[%c0, %c0_1] : memref<4x64xbf16, #tpu.memory_space<vmem>>, vector<4x64xbf16>
    %c0_2 = arith.constant 0 : index
    %c0_3 = arith.constant 0 : index
    %4 = vector.load %arg4[%c0_2, %c0_3] : memref<64x256xbf16, #tpu.memory_space<vmem>>, vector<64x256xbf16>
    %cst = arith.constant dense<0.000000e+00> : vector<4x256xf32>
    %5 = tpu.matmul %3, %4, %cst {dimension_numbers = #tpu.dot_dimension_numbers<[1], [0], [0], [1], [0, 0, 1, 1], [], []>} : vector<4x64xbf16>, vector<64x256xbf16>, vector<4x256xf32> -> vector<4x256xf32>
    %c0_4 = arith.constant 0 : index
    %c0_5 = arith.constant 0 : index
    %6 = vector.load %arg5[%c0_4, %c0_5] : memref<4x256xf32, #tpu.memory_space<vmem>>, vector<4x256xf32>
    tpu.vector_store %arg5[%c0_4, %c0_5], %5 {strides = array<i32>} : memref<4x256xf32, #tpu.memory_space<vmem>>, vector<4x256xf32>,
    return
  }
  func.func @transform_0(%arg0: i32, %arg1: i32) -> (i32, i32) {
    %c0_i32 = arith.constant 0 : i32
    %c0_i32_0 = arith.constant 0 : i32
    return %arg0, %c0_i32 : i32, i32
  }
  func.func @transform_1(%arg0: i32, %arg1: i32) -> (i32, i32) {
    %c0_i32 = arith.constant 0 : i32
    %c0_i32_0 = arith.constant 0 : i32
    %c0_i32_1 = arith.constant 0 : i32
    return %c0_i32, %c0_i32_0 : i32, i32
  }
  func.func @transform_2(%arg0: i32, %arg1: i32) -> (i32, i32) {
    %c0_i32 = arith.constant 0 : i32
    %c0_i32_0 = arith.constant 0 : i32
    return %c0_i32, %arg1 : i32, i32
  }
  func.func @transform_3(%arg0: i32, %arg1: i32) -> (i32, i32) {
    %c0_i32 = arith.constant 0 : i32
    return %arg0, %arg1 : i32, i32
  }
}

module attributes {stable_mosaic.version = 11 : i64} {
  func.func @_linear_kernel(%arg0: i32, %arg1: i32, %arg2: i32, %arg3: memref<4x128xf32, #tpu.memory_space<vmem>>, %arg4: memref<128x64xbf16, #tpu.memory_space<vmem>>, %arg5: memref<1x64xf32, #tpu.memory_space<vmem>>, %arg6: memref<4x64xf32, #tpu.memory_space<vmem>>, %arg7: memref<4x64xf32, #tpu.memory_space<vmem>>) attributes {dimension_semantics = [#tpu.dimension_semantics<parallel>, #tpu.dimension_semantics<parallel>, #tpu.dimension_semantics<arbitrary>], iteration_bounds = array<i64: 1, 1, 1>, scalar_prefetch = 0 : i64, scratch_operands = 1 : i64, tpu.core_type = #tpu.core_type<tc>, window_params = [{transform_indices = @transform_0, window_bounds = array<i64: 4, 128>}, {transform_indices = @transform_1, window_bounds = array<i64: 128, 64>}, {transform_indices = @transform_2, window_bounds = array<i64: 1, 64>}, {transform_indices = @transform_3, window_bounds = array<i64: 4, 64>}]} {
    %c0_i32 = arith.constant 0 : i32
    %0 = arith.cmpi eq, %arg2, %c0_i32 : i32
    %1 = arith.extui %0 : i1 to i32
    %c0_i32_0 = arith.constant 0 : i32
    %2 = arith.cmpi ne, %1, %c0_i32_0 : i32
    scf.if %2 {
      %c0_10 = arith.constant 0 : index
      %c0_11 = arith.constant 0 : index
      %13 = vector.load %arg5[%c0_10, %c0_11] : memref<1x64xf32, #tpu.memory_space<vmem>>, vector<1x64xf32>
      %14 = vector.shape_cast %13 : vector<1x64xf32> to vector<1x64xf32>
      %15 = vector.broadcast %14 : vector<1x64xf32> to vector<4x64xf32>
      %c0_12 = arith.constant 0 : index
      %c0_13 = arith.constant 0 : index
      %16 = vector.load %arg7[%c0_12, %c0_13] : memref<4x64xf32, #tpu.memory_space<vmem>>, vector<4x64xf32>
      tpu.vector_store %arg7[%c0_12, %c0_13], %15 {strides = array<i32>} : memref<4x64xf32, #tpu.memory_space<vmem>>, vector<4x64xf32>,
    } else {
    }
    %c0 = arith.constant 0 : index
    %c0_1 = arith.constant 0 : index
    %3 = vector.load %arg7[%c0, %c0_1] : memref<4x64xf32, #tpu.memory_space<vmem>>, vector<4x64xf32>
    %c0_2 = arith.constant 0 : index
    %c0_3 = arith.constant 0 : index
    %4 = vector.load %arg3[%c0_2, %c0_3] : memref<4x128xf32, #tpu.memory_space<vmem>>, vector<4x128xf32>
    %5 = arith.truncf %4 : vector<4x128xf32> to vector<4x128xbf16>
    %c0_4 = arith.constant 0 : index
    %c0_5 = arith.constant 0 : index
    %6 = vector.load %arg4[%c0_4, %c0_5] : memref<128x64xbf16, #tpu.memory_space<vmem>>, vector<128x64xbf16>
    %cst = arith.constant dense<0.000000e+00> : vector<4x64xf32>
    %7 = tpu.matmul %5, %6, %cst {dimension_numbers = #tpu.dot_dimension_numbers<[1], [0], [0], [1], [0, 0, 1, 1], [], []>} : vector<4x128xbf16>, vector<128x64xbf16>, vector<4x64xf32> -> vector<4x64xf32>
    %8 = arith.addf %3, %7 : vector<4x64xf32>
    %c0_6 = arith.constant 0 : index
    %c0_7 = arith.constant 0 : index
    %9 = vector.load %arg7[%c0_6, %c0_7] : memref<4x64xf32, #tpu.memory_space<vmem>>, vector<4x64xf32>
    tpu.vector_store %arg7[%c0_6, %c0_7], %8 {strides = array<i32>} : memref<4x64xf32, #tpu.memory_space<vmem>>, vector<4x64xf32>,
    %c0_i32_8 = arith.constant 0 : i32
    %10 = arith.cmpi eq, %arg2, %c0_i32_8 : i32
    %11 = arith.extui %10 : i1 to i32
    %c0_i32_9 = arith.constant 0 : i32
    %12 = arith.cmpi ne, %11, %c0_i32_9 : i32
    scf.if %12 {
      %c0_10 = arith.constant 0 : index
      %c0_11 = arith.constant 0 : index
      %13 = vector.load %arg7[%c0_10, %c0_11] : memref<4x64xf32, #tpu.memory_space<vmem>>, vector<4x64xf32>
      %c0_12 = arith.constant 0 : index
      %c0_13 = arith.constant 0 : index
      %14 = vector.load %arg6[%c0_12, %c0_13] : memref<4x64xf32, #tpu.memory_space<vmem>>, vector<4x64xf32>
      tpu.vector_store %arg6[%c0_12, %c0_13], %13 {strides = array<i32>} : memref<4x64xf32, #tpu.memory_space<vmem>>, vector<4x64xf32>,
    } else {
    }
    return
  }
  func.func @transform_0(%arg0: i32, %arg1: i32, %arg2: i32) -> (i32, i32) {
    %c0_i32 = arith.constant 0 : i32
    return %arg0, %arg2 : i32, i32
  }
  func.func @transform_1(%arg0: i32, %arg1: i32, %arg2: i32) -> (i32, i32) {
    %c0_i32 = arith.constant 0 : i32
    return %arg2, %arg1 : i32, i32
  }
  func.func @transform_2(%arg0: i32, %arg1: i32, %arg2: i32) -> (i32, i32) {
    %c0_i32 = arith.constant 0 : i32
    %c0_i32_0 = arith.constant 0 : i32
    return %c0_i32, %arg1 : i32, i32
  }
  func.func @transform_3(%arg0: i32, %arg1: i32, %arg2: i32) -> (i32, i32) {
    %c0_i32 = arith.constant 0 : i32
    return %arg0, %arg1 : i32, i32
  }
}

module attributes {stable_mosaic.version = 11 : i64} {
  func.func @_conv_silu_kernel(%arg0: i32, %arg1: i32, %arg2: i32, %arg3: memref<1x2x128xf32, #tpu.memory_space<vmem>>, %arg4: memref<4x128xf32, #tpu.memory_space<vmem>>, %arg5: memref<1x128xf32, #tpu.memory_space<vmem>>, %arg6: memref<1x2x128xf32, #tpu.memory_space<vmem>>, %arg7: memref<3x128xf32, #tpu.memory_space<vmem>>) attributes {dimension_semantics = [#tpu.dimension_semantics<parallel>, #tpu.dimension_semantics<parallel>, #tpu.dimension_semantics<arbitrary>], iteration_bounds = array<i64: 2, 1, 1>, scalar_prefetch = 0 : i64, scratch_operands = 1 : i64, tpu.core_type = #tpu.core_type<tc>, window_params = [{transform_indices = @transform_0, window_bounds = array<i64: 1, 2, 128>}, {transform_indices = @transform_1, window_bounds = array<i64: 4, 128>}, {transform_indices = @transform_2, window_bounds = array<i64: 1, 128>}, {transform_indices = @transform_3, window_bounds = array<i64: 1, 2, 128>}]} {
    %c0_i32 = arith.constant 0 : i32
    %0 = arith.cmpi eq, %arg2, %c0_i32 : i32
    %1 = arith.extui %0 : i1 to i32
    %c0_i32_0 = arith.constant 0 : i32
    %2 = arith.cmpi ne, %1, %c0_i32_0 : i32
    scf.if %2 {
      %cst_17 = arith.constant 0.000000e+00 : f32
      %41 = vector.broadcast %cst_17 : f32 to vector<3x128xf32>
      %c0_18 = arith.constant 0 : index
      %c0_19 = arith.constant 0 : index
      %42 = vector.load %arg7[%c0_18, %c0_19] : memref<3x128xf32, #tpu.memory_space<vmem>>, vector<3x128xf32>
      tpu.vector_store %arg7[%c0_18, %c0_19], %41 {strides = array<i32>} : memref<3x128xf32, #tpu.memory_space<vmem>>, vector<3x128xf32>,
    } else {
    }
    %c0 = arith.constant 0 : index
    %c0_1 = arith.constant 0 : index
    %c0_2 = arith.constant 0 : index
    %3 = vector.load %arg3[%c0, %c0_1, %c0_2] : memref<1x2x128xf32, #tpu.memory_space<vmem>>, vector<1x2x128xf32>
    %4 = vector.shape_cast %3 : vector<1x2x128xf32> to vector<2x128xf32>
    %c0_3 = arith.constant 0 : index
    %c0_4 = arith.constant 0 : index
    %5 = vector.load %arg7[%c0_3, %c0_4] : memref<3x128xf32, #tpu.memory_space<vmem>>, vector<3x128xf32>
    %6 = tpu.concatenate %5, %4 in 0 : vector<3x128xf32>, vector<2x128xf32> -> vector<5x128xf32>
    %c0_5 = arith.constant 0 : index
    %c0_6 = arith.constant 0 : index
    %7 = vector.load %arg5[%c0_5, %c0_6] : memref<1x128xf32, #tpu.memory_space<vmem>>, vector<1x128xf32>
    %8 = vector.shape_cast %7 : vector<1x128xf32> to vector<1x128xf32>
    %9 = vector.broadcast %8 : vector<1x128xf32> to vector<2x128xf32>
    %c0_7 = arith.constant 0 : index
    %c0_8 = arith.constant 0 : index
    %10 = vector.load %arg4[%c0_7, %c0_8] : memref<4x128xf32, #tpu.memory_space<vmem>>, vector<1x128xf32>
    %11 = vector.extract_strided_slice %6 {offsets = [0, 0], sizes = [2, 128], strides = [1, 1]} : vector<5x128xf32> to vector<2x128xf32>
    %12 = vector.broadcast %10 : vector<1x128xf32> to vector<2x128xf32>
    %13 = arith.mulf %12, %11 : vector<2x128xf32>
    %14 = arith.addf %9, %13 : vector<2x128xf32>
    %c1 = arith.constant 1 : index
    %c0_9 = arith.constant 0 : index
    %15 = vector.load %arg4[%c1, %c0_9] : memref<4x128xf32, #tpu.memory_space<vmem>>, vector<1x128xf32>
    %16 = vector.extract_strided_slice %6 {offsets = [1, 0], sizes = [2, 128], strides = [1, 1]} : vector<5x128xf32> to vector<2x128xf32>
    %17 = vector.broadcast %15 : vector<1x128xf32> to vector<2x128xf32>
    %18 = arith.mulf %17, %16 : vector<2x128xf32>
    %19 = arith.addf %14, %18 : vector<2x128xf32>
    %c2 = arith.constant 2 : index
    %c0_10 = arith.constant 0 : index
    %20 = vector.load %arg4[%c2, %c0_10] : memref<4x128xf32, #tpu.memory_space<vmem>>, vector<1x128xf32>
    %21 = vector.extract_strided_slice %6 {offsets = [2, 0], sizes = [2, 128], strides = [1, 1]} : vector<5x128xf32> to vector<2x128xf32>
    %22 = vector.broadcast %20 : vector<1x128xf32> to vector<2x128xf32>
    %23 = arith.mulf %22, %21 : vector<2x128xf32>
    %24 = arith.addf %19, %23 : vector<2x128xf32>
    %c3 = arith.constant 3 : index
    %c0_11 = arith.constant 0 : index
    %25 = vector.load %arg4[%c3, %c0_11] : memref<4x128xf32, #tpu.memory_space<vmem>>, vector<1x128xf32>
    %26 = vector.extract_strided_slice %6 {offsets = [3, 0], sizes = [2, 128], strides = [1, 1]} : vector<5x128xf32> to vector<2x128xf32>
    %27 = vector.broadcast %25 : vector<1x128xf32> to vector<2x128xf32>
    %28 = arith.mulf %27, %26 : vector<2x128xf32>
    %29 = arith.addf %24, %28 : vector<2x128xf32>
    %30 = arith.negf %29 : vector<2x128xf32>
    %31 = math.exp %30 : vector<2x128xf32>
    %cst = arith.constant 1.000000e+00 : f32
    %32 = vector.broadcast %cst : f32 to vector<2x128xf32>
    %33 = arith.addf %32, %31 : vector<2x128xf32>
    %34 = arith.divf %32, %33 : vector<2x128xf32>
    %35 = arith.mulf %29, %34 : vector<2x128xf32>
    %c0_12 = arith.constant 0 : index
    %c0_13 = arith.constant 0 : index
    %c0_14 = arith.constant 0 : index
    %36 = vector.load %arg6[%c0_12, %c0_13, %c0_14] : memref<1x2x128xf32, #tpu.memory_space<vmem>>, vector<1x2x128xf32>
    %37 = vector.shape_cast %36 : vector<1x2x128xf32> to vector<2x128xf32>
    %38 = vector.shape_cast %35 : vector<2x128xf32> to vector<1x2x128xf32>
    tpu.vector_store %arg6[%c0_12, %c0_13, %c0_14], %38 {strides = array<i32>} : memref<1x2x128xf32, #tpu.memory_space<vmem>>, vector<1x2x128xf32>,
    %39 = vector.extract_strided_slice %6 {offsets = [2, 0], sizes = [3, 128], strides = [1, 1]} : vector<5x128xf32> to vector<3x128xf32>
    %c0_15 = arith.constant 0 : index
    %c0_16 = arith.constant 0 : index
    %40 = vector.load %arg7[%c0_15, %c0_16] : memref<3x128xf32, #tpu.memory_space<vmem>>, vector<3x128xf32>
    tpu.vector_store %arg7[%c0_15, %c0_16], %39 {strides = array<i32>} : memref<3x128xf32, #tpu.memory_space<vmem>>, vector<3x128xf32>,
    return
  }
  func.func @transform_0(%arg0: i32, %arg1: i32, %arg2: i32) -> (i32, i32, i32) {
    %c0_i32 = arith.constant 0 : i32
    return %arg0, %arg2, %arg1 : i32, i32, i32
  }
  func.func @transform_1(%arg0: i32, %arg1: i32, %arg2: i32) -> (i32, i32) {
    %c0_i32 = arith.constant 0 : i32
    %c0_i32_0 = arith.constant 0 : i32
    return %c0_i32, %arg1 : i32, i32
  }
  func.func @transform_2(%arg0: i32, %arg1: i32, %arg2: i32) -> (i32, i32) {
    %c0_i32 = arith.constant 0 : i32
    %c0_i32_0 = arith.constant 0 : i32
    return %c0_i32, %arg1 : i32, i32
  }
  func.func @transform_3(%arg0: i32, %arg1: i32, %arg2: i32) -> (i32, i32, i32) {
    %c0_i32 = arith.constant 0 : i32
    return %arg0, %arg2, %arg1 : i32, i32, i32
  }
}

module attributes {stable_mosaic.version = 11 : i64} {
  func.func @_linear_kernel(%arg0: i32, %arg1: i32, %arg2: i32, %arg3: memref<4x128xf32, #tpu.memory_space<vmem>>, %arg4: memref<128x128xbf16, #tpu.memory_space<vmem>>, %arg5: memref<1x128xf32, #tpu.memory_space<vmem>>, %arg6: memref<4x128xf32, #tpu.memory_space<vmem>>, %arg7: memref<4x128xf32, #tpu.memory_space<vmem>>) attributes {dimension_semantics = [#tpu.dimension_semantics<parallel>, #tpu.dimension_semantics<parallel>, #tpu.dimension_semantics<arbitrary>], iteration_bounds = array<i64: 1, 1, 1>, scalar_prefetch = 0 : i64, scratch_operands = 1 : i64, tpu.core_type = #tpu.core_type<tc>, window_params = [{transform_indices = @transform_0, window_bounds = array<i64: 4, 128>}, {transform_indices = @transform_1, window_bounds = array<i64: 128, 128>}, {transform_indices = @transform_2, window_bounds = array<i64: 1, 128>}, {transform_indices = @transform_3, window_bounds = array<i64: 4, 128>}]} {
    %c0_i32 = arith.constant 0 : i32
    %0 = arith.cmpi eq, %arg2, %c0_i32 : i32
    %1 = arith.extui %0 : i1 to i32
    %c0_i32_0 = arith.constant 0 : i32
    %2 = arith.cmpi ne, %1, %c0_i32_0 : i32
    scf.if %2 {
      %c0_10 = arith.constant 0 : index
      %c0_11 = arith.constant 0 : index
      %13 = vector.load %arg5[%c0_10, %c0_11] : memref<1x128xf32, #tpu.memory_space<vmem>>, vector<1x128xf32>
      %14 = vector.shape_cast %13 : vector<1x128xf32> to vector<1x128xf32>
      %15 = vector.broadcast %14 : vector<1x128xf32> to vector<4x128xf32>
      %c0_12 = arith.constant 0 : index
      %c0_13 = arith.constant 0 : index
      %16 = vector.load %arg7[%c0_12, %c0_13] : memref<4x128xf32, #tpu.memory_space<vmem>>, vector<4x128xf32>
      tpu.vector_store %arg7[%c0_12, %c0_13], %15 {strides = array<i32>} : memref<4x128xf32, #tpu.memory_space<vmem>>, vector<4x128xf32>,
    } else {
    }
    %c0 = arith.constant 0 : index
    %c0_1 = arith.constant 0 : index
    %3 = vector.load %arg7[%c0, %c0_1] : memref<4x128xf32, #tpu.memory_space<vmem>>, vector<4x128xf32>
    %c0_2 = arith.constant 0 : index
    %c0_3 = arith.constant 0 : index
    %4 = vector.load %arg3[%c0_2, %c0_3] : memref<4x128xf32, #tpu.memory_space<vmem>>, vector<4x128xf32>
    %5 = arith.truncf %4 : vector<4x128xf32> to vector<4x128xbf16>
    %c0_4 = arith.constant 0 : index
    %c0_5 = arith.constant 0 : index
    %6 = vector.load %arg4[%c0_4, %c0_5] : memref<128x128xbf16, #tpu.memory_space<vmem>>, vector<128x128xbf16>
    %cst = arith.constant dense<0.000000e+00> : vector<4x128xf32>
    %7 = tpu.matmul %5, %6, %cst {dimension_numbers = #tpu.dot_dimension_numbers<[1], [0], [0], [1], [0, 0, 1, 1], [], []>} : vector<4x128xbf16>, vector<128x128xbf16>, vector<4x128xf32> -> vector<4x128xf32>
    %8 = arith.addf %3, %7 : vector<4x128xf32>
    %c0_6 = arith.constant 0 : index
    %c0_7 = arith.constant 0 : index
    %9 = vector.load %arg7[%c0_6, %c0_7] : memref<4x128xf32, #tpu.memory_space<vmem>>, vector<4x128xf32>
    tpu.vector_store %arg7[%c0_6, %c0_7], %8 {strides = array<i32>} : memref<4x128xf32, #tpu.memory_space<vmem>>, vector<4x128xf32>,
    %c0_i32_8 = arith.constant 0 : i32
    %10 = arith.cmpi eq, %arg2, %c0_i32_8 : i32
    %11 = arith.extui %10 : i1 to i32
    %c0_i32_9 = arith.constant 0 : i32
    %12 = arith.cmpi ne, %11, %c0_i32_9 : i32
    scf.if %12 {
      %c0_10 = arith.constant 0 : index
      %c0_11 = arith.constant 0 : index
      %13 = vector.load %arg7[%c0_10, %c0_11] : memref<4x128xf32, #tpu.memory_space<vmem>>, vector<4x128xf32>
      %c0_12 = arith.constant 0 : index
      %c0_13 = arith.constant 0 : index
      %14 = vector.load %arg6[%c0_12, %c0_13] : memref<4x128xf32, #tpu.memory_space<vmem>>, vector<4x128xf32>
      tpu.vector_store %arg6[%c0_12, %c0_13], %13 {strides = array<i32>} : memref<4x128xf32, #tpu.memory_space<vmem>>, vector<4x128xf32>,
    } else {
    }
    return
  }
  func.func @transform_0(%arg0: i32, %arg1: i32, %arg2: i32) -> (i32, i32) {
    %c0_i32 = arith.constant 0 : i32
    return %arg0, %arg2 : i32, i32
  }
  func.func @transform_1(%arg0: i32, %arg1: i32, %arg2: i32) -> (i32, i32) {
    %c0_i32 = arith.constant 0 : i32
    return %arg2, %arg1 : i32, i32
  }
  func.func @transform_2(%arg0: i32, %arg1: i32, %arg2: i32) -> (i32, i32) {
    %c0_i32 = arith.constant 0 : i32
    %c0_i32_0 = arith.constant 0 : i32
    return %c0_i32, %arg1 : i32, i32
  }
  func.func @transform_3(%arg0: i32, %arg1: i32, %arg2: i32) -> (i32, i32) {
    %c0_i32 = arith.constant 0 : i32
    return %arg0, %arg1 : i32, i32
  }
}

module attributes {stable_mosaic.version = 11 : i64} {
  func.func @_scan_kernel(%arg0: i32, %arg1: i32, %arg2: i32, %arg3: memref<1x2x8xf32, #tpu.memory_space<vmem>>, %arg4: memref<8x128xbf16, #tpu.memory_space<vmem>>, %arg5: memref<1x128xf32, #tpu.memory_space<vmem>>, %arg6: memref<1x1x8x2xf32, #tpu.memory_space<vmem>>, %arg7: memref<1x1x8x2xf32, #tpu.memory_space<vmem>>, %arg8: memref<1x2x128xf32, #tpu.memory_space<vmem>>, %arg9: memref<1x2x128xf32, #tpu.memory_space<vmem>>, %arg10: memref<8x128xf32, #tpu.memory_space<vmem>>, %arg11: memref<1x128xf32, #tpu.memory_space<vmem>>, %arg12: memref<1x2x128xf32, #tpu.memory_space<vmem>>, %arg13: memref<8x128xf32, #tpu.memory_space<vmem>>) attributes {dimension_semantics = [#tpu.dimension_semantics<parallel>, #tpu.dimension_semantics<parallel>, #tpu.dimension_semantics<arbitrary>], iteration_bounds = array<i64: 2, 1, 1>, scalar_prefetch = 0 : i64, scratch_operands = 1 : i64, tpu.core_type = #tpu.core_type<tc>, window_params = [{transform_indices = @transform_0, window_bounds = array<i64: 1, 2, 8>}, {transform_indices = @transform_1, window_bounds = array<i64: 8, 128>}, {transform_indices = @transform_2, window_bounds = array<i64: 1, 128>}, {transform_indices = @transform_3, window_bounds = array<i64: 1, 1, 8, 2>}, {transform_indices = @transform_4, window_bounds = array<i64: 1, 1, 8, 2>}, {transform_indices = @transform_5, window_bounds = array<i64: 1, 2, 128>}, {transform_indices = @transform_6, window_bounds = array<i64: 1, 2, 128>}, {transform_indices = @transform_7, window_bounds = array<i64: 8, 128>}, {transform_indices = @transform_8, window_bounds = array<i64: 1, 128>}, {transform_indices = @transform_9, window_bounds = array<i64: 1, 2, 128>}]} {
    %c0_i32 = arith.constant 0 : i32
    %0 = arith.cmpi eq, %arg2, %c0_i32 : i32
    %1 = arith.extui %0 : i1 to i32
    %c0_i32_0 = arith.constant 0 : i32
    %2 = arith.cmpi ne, %1, %c0_i32_0 : i32
    scf.if %2 {
      %cst_38 = arith.constant 0.000000e+00 : f32
      %80 = vector.broadcast %cst_38 : f32 to vector<8x128xf32>
      %c0_39 = arith.constant 0 : index
      %c0_40 = arith.constant 0 : index
      %81 = vector.load %arg13[%c0_39, %c0_40] : memref<8x128xf32, #tpu.memory_space<vmem>>, vector<8x128xf32>
      tpu.vector_store %arg13[%c0_39, %c0_40], %80 {strides = array<i32>} : memref<8x128xf32, #tpu.memory_space<vmem>>, vector<8x128xf32>,
    } else {
    }
    %c0 = arith.constant 0 : index
    %c0_1 = arith.constant 0 : index
    %3 = vector.load %arg10[%c0, %c0_1] : memref<8x128xf32, #tpu.memory_space<vmem>>, vector<8x128xf32>
    %c0_2 = arith.constant 0 : index
    %c0_3 = arith.constant 0 : index
    %4 = vector.load %arg11[%c0_2, %c0_3] : memref<1x128xf32, #tpu.memory_space<vmem>>, vector<1x128xf32>
    %c0_4 = arith.constant 0 : index
    %c0_5 = arith.constant 0 : index
    %c0_6 = arith.constant 0 : index
    %c0_7 = arith.constant 0 : index
    %5 = vector.load %arg6[%c0_4, %c0_5, %c0_6, %c0_7] : memref<1x1x8x2xf32, #tpu.memory_space<vmem>>, vector<1x1x8x2xf32>
    %6 = vector.shape_cast %5 : vector<1x1x8x2xf32> to vector<8x2xf32>
    %c0_8 = arith.constant 0 : index
    %c0_9 = arith.constant 0 : index
    %c0_10 = arith.constant 0 : index
    %c0_11 = arith.constant 0 : index
    %7 = vector.load %arg7[%c0_8, %c0_9, %c0_10, %c0_11] : memref<1x1x8x2xf32, #tpu.memory_space<vmem>>, vector<1x1x8x2xf32>
    %8 = vector.shape_cast %7 : vector<1x1x8x2xf32> to vector<8x2xf32>
    %c0_12 = arith.constant 0 : index
    %c0_13 = arith.constant 0 : index
    %9 = vector.load %arg4[%c0_12, %c0_13] : memref<8x128xbf16, #tpu.memory_space<vmem>>, vector<8x128xbf16>
    %c0_14 = arith.constant 0 : index
    %c0_15 = arith.constant 0 : index
    %10 = vector.load %arg5[%c0_14, %c0_15] : memref<1x128xf32, #tpu.memory_space<vmem>>, vector<1x128xf32>
    %c0_16 = arith.constant 0 : index
    %c0_17 = arith.constant 0 : index
    %11 = vector.load %arg13[%c0_16, %c0_17] : memref<8x128xf32, #tpu.memory_space<vmem>>, vector<8x128xf32>
    %c0_18 = arith.constant 0 : index
    %c0_19 = arith.constant 0 : index
    %c0_20 = arith.constant 0 : index
    %12 = vector.load %arg8[%c0_18, %c0_19, %c0_20] : memref<1x2x128xf32, #tpu.memory_space<vmem>>, vector<1x2x128xf32>
    %13 = vector.shape_cast %12 : vector<1x2x128xf32> to vector<2x128xf32>
    %c0_21 = arith.constant 0 : index
    %c0_22 = arith.constant 0 : index
    %c0_23 = arith.constant 0 : index
    %14 = vector.load %arg9[%c0_21, %c0_22, %c0_23] : memref<1x2x128xf32, #tpu.memory_space<vmem>>, vector<1x2x128xf32>
    %15 = vector.shape_cast %14 : vector<1x2x128xf32> to vector<2x128xf32>
    %c0_24 = arith.constant 0 : index
    %c0_25 = arith.constant 0 : index
    %c0_26 = arith.constant 0 : index
    %16 = vector.load %arg3[%c0_24, %c0_25, %c0_26] : memref<1x2x8xf32, #tpu.memory_space<vmem>>, vector<1x2x8xf32>
    %17 = vector.shape_cast %16 : vector<1x2x8xf32> to vector<2x8xf32>
    %18 = arith.truncf %17 : vector<2x8xf32> to vector<2x8xbf16>
    %cst = arith.constant dense<0.000000e+00> : vector<2x128xf32>
    %19 = tpu.matmul %18, %9, %cst {dimension_numbers = #tpu.dot_dimension_numbers<[1], [0], [0], [1], [0, 0, 1, 1], [], []>} : vector<2x8xbf16>, vector<8x128xbf16>, vector<2x128xf32> -> vector<2x128xf32>
    %20 = vector.broadcast %10 : vector<1x128xf32> to vector<2x128xf32>
    %21 = arith.addf %19, %20 : vector<2x128xf32>
    %cst_27 = arith.constant 0.000000e+00 : f32
    %22 = vector.broadcast %cst_27 : f32 to vector<2x128xf32>
    %23 = arith.maximumf %21, %22 : vector<2x128xf32>
    %24 = math.absf %21 : vector<2x128xf32>
    %cst_28 = arith.constant 0.000000e+00 : f32
    %25 = vector.broadcast %cst_28 : f32 to vector<2x128xf32>
    %26 = arith.subf %25, %24 : vector<2x128xf32>
    %27 = math.exp %26 : vector<2x128xf32>
    %cst_29 = arith.constant 1.000000e+00 : f32
    %28 = vector.broadcast %cst_29 : f32 to vector<2x128xf32>
    %29 = arith.addf %28, %27 : vector<2x128xf32>
    %30 = math.log %29 : vector<2x128xf32>
    %31 = arith.addf %23, %30 : vector<2x128xf32>
    %32 = arith.mulf %31, %13 : vector<2x128xf32>
    %33 = vector.extract_strided_slice %31 {offsets = [0, 0], sizes = [1, 128], strides = [1, 1]} : vector<2x128xf32> to vector<1x128xf32>
    %34 = vector.broadcast %33 : vector<1x128xf32> to vector<8x128xf32>
    %35 = arith.mulf %34, %3 : vector<8x128xf32>
    %36 = math.exp %35 : vector<8x128xf32>
    %37 = vector.extract_strided_slice %6 {offsets = [0, 0], sizes = [8, 1], strides = [1, 1]} : vector<8x2xf32> to vector<8x1xf32>
    %38 = vector.extract_strided_slice %32 {offsets = [0, 0], sizes = [1, 128], strides = [1, 1]} : vector<2x128xf32> to vector<1x128xf32>
    %39 = vector.broadcast %37 : vector<8x1xf32> to vector<8x128xf32>
    %40 = vector.broadcast %38 : vector<1x128xf32> to vector<8x128xf32>
    %41 = arith.mulf %39, %40 : vector<8x128xf32>
    %42 = arith.mulf %36, %11 : vector<8x128xf32>
    %43 = arith.addf %42, %41 : vector<8x128xf32>
    %44 = vector.extract_strided_slice %8 {offsets = [0, 0], sizes = [8, 1], strides = [1, 1]} : vector<8x2xf32> to vector<8x1xf32>
    %45 = vector.broadcast %44 : vector<8x1xf32> to vector<8x128xf32>
    %46 = arith.mulf %45, %43 : vector<8x128xf32>
    %cst_30 = arith.constant dense<0.000000e+00> : vector<128xf32>
    %47 = vector.multi_reduction <add>, %46, %cst_30 [0] : vector<8x128xf32> to vector<128xf32>
    %48 = vector.shape_cast %47 : vector<128xf32> to vector<1x128xf32>
    %49 = vector.extract_strided_slice %31 {offsets = [1, 0], sizes = [1, 128], strides = [1, 1]} : vector<2x128xf32> to vector<1x128xf32>
    %50 = vector.broadcast %49 : vector<1x128xf32> to vector<8x128xf32>
    %51 = arith.mulf %50, %3 : vector<8x128xf32>
    %52 = math.exp %51 : vector<8x128xf32>
    %53 = vector.extract_strided_slice %6 {offsets = [0, 1], sizes = [8, 1], strides = [1, 1]} : vector<8x2xf32> to vector<8x1xf32>
    %54 = vector.extract_strided_slice %32 {offsets = [1, 0], sizes = [1, 128], strides = [1, 1]} : vector<2x128xf32> to vector<1x128xf32>
    %55 = vector.broadcast %53 : vector<8x1xf32> to vector<8x128xf32>
    %56 = vector.broadcast %54 : vector<1x128xf32> to vector<8x128xf32>
    %57 = arith.mulf %55, %56 : vector<8x128xf32>
    %58 = arith.mulf %52, %43 : vector<8x128xf32>
    %59 = arith.addf %58, %57 : vector<8x128xf32>
    %60 = vector.extract_strided_slice %8 {offsets = [0, 1], sizes = [8, 1], strides = [1, 1]} : vector<8x2xf32> to vector<8x1xf32>
    %61 = vector.broadcast %60 : vector<8x1xf32> to vector<8x128xf32>
    %62 = arith.mulf %61, %59 : vector<8x128xf32>
    %cst_31 = arith.constant dense<0.000000e+00> : vector<128xf32>
    %63 = vector.multi_reduction <add>, %62, %cst_31 [0] : vector<8x128xf32> to vector<128xf32>
    %64 = vector.shape_cast %63 : vector<128xf32> to vector<1x128xf32>
    %65 = tpu.concatenate %48, %64 in 0 : vector<1x128xf32>, vector<1x128xf32> -> vector<2x128xf32>
    %66 = vector.broadcast %4 : vector<1x128xf32> to vector<2x128xf32>
    %67 = arith.mulf %66, %13 : vector<2x128xf32>
    %68 = arith.addf %65, %67 : vector<2x128xf32>
    %69 = arith.negf %15 : vector<2x128xf32>
    %70 = math.exp %69 : vector<2x128xf32>
    %cst_32 = arith.constant 1.000000e+00 : f32
    %71 = vector.broadcast %cst_32 : f32 to vector<2x128xf32>
    %72 = arith.addf %71, %70 : vector<2x128xf32>
    %73 = arith.divf %71, %72 : vector<2x128xf32>
    %74 = arith.mulf %15, %73 : vector<2x128xf32>
    %75 = arith.mulf %68, %74 : vector<2x128xf32>
    %c0_33 = arith.constant 0 : index
    %c0_34 = arith.constant 0 : index
    %c0_35 = arith.constant 0 : index
    %76 = vector.load %arg12[%c0_33, %c0_34, %c0_35] : memref<1x2x128xf32, #tpu.memory_space<vmem>>, vector<1x2x128xf32>
    %77 = vector.shape_cast %76 : vector<1x2x128xf32> to vector<2x128xf32>
    %78 = vector.shape_cast %75 : vector<2x128xf32> to vector<1x2x128xf32>
    tpu.vector_store %arg12[%c0_33, %c0_34, %c0_35], %78 {strides = array<i32>} : memref<1x2x128xf32, #tpu.memory_space<vmem>>, vector<1x2x128xf32>,
    %c0_36 = arith.constant 0 : index
    %c0_37 = arith.constant 0 : index
    %79 = vector.load %arg13[%c0_36, %c0_37] : memref<8x128xf32, #tpu.memory_space<vmem>>, vector<8x128xf32>
    tpu.vector_store %arg13[%c0_36, %c0_37], %59 {strides = array<i32>} : memref<8x128xf32, #tpu.memory_space<vmem>>, vector<8x128xf32>,
    return
  }
  func.func @transform_0(%arg0: i32, %arg1: i32, %arg2: i32) -> (i32, i32, i32) {
    %c0_i32 = arith.constant 0 : i32
    %c0_i32_0 = arith.constant 0 : i32
    return %arg0, %arg2, %c0_i32 : i32, i32, i32
  }
  func.func @transform_1(%arg0: i32, %arg1: i32, %arg2: i32) -> (i32, i32) {
    %c0_i32 = arith.constant 0 : i32
    %c0_i32_0 = arith.constant 0 : i32
    return %c0_i32, %arg1 : i32, i32
  }
  func.func @transform_2(%arg0: i32, %arg1: i32, %arg2: i32) -> (i32, i32) {
    %c0_i32 = arith.constant 0 : i32
    %c0_i32_0 = arith.constant 0 : i32
    return %c0_i32, %arg1 : i32, i32
  }
  func.func @transform_3(%arg0: i32, %arg1: i32, %arg2: i32) -> (i32, i32, i32, i32) {
    %c0_i32 = arith.constant 0 : i32
    %c0_i32_0 = arith.constant 0 : i32
    %c0_i32_1 = arith.constant 0 : i32
    return %arg0, %arg2, %c0_i32, %c0_i32_0 : i32, i32, i32, i32
  }
  func.func @transform_4(%arg0: i32, %arg1: i32, %arg2: i32) -> (i32, i32, i32, i32) {
    %c0_i32 = arith.constant 0 : i32
    %c0_i32_0 = arith.constant 0 : i32
    %c0_i32_1 = arith.constant 0 : i32
    return %arg0, %arg2, %c0_i32, %c0_i32_0 : i32, i32, i32, i32
  }
  func.func @transform_5(%arg0: i32, %arg1: i32, %arg2: i32) -> (i32, i32, i32) {
    %c0_i32 = arith.constant 0 : i32
    return %arg0, %arg2, %arg1 : i32, i32, i32
  }
  func.func @transform_6(%arg0: i32, %arg1: i32, %arg2: i32) -> (i32, i32, i32) {
    %c0_i32 = arith.constant 0 : i32
    return %arg0, %arg2, %arg1 : i32, i32, i32
  }
  func.func @transform_7(%arg0: i32, %arg1: i32, %arg2: i32) -> (i32, i32) {
    %c0_i32 = arith.constant 0 : i32
    %c0_i32_0 = arith.constant 0 : i32
    return %c0_i32, %arg1 : i32, i32
  }
  func.func @transform_8(%arg0: i32, %arg1: i32, %arg2: i32) -> (i32, i32) {
    %c0_i32 = arith.constant 0 : i32
    %c0_i32_0 = arith.constant 0 : i32
    return %c0_i32, %arg1 : i32, i32
  }
  func.func @transform_9(%arg0: i32, %arg1: i32, %arg2: i32) -> (i32, i32, i32) {
    %c0_i32 = arith.constant 0 : i32
    return %arg0, %arg2, %arg1 : i32, i32, i32
  }
}

module attributes {stable_mosaic.version = 11 : i64} {
  func.func @_linear_kernel(%arg0: i32, %arg1: i32, %arg2: i32, %arg3: memref<4x128xf32, #tpu.memory_space<vmem>>, %arg4: memref<128x64xbf16, #tpu.memory_space<vmem>>, %arg5: memref<1x64xf32, #tpu.memory_space<vmem>>, %arg6: memref<4x64xf32, #tpu.memory_space<vmem>>, %arg7: memref<4x64xf32, #tpu.memory_space<vmem>>) attributes {dimension_semantics = [#tpu.dimension_semantics<parallel>, #tpu.dimension_semantics<parallel>, #tpu.dimension_semantics<arbitrary>], iteration_bounds = array<i64: 1, 1, 1>, scalar_prefetch = 0 : i64, scratch_operands = 1 : i64, tpu.core_type = #tpu.core_type<tc>, window_params = [{transform_indices = @transform_0, window_bounds = array<i64: 4, 128>}, {transform_indices = @transform_1, window_bounds = array<i64: 128, 64>}, {transform_indices = @transform_2, window_bounds = array<i64: 1, 64>}, {transform_indices = @transform_3, window_bounds = array<i64: 4, 64>}]} {
    %c0_i32 = arith.constant 0 : i32
    %0 = arith.cmpi eq, %arg2, %c0_i32 : i32
    %1 = arith.extui %0 : i1 to i32
    %c0_i32_0 = arith.constant 0 : i32
    %2 = arith.cmpi ne, %1, %c0_i32_0 : i32
    scf.if %2 {
      %c0_10 = arith.constant 0 : index
      %c0_11 = arith.constant 0 : index
      %13 = vector.load %arg5[%c0_10, %c0_11] : memref<1x64xf32, #tpu.memory_space<vmem>>, vector<1x64xf32>
      %14 = vector.shape_cast %13 : vector<1x64xf32> to vector<1x64xf32>
      %15 = vector.broadcast %14 : vector<1x64xf32> to vector<4x64xf32>
      %c0_12 = arith.constant 0 : index
      %c0_13 = arith.constant 0 : index
      %16 = vector.load %arg7[%c0_12, %c0_13] : memref<4x64xf32, #tpu.memory_space<vmem>>, vector<4x64xf32>
      tpu.vector_store %arg7[%c0_12, %c0_13], %15 {strides = array<i32>} : memref<4x64xf32, #tpu.memory_space<vmem>>, vector<4x64xf32>,
    } else {
    }
    %c0 = arith.constant 0 : index
    %c0_1 = arith.constant 0 : index
    %3 = vector.load %arg7[%c0, %c0_1] : memref<4x64xf32, #tpu.memory_space<vmem>>, vector<4x64xf32>
    %c0_2 = arith.constant 0 : index
    %c0_3 = arith.constant 0 : index
    %4 = vector.load %arg3[%c0_2, %c0_3] : memref<4x128xf32, #tpu.memory_space<vmem>>, vector<4x128xf32>
    %5 = arith.truncf %4 : vector<4x128xf32> to vector<4x128xbf16>
    %c0_4 = arith.constant 0 : index
    %c0_5 = arith.constant 0 : index
    %6 = vector.load %arg4[%c0_4, %c0_5] : memref<128x64xbf16, #tpu.memory_space<vmem>>, vector<128x64xbf16>
    %cst = arith.constant dense<0.000000e+00> : vector<4x64xf32>
    %7 = tpu.matmul %5, %6, %cst {dimension_numbers = #tpu.dot_dimension_numbers<[1], [0], [0], [1], [0, 0, 1, 1], [], []>} : vector<4x128xbf16>, vector<128x64xbf16>, vector<4x64xf32> -> vector<4x64xf32>
    %8 = arith.addf %3, %7 : vector<4x64xf32>
    %c0_6 = arith.constant 0 : index
    %c0_7 = arith.constant 0 : index
    %9 = vector.load %arg7[%c0_6, %c0_7] : memref<4x64xf32, #tpu.memory_space<vmem>>, vector<4x64xf32>
    tpu.vector_store %arg7[%c0_6, %c0_7], %8 {strides = array<i32>} : memref<4x64xf32, #tpu.memory_space<vmem>>, vector<4x64xf32>,
    %c0_i32_8 = arith.constant 0 : i32
    %10 = arith.cmpi eq, %arg2, %c0_i32_8 : i32
    %11 = arith.extui %10 : i1 to i32
    %c0_i32_9 = arith.constant 0 : i32
    %12 = arith.cmpi ne, %11, %c0_i32_9 : i32
    scf.if %12 {
      %c0_10 = arith.constant 0 : index
      %c0_11 = arith.constant 0 : index
      %13 = vector.load %arg7[%c0_10, %c0_11] : memref<4x64xf32, #tpu.memory_space<vmem>>, vector<4x64xf32>
      %c0_12 = arith.constant 0 : index
      %c0_13 = arith.constant 0 : index
      %14 = vector.load %arg6[%c0_12, %c0_13] : memref<4x64xf32, #tpu.memory_space<vmem>>, vector<4x64xf32>
      tpu.vector_store %arg6[%c0_12, %c0_13], %13 {strides = array<i32>} : memref<4x64xf32, #tpu.memory_space<vmem>>, vector<4x64xf32>,
    } else {
    }
    return
  }
  func.func @transform_0(%arg0: i32, %arg1: i32, %arg2: i32) -> (i32, i32) {
    %c0_i32 = arith.constant 0 : i32
    return %arg0, %arg2 : i32, i32
  }
  func.func @transform_1(%arg0: i32, %arg1: i32, %arg2: i32) -> (i32, i32) {
    %c0_i32 = arith.constant 0 : i32
    return %arg2, %arg1 : i32, i32
  }
  func.func @transform_2(%arg0: i32, %arg1: i32, %arg2: i32) -> (i32, i32) {
    %c0_i32 = arith.constant 0 : i32
    %c0_i32_0 = arith.constant 0 : i32
    return %c0_i32, %arg1 : i32, i32
  }
  func.func @transform_3(%arg0: i32, %arg1: i32, %arg2: i32) -> (i32, i32) {
    %c0_i32 = arith.constant 0 : i32
    return %arg0, %arg1 : i32, i32
  }
}

module attributes {stable_mosaic.version = 11 : i64} {
  func.func @_linear_kernel(%arg0: i32, %arg1: i32, %arg2: i32, %arg3: memref<4x64xf32, #tpu.memory_space<vmem>>, %arg4: memref<64x128xbf16, #tpu.memory_space<vmem>>, %arg5: memref<1x128xf32, #tpu.memory_space<vmem>>, %arg6: memref<4x128xf32, #tpu.memory_space<vmem>>, %arg7: memref<4x128xf32, #tpu.memory_space<vmem>>) attributes {dimension_semantics = [#tpu.dimension_semantics<parallel>, #tpu.dimension_semantics<parallel>, #tpu.dimension_semantics<arbitrary>], iteration_bounds = array<i64: 1, 1, 1>, scalar_prefetch = 0 : i64, scratch_operands = 1 : i64, tpu.core_type = #tpu.core_type<tc>, window_params = [{transform_indices = @transform_0, window_bounds = array<i64: 4, 64>}, {transform_indices = @transform_1, window_bounds = array<i64: 64, 128>}, {transform_indices = @transform_2, window_bounds = array<i64: 1, 128>}, {transform_indices = @transform_3, window_bounds = array<i64: 4, 128>}]} {
    %c0_i32 = arith.constant 0 : i32
    %0 = arith.cmpi eq, %arg2, %c0_i32 : i32
    %1 = arith.extui %0 : i1 to i32
    %c0_i32_0 = arith.constant 0 : i32
    %2 = arith.cmpi ne, %1, %c0_i32_0 : i32
    scf.if %2 {
      %c0_10 = arith.constant 0 : index
      %c0_11 = arith.constant 0 : index
      %13 = vector.load %arg5[%c0_10, %c0_11] : memref<1x128xf32, #tpu.memory_space<vmem>>, vector<1x128xf32>
      %14 = vector.shape_cast %13 : vector<1x128xf32> to vector<1x128xf32>
      %15 = vector.broadcast %14 : vector<1x128xf32> to vector<4x128xf32>
      %c0_12 = arith.constant 0 : index
      %c0_13 = arith.constant 0 : index
      %16 = vector.load %arg7[%c0_12, %c0_13] : memref<4x128xf32, #tpu.memory_space<vmem>>, vector<4x128xf32>
      tpu.vector_store %arg7[%c0_12, %c0_13], %15 {strides = array<i32>} : memref<4x128xf32, #tpu.memory_space<vmem>>, vector<4x128xf32>,
    } else {
    }
    %c0 = arith.constant 0 : index
    %c0_1 = arith.constant 0 : index
    %3 = vector.load %arg7[%c0, %c0_1] : memref<4x128xf32, #tpu.memory_space<vmem>>, vector<4x128xf32>
    %c0_2 = arith.constant 0 : index
    %c0_3 = arith.constant 0 : index
    %4 = vector.load %arg3[%c0_2, %c0_3] : memref<4x64xf32, #tpu.memory_space<vmem>>, vector<4x64xf32>
    %5 = arith.truncf %4 : vector<4x64xf32> to vector<4x64xbf16>
    %c0_4 = arith.constant 0 : index
    %c0_5 = arith.constant 0 : index
    %6 = vector.load %arg4[%c0_4, %c0_5] : memref<64x128xbf16, #tpu.memory_space<vmem>>, vector<64x128xbf16>
    %cst = arith.constant dense<0.000000e+00> : vector<4x128xf32>
    %7 = tpu.matmul %5, %6, %cst {dimension_numbers = #tpu.dot_dimension_numbers<[1], [0], [0], [1], [0, 0, 1, 1], [], []>} : vector<4x64xbf16>, vector<64x128xbf16>, vector<4x128xf32> -> vector<4x128xf32>
    %8 = arith.addf %3, %7 : vector<4x128xf32>
    %c0_6 = arith.constant 0 : index
    %c0_7 = arith.constant 0 : index
    %9 = vector.load %arg7[%c0_6, %c0_7] : memref<4x128xf32, #tpu.memory_space<vmem>>, vector<4x128xf32>
    tpu.vector_store %arg7[%c0_6, %c0_7], %8 {strides = array<i32>} : memref<4x128xf32, #tpu.memory_space<vmem>>, vector<4x128xf32>,
    %c0_i32_8 = arith.constant 0 : i32
    %10 = arith.cmpi eq, %arg2, %c0_i32_8 : i32
    %11 = arith.extui %10 : i1 to i32
    %c0_i32_9 = arith.constant 0 : i32
    %12 = arith.cmpi ne, %11, %c0_i32_9 : i32
    scf.if %12 {
      %c0_10 = arith.constant 0 : index
      %c0_11 = arith.constant 0 : index
      %13 = vector.load %arg7[%c0_10, %c0_11] : memref<4x128xf32, #tpu.memory_space<vmem>>, vector<4x128xf32>
      %c0_12 = arith.constant 0 : index
      %c0_13 = arith.constant 0 : index
      %14 = vector.load %arg6[%c0_12, %c0_13] : memref<4x128xf32, #tpu.memory_space<vmem>>, vector<4x128xf32>
      tpu.vector_store %arg6[%c0_12, %c0_13], %13 {strides = array<i32>} : memref<4x128xf32, #tpu.memory_space<vmem>>, vector<4x128xf32>,
    } else {
    }
    return
  }
  func.func @transform_0(%arg0: i32, %arg1: i32, %arg2: i32) -> (i32, i32) {
    %c0_i32 = arith.constant 0 : i32
    return %arg0, %arg2 : i32, i32
  }
  func.func @transform_1(%arg0: i32, %arg1: i32, %arg2: i32) -> (i32, i32) {
    %c0_i32 = arith.constant 0 : i32
    return %arg2, %arg1 : i32, i32
  }
  func.func @transform_2(%arg0: i32, %arg1: i32, %arg2: i32) -> (i32, i32) {
    %c0_i32 = arith.constant 0 : i32
    %c0_i32_0 = arith.constant 0 : i32
    return %c0_i32, %arg1 : i32, i32
  }
  func.func @transform_3(%arg0: i32, %arg1: i32, %arg2: i32) -> (i32, i32) {
    %c0_i32 = arith.constant 0 : i32
    return %arg0, %arg1 : i32, i32
  }
}

module attributes {stable_mosaic.version = 11 : i64} {
  func.func @_linear_kernel(%arg0: i32, %arg1: i32, %arg2: i32, %arg3: memref<4x128xf32, #tpu.memory_space<vmem>>, %arg4: memref<128x256xbf16, #tpu.memory_space<vmem>>, %arg5: memref<1x256xf32, #tpu.memory_space<vmem>>, %arg6: memref<4x256xf32, #tpu.memory_space<vmem>>, %arg7: memref<4x256xf32, #tpu.memory_space<vmem>>) attributes {dimension_semantics = [#tpu.dimension_semantics<parallel>, #tpu.dimension_semantics<parallel>, #tpu.dimension_semantics<arbitrary>], iteration_bounds = array<i64: 1, 1, 1>, scalar_prefetch = 0 : i64, scratch_operands = 1 : i64, tpu.core_type = #tpu.core_type<tc>, window_params = [{transform_indices = @transform_0, window_bounds = array<i64: 4, 128>}, {transform_indices = @transform_1, window_bounds = array<i64: 128, 256>}, {transform_indices = @transform_2, window_bounds = array<i64: 1, 256>}, {transform_indices = @transform_3, window_bounds = array<i64: 4, 256>}]} {
    %c0_i32 = arith.constant 0 : i32
    %0 = arith.cmpi eq, %arg2, %c0_i32 : i32
    %1 = arith.extui %0 : i1 to i32
    %c0_i32_0 = arith.constant 0 : i32
    %2 = arith.cmpi ne, %1, %c0_i32_0 : i32
    scf.if %2 {
      %c0_10 = arith.constant 0 : index
      %c0_11 = arith.constant 0 : index
      %13 = vector.load %arg5[%c0_10, %c0_11] : memref<1x256xf32, #tpu.memory_space<vmem>>, vector<1x256xf32>
      %14 = vector.shape_cast %13 : vector<1x256xf32> to vector<1x256xf32>
      %15 = vector.broadcast %14 : vector<1x256xf32> to vector<4x256xf32>
      %c0_12 = arith.constant 0 : index
      %c0_13 = arith.constant 0 : index
      %16 = vector.load %arg7[%c0_12, %c0_13] : memref<4x256xf32, #tpu.memory_space<vmem>>, vector<4x256xf32>
      tpu.vector_store %arg7[%c0_12, %c0_13], %15 {strides = array<i32>} : memref<4x256xf32, #tpu.memory_space<vmem>>, vector<4x256xf32>,
    } else {
    }
    %c0 = arith.constant 0 : index
    %c0_1 = arith.constant 0 : index
    %3 = vector.load %arg7[%c0, %c0_1] : memref<4x256xf32, #tpu.memory_space<vmem>>, vector<4x256xf32>
    %c0_2 = arith.constant 0 : index
    %c0_3 = arith.constant 0 : index
    %4 = vector.load %arg3[%c0_2, %c0_3] : memref<4x128xf32, #tpu.memory_space<vmem>>, vector<4x128xf32>
    %5 = arith.truncf %4 : vector<4x128xf32> to vector<4x128xbf16>
    %c0_4 = arith.constant 0 : index
    %c0_5 = arith.constant 0 : index
    %6 = vector.load %arg4[%c0_4, %c0_5] : memref<128x256xbf16, #tpu.memory_space<vmem>>, vector<128x256xbf16>
    %cst = arith.constant dense<0.000000e+00> : vector<4x256xf32>
    %7 = tpu.matmul %5, %6, %cst {dimension_numbers = #tpu.dot_dimension_numbers<[1], [0], [0], [1], [0, 0, 1, 1], [], []>} : vector<4x128xbf16>, vector<128x256xbf16>, vector<4x256xf32> -> vector<4x256xf32>
    %8 = arith.addf %3, %7 : vector<4x256xf32>
    %c0_6 = arith.constant 0 : index
    %c0_7 = arith.constant 0 : index
    %9 = vector.load %arg7[%c0_6, %c0_7] : memref<4x256xf32, #tpu.memory_space<vmem>>, vector<4x256xf32>
    tpu.vector_store %arg7[%c0_6, %c0_7], %8 {strides = array<i32>} : memref<4x256xf32, #tpu.memory_space<vmem>>, vector<4x256xf32>,
    %c0_i32_8 = arith.constant 0 : i32
    %10 = arith.cmpi eq, %arg2, %c0_i32_8 : i32
    %11 = arith.extui %10 : i1 to i32
    %c0_i32_9 = arith.constant 0 : i32
    %12 = arith.cmpi ne, %11, %c0_i32_9 : i32
    scf.if %12 {
      %c0_10 = arith.constant 0 : index
      %c0_11 = arith.constant 0 : index
      %13 = vector.load %arg7[%c0_10, %c0_11] : memref<4x256xf32, #tpu.memory_space<vmem>>, vector<4x256xf32>
      %c0_12 = arith.constant 0 : index
      %c0_13 = arith.constant 0 : index
      %14 = vector.load %arg6[%c0_12, %c0_13] : memref<4x256xf32, #tpu.memory_space<vmem>>, vector<4x256xf32>
      tpu.vector_store %arg6[%c0_12, %c0_13], %13 {strides = array<i32>} : memref<4x256xf32, #tpu.memory_space<vmem>>, vector<4x256xf32>,
    } else {
    }
    return
  }
  func.func @transform_0(%arg0: i32, %arg1: i32, %arg2: i32) -> (i32, i32) {
    %c0_i32 = arith.constant 0 : i32
    return %arg0, %arg2 : i32, i32
  }
  func.func @transform_1(%arg0: i32, %arg1: i32, %arg2: i32) -> (i32, i32) {
    %c0_i32 = arith.constant 0 : i32
    return %arg2, %arg1 : i32, i32
  }
  func.func @transform_2(%arg0: i32, %arg1: i32, %arg2: i32) -> (i32, i32) {
    %c0_i32 = arith.constant 0 : i32
    %c0_i32_0 = arith.constant 0 : i32
    return %c0_i32, %arg1 : i32, i32
  }
  func.func @transform_3(%arg0: i32, %arg1: i32, %arg2: i32) -> (i32, i32) {
    %c0_i32 = arith.constant 0 : i32
    return %arg0, %arg1 : i32, i32
  }
}

module attributes {stable_mosaic.version = 11 : i64} {
  func.func @_linear_kernel(%arg0: i32, %arg1: i32, %arg2: i32, %arg3: memref<8x128xf32, #tpu.memory_space<vmem>>, %arg4: memref<128x256xbf16, #tpu.memory_space<vmem>>, %arg5: memref<1x256xf32, #tpu.memory_space<vmem>>, %arg6: memref<8x256xf32, #tpu.memory_space<vmem>>, %arg7: memref<8x256xf32, #tpu.memory_space<vmem>>) attributes {dimension_semantics = [#tpu.dimension_semantics<parallel>, #tpu.dimension_semantics<parallel>, #tpu.dimension_semantics<arbitrary>], iteration_bounds = array<i64: 1, 1, 1>, scalar_prefetch = 0 : i64, scratch_operands = 1 : i64, tpu.core_type = #tpu.core_type<tc>, window_params = [{transform_indices = @transform_0, window_bounds = array<i64: 8, 128>}, {transform_indices = @transform_1, window_bounds = array<i64: 128, 256>}, {transform_indices = @transform_2, window_bounds = array<i64: 1, 256>}, {transform_indices = @transform_3, window_bounds = array<i64: 8, 256>}]} {
    %c0_i32 = arith.constant 0 : i32
    %0 = arith.cmpi eq, %arg2, %c0_i32 : i32
    %1 = arith.extui %0 : i1 to i32
    %c0_i32_0 = arith.constant 0 : i32
    %2 = arith.cmpi ne, %1, %c0_i32_0 : i32
    scf.if %2 {
      %c0_10 = arith.constant 0 : index
      %c0_11 = arith.constant 0 : index
      %13 = vector.load %arg5[%c0_10, %c0_11] : memref<1x256xf32, #tpu.memory_space<vmem>>, vector<1x256xf32>
      %14 = vector.shape_cast %13 : vector<1x256xf32> to vector<1x256xf32>
      %15 = vector.broadcast %14 : vector<1x256xf32> to vector<8x256xf32>
      %c0_12 = arith.constant 0 : index
      %c0_13 = arith.constant 0 : index
      %16 = vector.load %arg7[%c0_12, %c0_13] : memref<8x256xf32, #tpu.memory_space<vmem>>, vector<8x256xf32>
      tpu.vector_store %arg7[%c0_12, %c0_13], %15 {strides = array<i32>} : memref<8x256xf32, #tpu.memory_space<vmem>>, vector<8x256xf32>,
    } else {
    }
    %c0 = arith.constant 0 : index
    %c0_1 = arith.constant 0 : index
    %3 = vector.load %arg7[%c0, %c0_1] : memref<8x256xf32, #tpu.memory_space<vmem>>, vector<8x256xf32>
    %c0_2 = arith.constant 0 : index
    %c0_3 = arith.constant 0 : index
    %4 = vector.load %arg3[%c0_2, %c0_3] : memref<8x128xf32, #tpu.memory_space<vmem>>, vector<8x128xf32>
    %5 = arith.truncf %4 : vector<8x128xf32> to vector<8x128xbf16>
    %c0_4 = arith.constant 0 : index
    %c0_5 = arith.constant 0 : index
    %6 = vector.load %arg4[%c0_4, %c0_5] : memref<128x256xbf16, #tpu.memory_space<vmem>>, vector<128x256xbf16>
    %cst = arith.constant dense<0.000000e+00> : vector<8x256xf32>
    %7 = tpu.matmul %5, %6, %cst {dimension_numbers = #tpu.dot_dimension_numbers<[1], [0], [0], [1], [0, 0, 1, 1], [], []>} : vector<8x128xbf16>, vector<128x256xbf16>, vector<8x256xf32> -> vector<8x256xf32>
    %8 = arith.addf %3, %7 : vector<8x256xf32>
    %c0_6 = arith.constant 0 : index
    %c0_7 = arith.constant 0 : index
    %9 = vector.load %arg7[%c0_6, %c0_7] : memref<8x256xf32, #tpu.memory_space<vmem>>, vector<8x256xf32>
    tpu.vector_store %arg7[%c0_6, %c0_7], %8 {strides = array<i32>} : memref<8x256xf32, #tpu.memory_space<vmem>>, vector<8x256xf32>,
    %c0_i32_8 = arith.constant 0 : i32
    %10 = arith.cmpi eq, %arg2, %c0_i32_8 : i32
    %11 = arith.extui %10 : i1 to i32
    %c0_i32_9 = arith.constant 0 : i32
    %12 = arith.cmpi ne, %11, %c0_i32_9 : i32
    scf.if %12 {
      %c0_10 = arith.constant 0 : index
      %c0_11 = arith.constant 0 : index
      %13 = vector.load %arg7[%c0_10, %c0_11] : memref<8x256xf32, #tpu.memory_space<vmem>>, vector<8x256xf32>
      %c0_12 = arith.constant 0 : index
      %c0_13 = arith.constant 0 : index
      %14 = vector.load %arg6[%c0_12, %c0_13] : memref<8x256xf32, #tpu.memory_space<vmem>>, vector<8x256xf32>
      tpu.vector_store %arg6[%c0_12, %c0_13], %13 {strides = array<i32>} : memref<8x256xf32, #tpu.memory_space<vmem>>, vector<8x256xf32>,
    } else {
    }
    return
  }
  func.func @transform_0(%arg0: i32, %arg1: i32, %arg2: i32) -> (i32, i32) {
    %c0_i32 = arith.constant 0 : i32
    return %arg0, %arg2 : i32, i32
  }
  func.func @transform_1(%arg0: i32, %arg1: i32, %arg2: i32) -> (i32, i32) {
    %c0_i32 = arith.constant 0 : i32
    return %arg2, %arg1 : i32, i32
  }
  func.func @transform_2(%arg0: i32, %arg1: i32, %arg2: i32) -> (i32, i32) {
    %c0_i32 = arith.constant 0 : i32
    %c0_i32_0 = arith.constant 0 : i32
    return %c0_i32, %arg1 : i32, i32
  }
  func.func @transform_3(%arg0: i32, %arg1: i32, %arg2: i32) -> (i32, i32) {
    %c0_i32 = arith.constant 0 : i32
    return %arg0, %arg1 : i32, i32
  }
}

module attributes {stable_mosaic.version = 11 : i64} {
  func.func @_linear_kernel(%arg0: i32, %arg1: i32, %arg2: i32, %arg3: memref<16x256xf32, #tpu.memory_space<vmem>>, %arg4: memref<256x128xbf16, #tpu.memory_space<vmem>>, %arg5: memref<1x128xf32, #tpu.memory_space<vmem>>, %arg6: memref<16x128xf32, #tpu.memory_space<vmem>>, %arg7: memref<16x128xf32, #tpu.memory_space<vmem>>) attributes {dimension_semantics = [#tpu.dimension_semantics<parallel>, #tpu.dimension_semantics<parallel>, #tpu.dimension_semantics<arbitrary>], iteration_bounds = array<i64: 1, 1, 1>, scalar_prefetch = 0 : i64, scratch_operands = 1 : i64, tpu.core_type = #tpu.core_type<tc>, window_params = [{transform_indices = @transform_0, window_bounds = array<i64: 16, 256>}, {transform_indices = @transform_1, window_bounds = array<i64: 256, 128>}, {transform_indices = @transform_2, window_bounds = array<i64: 1, 128>}, {transform_indices = @transform_3, window_bounds = array<i64: 16, 128>}]} {
    %c0_i32 = arith.constant 0 : i32
    %0 = arith.cmpi eq, %arg2, %c0_i32 : i32
    %1 = arith.extui %0 : i1 to i32
    %c0_i32_0 = arith.constant 0 : i32
    %2 = arith.cmpi ne, %1, %c0_i32_0 : i32
    scf.if %2 {
      %c0_10 = arith.constant 0 : index
      %c0_11 = arith.constant 0 : index
      %13 = vector.load %arg5[%c0_10, %c0_11] : memref<1x128xf32, #tpu.memory_space<vmem>>, vector<1x128xf32>
      %14 = vector.shape_cast %13 : vector<1x128xf32> to vector<1x128xf32>
      %15 = vector.broadcast %14 : vector<1x128xf32> to vector<16x128xf32>
      %c0_12 = arith.constant 0 : index
      %c0_13 = arith.constant 0 : index
      %16 = vector.load %arg7[%c0_12, %c0_13] : memref<16x128xf32, #tpu.memory_space<vmem>>, vector<16x128xf32>
      tpu.vector_store %arg7[%c0_12, %c0_13], %15 {strides = array<i32>} : memref<16x128xf32, #tpu.memory_space<vmem>>, vector<16x128xf32>,
    } else {
    }
    %c0 = arith.constant 0 : index
    %c0_1 = arith.constant 0 : index
    %3 = vector.load %arg7[%c0, %c0_1] : memref<16x128xf32, #tpu.memory_space<vmem>>, vector<16x128xf32>
    %c0_2 = arith.constant 0 : index
    %c0_3 = arith.constant 0 : index
    %4 = vector.load %arg3[%c0_2, %c0_3] : memref<16x256xf32, #tpu.memory_space<vmem>>, vector<16x256xf32>
    %5 = arith.truncf %4 : vector<16x256xf32> to vector<16x256xbf16>
    %c0_4 = arith.constant 0 : index
    %c0_5 = arith.constant 0 : index
    %6 = vector.load %arg4[%c0_4, %c0_5] : memref<256x128xbf16, #tpu.memory_space<vmem>>, vector<256x128xbf16>
    %cst = arith.constant dense<0.000000e+00> : vector<16x128xf32>
    %7 = tpu.matmul %5, %6, %cst {dimension_numbers = #tpu.dot_dimension_numbers<[1], [0], [0], [1], [0, 0, 1, 1], [], []>} : vector<16x256xbf16>, vector<256x128xbf16>, vector<16x128xf32> -> vector<16x128xf32>
    %8 = arith.addf %3, %7 : vector<16x128xf32>
    %c0_6 = arith.constant 0 : index
    %c0_7 = arith.constant 0 : index
    %9 = vector.load %arg7[%c0_6, %c0_7] : memref<16x128xf32, #tpu.memory_space<vmem>>, vector<16x128xf32>
    tpu.vector_store %arg7[%c0_6, %c0_7], %8 {strides = array<i32>} : memref<16x128xf32, #tpu.memory_space<vmem>>, vector<16x128xf32>,
    %c0_i32_8 = arith.constant 0 : i32
    %10 = arith.cmpi eq, %arg2, %c0_i32_8 : i32
    %11 = arith.extui %10 : i1 to i32
    %c0_i32_9 = arith.constant 0 : i32
    %12 = arith.cmpi ne, %11, %c0_i32_9 : i32
    scf.if %12 {
      %c0_10 = arith.constant 0 : index
      %c0_11 = arith.constant 0 : index
      %13 = vector.load %arg7[%c0_10, %c0_11] : memref<16x128xf32, #tpu.memory_space<vmem>>, vector<16x128xf32>
      %c0_12 = arith.constant 0 : index
      %c0_13 = arith.constant 0 : index
      %14 = vector.load %arg6[%c0_12, %c0_13] : memref<16x128xf32, #tpu.memory_space<vmem>>, vector<16x128xf32>
      tpu.vector_store %arg6[%c0_12, %c0_13], %13 {strides = array<i32>} : memref<16x128xf32, #tpu.memory_space<vmem>>, vector<16x128xf32>,
    } else {
    }
    return
  }
  func.func @transform_0(%arg0: i32, %arg1: i32, %arg2: i32) -> (i32, i32) {
    %c0_i32 = arith.constant 0 : i32
    return %arg0, %arg2 : i32, i32
  }
  func.func @transform_1(%arg0: i32, %arg1: i32, %arg2: i32) -> (i32, i32) {
    %c0_i32 = arith.constant 0 : i32
    return %arg2, %arg1 : i32, i32
  }
  func.func @transform_2(%arg0: i32, %arg1: i32, %arg2: i32) -> (i32, i32) {
    %c0_i32 = arith.constant 0 : i32
    %c0_i32_0 = arith.constant 0 : i32
    return %c0_i32, %arg1 : i32, i32
  }
  func.func @transform_3(%arg0: i32, %arg1: i32, %arg2: i32) -> (i32, i32) {
    %c0_i32 = arith.constant 0 : i32
    return %arg0, %arg1 : i32, i32
  }
}

module attributes {stable_mosaic.version = 11 : i64} {
  func.func @_linear_kernel(%arg0: i32, %arg1: i32, %arg2: i32, %arg3: memref<16x128xf32, #tpu.memory_space<vmem>>, %arg4: memref<128x256xbf16, #tpu.memory_space<vmem>>, %arg5: memref<1x256xf32, #tpu.memory_space<vmem>>, %arg6: memref<16x256xf32, #tpu.memory_space<vmem>>, %arg7: memref<16x256xf32, #tpu.memory_space<vmem>>) attributes {dimension_semantics = [#tpu.dimension_semantics<parallel>, #tpu.dimension_semantics<parallel>, #tpu.dimension_semantics<arbitrary>], iteration_bounds = array<i64: 1, 1, 1>, scalar_prefetch = 0 : i64, scratch_operands = 1 : i64, tpu.core_type = #tpu.core_type<tc>, window_params = [{transform_indices = @transform_0, window_bounds = array<i64: 16, 128>}, {transform_indices = @transform_1, window_bounds = array<i64: 128, 256>}, {transform_indices = @transform_2, window_bounds = array<i64: 1, 256>}, {transform_indices = @transform_3, window_bounds = array<i64: 16, 256>}]} {
    %c0_i32 = arith.constant 0 : i32
    %0 = arith.cmpi eq, %arg2, %c0_i32 : i32
    %1 = arith.extui %0 : i1 to i32
    %c0_i32_0 = arith.constant 0 : i32
    %2 = arith.cmpi ne, %1, %c0_i32_0 : i32
    scf.if %2 {
      %c0_10 = arith.constant 0 : index
      %c0_11 = arith.constant 0 : index
      %13 = vector.load %arg5[%c0_10, %c0_11] : memref<1x256xf32, #tpu.memory_space<vmem>>, vector<1x256xf32>
      %14 = vector.shape_cast %13 : vector<1x256xf32> to vector<1x256xf32>
      %15 = vector.broadcast %14 : vector<1x256xf32> to vector<16x256xf32>
      %c0_12 = arith.constant 0 : index
      %c0_13 = arith.constant 0 : index
      %16 = vector.load %arg7[%c0_12, %c0_13] : memref<16x256xf32, #tpu.memory_space<vmem>>, vector<16x256xf32>
      tpu.vector_store %arg7[%c0_12, %c0_13], %15 {strides = array<i32>} : memref<16x256xf32, #tpu.memory_space<vmem>>, vector<16x256xf32>,
    } else {
    }
    %c0 = arith.constant 0 : index
    %c0_1 = arith.constant 0 : index
    %3 = vector.load %arg7[%c0, %c0_1] : memref<16x256xf32, #tpu.memory_space<vmem>>, vector<16x256xf32>
    %c0_2 = arith.constant 0 : index
    %c0_3 = arith.constant 0 : index
    %4 = vector.load %arg3[%c0_2, %c0_3] : memref<16x128xf32, #tpu.memory_space<vmem>>, vector<16x128xf32>
    %5 = arith.truncf %4 : vector<16x128xf32> to vector<16x128xbf16>
    %c0_4 = arith.constant 0 : index
    %c0_5 = arith.constant 0 : index
    %6 = vector.load %arg4[%c0_4, %c0_5] : memref<128x256xbf16, #tpu.memory_space<vmem>>, vector<128x256xbf16>
    %cst = arith.constant dense<0.000000e+00> : vector<16x256xf32>
    %7 = tpu.matmul %5, %6, %cst {dimension_numbers = #tpu.dot_dimension_numbers<[1], [0], [0], [1], [0, 0, 1, 1], [], []>} : vector<16x128xbf16>, vector<128x256xbf16>, vector<16x256xf32> -> vector<16x256xf32>
    %8 = arith.addf %3, %7 : vector<16x256xf32>
    %c0_6 = arith.constant 0 : index
    %c0_7 = arith.constant 0 : index
    %9 = vector.load %arg7[%c0_6, %c0_7] : memref<16x256xf32, #tpu.memory_space<vmem>>, vector<16x256xf32>
    tpu.vector_store %arg7[%c0_6, %c0_7], %8 {strides = array<i32>} : memref<16x256xf32, #tpu.memory_space<vmem>>, vector<16x256xf32>,
    %c0_i32_8 = arith.constant 0 : i32
    %10 = arith.cmpi eq, %arg2, %c0_i32_8 : i32
    %11 = arith.extui %10 : i1 to i32
    %c0_i32_9 = arith.constant 0 : i32
    %12 = arith.cmpi ne, %11, %c0_i32_9 : i32
    scf.if %12 {
      %c0_10 = arith.constant 0 : index
      %c0_11 = arith.constant 0 : index
      %13 = vector.load %arg7[%c0_10, %c0_11] : memref<16x256xf32, #tpu.memory_space<vmem>>, vector<16x256xf32>
      %c0_12 = arith.constant 0 : index
      %c0_13 = arith.constant 0 : index
      %14 = vector.load %arg6[%c0_12, %c0_13] : memref<16x256xf32, #tpu.memory_space<vmem>>, vector<16x256xf32>
      tpu.vector_store %arg6[%c0_12, %c0_13], %13 {strides = array<i32>} : memref<16x256xf32, #tpu.memory_space<vmem>>, vector<16x256xf32>,
    } else {
    }
    return
  }
  func.func @transform_0(%arg0: i32, %arg1: i32, %arg2: i32) -> (i32, i32) {
    %c0_i32 = arith.constant 0 : i32
    return %arg0, %arg2 : i32, i32
  }
  func.func @transform_1(%arg0: i32, %arg1: i32, %arg2: i32) -> (i32, i32) {
    %c0_i32 = arith.constant 0 : i32
    return %arg2, %arg1 : i32, i32
  }
  func.func @transform_2(%arg0: i32, %arg1: i32, %arg2: i32) -> (i32, i32) {
    %c0_i32 = arith.constant 0 : i32
    %c0_i32_0 = arith.constant 0 : i32
    return %c0_i32, %arg1 : i32, i32
  }
  func.func @transform_3(%arg0: i32, %arg1: i32, %arg2: i32) -> (i32, i32) {
    %c0_i32 = arith.constant 0 : i32
    return %arg0, %arg1 : i32, i32
  }
}

</mosaic_0001>

<bundles_post_ra>
// kernel: latent_language_forward.66
= control target key start
LH: loop header
LB: loop body
LE: loop exit
PB: predicated region body
PF: predicated region fallthrough
CT: control target
= control target key end

     0   :  { %s683_s12 = smov 0   ;;  %s685_s13 = smov 0   ;;  %s758_s0 = inlined_call_operand.vmem [shape: f32[2,8,256], index: 0, kind: input, shape index: {}]   ;;  %s759_s1 = inlined_call_operand.vmem [shape: f32[4,256], index: 1, kind: input, shape index: {}]   ;;  %s760_s2 = inlined_call_operand.vmem [shape: f32[1,256], index: 2, kind: input, shape index: {}]   ;;  %s761_s3 = inlined_call_operand.vmem [shape: f32[2,8,256], index: 3, kind: output, shape index: {}]  }
   0x1   :  { %s687_s14 = smov 0  }
   0x2 LB: > { %s32_s15 = sadd.s32 1, %s656_s13  ;;  %p591_p0 = scmp.ge.s32.totalorder %s660_s14, 1  ;;  %s660_s14 = sphi %s687_s14, %s13_s14   ;;  %s656_s13 = sphi %s685_s13, %s763_s13   ;;  %s652_s12 = sphi %s683_s12, %s762_s12  }
   0x3   : > { %p34_p1 = scmp.ge.s32.totalorder %s32_s15, 2  ;;  %p194_p2 = scmp.lt.s32.totalorder %s660_s14, 3 }
   0x5   : > { %s765_s15 = smov (%p34_p1, %s32_s15), 0  ;;  %p195_p3 = pnand %p591_p0, %p194_p2 }
   0x6   : > { %p244_p4 = scmp.lt.s32.totalorder (!%p195_p3), %s652_s12, 1 }
   0x7   : > { %198 = sbr.rel (%p195_p3) target bundleno = 73 (0x49), region = 32 }
   0xc   : > { %v662_v0 = vmov 0.0   ;;  %s767_s12 = smov (!%p244_p4, %s652_s12), 1  ;;  %v596_v3 = vld [vmem:[%s759_s1 + $0x1] ss:$4 sm:$0x3]  ;;  %vm302_vm0 = vcmask 1042432  }
   0xd   : > { %286 = vst [vmem:[#allocation2] sm:$0x77] %v662_v0  ;;  %s603_s16 = sshll.u32 %s767_s12, 4  ;;  %v597_v4 = vld [vmem:[%s759_s1 + $0x2] ss:$4 sm:$0x3] }
   0xe   : > { %s255_s19 = scalar_lea.vmem %s758_s0, %s603_s16  ;;  %v598_v6 = vld [vmem:[%s759_s1 + $0x3] ss:$4 sm:$0x3]  ;;  %v324_v9 = vperm.slane %v596_v3, 0  ;;  %v325_v10 = vperm.slane %v596_v3, 1  ;;  %v350_v13 = vperm.slane %v597_v4, 0  ;;  %s280_s5 = scalar_lea.vmem %s761_s3, %s603_s16 }
   0xf   : > { %v287_v1 = vld [vmem:[%s255_s19] sm:$0xff]  ;;  %v288_v2 = vld [vmem:[%s255_s19 + $0x8] sm:$0xff]  ;;  %v376_v14 = vperm.slane %v598_v6, 0  ;;  %v351_v15 = vperm.slane %v597_v4, 1  ;;  %v377_v16 = vperm.slane %v598_v6, 1  ;;  %vm336_vm1 = vcmask 1046528  }
  0x10   : > { %v718_v7 = vrot.slane %v287_v1, 5  ;;  %v720_v8 = vrot.slane %v288_v2, 5  ;;  %v311_v11 = vld [vmem:[%s759_s1] ss:$4 sm:$0x3]  ;;  %vm362_vm2 = vcmask 1045504  }
  0x11   : > { %v305_v12 = vld [vmem:[%s760_s2] sm:$0x3]  ;;  %v313_v19 = vperm.slane %v311_v11, 0  ;;  %v314_v22 = vperm.slane %v311_v11, 1  ;;  %vm388_vm3 = vcmask 1044480   ;;  %vm442_vm4 = vcmask 1043456  }
  0x12   : > { %v330_v17 = vmul.f32 %v324_v9, %v718_v7  ;;  %v331_v18 = vmul.f32 %v325_v10, %v720_v8  ;;  %v307_v20 = vperm.slane %v305_v12, 0  ;;  %v308_v21 = vperm.slane %v305_v12, 1 }
  0x13   : > { %v356_v24 = vmul.f32 %v350_v13, %v718_v7  ;;  %v382_v25 = vmul.f32 %v376_v14, %v718_v7  ;;  %v357_v27 = vmul.f32 %v351_v15, %v720_v8  ;;  %v383_v28 = vmul.f32 %v377_v16, %v720_v8 }
  0x14   : > { %v289_v5 = vld [vmem:[#allocation2] sm:$0x77]  ;;  %v338_v30 = vrot.slane %v330_v17, 1  ;;  %v341_v32 = vrot.slane %v331_v18, 1  ;;  %v441_v60 = vrot.slane %v720_v8, 4 }
  0x15   : > { %291 = vst [vmem:[#allocation1] ss:$2 sm:$0xff] %v289_v5  ;;  %v364_v44 = vrot.slane %v356_v24, 2  ;;  %v367_v48 = vrot.slane %v357_v27, 2  ;;  %v390_v51 = vrot.slane %v382_v25, 3  ;;  %v393_v55 = vrot.slane %v383_v28, 3 }
  0x16   : > { %v443_v1 = vsel %vm442_vm4, %v718_v7, %v441_v60 }
  0x17   : > { %445 = vst [vmem:[#allocation2] sm:$0x77] %v443_v1 }
  0x1c   : > { %v292_v23 = vld.sshfl [vmem:[#allocation1] sm:$0xff pattern:$0x75316420]  ;;  %v293_v26 = vld.sshfl [vmem:[#allocation1 + $0x8] sm:$0xff pattern:$0x75316420] }
  0x1d   : > { %v303_v29 = vsel %vm302_vm0, %v292_v23, %v718_v7  ;;  %v304_v31 = vsel %vm302_vm0, %v293_v26, %v720_v8 }
  0x1e   : > { %v317_v33 = vmul.f32 %v313_v19, %v303_v29  ;;  %v328_v34 = vmul.f32 %v324_v9, %v303_v29  ;;  %v354_v35 = vmul.f32 %v350_v13, %v303_v29  ;;  %v380_v36 = vmul.f32 %v376_v14, %v303_v29 }
  0x1f   : > { %v318_v37 = vmul.f32 %v314_v22, %v304_v31  ;;  %v329_v38 = vmul.f32 %v325_v10, %v304_v31  ;;  %v355_v39 = vmul.f32 %v351_v15, %v304_v31  ;;  %v381_v40 = vmul.f32 %v377_v16, %v304_v31 }
  0x20   : > { %v319_v41 = vadd.f32 %v317_v33, %v307_v20  ;;  %v337_v42 = vrot.slane %v328_v34, 1  ;;  %v363_v43 = vrot.slane %v354_v35, 2  ;;  %v389_v50 = vrot.slane %v380_v36, 3 }
  0x21   : > { %v320_v45 = vadd.f32 %v318_v37, %v308_v21  ;;  %v340_v46 = vrot.slane %v329_v38, 1  ;;  %v366_v47 = vrot.slane %v355_v39, 2  ;;  %v392_v54 = vrot.slane %v381_v40, 3 }
  0x22   : > { %v339_v49 = vsel %vm336_vm1, %v337_v42, %v338_v30  ;;  %v365_v56 = vsel %vm362_vm2, %v363_v43, %v364_v44  ;;  %v391_v61 = vsel %vm388_vm3, %v389_v50, %v390_v51 }
  0x23   : > { %v345_v52 = vadd.f32 %v339_v49, %v319_v41  ;;  %v342_v53 = vsel %vm336_vm1, %v340_v46, %v341_v32  ;;  %v368_v59 = vsel %vm362_vm2, %v366_v47, %v367_v48  ;;  %v394_v0 = vsel %vm388_vm3, %v392_v54, %v393_v55 }
  0x24   : > { %v346_v57 = vadd.f32 %v342_v53, %v320_v45 }
  0x25   : > { %v371_v58 = vadd.f32 %v365_v56, %v345_v52 }
  0x26   : > { %v372_v62 = vadd.f32 %v368_v59, %v346_v57 }
  0x27   : > { %v397_v63 = vadd.f32 %v391_v61, %v371_v58 }
  0x28   : > { %v398_v2 = vadd.f32 %v394_v0, %v372_v62 }
  0x29   : > { %v599_v3 = vmul.f32 -1.442695, %v397_v63 }
  0x2a   : > { %v600_v4 = vmul.f32 -1.442695, %v398_v2 }
  0x2b   : > { %630 = vpow2.f32 %v599_v3 }
  0x2c   : > { %632 = vpow2.f32 %v600_v4 }
  0x31   : > { %v631_v5 = vpop.eup %630 }
  0x32   : > { %v633_v6 = vpop.eup %632  ;;  %v405_v9 = vadd.f32 1.0, %v631_v5 }
  0x33   : > { %v406_v10 = vadd.f32 1.0, %v633_v6 }
  0x34   : > { %634 = vrcp.f32 %v405_v9  ;;  %v418_v15 = vand.u32 2147483648, %v405_v9  ;;  %v416_v17 = vand.u32 2147483647, %v405_v9  ;;  %vm412_vm7 = vweird.f32 %v405_v9 }
  0x35   : > { %636 = vrcp.f32 %v406_v10  ;;  %v433_v18 = vand.u32 2147483648, %v406_v10  ;;  %v431_v20 = vand.u32 2147483647, %v406_v10  ;;  %vm427_vm9 = vweird.f32 %v406_v10 }
  0x36   : > { %v419_v22 = vor.u32 1.1754944e-38, %v418_v15  ;;  %vm417_vm10 = vcmp.eq.f32.partialorder %v416_v17, 8.507059e+37 }
  0x37   : > { %v434_v25 = vor.u32 1.1754944e-38, %v433_v18  ;;  %vm432_vm12 = vcmp.eq.f32.partialorder %v431_v20, 8.507059e+37 }
  0x3a   : > { %v635_v8 = vpop.eup %634 }
  0x3b   : > { %v637_v11 = vpop.eup %636  ;;  %v408_v12 = vmul.f32 %v635_v8, %v405_v9  ;;  %vm413_vm5 = vweird.f32 %v635_v8 }
  0x3c   : > { %v423_v13 = vmul.f32 %v637_v11, %v406_v10  ;;  %vm428_vm6 = vweird.f32 %v637_v11  ;;  %vm414_vm8 = vmor %vm412_vm7, %vm413_vm5 }
  0x3d   : > { %v409_v14 = vsub.f32 1.0, %v408_v12  ;;  %vm429_vm11 = vmor %vm427_vm9, %vm428_vm6 }
  0x3e   : > { %v424_v16 = vsub.f32 1.0, %v423_v13 }
  0x3f   : > { %v410_v7 = vmul.f32 %v635_v8, %v409_v14 }
  0x40   : > { %v425_v19 = vmul.f32 %v637_v11, %v424_v16 }
  0x41   : > { %v411_v21 = vadd.f32 %v635_v8, %v410_v7 }
  0x42   : > { %v426_v23 = vadd.f32 %v637_v11, %v425_v19 }
  0x43   : > { %v415_v24 = vsel %vm414_vm8, %v635_v8, %v411_v21 }
  0x44   : > { %v420_v26 = vsel %vm417_vm10, %v419_v22, %v415_v24  ;;  %v430_v27 = vsel %vm429_vm11, %v637_v11, %v426_v23 }
  0x45   : > { %v437_v28 = vmul.f32 %v420_v26, %v397_v63  ;;  %v435_v29 = vsel %vm432_vm12, %v434_v25, %v430_v27 }
  0x46   : > { %v438_v30 = vmul.f32 %v435_v29, %v398_v2 }
  0x47   : > { %439 = vst [vmem:[%s280_s5] sm:$0xff] %v437_v28 }
  0x48   : > { %440 = vst [vmem:[%s280_s5 + $0x8] sm:$0xff] %v438_v30 }
  0x49 PF: > { %s13_s14 = sadd.s32 1, %s660_s14   ;;  %s762_s12 = smov %s656_s13 }
  0x4a   : > { %p10_p5 = scmp.ge.s32.totalorder %s13_s14, 4   ;;  %s763_s13 = smov %s765_s15 }
  0x4c   :  { %12 = sbr.rel (!%p10_p5) target bundleno = 2 (0x2), region = 75 }

// kernel: latent_language_forward.67
= control target key start
LH: loop header
LB: loop body
LE: loop exit
PB: predicated region body
PF: predicated region fallthrough
CT: control target
= control target key end

     0   :  { %8 = vsyncpa [#allocation4], 0  ;;  %s330_s15 = smov [#allocation3]   ;;  %s331_s17 = smov 64   ;;  %s377_s0 = inlined_call_operand.vmem [shape: f32[16,256], index: 0, kind: input, shape index: {}]   ;;  %s378_s1 = inlined_call_operand.hbm [shape: bf16[256,128], index: 1, kind: input, shape index: {}]   ;;  %s379_s2 = inlined_call_operand.vmem [shape: f32[1,128], index: 2, kind: input, shape index: {}]   ;;  %s380_s3 = inlined_call_operand.vmem [shape: f32[16,128], index: 3, kind: output, shape index: {}]  }
   0x1   :  { %s15_s14 = sshll.u32 %s378_s1, 4  ;;  %s17_s16 = sshll.u32 %s330_s15, 4  ;;  %s16_s14 = int_to_ptr.hbm [resolvable:$true] %s15_s14  ;;  %s18_s16 = int_to_ptr.vmem [resolvable:$true] %s17_s16 }
   0x2   :  { %s332_s18 = smov 4  }
   0x3   :  { %23 = dma.hbm_to_vmem [thread:$0]  %s16_s14, 2048, %s18_s16, [#allocation4], %s331_s17, %s331_s17, %s332_s18  }
   0x4   :  { %328 = dma.done.wait [#allocation4], 2048  }
   0x5   :  { %329 = vsyncadd [#allocation4], 4294965248  ;;  %v291_v0 = vld [vmem:[#allocation3 + $0x38] sm:$0xff]  ;;  %v290_v2 = vld [vmem:[#allocation3 + $0x30] sm:$0xff] }
   0x6   :  { %v299_v1 = vld [vmem:[#allocation3 + $0x78] sm:$0xff]  ;;  %176 = vmatpush.bf16.msra.mxu0 %v291_v0  ;;  %v298_v3 = vld [vmem:[#allocation3 + $0x70] sm:$0xff]  ;;  %v289_v4 = vld [vmem:[#allocation3 + $0x28] sm:$0xff] }
   0x7   :  { %190 = vmatpush.bf16.msra.mxu1 %v299_v1  ;;  %v297_v5 = vld [vmem:[#allocation3 + $0x68] sm:$0xff]  ;;  %v288_v6 = vld [vmem:[#allocation3 + $0x20] sm:$0xff]  ;;  %v287_v8 = vld [vmem:[#allocation3 + $0x18] sm:$0xff] }
   0x8   :  { %v296_v7 = vld [vmem:[#allocation3 + $0x60] sm:$0xff]  ;;  %v295_v9 = vld [vmem:[#allocation3 + $0x58] sm:$0xff]  ;;  %v286_v10 = vld [vmem:[#allocation3 + $0x10] sm:$0xff] }
   0x9   :  { %v294_v11 = vld [vmem:[#allocation3 + $0x50] sm:$0xff]  ;;  %v285_v12 = vld [vmem:[#allocation3 + $0x8] sm:$0xff]  ;;  %v284_v14 = vld [vmem:[#allocation3] sm:$0xff] }
   0xa   :  { %177 = vmatpush.bf16.msra.mxu0 %v290_v2  ;;  %v293_v13 = vld [vmem:[#allocation3 + $0x48] sm:$0xff]  ;;  %v292_v15 = vld [vmem:[#allocation3 + $0x40] sm:$0xff]  ;;  %v44_v17 = vld [vmem:[%s377_s0 + $0x10] sm:$0xff] }
   0xb   :  { %191 = vmatpush.bf16.msra.mxu1 %v298_v3  ;;  %v42_v16 = vld [vmem:[%s377_s0] sm:$0xff]  ;;  %v43_v18 = vld [vmem:[%s377_s0 + $0x8] sm:$0xff]  ;;  %v45_v19 = vld [vmem:[%s377_s0 + $0x18] sm:$0xff] }
   0xc   :  { %v46_v20 = vpack.c.bf16 %v44_v17, %v42_v16  ;;  %v47_v21 = vpack.c.bf16 %v45_v19, %v43_v18  ;;  %v303_v22 = vld [vmem:[%s379_s2] ss:$0 sm:$0xff] }
   0xe   :  { %178 = vmatpush.bf16.msra.mxu0 %v289_v4 }
   0xf   :  { %192 = vmatpush.bf16.msra.mxu1 %v297_v5 }
  0x12   :  { %179 = vmatpush.bf16.msra.mxu0 %v288_v6 }
  0x13   :  { %193 = vmatpush.bf16.msra.mxu1 %v296_v7 }
  0x16   :  { %180 = vmatpush.bf16.msra.mxu0 %v287_v8 }
  0x17   :  { %194 = vmatpush.bf16.msra.mxu1 %v295_v9 }
  0x1a   :  { %181 = vmatpush.bf16.msra.mxu0 %v286_v10 }
  0x1b   :  { %195 = vmatpush.bf16.msra.mxu1 %v294_v11 }
  0x1e   :  { %182 = vmatpush.bf16.msra.mxu0 %v285_v12 }
  0x1f   :  { %196 = vmatpush.bf16.msra.mxu1 %v293_v13 }
  0x22   :  { %183 = vmatpush.bf16.msra.mxu0 %v284_v14 }
  0x23   :  { %197 = vmatpush.bf16.msra.mxu1 %v292_v15 }
  0x25   :  { %184 = vmatmul.bf16.vlgmr.msra.gmra.mxu0 %v46_v20 }
  0x26   :  { %198 = vmatmul.bf16.vlgmr.msra.gmra.mxu1 %v47_v21 }
  0xa2   :  { %v185_v23 = vpop.f32.mrf.mxu0 }
  0xa3   :  { %v199_v24 = vpop.f32.mrf.mxu1 }
  0xa4   :  { %v200_v25 = vadd.f32 %v199_v24, %v185_v23 }
  0xa6   :  { %v204_v26 = vadd.f32 %v303_v22, %v200_v25 }
  0xa8   :  { %213 = vst [vmem:[%s380_s3] sm:$0xff] %v204_v26 }
  0xaa   :  { %v187_v27 = vpop.f32.mrf.mxu0 }
  0xab   :  { %v201_v28 = vpop.f32.mrf.mxu1 }
  0xac   :  { %v202_v29 = vadd.f32 %v201_v28, %v187_v27 }
  0xae   :  { %v205_v30 = vadd.f32 %v303_v22, %v202_v29 }
  0xb0   :  { %214 = vst [vmem:[%s380_s3 + $0x8] sm:$0xff] %v205_v30 }
  0xb1   :  { %219 = vsyncpa [#allocation4], 1 }

// kernel: latent_language_forward.65
= control target key start
LH: loop header
LB: loop body
LE: loop exit
PB: predicated region body
PF: predicated region fallthrough
CT: control target
= control target key end

     0   :  { %8 = vsyncpa [#allocation4], 0  ;;  %s561_s15 = smov [#allocation3]   ;;  %s562_s17 = smov 256   ;;  %s638_s0 = inlined_call_operand.vmem [shape: f32[16,128], index: 0, kind: input, shape index: {}]   ;;  %s639_s1 = inlined_call_operand.vmem [shape: f32[1,128], index: 1, kind: input, shape index: {}]   ;;  %s640_s2 = inlined_call_operand.hbm [shape: bf16[128,512], index: 2, kind: input, shape index: {}]   ;;  %s641_s3 = inlined_call_operand.vmem [shape: f32[16,512], index: 3, kind: output, shape index: {}]  }
   0x1   :  { %s17_s14 = sshll.u32 %s640_s2, 4  ;;  %s19_s16 = sshll.u32 %s561_s15, 4  ;;  %s18_s14 = int_to_ptr.hbm [resolvable:$true] %s17_s14  ;;  %s20_s16 = int_to_ptr.vmem [resolvable:$true] %s19_s16 }
   0x2   :  { %s563_s18 = smov 16  }
   0x3   :  { %25 = dma.hbm_to_vmem [thread:$0]  %s18_s14, 4096, %s20_s16, [#allocation4], %s562_s17, %s562_s17, %s563_s18  }
   0x4   :  { %559 = dma.done.wait [#allocation4], 4096  }
   0x5   :  { %560 = vsyncadd [#allocation4], 4294963200  ;;  %v591_v0 = vld [vmem:[%s638_s0] sm:$0xff]  ;;  %v598_v2 = vld [vmem:[%s638_s0 + $0x8] sm:$0xff]  ;;  %v564_v4 = vmov 128.0  }
   0x6   :  { %v36_v1 = vmul.f32 %v591_v0, %v591_v0  ;;  %v37_v3 = vmul.f32 %v598_v2, %v598_v2  ;;  %529 = vrcp.f32 %v564_v4  ;;  %v472_v6 = vld [vmem:[#allocation3 + $0xe0] sm:$0xf]  ;;  %v517_v7 = vld [vmem:[#allocation3 + $0xec] sm:$0xf0]  ;;  %v515_v8 = vld [vmem:[#allocation3 + $0xe4] sm:$0xf] }
   0x7   :  { %v473_v9 = vor.u32 %v517_v7, %v472_v6  ;;  %v474_v10 = vld [vmem:[#allocation3 + $0xf0] sm:$0xf0]  ;;  %v480_v11 = vld [vmem:[#allocation3 + $0xe8] sm:$0xf]  ;;  %v518_v12 = vld [vmem:[#allocation3 + $0xf4] sm:$0xf0] }
   0x8   :  { %38 = vadd.xlane.f32.xlu0 %v36_v1  ;;  %v477_v14 = vor.u32 %v515_v8, %v474_v10  ;;  %v481_v15 = vor.u32 %v518_v12, %v480_v11  ;;  %v516_v16 = vld [vmem:[#allocation3 + $0xec] sm:$0xf]  ;;  %v482_v17 = vld [vmem:[#allocation3 + $0xf8] sm:$0xf0]  ;;  %v456_v19 = vld [vmem:[#allocation3 + $0xc0] sm:$0xf] }
   0x9   :  { %285 = vmatpush.bf16.msra.mxu0 %v473_v9  ;;  %v485_v18 = vor.u32 %v516_v16, %v482_v17  ;;  %v513_v20 = vld [vmem:[#allocation3 + $0xcc] sm:$0xf0]  ;;  %v511_v21 = vld [vmem:[#allocation3 + $0xc4] sm:$0xf]  ;;  %v458_v23 = vld [vmem:[#allocation3 + $0xd0] sm:$0xf0] }
   0xa   :  { %299 = vmatpush.bf16.msra.mxu1 %v477_v14  ;;  %313 = vmatpush.bf16.msra.mxu2 %v481_v15  ;;  %v457_v22 = vor.u32 %v513_v20, %v456_v19  ;;  %v464_v24 = vld [vmem:[#allocation3 + $0xc8] sm:$0xf]  ;;  %v514_v25 = vld [vmem:[#allocation3 + $0xd4] sm:$0xf0]  ;;  %v461_v27 = vor.u32 %v511_v21, %v458_v23  ;;  %v512_v29 = vld [vmem:[#allocation3 + $0xcc] sm:$0xf] }
   0xb   :  { %327 = vmatpush.bf16.msra.mxu3 %v485_v18  ;;  %v465_v28 = vor.u32 %v514_v25, %v464_v24  ;;  %v466_v30 = vld [vmem:[#allocation3 + $0xd8] sm:$0xf0]  ;;  %v440_v32 = vld [vmem:[#allocation3 + $0xa0] sm:$0xf]  ;;  %v509_v33 = vld [vmem:[#allocation3 + $0xac] sm:$0xf0] }
   0xc   :  { %v602_v5 = vpop.eup %529  ;;  %v469_v31 = vor.u32 %v512_v29, %v466_v30  ;;  %v507_v34 = vld [vmem:[#allocation3 + $0xa4] sm:$0xf]  ;;  %v441_v35 = vor.u32 %v509_v33, %v440_v32  ;;  %v442_v36 = vld [vmem:[#allocation3 + $0xb0] sm:$0xf0]  ;;  %v448_v37 = vld [vmem:[#allocation3 + $0xa8] sm:$0xf] }
   0xd   :  { %v43_v13 = vmul.f32 128.0, %v602_v5  ;;  %286 = vmatpush.bf16.msra.mxu0 %v457_v22  ;;  %v510_v38 = vld [vmem:[#allocation3 + $0xb4] sm:$0xf0]  ;;  %v445_v40 = vor.u32 %v507_v34, %v442_v36  ;;  %v508_v42 = vld [vmem:[#allocation3 + $0xac] sm:$0xf]  ;;  %vm47_vm0 = vweird.f32 %v602_v5 }
   0xe   :  { %300 = vmatpush.bf16.msra.mxu1 %v461_v27  ;;  %314 = vmatpush.bf16.msra.mxu2 %v465_v28  ;;  %v449_v41 = vor.u32 %v510_v38, %v448_v37  ;;  %v450_v43 = vld [vmem:[#allocation3 + $0xb8] sm:$0xf0]  ;;  %v424_v45 = vld [vmem:[#allocation3 + $0x80] sm:$0xf]  ;;  %v505_v46 = vld [vmem:[#allocation3 + $0x8c] sm:$0xf0] }
   0xf   :  { %v44_v26 = vsub.f32 1.0, %v43_v13  ;;  %328 = vmatpush.bf16.msra.mxu3 %v469_v31  ;;  %v453_v44 = vor.u32 %v508_v42, %v450_v43  ;;  %v503_v47 = vld [vmem:[#allocation3 + $0x84] sm:$0xf]  ;;  %v425_v48 = vor.u32 %v505_v46, %v424_v45  ;;  %v426_v49 = vld [vmem:[#allocation3 + $0x90] sm:$0xf0] }
  0x10   :  { %40 = vadd.xlane.f32.xlu0 %v37_v3  ;;  %v432_v50 = vld [vmem:[#allocation3 + $0x88] sm:$0xf]  ;;  %v506_v51 = vld [vmem:[#allocation3 + $0x94] sm:$0xf0]  ;;  %v429_v53 = vor.u32 %v503_v47, %v426_v49  ;;  %v504_v55 = vld [vmem:[#allocation3 + $0x8c] sm:$0xf] }
  0x11   :  { %v45_v39 = vmul.f32 %v602_v5, %v44_v26  ;;  %287 = vmatpush.bf16.msra.mxu0 %v441_v35  ;;  %v433_v54 = vor.u32 %v506_v51, %v432_v50  ;;  %v434_v56 = vld [vmem:[#allocation3 + $0x98] sm:$0xf0]  ;;  %v408_v58 = vld [vmem:[#allocation3 + $0x60] sm:$0xf]  ;;  %v501_v59 = vld [vmem:[#allocation3 + $0x6c] sm:$0xf0] }
  0x12   :  { %301 = vmatpush.bf16.msra.mxu1 %v445_v40  ;;  %315 = vmatpush.bf16.msra.mxu2 %v449_v41  ;;  %v437_v57 = vor.u32 %v504_v55, %v434_v56  ;;  %v499_v60 = vld [vmem:[#allocation3 + $0x64] sm:$0xf]  ;;  %v409_v61 = vor.u32 %v501_v59, %v408_v58  ;;  %v410_v62 = vld [vmem:[#allocation3 + $0x70] sm:$0xf0]  ;;  %v416_v63 = vld [vmem:[#allocation3 + $0x68] sm:$0xf] }
  0x13   :  { %329 = vmatpush.bf16.msra.mxu3 %v453_v44  ;;  %v46_v52 = vadd.f32 %v602_v5, %v45_v39  ;;  %v502_v1 = vld [vmem:[#allocation3 + $0x74] sm:$0xf0]  ;;  %v413_v4 = vor.u32 %v499_v60, %v410_v62  ;;  %v500_v7 = vld [vmem:[#allocation3 + $0x6c] sm:$0xf]  ;;  %v418_v8 = vld [vmem:[#allocation3 + $0x78] sm:$0xf0] }
  0x14   :  { %v417_v6 = vor.u32 %v502_v1, %v416_v63  ;;  %v421_v9 = vor.u32 %v500_v7, %v418_v8  ;;  %v392_v11 = vld [vmem:[#allocation3 + $0x40] sm:$0xf]  ;;  %v497_v12 = vld [vmem:[#allocation3 + $0x4c] sm:$0xf0]  ;;  %v495_v13 = vld [vmem:[#allocation3 + $0x44] sm:$0xf] }
  0x15   :  { %288 = vmatpush.bf16.msra.mxu0 %v425_v48  ;;  %v48_v3 = vsel %vm47_vm0, %v602_v5, %v46_v52  ;;  %v393_v15 = vor.u32 %v497_v12, %v392_v11  ;;  %v394_v16 = vld [vmem:[#allocation3 + $0x50] sm:$0xf0]  ;;  %v400_v17 = vld [vmem:[#allocation3 + $0x48] sm:$0xf]  ;;  %v498_v18 = vld [vmem:[#allocation3 + $0x54] sm:$0xf0] }
  0x16   :  { %302 = vmatpush.bf16.msra.mxu1 %v429_v53  ;;  %316 = vmatpush.bf16.msra.mxu2 %v433_v54  ;;  %v397_v19 = vor.u32 %v495_v13, %v394_v16  ;;  %v401_v5 = vor.u32 %v498_v18, %v400_v17  ;;  %v496_v20 = vld [vmem:[#allocation3 + $0x4c] sm:$0xf]  ;;  %v402_v21 = vld [vmem:[#allocation3 + $0x58] sm:$0xf0]  ;;  %v376_v24 = vld [vmem:[#allocation3 + $0x20] sm:$0xf] }
  0x17   :  { %330 = vmatpush.bf16.msra.mxu3 %v437_v57  ;;  %v405_v23 = vor.u32 %v496_v20, %v402_v21  ;;  %v493_v25 = vld [vmem:[#allocation3 + $0x2c] sm:$0xf0]  ;;  %v491_v26 = vld [vmem:[#allocation3 + $0x24] sm:$0xf]  ;;  %v378_v28 = vld [vmem:[#allocation3 + $0x30] sm:$0xf0] }
  0x18   :  { %v377_v27 = vor.u32 %v493_v25, %v376_v24  ;;  %v384_v29 = vld [vmem:[#allocation3 + $0x28] sm:$0xf]  ;;  %v494_v30 = vld [vmem:[#allocation3 + $0x34] sm:$0xf0]  ;;  %v381_v31 = vor.u32 %v491_v26, %v378_v28  ;;  %v492_v33 = vld [vmem:[#allocation3 + $0x2c] sm:$0xf] }
  0x19   :  { %289 = vmatpush.bf16.msra.mxu0 %v409_v61  ;;  %v385_v32 = vor.u32 %v494_v30, %v384_v29  ;;  %v386_v34 = vld [vmem:[#allocation3 + $0x38] sm:$0xf0]  ;;  %v360_v35 = vld [vmem:[#allocation3] sm:$0xf]  ;;  %v489_v37 = vld [vmem:[#allocation3 + $0xc] sm:$0xf0] }
  0x1a   :  { %303 = vmatpush.bf16.msra.mxu1 %v413_v4  ;;  %317 = vmatpush.bf16.msra.mxu2 %v417_v6  ;;  %v389_v36 = vor.u32 %v492_v33, %v386_v34  ;;  %v487_v38 = vld [vmem:[#allocation3 + $0x4] sm:$0xf]  ;;  %v362_v39 = vld [vmem:[#allocation3 + $0x10] sm:$0xf0]  ;;  %v361_v41 = vor.u32 %v489_v37, %v360_v35  ;;  %v368_v43 = vld [vmem:[#allocation3 + $0x8] sm:$0xf] }
  0x1b   :  { %331 = vmatpush.bf16.msra.mxu3 %v421_v9  ;;  %v365_v42 = vor.u32 %v487_v38, %v362_v39  ;;  %v490_v44 = vld [vmem:[#allocation3 + $0x14] sm:$0xf0]  ;;  %v488_v45 = vld [vmem:[#allocation3 + $0xc] sm:$0xf]  ;;  %v370_v48 = vld [vmem:[#allocation3 + $0x18] sm:$0xf0] }
  0x1c   :  { %v369_v47 = vor.u32 %v490_v44, %v368_v43  ;;  %v373_v49 = vor.u32 %v488_v45, %v370_v48  ;;  %v528_v1 = vld [vmem:[%s639_s1] ss:$0 sm:$0xff] }
  0x1d   :  { %290 = vmatpush.bf16.msra.mxu0 %v393_v15 }
  0x1e   :  { %304 = vmatpush.bf16.msra.mxu1 %v397_v19  ;;  %318 = vmatpush.bf16.msra.mxu2 %v401_v5 }
  0x1f   :  { %332 = vmatpush.bf16.msra.mxu3 %v405_v23 }
  0x21   :  { %291 = vmatpush.bf16.msra.mxu0 %v377_v27 }
  0x22   :  { %305 = vmatpush.bf16.msra.mxu1 %v381_v31  ;;  %319 = vmatpush.bf16.msra.mxu2 %v385_v32 }
  0x23   :  { %333 = vmatpush.bf16.msra.mxu3 %v389_v36 }
  0x25   :  { %292 = vmatpush.bf16.msra.mxu0 %v361_v41 }
  0x26   :  { %306 = vmatpush.bf16.msra.mxu1 %v365_v42  ;;  %320 = vmatpush.bf16.msra.mxu2 %v369_v47 }
  0x27   :  { %334 = vmatpush.bf16.msra.mxu3 %v373_v49 }
  0x7b   :  { %v39_v10 = vpop.xlane.xlu0 %38 }
  0x7c   :  { %v49_v14 = vmul.f32 %v48_v3, %v39_v10 }
  0x7e   :  { %v51_v22 = vadd.f32 1e-05, %v49_v14 }
  0x80   :  { %531 = vrsqrt.f32 %v51_v22  ;;  %vm59_vm2 = vweird.f32 %v51_v22 }
  0x83   :  { %v41_v40 = vpop.xlane.xlu0 %40 }
  0x84   :  { %v50_v46 = vmul.f32 %v48_v3, %v41_v40 }
  0x86   :  { %v532_v50 = vpop.eup %531  ;;  %v52_v51 = vadd.f32 1e-05, %v50_v46 }
  0x87   :  { %v54_v52 = vmul.f32 %v532_v50, %v51_v22  ;;  %vm60_vm1 = vweird.f32 %v532_v50 }
  0x88   :  { %533 = vrsqrt.f32 %v52_v51  ;;  %vm61_vm3 = vmor %vm59_vm2, %vm60_vm1  ;;  %vm69_vm5 = vweird.f32 %v52_v51 }
  0x89   :  { %v55_v53 = vmul.f32 %v532_v50, %v54_v52 }
  0x8b   :  { %v56_v54 = vmul.f32 0.5, %v55_v53 }
  0x8d   :  { %v57_v55 = vsub.f32 1.5, %v56_v54 }
  0x8e   :  { %v534_v56 = vpop.eup %533 }
  0x8f   :  { %v64_v57 = vmul.f32 %v534_v56, %v52_v51  ;;  %v58_v58 = vmul.f32 %v532_v50, %v57_v55  ;;  %vm70_vm4 = vweird.f32 %v534_v56 }
  0x90   :  { %vm71_vm6 = vmor %vm69_vm5, %vm70_vm4 }
  0x91   :  { %v65_v59 = vmul.f32 %v534_v56, %v64_v57  ;;  %v62_v61 = vsel %vm61_vm3, %v532_v50, %v58_v58 }
  0x92   :  { %v73_v3 = vmul.f32 %v62_v61, %v591_v0 }
  0x93   :  { %v66_v60 = vmul.f32 0.5, %v65_v59 }
  0x94   :  { %v79_v7 = vmul.f32 %v528_v1, %v73_v3 }
  0x95   :  { %v67_v62 = vsub.f32 1.5, %v66_v60 }
  0x97   :  { %v68_v63 = vmul.f32 %v534_v56, %v67_v62 }
  0x99   :  { %v72_v4 = vsel %vm71_vm6, %v534_v56, %v68_v63 }
  0x9a   :  { %v74_v6 = vmul.f32 %v72_v4, %v598_v2 }
  0x9c   :  { %v80_v8 = vmul.f32 %v528_v1, %v74_v6 }
  0x9e   :  { %v522_v9 = vpack.c.bf16 %v80_v8, %v79_v7 }
  0xa0   :  { %523 = vst [vmem:[#allocation2] sm:$0xff] %v522_v9  }
  0xa7   :  { %v486_v10 = vld [vmem:[#allocation2] sm:$0xff] }
  0xa8   :  { %293 = vmatmul.bf16.vlgmr.msra.gmra.mxu0 %v486_v10  ;;  %307 = vmatmul.bf16.vlgmr.msra.gmra.mxu1 %v486_v10 }
  0xa9   :  { %321 = vmatmul.bf16.vlgmr.msra.gmra.mxu2 %v486_v10  ;;  %335 = vmatmul.bf16.vlgmr.msra.gmra.mxu3 %v486_v10 }
 0x125   :  { %v294_v11 = vpop.f32.mrf.mxu0  ;;  %v308_v12 = vpop.f32.mrf.mxu1 }
 0x126   :  { %341 = vst [vmem:[%s641_s3] sm:$0xff] %v294_v11 }
 0x127   :  { %342 = vst [vmem:[%s641_s3 + $0x8] sm:$0xff] %v308_v12 }
 0x12c   :  { %v322_v0 = vpop.f32.mrf.mxu2  ;;  %v336_v2 = vpop.f32.mrf.mxu3 }
 0x12d   :  { %343 = vst [vmem:[%s641_s3 + $0x10] sm:$0xff] %v322_v0  ;;  %v296_v13 = vpop.f32.mrf.mxu0  ;;  %v310_v14 = vpop.f32.mrf.mxu1 }
 0x12e   :  { %344 = vst [vmem:[%s641_s3 + $0x18] sm:$0xff] %v336_v2 }
 0x12f   :  { %345 = vst [vmem:[%s641_s3 + $0x20] sm:$0xff] %v296_v13 }
 0x130   :  { %346 = vst [vmem:[%s641_s3 + $0x28] sm:$0xff] %v310_v14 }
 0x134   :  { %v324_v15 = vpop.f32.mrf.mxu2  ;;  %v338_v16 = vpop.f32.mrf.mxu3 }
 0x135   :  { %347 = vst [vmem:[%s641_s3 + $0x30] sm:$0xff] %v324_v15 }
 0x136   :  { %348 = vst [vmem:[%s641_s3 + $0x38] sm:$0xff] %v338_v16 }
 0x137   :  { %353 = vsyncpa [#allocation4], 1 }

// kernel: latent_language_forward.68
= control target key start
LH: loop header
LB: loop body
LE: loop exit
PB: predicated region body
PF: predicated region fallthrough
CT: control target
= control target key end

     0   :  { %14 = vsyncpa [#allocation4], 0  ;;  %s1576_s30 = smov 0   ;;  %s1578_s10 = smov 0   ;;  %s1844_s0 = inlined_call_operand.vmem [shape: f32[2,8,8], index: 0, kind: input, shape index: {}]   ;;  %s1845_s1 = inlined_call_operand.hbm [shape: bf16[8,256], index: 1, kind: input, shape index: {}]   ;;  %s1846_s2 = inlined_call_operand.vmem [shape: f32[1,256], index: 2, kind: input, shape index: {}]   ;;  %s1847_s3 = inlined_call_operand.vmem [shape: f32[2,1,8,8], index: 3, kind: input, shape index: {}]   ;;  %s1848_s4 = inlined_call_operand.vmem [shape: f32[2,1,8,8], index: 4, kind: input, shape index: {}]   ;;  %s1849_s5 = inlined_call_operand.vmem [shape: f32[2,8,256], index: 5, kind: input, shape index: {}]   ;;  %s1850_s6 = inlined_call_operand.vmem [shape: f32[2,8,256], index: 6, kind: input, shape index: {}]   ;;  %s1851_s7 = inlined_call_operand.vmem [shape: f32[8,256], index: 7, kind: input, shape index: {}]   ;;  %s1852_s8 = inlined_call_operand.vmem [shape: f32[1,256], index: 8, kind: input, shape index: {}]   ;;  %s1853_s9 = inlined_call_operand.vmem [shape: f32[2,8,256], index: 9, kind: output, shape index: {}]  }
   0x1   :  { %s1580_s11 = smov 0  }
   0x2 LB: > { %s1325_s12 = sadd.s32 4294967295, %s1515_s11   ;;  %s39_s13 = sadd.s32 1, %s1511_s10  ;;  %s1515_s11 = sphi %s1580_s11, %s20_s11   ;;  %s1511_s10 = sphi %s1578_s10, %s1863_s10   ;;  %s1507_s30 = sphi %s1576_s30, %s1862_s30  }
   0x3   : > { %p41_p0 = scmp.ge.s32.totalorder %s39_s13, 2  ;;  %p1327_p1 = scmp.ge.s32.totalorder %s1515_s11, 1 }
   0x4   : > { %p322_p2 = scmp.lt.s32.totalorder %s1515_s11, 3  ;;  %p1361_p4 = scmp.eq.s32.totalorder %s1325_s12, 0 }
   0x5   : > { %s1865_s13 = smov (%p41_p0, %s39_s13), 0  ;;  %s337_s16 = sshll.u32 %s1845_s1, 4  ;;  %s338_s16 = int_to_ptr.hbm [resolvable:$true] %s337_s16 }
   0x6   : > { %p323_p3 = pnand %p1327_p1, %p322_p2  ;;  %s1517_s17 = smov [#allocation3]  }
   0x7   : > { %s339_s18 = sshll.u32 %s1517_s17, 4  ;;  %s340_s18 = int_to_ptr.vmem [resolvable:$true] %s339_s18 }
   0x8   : > { %p1357_p5 = pneg %p323_p3  ;;  %441 = sbr.rel (%p323_p3) target bundleno = 257 (0x101), region = 56 }
   0xa   : > { %p1358_p6 = pnand %p1361_p4, %p1357_p5 }
   0xc   : > { %1360 = dma.hbm_to_vmem [thread:$0]  (!%p1358_p6), %s338_s16, 128, %s340_s18, [#allocation4]  }
   0xd   : > { %1502 = dma.done.wait (%p1361_p4), [#allocation4], 128  }
   0xe   : > { %1504 = vsyncadd (%p1361_p4), [#allocation4], 4294967168  ;;  %p541_p7 = scmp.lt.s32.totalorder %s1507_s30, 1  ;;  %v1518_v0 = vmov 0   ;;  %v633_v1 = vld [vmem:[#allocation3] sm:$0xff]  ;;  %v1519_v3 = vmov 1  }
   0xf   : > { %1396 = vset.pattern.permute.xlu0 %v1518_v0  ;;  %1397 = vset.pattern.permute.xlu1 %v1519_v3  ;;  %v649_v4 = vunpack.c.l.b16 %v633_v1  ;;  %v650_v5 = vunpack.c.h.b16 %v633_v1  ;;  %vm657_vm0 = vcmask 1043456   ;;  %v1520_v7 = vmov 3   ;;  %v634_v19 = vld [vmem:[%s1846_s2] sm:$0x3]  ;;  %v1641_v52 = vld [vmem:[%s1851_s7 + $0x8] sm:$0xff] }
  0x10   : > { %s1867_s30 = smov (!%p541_p7, %s1507_s30), 1  ;;  %1399 = vset.pattern.permute.xlu2 %v1520_v7  ;;  %vm653_vm1 = vcmask 64512   ;;  %v1521_v14 = vmov 2   ;;  %v1522_v15 = vmov 4   ;;  %v1523_v16 = vmov 5   ;;  %v1635_v50 = vld [vmem:[%s1851_s7] sm:$0xff] }
  0x11   : > { %s1335_s19 = sshll.u32 %s1867_s30, 3  ;;  %v651_v8 = vpack.c.b16 %v649_v4, %v649_v4  ;;  %v652_v9 = vpack.c.b16 %v650_v5, %v650_v5  ;;  %v1524_v17 = vmov 6   ;;  %v1525_v18 = vmov 7   ;;  %s1616_s14 = sshll.u32 %s1867_s30, 4 }
  0x12   : > { %s560_s22 = scalar_lea.vmem %s1847_s3, %s1335_s19  ;;  %s547_s25 = scalar_lea.vmem %s1844_s0, %s1335_s19  ;;  %v644_v20 = vperm.slane %v634_v19, 0  ;;  %v645_v21 = vperm.slane %v634_v19, 1  ;;  %vm1016_vm10 = vcmask 1040384   ;;  %vm1019_vm11 = vcmask 1041408  }
  0x13   : > { %v631_v2 = vld [vmem:[%s560_s22] sm:$0xff]  ;;  %s567_s28 = scalar_lea.vmem %s1848_s4, %s1335_s19  ;;  %v659_v10 = vsel %vm657_vm0, %v651_v8, 0  ;;  %v662_v11 = vsel %vm657_vm0, %v652_v9, 0  ;;  %s594_s17 = scalar_lea.vmem %s1850_s6, %s1616_s14  ;;  %vm1022_vm12 = vcmask 1042432   ;;  %vm1027_vm13 = vcmask 1044480  }
  0x14   : > { %720 = vperm.xlu0 %1396, %v631_v2   ;;  %759 = vperm.xlu1 %1397, %v631_v2   ;;  %v641_v6 = vld [vmem:[%s547_s25] sm:$0xff]  ;;  %v1624_v39 = vld [vmem:[%s594_s17 + $0x8] sm:$0xff]  ;;  %s580_s23 = scalar_lea.vmem %s1849_s5, %s1616_s14  ;;  %vm1030_vm14 = vcmask 1045504   ;;  %vm1033_vm15 = vcmask 1046528  }
  0x15   : > { %835 = vperm.xlu2 %1399, %v631_v2   ;;  %v642_v12 = vpack.c.bf16 %v641_v6, %v641_v6  ;;  %671 = vmatpush.bf16.msra.mxu0 %v659_v10  ;;  %v632_v13 = vld [vmem:[%s567_s28] sm:$0xff]  ;;  %v1347_v42 = vmul.f32 -1.442695, %v1624_v39  ;;  %v1652_v60 = vld [vmem:[%s580_s23 + $0x8] sm:$0xff]  ;;  %s619_s28 = scalar_lea.vmem %s1853_s9, %s1616_s14 }
  0x16   : > { %684 = vmatpush.bf16.msra.mxu1 %v662_v11  ;;  %v1622_v38 = vld [vmem:[%s594_s17] sm:$0xff] }
  0x17   : > { %v1346_v40 = vmul.f32 -1.442695, %v1622_v38  ;;  %v1650_v57 = vld [vmem:[%s580_s23] sm:$0xff] }
  0x18   : > { %1344 = vmatmul.msk.bf16.vlgmr.msra.gmra.mxu0 %vm653_vm1, %v642_v12 }
  0x19   : > { %1345 = vmatmul.msk.bf16.vlgmr.msra.gmra.mxu1 %vm653_vm1, %v642_v12 }
  0x1c   : > { %733 = vperm.xlu0 %1396, %v632_v13   ;;  %1398 = vset.pattern.permute.xlu1 %v1521_v14 }
  0x1d   : > { %797 = vperm.xlu1 %1398, %v631_v2   ;;  %1400 = vset.pattern.permute.xlu2 %v1522_v15 }
  0x1e   : > { %873 = vperm.xlu2 %1400, %v631_v2  }
  0x24   : > { %1401 = vset.pattern.permute.xlu0 %v1523_v16 }
  0x25   : > { %911 = vperm.xlu0 %1401, %v631_v2   ;;  %1402 = vset.pattern.permute.xlu1 %v1524_v17 }
  0x26   : > { %949 = vperm.xlu1 %1402, %v631_v2   ;;  %1403 = vset.pattern.permute.xlu2 %v1519_v3 }
  0x27   : > { %771 = vperm.xlu2 %1403, %v632_v13  }
  0x2d   : > { %1406 = vset.pattern.permute.xlu0 %v1525_v18 }
  0x2e   : > { %987 = vperm.xlu0 %1406, %v631_v2   ;;  %1404 = vset.pattern.permute.xlu1 %v1521_v14 }
  0x2f   : > { %809 = vperm.xlu1 %1404, %v632_v13   ;;  %1405 = vset.pattern.permute.xlu2 %v1520_v7 }
  0x30   : > { %847 = vperm.xlu2 %1405, %v632_v13  }
  0x37   : > { %1407 = vset.pattern.permute.xlu1 %v1522_v15 }
  0x38   : > { %885 = vperm.xlu1 %1407, %v632_v13   ;;  %1408 = vset.pattern.permute.xlu2 %v1523_v16 }
  0x39   : > { %923 = vperm.xlu2 %1408, %v632_v13  }
  0x40   : > { %1409 = vset.pattern.permute.xlu1 %v1524_v17 }
  0x41   : > { %961 = vperm.xlu1 %1409, %v632_v13   ;;  %1410 = vset.pattern.permute.xlu2 %v1525_v18 }
  0x42   : > { %999 = vperm.xlu2 %1410, %v632_v13  }
  0x6f   : > { %v1670_v7 = vpop.permute.xlu2 %835 }
  0x86   : > { %v760_v1 = vpop.permute.xlu1 %759  ;;  %v721_v14 = vpop.permute.xlu0 %720 }
  0x95   : > { %v673_v22 = vpop.f32.mrf.mxu0 }
  0x96   : > { %v686_v23 = vpop.f32.mrf.mxu1  ;;  %v674_v24 = vadd.f32 %v673_v22, %v644_v20 }
  0x97   : > { %v687_v25 = vadd.f32 %v686_v23, %v645_v21 }
  0x98   : > { %v692_v26 = vand.u32 2147483647, %v674_v24  ;;  %v690_v44 = vmax.f32 %v674_v24, 0.0 }
  0x99   : > { %v693_v27 = vand.u32 2147483647, %v687_v25  ;;  %v691_v46 = vmax.f32 %v687_v25, 0.0 }
  0x9a   : > { %v694_v28 = vsub.f32 0.0, %v692_v26 }
  0x9b   : > { %v695_v29 = vsub.f32 0.0, %v693_v27 }
  0x9c   : > { %v696_v30 = vmul.f32 1.442695, %v694_v28 }
  0x9d   : > { %v698_v31 = vmul.f32 1.442695, %v695_v29  ;;  %v675_v32 = vpop.f32.mrf.mxu0 }
  0x9e   : > { %v688_v33 = vpop.f32.mrf.mxu1  ;;  %1411 = vpow2.f32 %v696_v30 }
  0x9f   : > { %1413 = vpow2.f32 %v698_v31  ;;  %v798_v33 = vpop.permute.xlu1 %797 }
  0xa4   : > { %v1412_v34 = vpop.eup %1411 }
  0xa5   : > { %v1414_v35 = vpop.eup %1413  ;;  %v700_v36 = vadd.f32 1.0, %v1412_v34 }
  0xa6   : > { %v701_v37 = vadd.f32 1.0, %v1414_v35 }
  0xa7   : > { %1415 = vlog2.f32 %v700_v36 }
  0xa8   : > { %1417 = vlog2.f32 %v701_v37 }
  0xa9   : > { %1419 = vpow2.f32 %v1346_v40 }
  0xaa   : > { %1421 = vpow2.f32 %v1347_v42 }
  0xad   : > { %v1416_v41 = vpop.eup %1415 }
  0xae   : > { %v1418_v43 = vpop.eup %1417  ;;  %v703_v45 = vmul.f32 0.6931472, %v1416_v41  ;;  %v1692_v41 = vpop.permute.xlu2 %873 }
  0xaf   : > { %v705_v47 = vmul.f32 0.6931472, %v1418_v43  ;;  %v1420_v55 = vpop.eup %1419 }
  0xb0   : > { %v1628_v48 = vadd.f32 %v703_v45, %v690_v44  ;;  %v1422_v59 = vpop.eup %1421  ;;  %v1654_v62 = vadd.f32 1.0, %v1420_v55 }
  0xb1   : > { %v1630_v49 = vadd.f32 %v705_v47, %v691_v46  ;;  %v1663_v4 = vadd.f32 1.0, %v1422_v59 }
  0xb2   : > { %v710_v51 = vperm.slane %v1628_v48, 0  ;;  %v750_v63 = vperm.slane %v1628_v48, 1  ;;  %v1659_v0 = vmul.f32 %v1628_v48, %v1650_v57  ;;  %v788_v3 = vperm.slane %v1628_v48, 2 }
  0xb3   : > { %v711_v53 = vperm.slane %v1630_v49, 0  ;;  %v751_v2 = vperm.slane %v1630_v49, 1  ;;  %v1667_v5 = vmul.f32 %v1630_v49, %v1652_v60  ;;  %v789_v6 = vperm.slane %v1630_v49, 2 }
  0xb4   : > { %v712_v54 = vmul.f32 %v710_v51, %v1635_v50  ;;  %v752_v8 = vmul.f32 %v750_v63, %v1635_v50  ;;  %v723_v9 = vperm.slane %v1659_v0, 0  ;;  %v790_v11 = vmul.f32 %v788_v3, %v1635_v50 }
  0xb5   : > { %v713_v56 = vmul.f32 %v711_v53, %v1641_v52  ;;  %v753_v10 = vmul.f32 %v751_v2, %v1641_v52  ;;  %v724_v13 = vperm.slane %v1667_v5, 0  ;;  %v791_v16 = vmul.f32 %v789_v6, %v1641_v52 }
  0xb6   : > { %v714_v58 = vmul.f32 1.442695, %v712_v54  ;;  %v754_v15 = vmul.f32 1.442695, %v752_v8  ;;  %v826_v20 = vperm.slane %v1628_v48, 3  ;;  %v827_v23 = vperm.slane %v1630_v49, 3 }
  0xb7   : > { %v716_v61 = vmul.f32 1.442695, %v713_v56  ;;  %v756_v19 = vmul.f32 1.442695, %v753_v10  ;;  %v792_v22 = vmul.f32 1.442695, %v790_v11  ;;  %v725_v24 = vmul.f32 %v723_v9, %v721_v14 }
  0xb8   : > { %1423 = vpow2.f32 %v714_v58  ;;  %v794_v25 = vmul.f32 1.442695, %v791_v16  ;;  %v828_v26 = vmul.f32 %v826_v20, %v1635_v50  ;;  %v726_v27 = vmul.f32 %v724_v13, %v721_v14  ;;  %v734_v58 = vpop.permute.xlu0 %733  ;;  %v1714_v20 = vpop.permute.xlu1 %949 }
  0xb9   : > { %1425 = vpow2.f32 %v716_v61  ;;  %v829_v28 = vmul.f32 %v827_v23, %v1641_v52  ;;  %v864_v29 = vperm.slane %v1628_v48, 4  ;;  %v762_v31 = vperm.slane %v1659_v0, 1 }
  0xba   : > { %1427 = vrcp.f32 %v1654_v62  ;;  %v865_v34 = vperm.slane %v1630_v49, 4  ;;  %v763_v36 = vperm.slane %v1667_v5, 1  ;;  %v830_v40 = vmul.f32 1.442695, %v828_v26 }
  0xbb   : > { %1429 = vrcp.f32 %v1663_v4  ;;  %v832_v42 = vmul.f32 1.442695, %v829_v28  ;;  %v866_v43 = vmul.f32 %v864_v29, %v1635_v50  ;;  %v764_v53 = vmul.f32 %v762_v31, %v760_v1 }
  0xbc   : > { %1431 = vpow2.f32 %v754_v15  ;;  %v867_v46 = vmul.f32 %v865_v34, %v1641_v52  ;;  %v800_v54 = vperm.slane %v1659_v0, 2  ;;  %v765_v56 = vmul.f32 %v763_v36, %v760_v1 }
  0xbd   : > { %1433 = vpow2.f32 %v756_v19  ;;  %v801_v59 = vperm.slane %v1667_v5, 2  ;;  %v868_v2 = vmul.f32 1.442695, %v866_v43  ;;  %v902_v3 = vperm.slane %v1628_v48, 5 }
  0xbe   : > { %v1424_v12 = vpop.eup %1423  ;;  %1435 = vpow2.f32 %v792_v22  ;;  %vm1058_vm2 = vweird.f32 %v1654_v62  ;;  %v870_v9 = vmul.f32 1.442695, %v867_v46  ;;  %v903_v10 = vperm.slane %v1630_v49, 5 }
  0xbf   : > { %v1426_v17 = vpop.eup %1425  ;;  %v727_v18 = vmul.f32 0.0, %v1424_v12  ;;  %1437 = vpow2.f32 %v794_v25  ;;  %v838_v12 = vperm.slane %v1659_v0, 3  ;;  %v802_v13 = vmul.f32 %v800_v54, %v798_v33 }
  0xc0   : > { %v728_v21 = vmul.f32 0.0, %v1426_v17  ;;  %v1685_v30 = vpop.eup %1427  ;;  %1439 = vpow2.f32 %v830_v40  ;;  %v1062_v15 = vand.u32 2147483647, %v1654_v62  ;;  %v839_v16 = vperm.slane %v1667_v5, 3 }
  0xc1   : > { %v729_v32 = vadd.f32 %v727_v18, %v725_v24  ;;  %v1689_v35 = vpop.eup %1429  ;;  %v1054_v45 = vmul.f32 %v1685_v30, %v1654_v62  ;;  %1441 = vpow2.f32 %v832_v42  ;;  %v803_v17 = vmul.f32 %v801_v59, %v798_v33 }
  0xc2   : > { %v730_v37 = vadd.f32 %v728_v21, %v726_v27  ;;  %v1432_v44 = vpop.eup %1431  ;;  %v1069_v51 = vmul.f32 %v1689_v35, %v1663_v4  ;;  %v772_v21 = vpop.permute.xlu2 %771  ;;  %1443 = vpow2.f32 %v868_v2  ;;  %v904_v23 = vmul.f32 %v902_v3, %v1635_v50 }
  0xc3   : > { %v1434_v47 = vpop.eup %1433  ;;  %v766_v55 = vmul.f32 %v1432_v44, %v729_v32  ;;  %v1055_v11 = vsub.f32 1.0, %v1054_v45  ;;  %v1064_v25 = vand.u32 2147483648, %v1654_v62  ;;  %1445 = vpow2.f32 %v870_v9 }
  0xc4   : > { %v767_v61 = vmul.f32 %v1434_v47, %v730_v37  ;;  %v1436_v6 = vpop.eup %1435  ;;  %v1070_v19 = vsub.f32 1.0, %v1069_v51  ;;  %v905_v27 = vmul.f32 %v903_v10, %v1641_v52  ;;  %vm1073_vm3 = vweird.f32 %v1663_v4  ;;  %v912_v47 = vpop.permute.xlu0 %911 }
  0xc5   : > { %v1702_v63 = vadd.f32 %v766_v55, %v764_v53  ;;  %v1438_v1 = vpop.eup %1437  ;;  %v1056_v29 = vmul.f32 %v1685_v30, %v1055_v11  ;;  %v840_v31 = vmul.f32 %v838_v12, %v1670_v7  ;;  %vm1059_vm4 = vweird.f32 %v1685_v30  ;;  %v810_v10 = vpop.permute.xlu1 %809 }
  0xc6   : > { %v1706_v8 = vadd.f32 %v767_v61, %v765_v56  ;;  %v1440_v24 = vpop.eup %1439  ;;  %v736_v34 = vmul.f32 %v734_v58, %v729_v32  ;;  %v841_v36 = vmul.f32 %v839_v16, %v1670_v7  ;;  %v1071_v42 = vmul.f32 %v1689_v35, %v1070_v19  ;;  %vm1745_vm6 = vmor %vm1058_vm2, %vm1059_vm4 }
  0xc7   : > { %v804_v14 = vmul.f32 %v1436_v6, %v1702_v63  ;;  %v1442_v28 = vpop.eup %1441  ;;  %v737_v43 = vmul.f32 %v734_v58, %v730_v37  ;;  %v906_v45 = vmul.f32 1.442695, %v904_v23  ;;  %v1077_v46 = vand.u32 2147483647, %v1663_v4 }
  0xc8   : > { %v805_v18 = vmul.f32 %v1438_v1, %v1706_v8  ;;  %v876_v51 = vperm.slane %v1659_v0, 4  ;;  %v908_v54 = vmul.f32 1.442695, %v905_v27  ;;  %v1444_v55 = vpop.eup %1443  ;;  %v1057_v32 = vadd.f32 %v1685_v30, %v1056_v29 }
  0xc9   : > { %v1716_v22 = vadd.f32 %v804_v14, %v802_v13  ;;  %vm1074_vm5 = vweird.f32 %v1689_v35  ;;  %v1079_v7 = vand.u32 2147483648, %v1663_v4  ;;  %v877_v37 = vperm.slane %v1667_v5, 4  ;;  %v1446_v56 = vpop.eup %1445 }
  0xca   : > { %v1720_v26 = vadd.f32 %v805_v18, %v803_v17  ;;  %vm1749_vm7 = vcmp.eq.f32.partialorder %v1062_v15, 8.507059e+37  ;;  %v1065_v61 = vor.u32 1.1754944e-38, %v1064_v25  ;;  %v738_v2 = vrot.slane %v736_v34, 4  ;;  %vm1758_vm8 = vmor %vm1073_vm3, %vm1074_vm5  ;;  %v848_v16 = vpop.permute.xlu2 %847 }
  0xcb   : > { %v842_v33 = vmul.f32 %v1440_v24, %v1716_v22  ;;  %v1072_v6 = vadd.f32 %v1689_v35, %v1071_v42  ;;  %v744_v9 = vrot.slane %v737_v43, 4  ;;  %1447 = vpow2.f32 %v906_v45 }
  0xcc   : > { %v843_v40 = vmul.f32 %v1442_v28, %v1720_v26  ;;  %vm1762_vm9 = vcmp.eq.f32.partialorder %v1077_v46, 8.507059e+37  ;;  %v878_v12 = vmul.f32 %v876_v51, %v1692_v41  ;;  %v774_v13 = vmul.f32 %v772_v21, %v1702_v63  ;;  %v988_v42 = vpop.permute.xlu0 %987 }
  0xcd   : > { %v1731_v44 = vadd.f32 %v842_v33, %v840_v31  ;;  %1449 = vpow2.f32 %v908_v54  ;;  %v1061_v14 = vsel %vm1745_vm6, %v1685_v30, %v1057_v32  ;;  %v1080_v15 = vor.u32 1.1754944e-38, %v1079_v7 }
  0xce   : > { %v1735_v53 = vadd.f32 %v843_v40, %v841_v36  ;;  %v879_v4 = vmul.f32 %v877_v37, %v1692_v41  ;;  %v940_v17 = vperm.slane %v1628_v48, 6  ;;  %v739_v18 = vadd.f32 %v738_v2, %v736_v34 }
  0xcf   : > { %v880_v3 = vmul.f32 %v1444_v55, %v1731_v44  ;;  %v775_v19 = vmul.f32 %v772_v21, %v1706_v8  ;;  %v941_v24 = vperm.slane %v1630_v49, 6  ;;  %v1076_v63 = vsel %vm1758_vm8, %v1689_v35, %v1072_v6 }
  0xd0   : > { %v881_v1 = vmul.f32 %v1446_v56, %v1735_v53  ;;  %v745_v25 = vadd.f32 %v744_v9, %v737_v43  ;;  %v914_v27 = vperm.slane %v1659_v0, 5  ;;  %v915_v28 = vperm.slane %v1667_v5, 5 }
  0xd1   : > { %v882_v23 = vadd.f32 %v880_v3, %v878_v12  ;;  %v952_v41 = vperm.slane %v1659_v0, 6  ;;  %v953_v29 = vperm.slane %v1667_v5, 6  ;;  %v776_v31 = vrot.slane %v774_v13, 4  ;;  %v1448_v33 = vpop.eup %1447 }
  0xd2   : > { %v883_v30 = vadd.f32 %v881_v1, %v879_v4  ;;  %v1784_v8 = vsel %vm1749_vm7, %v1065_v61, %v1061_v14  ;;  %v990_v21 = vperm.slane %v1659_v0, 7  ;;  %v991_v35 = vperm.slane %v1667_v5, 7  ;;  %v886_v61 = vpop.permute.xlu1 %885  ;;  %v924_v11 = vpop.permute.xlu2 %923 }
  0xd3   : > { %v942_v34 = vmul.f32 %v940_v17, %v1635_v50  ;;  %v1450_v36 = vpop.eup %1449  ;;  %v740_v40 = vrot.slane %v739_v18, 2  ;;  %v782_v43 = vrot.slane %v775_v19, 4  ;;  %v918_v45 = vmul.f32 %v1448_v33, %v882_v23 }
  0xd4   : > { %v943_v46 = vmul.f32 %v941_v24, %v1641_v52  ;;  %v1792_v51 = vsel %vm1762_vm9, %v1080_v15, %v1076_v63  ;;  %v746_v54 = vrot.slane %v745_v25, 2  ;;  %v916_v55 = vmul.f32 %v914_v27, %v912_v47 }
  0xd5   : > { %v919_v32 = vmul.f32 %v1450_v36, %v883_v30  ;;  %v917_v7 = vmul.f32 %v915_v28, %v912_v47  ;;  %v954_v0 = vmul.f32 %v952_v41, %v1714_v20  ;;  %v955_v5 = vmul.f32 %v953_v29, %v1714_v20 }
  0xd6   : > { %v777_v37 = vadd.f32 %v776_v31, %v774_v13  ;;  %v1796_v56 = vmul.f32 %v990_v21, %v988_v42  ;;  %v1798_v58 = vmul.f32 %v991_v35, %v988_v42  ;;  %v812_v59 = vmul.f32 %v810_v10, %v1716_v22 }
  0xd7   : > { %v944_v2 = vmul.f32 1.442695, %v942_v34  ;;  %v741_v3 = vadd.f32 %v740_v40, %v739_v18  ;;  %v783_v6 = vadd.f32 %v782_v43, %v775_v19  ;;  %v920_v9 = vadd.f32 %v918_v45, %v916_v55 }
  0xd8   : > { %v946_v1 = vmul.f32 1.442695, %v943_v46  ;;  %v747_v62 = vadd.f32 %v746_v54, %v745_v25  ;;  %v813_v47 = vmul.f32 %v810_v10, %v1720_v26  ;;  %v921_v12 = vadd.f32 %v919_v32, %v917_v7 }
  0xd9   : > { %1451 = vpow2.f32 %v944_v2  ;;  %v778_v20 = vrot.slane %v777_v37, 2  ;;  %v850_v13 = vmul.f32 %v848_v16, %v1731_v44  ;;  %v851_v14 = vmul.f32 %v848_v16, %v1735_v53 }
  0xda   : > { %1453 = vpow2.f32 %v946_v1  ;;  %v814_v15 = vrot.slane %v812_v59, 4  ;;  %v888_v22 = vmul.f32 %v886_v61, %v882_v23  ;;  %v978_v4 = vperm.slane %v1628_v48, 7  ;;  %v962_v40 = vpop.permute.xlu1 %961 }
  0xdb   : > { %v979_v17 = vperm.slane %v1630_v49, 7  ;;  %v742_v18 = vrot.slane %v741_v3, 1  ;;  %v784_v19 = vrot.slane %v783_v6, 2  ;;  %v889_v24 = vmul.f32 %v886_v61, %v883_v30 }
  0xdc   : > { %v926_v63 = vmul.f32 %v924_v11, %v920_v9  ;;  %v820_v26 = vrot.slane %v813_v47, 4  ;;  %v927_v10 = vmul.f32 %v924_v11, %v921_v12  ;;  %v980_v25 = vmul.f32 %v978_v4, %v1635_v50 }
  0xdd   : > { %v981_v27 = vmul.f32 %v979_v17, %v1641_v52  ;;  %v748_v44 = vrot.slane %v747_v62, 1  ;;  %v779_v28 = vadd.f32 %v778_v20, %v777_v37  ;;  %v852_v53 = vrot.slane %v850_v13, 4 }
  0xde   : > { %v858_v16 = vrot.slane %v851_v14, 4  ;;  %v815_v23 = vadd.f32 %v814_v15, %v812_v59  ;;  %v890_v29 = vrot.slane %v888_v22, 4  ;;  %v982_v48 = vmul.f32 1.442695, %v980_v25 }
  0xdf   : > { %v1452_v41 = vpop.eup %1451  ;;  %v984_v31 = vmul.f32 1.442695, %v981_v27  ;;  %v785_v33 = vadd.f32 %v784_v19, %v783_v6  ;;  %v896_v21 = vrot.slane %v889_v24, 4  ;;  %v928_v30 = vrot.slane %v926_v63, 4 }
  0xe0   : > { %v1454_v49 = vpop.eup %1453  ;;  %v956_v35 = vmul.f32 %v1452_v41, %v920_v9  ;;  %v821_v34 = vadd.f32 %v820_v26, %v813_v47  ;;  %v934_v36 = vrot.slane %v927_v10, 4  ;;  %1455 = vpow2.f32 %v982_v48 }
  0xe1   : > { %v957_v50 = vmul.f32 %v1454_v49, %v921_v12  ;;  %v853_v52 = vadd.f32 %v852_v53, %v850_v13  ;;  %v859_v42 = vadd.f32 %v858_v16, %v851_v14  ;;  %1457 = vpow2.f32 %v984_v31 }
  0xe2   : > { %v958_v43 = vadd.f32 %v956_v35, %v954_v0  ;;  %v780_v45 = vrot.slane %v779_v28, 1  ;;  %v816_v46 = vrot.slane %v815_v23, 2  ;;  %v891_v54 = vadd.f32 %v890_v29, %v888_v22 }
  0xe3   : > { %v959_v55 = vadd.f32 %v957_v50, %v955_v5  ;;  %v743_v32 = vadd.f32 %v742_v18, %v741_v3  ;;  %v897_v7 = vadd.f32 %v896_v21, %v889_v24  ;;  %v929_v37 = vadd.f32 %v928_v30, %v926_v63  ;;  %v1000_v24 = vpop.permute.xlu2 %999 }
  0xe4   : > { %v964_v59 = vmul.f32 %v962_v40, %v958_v43  ;;  %v749_v61 = vadd.f32 %v748_v44, %v747_v62  ;;  %v822_v2 = vrot.slane %v821_v34, 2  ;;  %v935_v6 = vadd.f32 %v934_v36, %v927_v10 }
  0xe5   : > { %v965_v9 = vmul.f32 %v962_v40, %v959_v55  ;;  %v786_v1 = vrot.slane %v785_v33, 1  ;;  %v854_v47 = vrot.slane %v853_v52, 2  ;;  %v860_v11 = vrot.slane %v859_v42, 2 }
  0xe6   : > { %v966_v12 = vrot.slane %v964_v59, 4  ;;  %v1456_v20 = vpop.eup %1455  ;;  %v781_v0 = vadd.f32 %v780_v45, %v779_v28  ;;  %v817_v13 = vadd.f32 %v816_v46, %v815_v23  ;;  %v892_v14 = vrot.slane %v891_v54, 2  ;;  %v630_v45 = vld [vmem:[%s1852_s8] sm:$0x3] }
  0xe7   : > { %v972_v15 = vrot.slane %v965_v9, 4  ;;  %v1458_v22 = vpop.eup %1457  ;;  %v898_v5 = vrot.slane %v897_v7, 2  ;;  %v930_v3 = vrot.slane %v929_v37, 2  ;;  %v994_v17 = vmul.f32 %v1456_v20, %v958_v43 }
  0xe8   : > { %v967_v4 = vadd.f32 %v966_v12, %v964_v59  ;;  %v823_v18 = vadd.f32 %v822_v2, %v821_v34  ;;  %v936_v62 = vrot.slane %v935_v6, 2  ;;  %v995_v63 = vmul.f32 %v1458_v22, %v959_v55 }
  0xe9   : > { %v973_v19 = vadd.f32 %v972_v15, %v965_v9  ;;  %v855_v26 = vadd.f32 %v854_v47, %v853_v52  ;;  %v861_v10 = vadd.f32 %v860_v11, %v859_v42  ;;  %v996_v27 = vadd.f32 %v994_v17, %v1796_v56 }
  0xea   : > { %v968_v25 = vrot.slane %v967_v4, 2  ;;  %v818_v44 = vrot.slane %v817_v13, 1  ;;  %v893_v28 = vadd.f32 %v892_v14, %v891_v54  ;;  %v997_v16 = vadd.f32 %v995_v63, %v1798_v58 }
  0xeb   : > { %v974_v53 = vrot.slane %v973_v19, 2  ;;  %v787_v41 = vadd.f32 %v786_v1, %v785_v33  ;;  %v899_v23 = vadd.f32 %v898_v5, %v897_v7  ;;  %v931_v29 = vadd.f32 %v930_v3, %v929_v37 }
  0xec   : > { %v1002_v48 = vmul.f32 %v1000_v24, %v996_v27  ;;  %v824_v31 = vrot.slane %v823_v18, 1  ;;  %v937_v49 = vadd.f32 %v936_v62, %v935_v6  ;;  %v969_v21 = vadd.f32 %v968_v25, %v967_v4 }
  0xed   : > { %v1003_v30 = vmul.f32 %v1000_v24, %v997_v16  ;;  %v856_v35 = vrot.slane %v855_v26, 1  ;;  %v862_v34 = vrot.slane %v861_v10, 1  ;;  %v975_v36 = vadd.f32 %v974_v53, %v973_v19 }
  0xee   : > { %v1004_v56 = vrot.slane %v1002_v48, 4  ;;  %v1017_v40 = vsel %vm1016_vm10, %v743_v32, %v781_v0  ;;  %v819_v50 = vadd.f32 %v818_v44, %v817_v13  ;;  %v894_v52 = vrot.slane %v893_v28, 1 }
  0xef   : > { %v1010_v42 = vrot.slane %v1003_v30, 4  ;;  %v1018_v58 = vsel %vm1016_vm10, %v749_v61, %v787_v41  ;;  %v900_v33 = vrot.slane %v899_v23, 1  ;;  %v932_v43 = vrot.slane %v931_v29, 1 }
  0xf0   : > { %v1005_v46 = vadd.f32 %v1004_v56, %v1002_v48  ;;  %v825_v54 = vadd.f32 %v824_v31, %v823_v18  ;;  %v938_v55 = vrot.slane %v937_v49, 1  ;;  %v970_v7 = vrot.slane %v969_v21, 1 }
  0xf1   : > { %v1011_v37 = vadd.f32 %v1010_v42, %v1003_v30  ;;  %v857_v59 = vadd.f32 %v856_v35, %v855_v26  ;;  %v863_v2 = vadd.f32 %v862_v34, %v861_v10  ;;  %v976_v6 = vrot.slane %v975_v36, 1 }
  0xf2   : > { %v1006_v32 = vrot.slane %v1005_v46, 2  ;;  %v1020_v9 = vsel %vm1019_vm11, %v1017_v40, %v819_v50  ;;  %v895_v1 = vadd.f32 %v894_v52, %v893_v28  ;;  %v1037_v61 = vperm.slane %v630_v45, 0 }
  0xf3   : > { %v1012_v47 = vrot.slane %v1011_v37, 2  ;;  %v901_v11 = vadd.f32 %v900_v33, %v899_v23  ;;  %v933_v12 = vadd.f32 %v932_v43, %v931_v29  ;;  %v1038_v0 = vperm.slane %v630_v45, 1 }
  0xf4   : > { %v1007_v20 = vadd.f32 %v1006_v32, %v1005_v46  ;;  %v1021_v13 = vsel %vm1019_vm11, %v1018_v58, %v825_v54  ;;  %v939_v14 = vadd.f32 %v938_v55, %v937_v49  ;;  %v971_v15 = vadd.f32 %v970_v7, %v969_v21 }
  0xf5   : > { %v1013_v22 = vadd.f32 %v1012_v47, %v1011_v37  ;;  %v1023_v5 = vsel %vm1022_vm12, %v1020_v9, %v857_v59  ;;  %v1024_v3 = vsel %vm1022_vm12, %v1021_v13, %v863_v2  ;;  %v977_v4 = vadd.f32 %v976_v6, %v975_v36 }
  0xf6   : > { %v1008_v17 = vrot.slane %v1007_v20, 1  ;;  %v1025_v18 = vsel %vm657_vm0, %v1023_v5, %v895_v1  ;;  %v1041_v19 = vmul.f32 %v1037_v61, %v1650_v57  ;;  %v1026_v24 = vsel %vm657_vm0, %v1024_v3, %v901_v11 }
  0xf7   : > { %v1014_v62 = vrot.slane %v1013_v22, 1  ;;  %v1028_v63 = vsel %vm1027_vm13, %v1025_v18, %v933_v12  ;;  %v1042_v10 = vmul.f32 %v1038_v0, %v1652_v60  ;;  %v1083_v25 = vmul.f32 %v1784_v8, %v1622_v38 }
  0xf8   : > { %v1009_v26 = vadd.f32 %v1008_v17, %v1007_v20  ;;  %v1029_v27 = vsel %vm1027_vm13, %v1026_v24, %v939_v14  ;;  %v1031_v44 = vsel %vm1030_vm14, %v1028_v63, %v971_v15  ;;  %v1084_v53 = vmul.f32 %v1792_v51, %v1624_v39 }
  0xf9   : > { %v1015_v28 = vadd.f32 %v1014_v62, %v1013_v22  ;;  %v1032_v57 = vsel %vm1030_vm14, %v1029_v27, %v977_v4 }
  0xfa   : > { %v1034_v16 = vsel %vm1033_vm15, %v1031_v44, %v1009_v26 }
  0xfb   : > { %v1035_v41 = vsel %vm1033_vm15, %v1032_v57, %v1015_v28  ;;  %v1043_v23 = vadd.f32 %v1041_v19, %v1034_v16 }
  0xfc   : > { %v1044_v60 = vadd.f32 %v1042_v10, %v1035_v41 }
  0xfd   : > { %v1085_v29 = vmul.f32 %v1083_v25, %v1043_v23 }
  0xfe   : > { %v1086_v38 = vmul.f32 %v1084_v53, %v1044_v60 }
  0xff   : > { %1087 = vst [vmem:[%s619_s28] sm:$0xff] %v1085_v29 }
 0x100   : > { %1088 = vst [vmem:[%s619_s28 + $0x8] sm:$0xff] %v1086_v38 }
 0x101 PF: > { %s20_s11 = sadd.s32 1, %s1515_s11   ;;  %s1862_s30 = smov %s1511_s10 }
 0x102   : > { %p17_p8 = scmp.ge.s32.totalorder %s20_s11, 4   ;;  %s1863_s10 = smov %s1865_s13 }
 0x104   :  { %19 = sbr.rel (!%p17_p8) target bundleno = 2 (0x2), region = 117 }
 0x109   :  { %1129 = vsyncpa [#allocation4], 1 }
 0x10a   :  { %1131 = vsyncpa [#allocation4 + $0x1], 1 }

// kernel: latent_language_forward.70
= control target key start
LH: loop header
LB: loop body
LE: loop exit
PB: predicated region body
PF: predicated region fallthrough
CT: control target
= control target key end

     0   :  { %10 = vsyncpa [#allocation4], 0  ;;  %s530_s0 = inlined_call_operand.vmem [shape: f32[16,128], index: 0, kind: input, shape index: {}]   ;;  %s531_s1 = inlined_call_operand.vmem [shape: f32[16,128], index: 1, kind: input, shape index: {}]   ;;  %s532_s2 = inlined_call_operand.hbm [shape: bf16[128,128], index: 2, kind: input, shape index: {}]   ;;  %s533_s3 = inlined_call_operand.hbm [shape: bf16[128,128], index: 3, kind: input, shape index: {}]   ;;  %s534_s4 = inlined_call_operand.hbm [shape: f32[1,128], index: 4, kind: input, shape index: {}]   ;;  %s535_s5 = inlined_call_operand.vmem [shape: f32[16,128], index: 5, kind: output, shape index: {}]  }
   0x1   :  { %11 = vsyncpa [#allocation6], 0  ;;  %s33_s20 = sshll.u32 %s533_s3, 4  ;;  %s468_s21 = smov [#allocation5]   ;;  %s34_s20 = int_to_ptr.hbm [resolvable:$true] %s33_s20 }
   0x2   :  { %s35_s22 = sshll.u32 %s468_s21, 4  ;;  %s20_s25 = sshll.u32 %s532_s2, 4  ;;  %s36_s22 = int_to_ptr.vmem [resolvable:$true] %s35_s22  ;;  %s21_s25 = int_to_ptr.hbm [resolvable:$true] %s20_s25 }
   0x3   :  { %s469_s26 = smov 64   ;;  %s470_s27 = smov 4  }
   0x4   :  { %41 = dma.hbm_to_vmem [thread:$0]  %s34_s20, 1024, %s36_s22, [#allocation6], %s469_s26, %s469_s26, %s470_s27  }
   0x5   :  { %s471_s28 = smov [#allocation3]   ;;  %s47_s7 = sshll.u32 %s534_s4, 4  ;;  %s48_s7 = int_to_ptr.hbm [resolvable:$true] %s47_s7 }
   0x6   :  { %s22_s29 = sshll.u32 %s471_s28, 4  ;;  %s472_s3 = smov [#allocation7]   ;;  %s23_s29 = int_to_ptr.vmem [resolvable:$true] %s22_s29 }
   0x7   :  { %28 = dma.hbm_to_vmem [thread:$0]  %s21_s25, 1024, %s23_s29, [#allocation4], %s469_s26, %s469_s26, %s470_s27  }
   0x8   :  { %s49_s8 = sshll.u32 %s472_s3, 4  ;;  %s50_s8 = int_to_ptr.vmem [resolvable:$true] %s49_s8 }
   0x9   :  { %52 = dma.hbm_to_vmem [thread:$0]  %s48_s7, 16, %s50_s8, [#allocation6]  }
   0xa   :  { %464 = dma.done.wait [#allocation4], 1024  }
   0xb   :  { %465 = vsyncadd [#allocation4], 4294966272 }
   0xc   :  { %466 = dma.done.wait [#allocation6], 1040  }
   0xd   :  { %467 = vsyncadd [#allocation6], 4294966256  ;;  %v377_v0 = vld [vmem:[#allocation5 + $0x38] sm:$0xff]  ;;  %v376_v2 = vld [vmem:[#allocation5 + $0x30] sm:$0xff] }
   0xe   :  { %v369_v1 = vld [vmem:[#allocation3 + $0x38] sm:$0xff]  ;;  %163 = vmatpush.bf16.msra.mxu0 %v377_v0  ;;  %v368_v3 = vld [vmem:[#allocation3 + $0x30] sm:$0xff]  ;;  %v375_v4 = vld [vmem:[#allocation5 + $0x28] sm:$0xff] }
   0xf   :  { %225 = vmatpush.bf16.msra.mxu1 %v369_v1  ;;  %v367_v5 = vld [vmem:[#allocation3 + $0x28] sm:$0xff]  ;;  %v374_v6 = vld [vmem:[#allocation5 + $0x20] sm:$0xff]  ;;  %v373_v8 = vld [vmem:[#allocation5 + $0x18] sm:$0xff] }
  0x10   :  { %v366_v7 = vld [vmem:[#allocation3 + $0x20] sm:$0xff]  ;;  %v365_v9 = vld [vmem:[#allocation3 + $0x18] sm:$0xff]  ;;  %v372_v10 = vld [vmem:[#allocation5 + $0x10] sm:$0xff] }
  0x11   :  { %v364_v11 = vld [vmem:[#allocation3 + $0x10] sm:$0xff]  ;;  %v371_v12 = vld [vmem:[#allocation5 + $0x8] sm:$0xff]  ;;  %v370_v14 = vld [vmem:[#allocation5] sm:$0xff] }
  0x12   :  { %164 = vmatpush.bf16.msra.mxu0 %v376_v2  ;;  %v363_v13 = vld [vmem:[#allocation3 + $0x8] sm:$0xff]  ;;  %v362_v15 = vld [vmem:[#allocation3] sm:$0xff] }
  0x13   :  { %226 = vmatpush.bf16.msra.mxu1 %v368_v3  ;;  %v96_v16 = vld [vmem:[%s531_s1] sm:$0xff]  ;;  %v97_v17 = vld [vmem:[%s531_s1 + $0x8] sm:$0xff] }
  0x14   :  { %v77_v18 = vld [vmem:[%s530_s0] sm:$0xff]  ;;  %v78_v19 = vld [vmem:[%s530_s0 + $0x8] sm:$0xff]  ;;  %v98_v20 = vpack.c.bf16 %v97_v17, %v96_v16 }
  0x15   :  { %v79_v21 = vpack.c.bf16 %v78_v19, %v77_v18  ;;  %v383_v22 = vld [vmem:[#allocation7] ss:$0 sm:$0xff] }
  0x16   :  { %165 = vmatpush.bf16.msra.mxu0 %v375_v4 }
  0x17   :  { %227 = vmatpush.bf16.msra.mxu1 %v367_v5 }
  0x1a   :  { %166 = vmatpush.bf16.msra.mxu0 %v374_v6 }
  0x1b   :  { %228 = vmatpush.bf16.msra.mxu1 %v366_v7 }
  0x1e   :  { %167 = vmatpush.bf16.msra.mxu0 %v373_v8 }
  0x1f   :  { %229 = vmatpush.bf16.msra.mxu1 %v365_v9 }
  0x22   :  { %168 = vmatpush.bf16.msra.mxu0 %v372_v10 }
  0x23   :  { %230 = vmatpush.bf16.msra.mxu1 %v364_v11 }
  0x26   :  { %169 = vmatpush.bf16.msra.mxu0 %v371_v12 }
  0x27   :  { %231 = vmatpush.bf16.msra.mxu1 %v363_v13 }
  0x2a   :  { %170 = vmatpush.bf16.msra.mxu0 %v370_v14 }
  0x2b   :  { %232 = vmatpush.bf16.msra.mxu1 %v362_v15 }
  0x2d   :  { %171 = vmatmul.bf16.vlgmr.msra.gmra.mxu0 %v98_v20 }
  0x2e   :  { %233 = vmatmul.bf16.vlgmr.msra.gmra.mxu1 %v79_v21 }
  0xaa   :  { %v172_v23 = vpop.f32.mrf.mxu0 }
  0xab   :  { %v234_v24 = vpop.f32.mrf.mxu1 }
  0xac   :  { %v235_v25 = vadd.f32 %v234_v24, %v172_v23 }
  0xae   :  { %v239_v26 = vadd.f32 %v383_v22, %v235_v25 }
  0xb0   :  { %v360_v27 = vmul.f32 -1.442695, %v239_v26 }
  0xb2   :  { %384 = vpow2.f32 %v360_v27  ;;  %v174_v28 = vpop.f32.mrf.mxu0 }
  0xb3   :  { %v236_v29 = vpop.f32.mrf.mxu1 }
  0xb4   :  { %v237_v30 = vadd.f32 %v236_v29, %v174_v28 }
  0xb6   :  { %v240_v31 = vadd.f32 %v383_v22, %v237_v30 }
  0xb8   :  { %v385_v32 = vpop.eup %384  ;;  %v361_v33 = vmul.f32 -1.442695, %v240_v31 }
  0xb9   :  { %v254_v34 = vadd.f32 1.0, %v385_v32 }
  0xba   :  { %386 = vpow2.f32 %v361_v33 }
  0xbb   :  { %388 = vrcp.f32 %v254_v34  ;;  %v267_v40 = vand.u32 2147483648, %v254_v34  ;;  %v265_v42 = vand.u32 2147483647, %v254_v34  ;;  %vm261_vm1 = vweird.f32 %v254_v34 }
  0xbd   :  { %v268_v45 = vor.u32 1.1754944e-38, %v267_v40  ;;  %vm266_vm3 = vcmp.eq.f32.partialorder %v265_v42, 8.507059e+37 }
  0xc0   :  { %v387_v35 = vpop.eup %386 }
  0xc1   :  { %v389_v36 = vpop.eup %388  ;;  %v255_v37 = vadd.f32 1.0, %v387_v35 }
  0xc2   :  { %v257_v38 = vmul.f32 %v389_v36, %v254_v34  ;;  %vm262_vm0 = vweird.f32 %v389_v36 }
  0xc3   :  { %390 = vrcp.f32 %v255_v37  ;;  %vm263_vm2 = vmor %vm261_vm1, %vm262_vm0  ;;  %v282_v51 = vand.u32 2147483648, %v255_v37  ;;  %v280_v53 = vand.u32 2147483647, %v255_v37  ;;  %vm276_vm5 = vweird.f32 %v255_v37 }
  0xc4   :  { %v258_v39 = vsub.f32 1.0, %v257_v38 }
  0xc5   :  { %v283_v55 = vor.u32 1.1754944e-38, %v282_v51  ;;  %vm281_vm7 = vcmp.eq.f32.partialorder %v280_v53, 8.507059e+37 }
  0xc6   :  { %v259_v41 = vmul.f32 %v389_v36, %v258_v39 }
  0xc8   :  { %v260_v43 = vadd.f32 %v389_v36, %v259_v41 }
  0xc9   :  { %v391_v44 = vpop.eup %390 }
  0xca   :  { %v264_v46 = vsel %vm263_vm2, %v389_v36, %v260_v43  ;;  %v272_v47 = vmul.f32 %v391_v44, %v255_v37  ;;  %vm277_vm4 = vweird.f32 %v391_v44 }
  0xcb   :  { %v269_v48 = vsel %vm266_vm3, %v268_v45, %v264_v46  ;;  %vm278_vm6 = vmor %vm276_vm5, %vm277_vm4 }
  0xcc   :  { %v286_v49 = vmul.f32 %v269_v48, %v239_v26  ;;  %v273_v50 = vsub.f32 1.0, %v272_v47 }
  0xce   :  { %288 = vst [vmem:[%s535_s5] sm:$0xff] %v286_v49  ;;  %v274_v52 = vmul.f32 %v391_v44, %v273_v50 }
  0xd0   :  { %v275_v54 = vadd.f32 %v391_v44, %v274_v52 }
  0xd2   :  { %v279_v56 = vsel %vm278_vm6, %v391_v44, %v275_v54 }
  0xd3   :  { %v284_v57 = vsel %vm281_vm7, %v283_v55, %v279_v56 }
  0xd4   :  { %v287_v58 = vmul.f32 %v284_v57, %v240_v31 }
  0xd6   :  { %289 = vst [vmem:[%s535_s5 + $0x8] sm:$0xff] %v287_v58 }
  0xd7   :  { %294 = vsyncpa [#allocation4], 1 }
  0xd8   :  { %295 = vsyncpa [#allocation6], 1 }

// kernel: latent_language_forward.74
= control target key start
LH: loop header
LB: loop body
LE: loop exit
PB: predicated region body
PF: predicated region fallthrough
CT: control target
= control target key end

     0   :  { %8 = vsyncpa [#allocation4], 0  ;;  %s728_s12 = smov 0   ;;  %s730_s13 = smov 0   ;;  %s797_s0 = inlined_call_operand.vmem [shape: f32[2,8,256], index: 0, kind: input, shape index: {}]   ;;  %s798_s1 = inlined_call_operand.hbm [shape: f32[4,256], index: 1, kind: input, shape index: {}]   ;;  %s799_s2 = inlined_call_operand.vmem [shape: f32[1,256], index: 2, kind: input, shape index: {}]   ;;  %s800_s3 = inlined_call_operand.vmem [shape: f32[2,8,256], index: 3, kind: output, shape index: {}]  }
   0x1   :  { %s732_s14 = smov 0  }
   0x2 LB: > { %s586_s15 = sadd.s32 4294967295, %s704_s14   ;;  %s33_s16 = sadd.s32 1, %s700_s13  ;;  %s704_s14 = sphi %s732_s14, %s14_s14   ;;  %s700_s13 = sphi %s730_s13, %s802_s13   ;;  %s696_s12 = sphi %s728_s12, %s801_s12  }
   0x3   : > { %p35_p0 = scmp.ge.s32.totalorder %s33_s16, 2  ;;  %p588_p1 = scmp.ge.s32.totalorder %s704_s14, 1 }
   0x4   : > { %p150_p2 = scmp.lt.s32.totalorder %s704_s14, 3  ;;  %p612_p4 = scmp.eq.s32.totalorder %s586_s15, 0 }
   0x5   : > { %s804_s16 = smov (%p35_p0, %s33_s16), 0  ;;  %s165_s19 = sshll.u32 %s798_s1, 4  ;;  %s166_s19 = int_to_ptr.hbm [resolvable:$true] %s165_s19 }
   0x6   : > { %p151_p3 = pnand %p588_p1, %p150_p2  ;;  %s706_s20 = smov [#allocation3]  }
   0x7   : > { %s167_s21 = sshll.u32 %s706_s20, 4  ;;  %s168_s21 = int_to_ptr.vmem [resolvable:$true] %s167_s21 }
   0x8   : > { %p608_p5 = pneg %p151_p3  ;;  %205 = sbr.rel (%p151_p3) target bundleno = 75 (0x4b), region = 32 }
   0xa   : > { %p609_p6 = pnand %p612_p4, %p608_p5 }
   0xc   : > { %611 = dma.hbm_to_vmem [thread:$0]  (!%p609_p6), %s166_s19, 128, %s168_s21, [#allocation4]  }
   0xd   : > { %691 = dma.done.wait (%p612_p4), [#allocation4], 128  }
   0xe   : > { %693 = vsyncadd (%p612_p4), [#allocation4], 4294967168  ;;  %p251_p7 = scmp.lt.s32.totalorder %s696_s12, 1  ;;  %v707_v0 = vmov 0.0   ;;  %v307_v13 = vld [vmem:[%s799_s2] sm:$0x3] }
   0xf   : > { %288 = vst [vmem:[#allocation2] sm:$0x77] %v707_v0  ;;  %v313_v5 = vld [vmem:[#allocation3] ss:$4 sm:$0x3]  ;;  %vm304_vm0 = vcmask 1042432  }
  0x10   : > { %s806_s12 = smov (!%p251_p7, %s696_s12), 1  ;;  %v324_v6 = vld [vmem:[#allocation3 + $0x1] ss:$4 sm:$0x3]  ;;  %v315_v17 = vperm.slane %v313_v5, 0  ;;  %vm338_vm1 = vcmask 1046528  }
  0x11   : > { %s602_s22 = sshll.u32 %s806_s12, 4  ;;  %v326_v8 = vperm.slane %v324_v6, 0  ;;  %v350_v9 = vld [vmem:[#allocation3 + $0x2] ss:$4 sm:$0x3]  ;;  %v327_v10 = vperm.slane %v324_v6, 1 }
  0x12   : > { %s262_s25 = scalar_lea.vmem %s797_s0, %s602_s22  ;;  %v352_v11 = vperm.slane %v350_v9, 0  ;;  %v376_v12 = vld [vmem:[#allocation3 + $0x3] ss:$4 sm:$0x3]  ;;  %v353_v16 = vperm.slane %v350_v9, 1  ;;  %vm364_vm2 = vcmask 1045504   ;;  %s282_s30 = scalar_lea.vmem %s800_s3, %s602_s22 }
  0x13   : > { %v289_v1 = vld [vmem:[%s262_s25] sm:$0xff]  ;;  %v290_v3 = vld [vmem:[%s262_s25 + $0x8] sm:$0xff]  ;;  %v378_v15 = vperm.slane %v376_v12, 0  ;;  %v379_v19 = vperm.slane %v376_v12, 1  ;;  %v309_v21 = vperm.slane %v307_v13, 0  ;;  %vm390_vm3 = vcmask 1044480  }
  0x14   : > { %v758_v4 = vrot.slane %v289_v1, 5  ;;  %v760_v7 = vrot.slane %v290_v3, 5  ;;  %v316_v23 = vperm.slane %v313_v5, 1  ;;  %v310_v34 = vperm.slane %v307_v13, 1 }
  0x15   : > { %vm444_vm4 = vcmask 1043456  }
  0x16   : > { %v291_v2 = vld [vmem:[#allocation2] sm:$0x77]  ;;  %v332_v14 = vmul.f32 %v326_v8, %v758_v4  ;;  %v333_v18 = vmul.f32 %v327_v10, %v760_v7  ;;  %v358_v22 = vmul.f32 %v352_v11, %v758_v4  ;;  %v384_v26 = vmul.f32 %v378_v15, %v758_v4 }
  0x17   : > { %293 = vst [vmem:[#allocation1] ss:$2 sm:$0xff] %v291_v2  ;;  %v359_v28 = vmul.f32 %v353_v16, %v760_v7  ;;  %v385_v36 = vmul.f32 %v379_v19, %v760_v7  ;;  %v443_v63 = vrot.slane %v760_v7, 4 }
  0x18   : > { %v340_v25 = vrot.slane %v332_v14, 1  ;;  %v343_v35 = vrot.slane %v333_v18, 1  ;;  %v366_v40 = vrot.slane %v358_v22, 2  ;;  %v392_v47 = vrot.slane %v384_v26, 3 }
  0x19   : > { %v369_v48 = vrot.slane %v359_v28, 2  ;;  %v395_v57 = vrot.slane %v385_v36, 3  ;;  %v445_v3 = vsel %vm444_vm4, %v758_v4, %v443_v63 }
  0x1a   : > { %447 = vst [vmem:[#allocation2] sm:$0x77] %v445_v3 }
  0x1e   : > { %v294_v20 = vld.sshfl [vmem:[#allocation1] sm:$0xff pattern:$0x75316420]  ;;  %v295_v27 = vld.sshfl [vmem:[#allocation1 + $0x8] sm:$0xff pattern:$0x75316420] }
  0x1f   : > { %v305_v24 = vsel %vm304_vm0, %v294_v20, %v758_v4  ;;  %v306_v33 = vsel %vm304_vm0, %v295_v27, %v760_v7 }
  0x20   : > { %v319_v29 = vmul.f32 %v315_v17, %v305_v24  ;;  %v330_v30 = vmul.f32 %v326_v8, %v305_v24  ;;  %v356_v31 = vmul.f32 %v352_v11, %v305_v24  ;;  %v382_v32 = vmul.f32 %v378_v15, %v305_v24 }
  0x21   : > { %v320_v41 = vmul.f32 %v316_v23, %v306_v33  ;;  %v331_v42 = vmul.f32 %v327_v10, %v306_v33  ;;  %v357_v43 = vmul.f32 %v353_v16, %v306_v33  ;;  %v383_v44 = vmul.f32 %v379_v19, %v306_v33 }
  0x22   : > { %v321_v37 = vadd.f32 %v319_v29, %v309_v21  ;;  %v339_v38 = vrot.slane %v330_v30, 1  ;;  %v365_v39 = vrot.slane %v356_v31, 2  ;;  %v391_v46 = vrot.slane %v382_v32, 3 }
  0x23   : > { %v322_v50 = vadd.f32 %v320_v41, %v310_v34  ;;  %v342_v51 = vrot.slane %v331_v42, 1  ;;  %v368_v52 = vrot.slane %v357_v43, 2  ;;  %v394_v56 = vrot.slane %v383_v44, 3 }
  0x24   : > { %v341_v45 = vsel %vm338_vm1, %v339_v38, %v340_v25  ;;  %v367_v53 = vsel %vm364_vm2, %v365_v39, %v366_v40  ;;  %v393_v58 = vsel %vm390_vm3, %v391_v46, %v392_v47 }
  0x25   : > { %v347_v49 = vadd.f32 %v341_v45, %v321_v37  ;;  %v344_v55 = vsel %vm338_vm1, %v342_v51, %v343_v35  ;;  %v370_v61 = vsel %vm364_vm2, %v368_v52, %v369_v48  ;;  %v396_v1 = vsel %vm390_vm3, %v394_v56, %v395_v57 }
  0x26   : > { %v348_v59 = vadd.f32 %v344_v55, %v322_v50 }
  0x27   : > { %v373_v54 = vadd.f32 %v367_v53, %v347_v49 }
  0x28   : > { %v374_v62 = vadd.f32 %v370_v61, %v348_v59 }
  0x29   : > { %v399_v60 = vadd.f32 %v393_v58, %v373_v54 }
  0x2a   : > { %v400_v2 = vadd.f32 %v396_v1, %v374_v62 }
  0x2b   : > { %v598_v0 = vmul.f32 -1.442695, %v399_v60 }
  0x2c   : > { %v599_v5 = vmul.f32 -1.442695, %v400_v2 }
  0x2d   : > { %640 = vpow2.f32 %v598_v0 }
  0x2e   : > { %642 = vpow2.f32 %v599_v5 }
  0x33   : > { %v641_v6 = vpop.eup %640 }
  0x34   : > { %v407_v8 = vadd.f32 1.0, %v641_v6  ;;  %v643_v9 = vpop.eup %642 }
  0x35   : > { %v408_v10 = vadd.f32 1.0, %v643_v9 }
  0x36   : > { %644 = vrcp.f32 %v407_v8  ;;  %v420_v14 = vand.u32 2147483648, %v407_v8  ;;  %v418_v4 = vand.u32 2147483647, %v407_v8  ;;  %vm414_vm6 = vweird.f32 %v407_v8 }
  0x37   : > { %646 = vrcp.f32 %v408_v10  ;;  %v435_v19 = vand.u32 2147483648, %v408_v10  ;;  %v433_v22 = vand.u32 2147483647, %v408_v10  ;;  %vm429_vm10 = vweird.f32 %v408_v10 }
  0x38   : > { %v421_v20 = vor.u32 1.1754944e-38, %v420_v14  ;;  %vm419_vm9 = vcmp.eq.f32.partialorder %v418_v4, 8.507059e+37 }
  0x39   : > { %v436_v27 = vor.u32 1.1754944e-38, %v435_v19  ;;  %vm434_vm12 = vcmp.eq.f32.partialorder %v433_v22, 8.507059e+37 }
  0x3c   : > { %v645_v11 = vpop.eup %644 }
  0x3d   : > { %v410_v12 = vmul.f32 %v645_v11, %v407_v8  ;;  %v647_v7 = vpop.eup %646  ;;  %vm415_vm5 = vweird.f32 %v645_v11 }
  0x3e   : > { %v425_v15 = vmul.f32 %v647_v7, %v408_v10  ;;  %vm416_vm7 = vmor %vm414_vm6, %vm415_vm5  ;;  %vm430_vm8 = vweird.f32 %v647_v7 }
  0x3f   : > { %v411_v13 = vsub.f32 1.0, %v410_v12  ;;  %vm431_vm11 = vmor %vm429_vm10, %vm430_vm8 }
  0x40   : > { %v426_v17 = vsub.f32 1.0, %v425_v15 }
  0x41   : > { %v412_v16 = vmul.f32 %v645_v11, %v411_v13 }
  0x42   : > { %v427_v21 = vmul.f32 %v647_v7, %v426_v17 }
  0x43   : > { %v413_v18 = vadd.f32 %v645_v11, %v412_v16 }
  0x44   : > { %v428_v25 = vadd.f32 %v647_v7, %v427_v21 }
  0x45   : > { %v417_v23 = vsel %vm416_vm7, %v645_v11, %v413_v18 }
  0x46   : > { %v422_v24 = vsel %vm419_vm9, %v421_v20, %v417_v23  ;;  %v432_v28 = vsel %vm431_vm11, %v647_v7, %v428_v25 }
  0x47   : > { %v439_v26 = vmul.f32 %v422_v24, %v399_v60  ;;  %v437_v29 = vsel %vm434_vm12, %v436_v27, %v432_v28 }
  0x48   : > { %v440_v30 = vmul.f32 %v437_v29, %v400_v2 }
  0x49   : > { %441 = vst [vmem:[%s282_s30] sm:$0xff] %v439_v26 }
  0x4a   : > { %442 = vst [vmem:[%s282_s30 + $0x8] sm:$0xff] %v440_v30 }
  0x4b PF: > { %s14_s14 = sadd.s32 1, %s704_s14   ;;  %s801_s12 = smov %s700_s13 }
  0x4c   : > { %p11_p8 = scmp.ge.s32.totalorder %s14_s14, 4   ;;  %s802_s13 = smov %s804_s16 }
  0x4e   :  { %13 = sbr.rel (!%p11_p8) target bundleno = 2 (0x2), region = 78 }
  0x53   :  { %486 = vsyncpa [#allocation4], 1 }
  0x54   :  { %488 = vsyncpa [#allocation4 + $0x1], 1 }

// kernel: latent_language_forward.73
= control target key start
LH: loop header
LB: loop body
LE: loop exit
PB: predicated region body
PF: predicated region fallthrough
CT: control target
= control target key end

     0   :  { %v515_v4 = vmov 128.0   ;;  %s778_s0 = inlined_call_operand.vmem [shape: f32[16,128], index: 0, kind: input, shape index: {}]   ;;  %s779_s1 = inlined_call_operand.vmem [shape: f32[1,128], index: 1, kind: input, shape index: {}]   ;;  %s780_s2 = inlined_call_operand.vmem [shape: bf16[128,512], index: 2, kind: input, shape index: {}]   ;;  %s781_s3 = inlined_call_operand.vmem [shape: f32[16,512], index: 3, kind: output, shape index: {}]  }
   0x1   :  { %v539_v0 = vld [vmem:[%s778_s0] sm:$0xff]  ;;  %v546_v2 = vld [vmem:[%s778_s0 + $0x8] sm:$0xff]  ;;  %509 = vrcp.f32 %v515_v4  ;;  %v500_v7 = vld [vmem:[%s780_s2 + $0xec] sm:$0xf0] }
   0x2   :  { %v20_v1 = vmul.f32 %v539_v0, %v539_v0  ;;  %v21_v3 = vmul.f32 %v546_v2, %v546_v2  ;;  %v455_v6 = vld [vmem:[%s780_s2 + $0xe0] sm:$0xf]  ;;  %v498_v8 = vld [vmem:[%s780_s2 + $0xe4] sm:$0xf]  ;;  %v457_v10 = vld [vmem:[%s780_s2 + $0xf0] sm:$0xf0] }
   0x3   :  { %v456_v9 = vor.u32 %v500_v7, %v455_v6  ;;  %v463_v11 = vld [vmem:[%s780_s2 + $0xe8] sm:$0xf]  ;;  %v501_v12 = vld [vmem:[%s780_s2 + $0xf4] sm:$0xf0]  ;;  %v460_v14 = vor.u32 %v498_v8, %v457_v10  ;;  %v499_v16 = vld [vmem:[%s780_s2 + $0xec] sm:$0xf] }
   0x4   :  { %22 = vadd.xlane.f32.xlu0 %v20_v1  ;;  %v464_v15 = vor.u32 %v501_v12, %v463_v11  ;;  %v465_v17 = vld [vmem:[%s780_s2 + $0xf8] sm:$0xf0]  ;;  %v439_v19 = vld [vmem:[%s780_s2 + $0xc0] sm:$0xf]  ;;  %v496_v20 = vld [vmem:[%s780_s2 + $0xcc] sm:$0xf0] }
   0x5   :  { %269 = vmatpush.bf16.msra.mxu0 %v456_v9  ;;  %v468_v18 = vor.u32 %v499_v16, %v465_v17  ;;  %283 = vmatpush.bf16.msra.mxu1 %v460_v14  ;;  %v494_v21 = vld [vmem:[%s780_s2 + $0xc4] sm:$0xf]  ;;  %v440_v22 = vor.u32 %v496_v20, %v439_v19  ;;  %v441_v23 = vld [vmem:[%s780_s2 + $0xd0] sm:$0xf0]  ;;  %v447_v24 = vld [vmem:[%s780_s2 + $0xc8] sm:$0xf] }
   0x6   :  { %297 = vmatpush.bf16.msra.mxu2 %v464_v15  ;;  %v497_v25 = vld [vmem:[%s780_s2 + $0xd4] sm:$0xf0]  ;;  %v444_v27 = vor.u32 %v494_v21, %v441_v23  ;;  %v495_v29 = vld [vmem:[%s780_s2 + $0xcc] sm:$0xf]  ;;  %v449_v30 = vld [vmem:[%s780_s2 + $0xd8] sm:$0xf0] }
   0x7   :  { %v550_v5 = vpop.eup %509  ;;  %311 = vmatpush.bf16.msra.mxu3 %v468_v18  ;;  %v448_v28 = vor.u32 %v497_v25, %v447_v24  ;;  %v452_v31 = vor.u32 %v495_v29, %v449_v30  ;;  %v423_v32 = vld [vmem:[%s780_s2 + $0xa0] sm:$0xf]  ;;  %v492_v33 = vld [vmem:[%s780_s2 + $0xac] sm:$0xf0]  ;;  %v490_v34 = vld [vmem:[%s780_s2 + $0xa4] sm:$0xf] }
   0x8   :  { %v27_v13 = vmul.f32 128.0, %v550_v5  ;;  %v424_v35 = vor.u32 %v492_v33, %v423_v32  ;;  %v425_v36 = vld [vmem:[%s780_s2 + $0xb0] sm:$0xf0]  ;;  %v431_v37 = vld [vmem:[%s780_s2 + $0xa8] sm:$0xf]  ;;  %vm31_vm0 = vweird.f32 %v550_v5 }
   0x9   :  { %270 = vmatpush.bf16.msra.mxu0 %v440_v22  ;;  %284 = vmatpush.bf16.msra.mxu1 %v444_v27  ;;  %v493_v38 = vld [vmem:[%s780_s2 + $0xb4] sm:$0xf0]  ;;  %v428_v40 = vor.u32 %v490_v34, %v425_v36  ;;  %v491_v42 = vld [vmem:[%s780_s2 + $0xac] sm:$0xf]  ;;  %v433_v43 = vld [vmem:[%s780_s2 + $0xb8] sm:$0xf0] }
   0xa   :  { %v28_v26 = vsub.f32 1.0, %v27_v13  ;;  %298 = vmatpush.bf16.msra.mxu2 %v448_v28  ;;  %v432_v41 = vor.u32 %v493_v38, %v431_v37  ;;  %v436_v44 = vor.u32 %v491_v42, %v433_v43  ;;  %v407_v45 = vld [vmem:[%s780_s2 + $0x80] sm:$0xf]  ;;  %v488_v46 = vld [vmem:[%s780_s2 + $0x8c] sm:$0xf0] }
   0xb   :  { %312 = vmatpush.bf16.msra.mxu3 %v452_v31  ;;  %v486_v47 = vld [vmem:[%s780_s2 + $0x84] sm:$0xf]  ;;  %v408_v48 = vor.u32 %v488_v46, %v407_v45  ;;  %v409_v49 = vld [vmem:[%s780_s2 + $0x90] sm:$0xf0]  ;;  %v415_v50 = vld [vmem:[%s780_s2 + $0x88] sm:$0xf] }
   0xc   :  { %24 = vadd.xlane.f32.xlu0 %v21_v3  ;;  %v29_v39 = vmul.f32 %v550_v5, %v28_v26  ;;  %v489_v51 = vld [vmem:[%s780_s2 + $0x94] sm:$0xf0]  ;;  %v412_v53 = vor.u32 %v486_v47, %v409_v49  ;;  %v487_v55 = vld [vmem:[%s780_s2 + $0x8c] sm:$0xf]  ;;  %v417_v56 = vld [vmem:[%s780_s2 + $0x98] sm:$0xf0] }
   0xd   :  { %271 = vmatpush.bf16.msra.mxu0 %v424_v35  ;;  %285 = vmatpush.bf16.msra.mxu1 %v428_v40  ;;  %v416_v54 = vor.u32 %v489_v51, %v415_v50  ;;  %v420_v57 = vor.u32 %v487_v55, %v417_v56  ;;  %v391_v58 = vld [vmem:[%s780_s2 + $0x60] sm:$0xf]  ;;  %v484_v59 = vld [vmem:[%s780_s2 + $0x6c] sm:$0xf0]  ;;  %v482_v60 = vld [vmem:[%s780_s2 + $0x64] sm:$0xf] }
   0xe   :  { %299 = vmatpush.bf16.msra.mxu2 %v432_v41  ;;  %v30_v52 = vadd.f32 %v550_v5, %v29_v39  ;;  %v392_v61 = vor.u32 %v484_v59, %v391_v58  ;;  %v393_v62 = vld [vmem:[%s780_s2 + $0x70] sm:$0xf0]  ;;  %v399_v63 = vld [vmem:[%s780_s2 + $0x68] sm:$0xf]  ;;  %v485_v1 = vld [vmem:[%s780_s2 + $0x74] sm:$0xf0] }
   0xf   :  { %313 = vmatpush.bf16.msra.mxu3 %v436_v44  ;;  %v396_v4 = vor.u32 %v482_v60, %v393_v62  ;;  %v400_v6 = vor.u32 %v485_v1, %v399_v63  ;;  %v483_v7 = vld [vmem:[%s780_s2 + $0x6c] sm:$0xf]  ;;  %v401_v8 = vld [vmem:[%s780_s2 + $0x78] sm:$0xf0]  ;;  %v375_v11 = vld [vmem:[%s780_s2 + $0x40] sm:$0xf] }
  0x10   :  { %v32_v3 = vsel %vm31_vm0, %v550_v5, %v30_v52  ;;  %v404_v9 = vor.u32 %v483_v7, %v401_v8  ;;  %v480_v5 = vld [vmem:[%s780_s2 + $0x4c] sm:$0xf0]  ;;  %v478_v12 = vld [vmem:[%s780_s2 + $0x44] sm:$0xf]  ;;  %v377_v15 = vld [vmem:[%s780_s2 + $0x50] sm:$0xf0] }
  0x11   :  { %272 = vmatpush.bf16.msra.mxu0 %v408_v48  ;;  %286 = vmatpush.bf16.msra.mxu1 %v412_v53  ;;  %v376_v14 = vor.u32 %v480_v5, %v375_v11  ;;  %v383_v16 = vld [vmem:[%s780_s2 + $0x48] sm:$0xf]  ;;  %v481_v17 = vld [vmem:[%s780_s2 + $0x54] sm:$0xf0]  ;;  %v380_v18 = vor.u32 %v478_v12, %v377_v15  ;;  %v479_v20 = vld [vmem:[%s780_s2 + $0x4c] sm:$0xf] }
  0x12   :  { %300 = vmatpush.bf16.msra.mxu2 %v416_v54  ;;  %v384_v19 = vor.u32 %v481_v17, %v383_v16  ;;  %v385_v21 = vld [vmem:[%s780_s2 + $0x58] sm:$0xf0]  ;;  %v359_v24 = vld [vmem:[%s780_s2 + $0x20] sm:$0xf]  ;;  %v476_v25 = vld [vmem:[%s780_s2 + $0x2c] sm:$0xf0] }
  0x13   :  { %314 = vmatpush.bf16.msra.mxu3 %v420_v57  ;;  %v388_v23 = vor.u32 %v479_v20, %v385_v21  ;;  %v474_v26 = vld [vmem:[%s780_s2 + $0x24] sm:$0xf]  ;;  %v360_v27 = vor.u32 %v476_v25, %v359_v24  ;;  %v361_v28 = vld [vmem:[%s780_s2 + $0x30] sm:$0xf0]  ;;  %v367_v29 = vld [vmem:[%s780_s2 + $0x28] sm:$0xf] }
  0x14   :  { %v477_v30 = vld [vmem:[%s780_s2 + $0x34] sm:$0xf0]  ;;  %v364_v31 = vor.u32 %v474_v26, %v361_v28  ;;  %v475_v33 = vld [vmem:[%s780_s2 + $0x2c] sm:$0xf]  ;;  %v369_v34 = vld [vmem:[%s780_s2 + $0x38] sm:$0xf0] }
  0x15   :  { %273 = vmatpush.bf16.msra.mxu0 %v392_v61  ;;  %287 = vmatpush.bf16.msra.mxu1 %v396_v4  ;;  %v368_v32 = vor.u32 %v477_v30, %v367_v29  ;;  %v343_v35 = vld [vmem:[%s780_s2] sm:$0xf]  ;;  %v372_v36 = vor.u32 %v475_v33, %v369_v34  ;;  %v472_v37 = vld [vmem:[%s780_s2 + $0xc] sm:$0xf0]  ;;  %v470_v38 = vld [vmem:[%s780_s2 + $0x4] sm:$0xf] }
  0x16   :  { %301 = vmatpush.bf16.msra.mxu2 %v400_v6  ;;  %v345_v39 = vld [vmem:[%s780_s2 + $0x10] sm:$0xf0]  ;;  %v344_v41 = vor.u32 %v472_v37, %v343_v35  ;;  %v351_v43 = vld [vmem:[%s780_s2 + $0x8] sm:$0xf]  ;;  %v473_v44 = vld [vmem:[%s780_s2 + $0x14] sm:$0xf0] }
  0x17   :  { %315 = vmatpush.bf16.msra.mxu3 %v404_v9  ;;  %v348_v42 = vor.u32 %v470_v38, %v345_v39  ;;  %v471_v45 = vld [vmem:[%s780_s2 + $0xc] sm:$0xf]  ;;  %v352_v47 = vor.u32 %v473_v44, %v351_v43  ;;  %v353_v48 = vld [vmem:[%s780_s2 + $0x18] sm:$0xf0]  ;;  %v508_v1 = vld [vmem:[%s779_s1] ss:$0 sm:$0xff] }
  0x18   :  { %v356_v49 = vor.u32 %v471_v45, %v353_v48 }
  0x19   :  { %274 = vmatpush.bf16.msra.mxu0 %v376_v14  ;;  %288 = vmatpush.bf16.msra.mxu1 %v380_v18 }
  0x1a   :  { %302 = vmatpush.bf16.msra.mxu2 %v384_v19 }
  0x1b   :  { %316 = vmatpush.bf16.msra.mxu3 %v388_v23 }
  0x1d   :  { %275 = vmatpush.bf16.msra.mxu0 %v360_v27  ;;  %289 = vmatpush.bf16.msra.mxu1 %v364_v31 }
  0x1e   :  { %303 = vmatpush.bf16.msra.mxu2 %v368_v32 }
  0x1f   :  { %317 = vmatpush.bf16.msra.mxu3 %v372_v36 }
  0x21   :  { %276 = vmatpush.bf16.msra.mxu0 %v344_v41  ;;  %290 = vmatpush.bf16.msra.mxu1 %v348_v42 }
  0x22   :  { %304 = vmatpush.bf16.msra.mxu2 %v352_v47 }
  0x23   :  { %318 = vmatpush.bf16.msra.mxu3 %v356_v49 }
  0x77   :  { %v23_v10 = vpop.xlane.xlu0 %22 }
  0x78   :  { %v33_v13 = vmul.f32 %v32_v3, %v23_v10 }
  0x7a   :  { %v35_v22 = vadd.f32 1e-05, %v33_v13 }
  0x7c   :  { %511 = vrsqrt.f32 %v35_v22  ;;  %vm43_vm2 = vweird.f32 %v35_v22 }
  0x7f   :  { %v25_v40 = vpop.xlane.xlu0 %24 }
  0x80   :  { %v34_v46 = vmul.f32 %v32_v3, %v25_v40 }
  0x82   :  { %v512_v50 = vpop.eup %511  ;;  %v36_v51 = vadd.f32 1e-05, %v34_v46 }
  0x83   :  { %v38_v52 = vmul.f32 %v512_v50, %v35_v22  ;;  %vm44_vm1 = vweird.f32 %v512_v50 }
  0x84   :  { %513 = vrsqrt.f32 %v36_v51  ;;  %vm45_vm3 = vmor %vm43_vm2, %vm44_vm1  ;;  %vm53_vm5 = vweird.f32 %v36_v51 }
  0x85   :  { %v39_v53 = vmul.f32 %v512_v50, %v38_v52 }
  0x87   :  { %v40_v54 = vmul.f32 0.5, %v39_v53 }
  0x89   :  { %v41_v55 = vsub.f32 1.5, %v40_v54 }
  0x8a   :  { %v514_v56 = vpop.eup %513 }
  0x8b   :  { %v48_v57 = vmul.f32 %v514_v56, %v36_v51  ;;  %v42_v58 = vmul.f32 %v512_v50, %v41_v55  ;;  %vm54_vm4 = vweird.f32 %v514_v56 }
  0x8c   :  { %vm55_vm6 = vmor %vm53_vm5, %vm54_vm4 }
  0x8d   :  { %v49_v59 = vmul.f32 %v514_v56, %v48_v57  ;;  %v46_v61 = vsel %vm45_vm3, %v512_v50, %v42_v58 }
  0x8e   :  { %v57_v3 = vmul.f32 %v46_v61, %v539_v0 }
  0x8f   :  { %v50_v60 = vmul.f32 0.5, %v49_v59 }
  0x90   :  { %v63_v7 = vmul.f32 %v508_v1, %v57_v3 }
  0x91   :  { %v51_v62 = vsub.f32 1.5, %v50_v60 }
  0x93   :  { %v52_v63 = vmul.f32 %v514_v56, %v51_v62 }
  0x95   :  { %v56_v4 = vsel %vm55_vm6, %v514_v56, %v52_v63 }
  0x96   :  { %v58_v6 = vmul.f32 %v56_v4, %v546_v2 }
  0x98   :  { %v64_v8 = vmul.f32 %v508_v1, %v58_v6 }
  0x9a   :  { %v505_v9 = vpack.c.bf16 %v64_v8, %v63_v7 }
  0x9c   :  { %506 = vst [vmem:[#allocation2] sm:$0xff] %v505_v9  }
  0xa3   :  { %v469_v10 = vld [vmem:[#allocation2] sm:$0xff] }
  0xa4   :  { %277 = vmatmul.bf16.vlgmr.msra.gmra.mxu0 %v469_v10  ;;  %291 = vmatmul.bf16.vlgmr.msra.gmra.mxu1 %v469_v10 }
  0xa5   :  { %305 = vmatmul.bf16.vlgmr.msra.gmra.mxu2 %v469_v10  ;;  %319 = vmatmul.bf16.vlgmr.msra.gmra.mxu3 %v469_v10 }
 0x121   :  { %v278_v11 = vpop.f32.mrf.mxu0  ;;  %v292_v5 = vpop.f32.mrf.mxu1 }
 0x122   :  { %325 = vst [vmem:[%s781_s3] sm:$0xff] %v278_v11 }
 0x123   :  { %326 = vst [vmem:[%s781_s3 + $0x8] sm:$0xff] %v292_v5 }
 0x128   :  { %v306_v0 = vpop.f32.mrf.mxu2  ;;  %v320_v2 = vpop.f32.mrf.mxu3 }
 0x129   :  { %327 = vst [vmem:[%s781_s3 + $0x10] sm:$0xff] %v306_v0  ;;  %v280_v12 = vpop.f32.mrf.mxu0  ;;  %v294_v13 = vpop.f32.mrf.mxu1 }
 0x12a   :  { %328 = vst [vmem:[%s781_s3 + $0x18] sm:$0xff] %v320_v2 }
 0x12b   :  { %329 = vst [vmem:[%s781_s3 + $0x20] sm:$0xff] %v280_v12 }
 0x12c   :  { %330 = vst [vmem:[%s781_s3 + $0x28] sm:$0xff] %v294_v13 }
 0x130   :  { %v308_v14 = vpop.f32.mrf.mxu2  ;;  %v322_v15 = vpop.f32.mrf.mxu3 }
 0x131   :  { %331 = vst [vmem:[%s781_s3 + $0x30] sm:$0xff] %v308_v14 }
 0x132   :  { %332 = vst [vmem:[%s781_s3 + $0x38] sm:$0xff] %v322_v15 }

// kernel: latent_language_forward.78
= control target key start
LH: loop header
LB: loop body
LE: loop exit
PB: predicated region body
PF: predicated region fallthrough
CT: control target
= control target key end

     0   :  { %8 = vsyncpa [#allocation4], 0  ;;  %s401_s0 = inlined_call_operand.vmem [shape: f32[8,256], index: 0, kind: input, shape index: {}]   ;;  %s402_s1 = inlined_call_operand.hbm [shape: bf16[256,128], index: 1, kind: input, shape index: {}]   ;;  %s403_s2 = inlined_call_operand.hbm [shape: f32[1,128], index: 2, kind: input, shape index: {}]   ;;  %s404_s3 = inlined_call_operand.vmem [shape: f32[8,128], index: 3, kind: output, shape index: {}]  }
   0x1   :  { %s16_s14 = sshll.u32 %s402_s1, 4  ;;  %s17_s14 = int_to_ptr.hbm [resolvable:$true] %s16_s14 }
   0x2   :  { %9 = vsyncpa [#allocation6], 0  ;;  %s362_s15 = smov [#allocation3]   ;;  %s30_s19 = sshll.u32 %s403_s2, 4  ;;  %s31_s19 = int_to_ptr.hbm [resolvable:$true] %s30_s19 }
   0x3   :  { %s18_s16 = sshll.u32 %s362_s15, 4  ;;  %s363_s20 = smov 64   ;;  %s19_s16 = int_to_ptr.vmem [resolvable:$true] %s18_s16 }
   0x4   :  { %s364_s21 = smov 4   ;;  %s365_s22 = smov [#allocation5]  }
   0x5   :  { %24 = dma.hbm_to_vmem [thread:$0]  %s17_s14, 2048, %s19_s16, [#allocation4], %s363_s20, %s363_s20, %s364_s21  }
   0x6   :  { %s32_s23 = sshll.u32 %s365_s22, 4  ;;  %s33_s23 = int_to_ptr.vmem [resolvable:$true] %s32_s23 }
   0x7   :  { %35 = dma.hbm_to_vmem [thread:$0]  %s31_s19, 16, %s33_s23, [#allocation6]  }
   0x8   :  { %358 = dma.done.wait [#allocation4], 2048  }
   0x9   :  { %359 = vsyncadd [#allocation4], 4294965248 }
   0xa   :  { %360 = dma.done.wait [#allocation6], 16  }
   0xb   :  { %361 = vsyncadd [#allocation6], 4294967280  ;;  %v296_v0 = vld [vmem:[#allocation3 + $0x38] sm:$0xff]  ;;  %v295_v2 = vld [vmem:[#allocation3 + $0x30] sm:$0xff] }
   0xc   :  { %v304_v1 = vld [vmem:[#allocation3 + $0x78] sm:$0xff]  ;;  %186 = vmatpush.bf16.msra.mxu0 %v296_v0  ;;  %v303_v3 = vld [vmem:[#allocation3 + $0x70] sm:$0xff]  ;;  %v294_v4 = vld [vmem:[#allocation3 + $0x28] sm:$0xff] }
   0xd   :  { %199 = vmatpush.bf16.msra.mxu1 %v304_v1  ;;  %v302_v5 = vld [vmem:[#allocation3 + $0x68] sm:$0xff]  ;;  %v293_v6 = vld [vmem:[#allocation3 + $0x20] sm:$0xff]  ;;  %v292_v8 = vld [vmem:[#allocation3 + $0x18] sm:$0xff] }
   0xe   :  { %v301_v7 = vld [vmem:[#allocation3 + $0x60] sm:$0xff]  ;;  %v300_v9 = vld [vmem:[#allocation3 + $0x58] sm:$0xff]  ;;  %v291_v10 = vld [vmem:[#allocation3 + $0x10] sm:$0xff] }
   0xf   :  { %v299_v11 = vld [vmem:[#allocation3 + $0x50] sm:$0xff]  ;;  %v290_v12 = vld [vmem:[#allocation3 + $0x8] sm:$0xff]  ;;  %v289_v14 = vld [vmem:[#allocation3] sm:$0xff] }
  0x10   :  { %187 = vmatpush.bf16.msra.mxu0 %v295_v2  ;;  %v298_v13 = vld [vmem:[#allocation3 + $0x48] sm:$0xff]  ;;  %v297_v15 = vld [vmem:[#allocation3 + $0x40] sm:$0xff] }
  0x11   :  { %200 = vmatpush.bf16.msra.mxu1 %v303_v3  ;;  %v54_v16 = vld [vmem:[%s401_s0] sm:$0xff]  ;;  %v55_v17 = vld [vmem:[%s401_s0 + $0x8] sm:$0xff] }
  0x12   :  { %v56_v18 = vpack.c.bf16 %v54_v16, %v54_v16  ;;  %v57_v19 = vpack.c.bf16 %v55_v17, %v55_v17  ;;  %v309_v20 = vld [vmem:[#allocation5] ss:$0 sm:$0xff] }
  0x14   :  { %188 = vmatpush.bf16.msra.mxu0 %v294_v4 }
  0x15   :  { %201 = vmatpush.bf16.msra.mxu1 %v302_v5 }
  0x18   :  { %189 = vmatpush.bf16.msra.mxu0 %v293_v6 }
  0x19   :  { %202 = vmatpush.bf16.msra.mxu1 %v301_v7 }
  0x1c   :  { %190 = vmatpush.bf16.msra.mxu0 %v292_v8 }
  0x1d   :  { %203 = vmatpush.bf16.msra.mxu1 %v300_v9 }
  0x20   :  { %191 = vmatpush.bf16.msra.mxu0 %v291_v10 }
  0x21   :  { %204 = vmatpush.bf16.msra.mxu1 %v299_v11 }
  0x24   :  { %192 = vmatpush.bf16.msra.mxu0 %v290_v12 }
  0x25   :  { %205 = vmatpush.bf16.msra.mxu1 %v298_v13 }
  0x28   :  { %193 = vmatpush.bf16.msra.mxu0 %v289_v14 }
  0x29   :  { %206 = vmatpush.bf16.msra.mxu1 %v297_v15 }
  0x2b   :  { %194 = vmatmul.bf16.vlgmr.msra.gmra.mxu0 %v56_v18 }
  0x2c   :  { %207 = vmatmul.bf16.vlgmr.msra.gmra.mxu1 %v57_v19 }
  0xa8   :  { %v195_v21 = vpop.f32.mrf.mxu0 }
  0xa9   :  { %v208_v22 = vpop.f32.mrf.mxu1 }
  0xaa   :  { %v209_v23 = vadd.f32 %v208_v22, %v195_v21 }
  0xac   :  { %v212_v24 = vadd.f32 %v309_v20, %v209_v23 }
  0xae   :  { %218 = vst [vmem:[%s404_s3] sm:$0xff] %v212_v24 }
  0xb0   :  { %v197_v25 = vpop.f32.mrf.mxu0 }
  0xb1   :  { %v210_v26 = vpop.f32.mrf.mxu1 }
  0xb2   :  { %223 = vsyncpa [#allocation4], 1 }
  0xb3   :  { %224 = vsyncpa [#allocation6], 1 }

// kernel: latent_language_forward.79
= control target key start
LH: loop header
LB: loop body
LE: loop exit
PB: predicated region body
PF: predicated region fallthrough
CT: control target
= control target key end

     0   :  { %v468_v9 = vmov 128.0   ;;  %s713_s0 = inlined_call_operand.vmem [shape: f32[8,128], index: 0, kind: input, shape index: {}]   ;;  %s714_s1 = inlined_call_operand.vmem [shape: f32[1,128], index: 1, kind: input, shape index: {}]   ;;  %s715_s2 = inlined_call_operand.vmem [shape: bf16[128,512], index: 2, kind: input, shape index: {}]   ;;  %s716_s3 = inlined_call_operand.vmem [shape: f32[8,512], index: 3, kind: output, shape index: {}]  }
   0x1   :  { %v492_v0 = vld [vmem:[%s713_s0] sm:$0xff]  ;;  %v460_v3 = vld [vmem:[%s715_s2 + $0xec] sm:$0xf0]  ;;  %v418_v6 = vld [vmem:[%s715_s2 + $0xf0] sm:$0xf0]  ;;  %464 = vrcp.f32 %v468_v9 }
   0x2   :  { %v19_v1 = vmul.f32 %v492_v0, %v492_v0  ;;  %v416_v2 = vld [vmem:[%s715_s2 + $0xe0] sm:$0xf]  ;;  %v458_v4 = vld [vmem:[%s715_s2 + $0xe4] sm:$0xf]  ;;  %v424_v7 = vld [vmem:[%s715_s2 + $0xe8] sm:$0xf] }
   0x3   :  { %v417_v5 = vor.u32 %v460_v3, %v416_v2  ;;  %v461_v8 = vld [vmem:[%s715_s2 + $0xf4] sm:$0xf0]  ;;  %v421_v10 = vor.u32 %v458_v4, %v418_v6  ;;  %v459_v12 = vld [vmem:[%s715_s2 + $0xec] sm:$0xf]  ;;  %v426_v13 = vld [vmem:[%s715_s2 + $0xf8] sm:$0xf0] }
   0x4   :  { %20 = vadd.xlane.f32.xlu0 %v19_v1  ;;  %v425_v11 = vor.u32 %v461_v8, %v424_v7  ;;  %v429_v14 = vor.u32 %v459_v12, %v426_v13  ;;  %v400_v15 = vld [vmem:[%s715_s2 + $0xc0] sm:$0xf]  ;;  %v456_v16 = vld [vmem:[%s715_s2 + $0xcc] sm:$0xf0]  ;;  %v454_v17 = vld [vmem:[%s715_s2 + $0xc4] sm:$0xf] }
   0x5   :  { %242 = vmatpush.bf16.msra.mxu0 %v417_v5  ;;  %255 = vmatpush.bf16.msra.mxu1 %v421_v10  ;;  %v401_v18 = vor.u32 %v456_v16, %v400_v15  ;;  %v402_v19 = vld [vmem:[%s715_s2 + $0xd0] sm:$0xf0]  ;;  %v408_v20 = vld [vmem:[%s715_s2 + $0xc8] sm:$0xf]  ;;  %v457_v21 = vld [vmem:[%s715_s2 + $0xd4] sm:$0xf0] }
   0x6   :  { %268 = vmatpush.bf16.msra.mxu2 %v425_v11  ;;  %281 = vmatpush.bf16.msra.mxu3 %v429_v14  ;;  %v405_v22 = vor.u32 %v454_v17, %v402_v19  ;;  %v409_v23 = vor.u32 %v457_v21, %v408_v20  ;;  %v455_v24 = vld [vmem:[%s715_s2 + $0xcc] sm:$0xf]  ;;  %v410_v25 = vld [vmem:[%s715_s2 + $0xd8] sm:$0xf0]  ;;  %v384_v28 = vld [vmem:[%s715_s2 + $0xa0] sm:$0xf] }
   0x7   :  { %v413_v26 = vor.u32 %v455_v24, %v410_v25  ;;  %v544_v27 = vpop.eup %464  ;;  %v452_v29 = vld [vmem:[%s715_s2 + $0xac] sm:$0xf0]  ;;  %v450_v30 = vld [vmem:[%s715_s2 + $0xa4] sm:$0xf]  ;;  %v386_v32 = vld [vmem:[%s715_s2 + $0xb0] sm:$0xf0] }
   0x8   :  { %v385_v31 = vor.u32 %v452_v29, %v384_v28  ;;  %v392_v33 = vld [vmem:[%s715_s2 + $0xa8] sm:$0xf]  ;;  %v453_v34 = vld [vmem:[%s715_s2 + $0xb4] sm:$0xf0]  ;;  %v389_v35 = vor.u32 %v450_v30, %v386_v32  ;;  %v451_v37 = vld [vmem:[%s715_s2 + $0xac] sm:$0xf]  ;;  %vm27_vm0 = vweird.f32 %v544_v27 }
   0x9   :  { %243 = vmatpush.bf16.msra.mxu0 %v401_v18  ;;  %256 = vmatpush.bf16.msra.mxu1 %v405_v22  ;;  %v393_v36 = vor.u32 %v453_v34, %v392_v33  ;;  %v394_v38 = vld [vmem:[%s715_s2 + $0xb8] sm:$0xf0]  ;;  %v23_v39 = vmul.f32 128.0, %v544_v27  ;;  %v368_v41 = vld [vmem:[%s715_s2 + $0x80] sm:$0xf] }
   0xa   :  { %269 = vmatpush.bf16.msra.mxu2 %v409_v23  ;;  %282 = vmatpush.bf16.msra.mxu3 %v413_v26  ;;  %v397_v40 = vor.u32 %v451_v37, %v394_v38  ;;  %v448_v42 = vld [vmem:[%s715_s2 + $0x8c] sm:$0xf0]  ;;  %v446_v43 = vld [vmem:[%s715_s2 + $0x84] sm:$0xf]  ;;  %v370_v45 = vld [vmem:[%s715_s2 + $0x90] sm:$0xf0] }
   0xb   :  { %v369_v44 = vor.u32 %v448_v42, %v368_v41  ;;  %v376_v46 = vld [vmem:[%s715_s2 + $0x88] sm:$0xf]  ;;  %v449_v47 = vld [vmem:[%s715_s2 + $0x94] sm:$0xf0]  ;;  %v373_v48 = vor.u32 %v446_v43, %v370_v45  ;;  %v447_v50 = vld [vmem:[%s715_s2 + $0x8c] sm:$0xf] }
   0xc   :  { %v377_v49 = vor.u32 %v449_v47, %v376_v46  ;;  %v378_v51 = vld [vmem:[%s715_s2 + $0x98] sm:$0xf0]  ;;  %v24_v52 = vsub.f32 1.0, %v23_v39  ;;  %v352_v54 = vld [vmem:[%s715_s2 + $0x60] sm:$0xf] }
   0xd   :  { %244 = vmatpush.bf16.msra.mxu0 %v385_v31  ;;  %257 = vmatpush.bf16.msra.mxu1 %v389_v35  ;;  %v381_v53 = vor.u32 %v447_v50, %v378_v51  ;;  %v444_v55 = vld [vmem:[%s715_s2 + $0x6c] sm:$0xf0]  ;;  %v442_v56 = vld [vmem:[%s715_s2 + $0x64] sm:$0xf]  ;;  %v354_v58 = vld [vmem:[%s715_s2 + $0x70] sm:$0xf0] }
   0xe   :  { %270 = vmatpush.bf16.msra.mxu2 %v393_v36  ;;  %283 = vmatpush.bf16.msra.mxu3 %v397_v40  ;;  %v353_v57 = vor.u32 %v444_v55, %v352_v54  ;;  %v360_v59 = vld [vmem:[%s715_s2 + $0x68] sm:$0xf]  ;;  %v445_v60 = vld [vmem:[%s715_s2 + $0x74] sm:$0xf0]  ;;  %v357_v61 = vor.u32 %v442_v56, %v354_v58  ;;  %v443_v63 = vld [vmem:[%s715_s2 + $0x6c] sm:$0xf]  ;;  %v25_v2 = vmul.f32 %v544_v27, %v24_v52 }
   0xf   :  { %v361_v62 = vor.u32 %v445_v60, %v360_v59  ;;  %v362_v1 = vld [vmem:[%s715_s2 + $0x78] sm:$0xf0]  ;;  %v336_v4 = vld [vmem:[%s715_s2 + $0x40] sm:$0xf]  ;;  %v440_v5 = vld [vmem:[%s715_s2 + $0x4c] sm:$0xf0] }
  0x10   :  { %v365_v3 = vor.u32 %v443_v63, %v362_v1  ;;  %v337_v6 = vor.u32 %v440_v5, %v336_v4  ;;  %v438_v7 = vld [vmem:[%s715_s2 + $0x44] sm:$0xf]  ;;  %v338_v8 = vld [vmem:[%s715_s2 + $0x50] sm:$0xf0]  ;;  %v344_v9 = vld [vmem:[%s715_s2 + $0x48] sm:$0xf]  ;;  %v26_v14 = vadd.f32 %v544_v27, %v25_v2 }
  0x11   :  { %245 = vmatpush.bf16.msra.mxu0 %v369_v44  ;;  %258 = vmatpush.bf16.msra.mxu1 %v373_v48  ;;  %v341_v10 = vor.u32 %v438_v7, %v338_v8  ;;  %v441_v11 = vld [vmem:[%s715_s2 + $0x54] sm:$0xf0]  ;;  %v439_v12 = vld [vmem:[%s715_s2 + $0x4c] sm:$0xf]  ;;  %v346_v13 = vld [vmem:[%s715_s2 + $0x58] sm:$0xf0] }
  0x12   :  { %271 = vmatpush.bf16.msra.mxu2 %v377_v49  ;;  %284 = vmatpush.bf16.msra.mxu3 %v381_v53  ;;  %v345_v15 = vor.u32 %v441_v11, %v344_v9  ;;  %v349_v16 = vor.u32 %v439_v12, %v346_v13  ;;  %v320_v17 = vld [vmem:[%s715_s2 + $0x20] sm:$0xf]  ;;  %v436_v18 = vld [vmem:[%s715_s2 + $0x2c] sm:$0xf0]  ;;  %v434_v19 = vld [vmem:[%s715_s2 + $0x24] sm:$0xf]  ;;  %v28_v30 = vsel %vm27_vm0, %v544_v27, %v26_v14 }
  0x13   :  { %v321_v20 = vor.u32 %v436_v18, %v320_v17  ;;  %v322_v21 = vld [vmem:[%s715_s2 + $0x30] sm:$0xf0]  ;;  %v328_v22 = vld [vmem:[%s715_s2 + $0x28] sm:$0xf]  ;;  %v437_v23 = vld [vmem:[%s715_s2 + $0x34] sm:$0xf0] }
  0x14   :  { %v325_v24 = vor.u32 %v434_v19, %v322_v21  ;;  %v329_v25 = vor.u32 %v437_v23, %v328_v22  ;;  %v435_v26 = vld [vmem:[%s715_s2 + $0x2c] sm:$0xf]  ;;  %v330_v28 = vld [vmem:[%s715_s2 + $0x38] sm:$0xf0]  ;;  %v304_v29 = vld [vmem:[%s715_s2] sm:$0xf] }
  0x15   :  { %246 = vmatpush.bf16.msra.mxu0 %v353_v57  ;;  %259 = vmatpush.bf16.msra.mxu1 %v357_v61  ;;  %v333_v31 = vor.u32 %v435_v26, %v330_v28  ;;  %v432_v32 = vld [vmem:[%s715_s2 + $0xc] sm:$0xf0]  ;;  %v430_v33 = vld [vmem:[%s715_s2 + $0x4] sm:$0xf]  ;;  %v306_v34 = vld [vmem:[%s715_s2 + $0x10] sm:$0xf0] }
  0x16   :  { %272 = vmatpush.bf16.msra.mxu2 %v361_v62  ;;  %285 = vmatpush.bf16.msra.mxu3 %v365_v3  ;;  %v305_v35 = vor.u32 %v432_v32, %v304_v29  ;;  %v309_v36 = vor.u32 %v430_v33, %v306_v34  ;;  %v312_v27 = vld [vmem:[%s715_s2 + $0x8] sm:$0xf]  ;;  %v433_v37 = vld [vmem:[%s715_s2 + $0x14] sm:$0xf0]  ;;  %v431_v38 = vld [vmem:[%s715_s2 + $0xc] sm:$0xf] }
  0x17   :  { %v313_v40 = vor.u32 %v433_v37, %v312_v27  ;;  %v314_v41 = vld [vmem:[%s715_s2 + $0x18] sm:$0xf0]  ;;  %v463_v51 = vld [vmem:[%s714_s1] ss:$0 sm:$0xff] }
  0x18   :  { %v317_v43 = vor.u32 %v431_v38, %v314_v41 }
  0x19   :  { %247 = vmatpush.bf16.msra.mxu0 %v337_v6  ;;  %260 = vmatpush.bf16.msra.mxu1 %v341_v10 }
  0x1a   :  { %273 = vmatpush.bf16.msra.mxu2 %v345_v15  ;;  %286 = vmatpush.bf16.msra.mxu3 %v349_v16 }
  0x1d   :  { %248 = vmatpush.bf16.msra.mxu0 %v321_v20  ;;  %261 = vmatpush.bf16.msra.mxu1 %v325_v24 }
  0x1e   :  { %274 = vmatpush.bf16.msra.mxu2 %v329_v25  ;;  %287 = vmatpush.bf16.msra.mxu3 %v333_v31 }
  0x21   :  { %249 = vmatpush.bf16.msra.mxu0 %v305_v35  ;;  %262 = vmatpush.bf16.msra.mxu1 %v309_v36 }
  0x22   :  { %275 = vmatpush.bf16.msra.mxu2 %v313_v40  ;;  %288 = vmatpush.bf16.msra.mxu3 %v317_v43 }
  0x77   :  { %v21_v39 = vpop.xlane.xlu0 %20 }
  0x78   :  { %v29_v42 = vmul.f32 %v28_v30, %v21_v39 }
  0x7a   :  { %v30_v44 = vadd.f32 1e-05, %v29_v42 }
  0x7c   :  { %466 = vrsqrt.f32 %v30_v44  ;;  %vm37_vm2 = vweird.f32 %v30_v44 }
  0x82   :  { %v467_v45 = vpop.eup %466 }
  0x83   :  { %v32_v46 = vmul.f32 %v467_v45, %v30_v44  ;;  %vm38_vm1 = vweird.f32 %v467_v45 }
  0x84   :  { %vm39_vm3 = vmor %vm37_vm2, %vm38_vm1 }
  0x85   :  { %v33_v47 = vmul.f32 %v467_v45, %v32_v46 }
  0x87   :  { %v34_v48 = vmul.f32 0.5, %v33_v47 }
  0x89   :  { %v35_v49 = vsub.f32 1.5, %v34_v48 }
  0x8b   :  { %v36_v50 = vmul.f32 %v467_v45, %v35_v49 }
  0x8d   :  { %v40_v52 = vsel %vm39_vm3, %v467_v45, %v36_v50 }
  0x8e   :  { %v41_v53 = vmul.f32 %v40_v52, %v492_v0 }
  0x90   :  { %v46_v54 = vmul.f32 %v463_v51, %v41_v53 }
  0x92   :  { %v47_v55 = vpack.c.bf16 %v46_v54, %v46_v54 }
  0x94   :  { %48 = vst [vmem:[#allocation2] sm:$0xf] %v47_v55 }
  0x9b   :  { %v49_v56 = vld [vmem:[#allocation2] sm:$0xf] }
  0x9c   :  { %250 = vmatmul.bf16.vlgmr.msra.gmra.mxu0 %v49_v56  ;;  %263 = vmatmul.bf16.vlgmr.msra.gmra.mxu1 %v49_v56 }
  0x9d   :  { %276 = vmatmul.bf16.vlgmr.msra.gmra.mxu2 %v49_v56  ;;  %289 = vmatmul.bf16.vlgmr.msra.gmra.mxu3 %v49_v56 }
 0x119   :  { %v251_v57 = vpop.f32.mrf.mxu0  ;;  %v264_v58 = vpop.f32.mrf.mxu1 }
 0x11a   :  { %294 = vst [vmem:[%s716_s3] sm:$0xff] %v251_v57 }
 0x11b   :  { %295 = vst [vmem:[%s716_s3 + $0x8] sm:$0xff] %v264_v58 }
 0x120   :  { %v277_v59 = vpop.f32.mrf.mxu2  ;;  %v290_v0 = vpop.f32.mrf.mxu3 }
 0x121   :  { %296 = vst [vmem:[%s716_s3 + $0x10] sm:$0xff] %v277_v59  ;;  %v253_v60 = vpop.f32.mrf.mxu0  ;;  %v266_v61 = vpop.f32.mrf.mxu1 }
 0x122   :  { %297 = vst [vmem:[%s716_s3 + $0x18] sm:$0xff] %v290_v0 }
 0x128   :  { %v279_v62 = vpop.f32.mrf.mxu2  ;;  %v292_v63 = vpop.f32.mrf.mxu3 }

// kernel: latent_language_forward.81
= control target key start
LH: loop header
LB: loop body
LE: loop exit
PB: predicated region body
PF: predicated region fallthrough
CT: control target
= control target key end

     0   :  { %8 = vsyncpa [#allocation4], 0  ;;  %s320_s15 = smov [#allocation3]   ;;  %s321_s17 = smov 64   ;;  %s358_s0 = inlined_call_operand.vmem [shape: f32[8,256], index: 0, kind: input, shape index: {}]   ;;  %s359_s1 = inlined_call_operand.hbm [shape: bf16[256,128], index: 1, kind: input, shape index: {}]   ;;  %s360_s2 = inlined_call_operand.vmem [shape: f32[1,128], index: 2, kind: input, shape index: {}]   ;;  %s361_s3 = inlined_call_operand.vmem [shape: f32[8,128], index: 3, kind: output, shape index: {}]  }
   0x1   :  { %s15_s14 = sshll.u32 %s359_s1, 4  ;;  %s17_s16 = sshll.u32 %s320_s15, 4  ;;  %s16_s14 = int_to_ptr.hbm [resolvable:$true] %s15_s14  ;;  %s18_s16 = int_to_ptr.vmem [resolvable:$true] %s17_s16 }
   0x2   :  { %s322_s18 = smov 4  }
   0x3   :  { %23 = dma.hbm_to_vmem [thread:$0]  %s16_s14, 2048, %s18_s16, [#allocation4], %s321_s17, %s321_s17, %s322_s18  }
   0x4   :  { %318 = dma.done.wait [#allocation4], 2048  }
   0x5   :  { %319 = vsyncadd [#allocation4], 4294965248  ;;  %v281_v0 = vld [vmem:[#allocation3 + $0x38] sm:$0xff]  ;;  %v280_v2 = vld [vmem:[#allocation3 + $0x30] sm:$0xff] }
   0x6   :  { %v289_v1 = vld [vmem:[#allocation3 + $0x78] sm:$0xff]  ;;  %172 = vmatpush.bf16.msra.mxu0 %v281_v0  ;;  %v288_v3 = vld [vmem:[#allocation3 + $0x70] sm:$0xff]  ;;  %v279_v4 = vld [vmem:[#allocation3 + $0x28] sm:$0xff] }
   0x7   :  { %185 = vmatpush.bf16.msra.mxu1 %v289_v1  ;;  %v287_v5 = vld [vmem:[#allocation3 + $0x68] sm:$0xff]  ;;  %v278_v6 = vld [vmem:[#allocation3 + $0x20] sm:$0xff]  ;;  %v277_v8 = vld [vmem:[#allocation3 + $0x18] sm:$0xff] }
   0x8   :  { %v286_v7 = vld [vmem:[#allocation3 + $0x60] sm:$0xff]  ;;  %v285_v9 = vld [vmem:[#allocation3 + $0x58] sm:$0xff]  ;;  %v276_v10 = vld [vmem:[#allocation3 + $0x10] sm:$0xff] }
   0x9   :  { %v284_v11 = vld [vmem:[#allocation3 + $0x50] sm:$0xff]  ;;  %v275_v12 = vld [vmem:[#allocation3 + $0x8] sm:$0xff]  ;;  %v274_v14 = vld [vmem:[#allocation3] sm:$0xff] }
   0xa   :  { %173 = vmatpush.bf16.msra.mxu0 %v280_v2  ;;  %v283_v13 = vld [vmem:[#allocation3 + $0x48] sm:$0xff]  ;;  %v282_v15 = vld [vmem:[#allocation3 + $0x40] sm:$0xff] }
   0xb   :  { %186 = vmatpush.bf16.msra.mxu1 %v288_v3  ;;  %v40_v16 = vld [vmem:[%s358_s0] sm:$0xff]  ;;  %v41_v17 = vld [vmem:[%s358_s0 + $0x8] sm:$0xff] }
   0xc   :  { %v42_v18 = vpack.c.bf16 %v40_v16, %v40_v16  ;;  %v43_v19 = vpack.c.bf16 %v41_v17, %v41_v17  ;;  %v293_v20 = vld [vmem:[%s360_s2] ss:$0 sm:$0xff] }
   0xe   :  { %174 = vmatpush.bf16.msra.mxu0 %v279_v4 }
   0xf   :  { %187 = vmatpush.bf16.msra.mxu1 %v287_v5 }
  0x12   :  { %175 = vmatpush.bf16.msra.mxu0 %v278_v6 }
  0x13   :  { %188 = vmatpush.bf16.msra.mxu1 %v286_v7 }
  0x16   :  { %176 = vmatpush.bf16.msra.mxu0 %v277_v8 }
  0x17   :  { %189 = vmatpush.bf16.msra.mxu1 %v285_v9 }
  0x1a   :  { %177 = vmatpush.bf16.msra.mxu0 %v276_v10 }
  0x1b   :  { %190 = vmatpush.bf16.msra.mxu1 %v284_v11 }
  0x1e   :  { %178 = vmatpush.bf16.msra.mxu0 %v275_v12 }
  0x1f   :  { %191 = vmatpush.bf16.msra.mxu1 %v283_v13 }
  0x22   :  { %179 = vmatpush.bf16.msra.mxu0 %v274_v14 }
  0x23   :  { %192 = vmatpush.bf16.msra.mxu1 %v282_v15 }
  0x25   :  { %180 = vmatmul.bf16.vlgmr.msra.gmra.mxu0 %v42_v18 }
  0x26   :  { %193 = vmatmul.bf16.vlgmr.msra.gmra.mxu1 %v43_v19 }
  0xa2   :  { %v181_v21 = vpop.f32.mrf.mxu0 }
  0xa3   :  { %v194_v22 = vpop.f32.mrf.mxu1 }
  0xa4   :  { %v195_v23 = vadd.f32 %v194_v22, %v181_v21 }
  0xa6   :  { %v198_v24 = vadd.f32 %v293_v20, %v195_v23 }
  0xa8   :  { %204 = vst [vmem:[%s361_s3] sm:$0xff] %v198_v24 }
  0xaa   :  { %v183_v25 = vpop.f32.mrf.mxu0 }
  0xab   :  { %v196_v26 = vpop.f32.mrf.mxu1 }
  0xac   :  { %209 = vsyncpa [#allocation4], 1 }

// kernel: latent_language_forward.80
= control target key start
LH: loop header
LB: loop body
LE: loop exit
PB: predicated region body
PF: predicated region fallthrough
CT: control target
= control target key end

     0   :  { %8 = vsyncpa [#allocation4], 0  ;;  %s710_s12 = smov 0   ;;  %s712_s13 = smov 0   ;;  %s759_s0 = inlined_call_operand.vmem [shape: f32[2,4,256], index: 0, kind: input, shape index: {}]   ;;  %s760_s1 = inlined_call_operand.hbm [shape: f32[4,256], index: 1, kind: input, shape index: {}]   ;;  %s761_s2 = inlined_call_operand.vmem [shape: f32[1,256], index: 2, kind: input, shape index: {}]   ;;  %s762_s3 = inlined_call_operand.vmem [shape: f32[2,4,256], index: 3, kind: output, shape index: {}]  }
   0x1   :  { %s714_s14 = smov 0  }
   0x2 LB: > { %s568_s15 = sadd.s32 4294967295, %s686_s14   ;;  %s33_s16 = sadd.s32 1, %s682_s13  ;;  %s686_s14 = sphi %s714_s14, %s14_s14   ;;  %s682_s13 = sphi %s712_s13, %s764_s13   ;;  %s678_s12 = sphi %s710_s12, %s763_s12  }
   0x3   : > { %p35_p0 = scmp.ge.s32.totalorder %s33_s16, 2  ;;  %p570_p1 = scmp.ge.s32.totalorder %s686_s14, 1 }
   0x4   : > { %p150_p2 = scmp.lt.s32.totalorder %s686_s14, 3  ;;  %p594_p4 = scmp.eq.s32.totalorder %s568_s15, 0 }
   0x5   : > { %s766_s16 = smov (%p35_p0, %s33_s16), 0  ;;  %s165_s19 = sshll.u32 %s760_s1, 4  ;;  %s166_s19 = int_to_ptr.hbm [resolvable:$true] %s165_s19 }
   0x6   : > { %p151_p3 = pnand %p570_p1, %p150_p2  ;;  %s688_s20 = smov [#allocation3]  }
   0x7   : > { %s167_s21 = sshll.u32 %s688_s20, 4  ;;  %s168_s21 = int_to_ptr.vmem [resolvable:$true] %s167_s21 }
   0x8   : > { %p590_p5 = pneg %p151_p3  ;;  %205 = sbr.rel (%p151_p3) target bundleno = 87 (0x57), region = 32 }
   0xa   : > { %p591_p6 = pnand %p594_p4, %p590_p5 }
   0xc   : > { %593 = dma.hbm_to_vmem [thread:$0]  (!%p591_p6), %s166_s19, 128, %s168_s21, [#allocation4]  }
   0xd   : > { %673 = dma.done.wait (%p594_p4), [#allocation4], 128  }
   0xe   : > { %675 = vsyncadd (%p594_p4), [#allocation4], 4294967168  ;;  %p251_p7 = scmp.lt.s32.totalorder %s678_s12, 1  ;;  %v689_v0 = vmov 0.0   ;;  %vm305_vm0 = vcmask 1042432   ;;  %vm418_vm9 = vcmask 1043456  }
   0xf   : > { %288 = vst [vmem:[#allocation2] sm:$0x77] %v689_v0  ;;  %v314_v5 = vld [vmem:[#allocation3] ss:$4 sm:$0x3] }
  0x10   : > { %s768_s12 = smov (!%p251_p7, %s678_s12), 1  ;;  %v325_v6 = vld [vmem:[#allocation3 + $0x1] ss:$4 sm:$0x3]  ;;  %v308_v8 = vld [vmem:[%s761_s2] sm:$0x3] }
  0x11   : > { %s584_s22 = sshll.u32 %s768_s12, 3  ;;  %v342_v7 = vld [vmem:[#allocation3 + $0x2] ss:$4 sm:$0x3]  ;;  %v316_v9 = vperm.slane %v314_v5, 0  ;;  %v327_v10 = vperm.slane %v325_v6, 0 }
  0x12   : > { %s262_s25 = scalar_lea.vmem %s759_s0, %s584_s22  ;;  %v344_v11 = vperm.slane %v342_v7, 0  ;;  %v317_v12 = vperm.slane %v314_v5, 1  ;;  %v359_v13 = vld [vmem:[#allocation3 + $0x3] ss:$4 sm:$0x3]  ;;  %v328_v18 = vperm.slane %v325_v6, 1  ;;  %s282_s30 = scalar_lea.vmem %s762_s3, %s584_s22 }
  0x13   : > { %v289_v2 = vld [vmem:[%s262_s25] sm:$0xff]  ;;  %v345_v19 = vperm.slane %v342_v7, 1  ;;  %v310_v20 = vperm.slane %v308_v8, 0  ;;  %v311_v21 = vperm.slane %v308_v8, 1  ;;  %v361_v22 = vperm.slane %v359_v13, 0 }
  0x14   : > { %v362_v25 = vperm.slane %v359_v13, 1 }
  0x16   : > { %v290_v1 = vld [vmem:[#allocation2] sm:$0x77] }
  0x17   : > { %292 = vst [vmem:[#allocation1] ss:$2 sm:$0xff] %v290_v1 }
  0x1e   : > { %v293_v3 = vld.sshfl [vmem:[#allocation1] sm:$0xff pattern:$0x75316420]  ;;  %v294_v4 = vld.sshfl [vmem:[#allocation1 + $0x8] sm:$0xff pattern:$0x75316420] }
  0x1f   : > { %298 = vst [vmem:[#allocation1] ss:$2 sm:$0xff] %v289_v2 }
  0x26   : > { %v299_v14 = vld.sshfl [vmem:[#allocation1] sm:$0xff pattern:$0x75316420]  ;;  %v300_v15 = vld.sshfl [vmem:[#allocation1 + $0x8] sm:$0xff pattern:$0x75316420] }
  0x27   : > { %v301_v16 = vrot.slane %v299_v14, 5  ;;  %v302_v17 = vrot.slane %v300_v15, 5 }
  0x29   : > { %v306_v23 = vsel %vm305_vm0, %v293_v3, %v301_v16  ;;  %v307_v24 = vsel %vm305_vm0, %v294_v4, %v302_v17 }
  0x2a   : > { %v320_v26 = vmul.f32 %v316_v9, %v306_v23  ;;  %v331_v27 = vmul.f32 %v327_v10, %v306_v23  ;;  %v348_v28 = vmul.f32 %v344_v11, %v306_v23  ;;  %424 = vst.sshfl [vmem:[#allocation1] sm:$0xff pattern:$0x75316420] %v306_v23  ;;  %v321_v29 = vmul.f32 %v317_v12, %v307_v24 }
  0x2b   : > { %v332_v30 = vmul.f32 %v328_v18, %v307_v24  ;;  %v349_v31 = vmul.f32 %v345_v19, %v307_v24  ;;  %425 = vst.sshfl [vmem:[#allocation1 + $0x8] sm:$0xff pattern:$0x75316420] %v307_v24  ;;  %v365_v35 = vmul.f32 %v361_v22, %v306_v23  ;;  %v366_v37 = vmul.f32 %v362_v25, %v307_v24 }
  0x2c   : > { %v322_v32 = vadd.f32 %v320_v26, %v310_v20  ;;  %v335_v33 = vrot.slane %v331_v27, 1  ;;  %v323_v34 = vadd.f32 %v321_v29, %v311_v21  ;;  %v352_v39 = vrot.slane %v348_v28, 2 }
  0x2d   : > { %v336_v36 = vrot.slane %v332_v30, 1  ;;  %v353_v40 = vrot.slane %v349_v31, 2  ;;  %v369_v43 = vrot.slane %v365_v35, 3  ;;  %v370_v45 = vrot.slane %v366_v37, 3 }
  0x2e   : > { %v339_v38 = vadd.f32 %v335_v33, %v322_v32 }
  0x2f   : > { %v340_v41 = vadd.f32 %v336_v36, %v323_v34 }
  0x30   : > { %v356_v42 = vadd.f32 %v352_v39, %v339_v38 }
  0x31   : > { %v357_v44 = vadd.f32 %v353_v40, %v340_v41 }
  0x32   : > { %v427_v46 = vld [vmem:[#allocation1 + $0x1] ss:$2 sm:$0xff]  ;;  %v373_v47 = vadd.f32 %v369_v43, %v356_v42 }
  0x33   : > { %429 = vst [vmem:[#allocation2] sm:$0x77] %v427_v46  ;;  %v374_v48 = vadd.f32 %v370_v45, %v357_v44 }
  0x34   : > { %v580_v49 = vmul.f32 -1.442695, %v373_v47 }
  0x35   : > { %v581_v50 = vmul.f32 -1.442695, %v374_v48 }
  0x36   : > { %622 = vpow2.f32 %v580_v49 }
  0x37   : > { %624 = vpow2.f32 %v581_v50 }
  0x3c   : > { %v623_v51 = vpop.eup %622 }
  0x3d   : > { %v625_v52 = vpop.eup %624  ;;  %v381_v53 = vadd.f32 1.0, %v623_v51 }
  0x3e   : > { %v382_v54 = vadd.f32 1.0, %v625_v52 }
  0x3f   : > { %626 = vrcp.f32 %v381_v53  ;;  %v394_v62 = vand.u32 2147483648, %v381_v53  ;;  %v392_v0 = vand.u32 2147483647, %v381_v53  ;;  %vm388_vm3 = vweird.f32 %v381_v53 }
  0x40   : > { %628 = vrcp.f32 %v382_v54  ;;  %v409_v63 = vand.u32 2147483648, %v382_v54  ;;  %v407_v2 = vand.u32 2147483647, %v382_v54  ;;  %vm403_vm5 = vweird.f32 %v382_v54 }
  0x41   : > { %v395_v6 = vor.u32 1.1754944e-38, %v394_v62  ;;  %vm393_vm7 = vcmp.eq.f32.partialorder %v392_v0, 8.507059e+37 }
  0x42   : > { %v410_v7 = vor.u32 1.1754944e-38, %v409_v63  ;;  %vm408_vm8 = vcmp.eq.f32.partialorder %v407_v2, 8.507059e+37 }
  0x45   : > { %v627_v55 = vpop.eup %626 }
  0x46   : > { %v629_v56 = vpop.eup %628  ;;  %v384_v57 = vmul.f32 %v627_v55, %v381_v53  ;;  %vm389_vm1 = vweird.f32 %v627_v55 }
  0x47   : > { %v399_v58 = vmul.f32 %v629_v56, %v382_v54  ;;  %vm404_vm2 = vweird.f32 %v629_v56  ;;  %vm390_vm4 = vmor %vm388_vm3, %vm389_vm1 }
  0x48   : > { %v385_v59 = vsub.f32 1.0, %v384_v57  ;;  %vm405_vm6 = vmor %vm403_vm5, %vm404_vm2 }
  0x49   : > { %v400_v60 = vsub.f32 1.0, %v399_v58 }
  0x4a   : > { %v386_v61 = vmul.f32 %v627_v55, %v385_v59 }
  0x4b   : > { %v401_v1 = vmul.f32 %v629_v56, %v400_v60 }
  0x4c   : > { %v387_v3 = vadd.f32 %v627_v55, %v386_v61 }
  0x4d   : > { %v402_v4 = vadd.f32 %v629_v56, %v401_v1 }
  0x4e   : > { %v391_v5 = vsel %vm390_vm4, %v627_v55, %v387_v3 }
  0x4f   : > { %v406_v8 = vsel %vm405_vm6, %v629_v56, %v402_v4  ;;  %v396_v9 = vsel %vm393_vm7, %v395_v6, %v391_v5 }
  0x50   : > { %v411_v10 = vsel %vm408_vm8, %v410_v7, %v406_v8  ;;  %v413_v12 = vmul.f32 %v396_v9, %v373_v47 }
  0x51   : > { %v414_v11 = vmul.f32 %v411_v10, %v374_v48 }
  0x53   : > { %v417_v13 = vrot.slane %v414_v11, 4 }
  0x55   : > { %v419_v14 = vsel %vm418_vm9, %v413_v12, %v417_v13 }
  0x56   : > { %421 = vst [vmem:[%s282_s30] sm:$0xff] %v419_v14 }
  0x57 PF: > { %s14_s14 = sadd.s32 1, %s686_s14   ;;  %s763_s12 = smov %s682_s13 }
  0x58   : > { %p11_p8 = scmp.ge.s32.totalorder %s14_s14, 4   ;;  %s764_s13 = smov %s766_s16 }
  0x5a   :  { %13 = sbr.rel (!%p11_p8) target bundleno = 2 (0x2), region = 79 }
  0x5f   :  { %468 = vsyncpa [#allocation4], 1 }
  0x60   :  { %470 = vsyncpa [#allocation4 + $0x1], 1 }

// kernel: latent_language_forward.83
= control target key start
LH: loop header
LB: loop body
LE: loop exit
PB: predicated region body
PF: predicated region fallthrough
CT: control target
= control target key end

     0   :  { %s354_s1 = inlined_call_operand.vmem [shape: bf16[256,128], index: 1, kind: input, shape index: {}]   ;;  %s355_s0 = inlined_call_operand.vmem [shape: f32[8,256], index: 0, kind: input, shape index: {}]   ;;  %s356_s2 = inlined_call_operand.vmem [shape: f32[1,128], index: 2, kind: input, shape index: {}]   ;;  %s357_s3 = inlined_call_operand.vmem [shape: f32[8,128], index: 3, kind: output, shape index: {}]  }
   0x1   :  { %v264_v0 = vld [vmem:[%s354_s1 + $0x38] sm:$0xff]  ;;  %v263_v2 = vld [vmem:[%s354_s1 + $0x30] sm:$0xff]  ;;  %v262_v4 = vld [vmem:[%s354_s1 + $0x28] sm:$0xff] }
   0x2   :  { %v272_v1 = vld [vmem:[%s354_s1 + $0x78] sm:$0xff]  ;;  %156 = vmatpush.bf16.msra.mxu0 %v264_v0  ;;  %v271_v3 = vld [vmem:[%s354_s1 + $0x70] sm:$0xff]  ;;  %v270_v5 = vld [vmem:[%s354_s1 + $0x68] sm:$0xff] }
   0x3   :  { %169 = vmatpush.bf16.msra.mxu1 %v272_v1  ;;  %v261_v6 = vld [vmem:[%s354_s1 + $0x20] sm:$0xff]  ;;  %v260_v8 = vld [vmem:[%s354_s1 + $0x18] sm:$0xff]  ;;  %v259_v10 = vld [vmem:[%s354_s1 + $0x10] sm:$0xff] }
   0x4   :  { %v269_v7 = vld [vmem:[%s354_s1 + $0x60] sm:$0xff]  ;;  %v268_v9 = vld [vmem:[%s354_s1 + $0x58] sm:$0xff]  ;;  %v267_v11 = vld [vmem:[%s354_s1 + $0x50] sm:$0xff] }
   0x5   :  { %v258_v12 = vld [vmem:[%s354_s1 + $0x8] sm:$0xff]  ;;  %v257_v14 = vld [vmem:[%s354_s1] sm:$0xff] }
   0x6   :  { %157 = vmatpush.bf16.msra.mxu0 %v263_v2  ;;  %v266_v13 = vld [vmem:[%s354_s1 + $0x48] sm:$0xff]  ;;  %v265_v15 = vld [vmem:[%s354_s1 + $0x40] sm:$0xff] }
   0x7   :  { %170 = vmatpush.bf16.msra.mxu1 %v271_v3  ;;  %v24_v16 = vld [vmem:[%s355_s0] sm:$0xff]  ;;  %v25_v17 = vld [vmem:[%s355_s0 + $0x8] sm:$0xff] }
   0x8   :  { %v26_v18 = vpack.c.bf16 %v24_v16, %v24_v16  ;;  %v27_v19 = vpack.c.bf16 %v25_v17, %v25_v17  ;;  %v273_v20 = vld [vmem:[%s356_s2] ss:$0 sm:$0xff] }
   0xa   :  { %158 = vmatpush.bf16.msra.mxu0 %v262_v4 }
   0xb   :  { %171 = vmatpush.bf16.msra.mxu1 %v270_v5 }
   0xe   :  { %159 = vmatpush.bf16.msra.mxu0 %v261_v6 }
   0xf   :  { %172 = vmatpush.bf16.msra.mxu1 %v269_v7 }
  0x12   :  { %160 = vmatpush.bf16.msra.mxu0 %v260_v8 }
  0x13   :  { %173 = vmatpush.bf16.msra.mxu1 %v268_v9 }
  0x16   :  { %161 = vmatpush.bf16.msra.mxu0 %v259_v10 }
  0x17   :  { %174 = vmatpush.bf16.msra.mxu1 %v267_v11 }
  0x1a   :  { %162 = vmatpush.bf16.msra.mxu0 %v258_v12 }
  0x1b   :  { %175 = vmatpush.bf16.msra.mxu1 %v266_v13 }
  0x1e   :  { %163 = vmatpush.bf16.msra.mxu0 %v257_v14 }
  0x1f   :  { %176 = vmatpush.bf16.msra.mxu1 %v265_v15 }
  0x21   :  { %164 = vmatmul.bf16.vlgmr.msra.gmra.mxu0 %v26_v18 }
  0x22   :  { %177 = vmatmul.bf16.vlgmr.msra.gmra.mxu1 %v27_v19 }
  0x9e   :  { %v165_v21 = vpop.f32.mrf.mxu0 }
  0x9f   :  { %v178_v22 = vpop.f32.mrf.mxu1 }
  0xa0   :  { %v179_v23 = vadd.f32 %v178_v22, %v165_v21 }
  0xa2   :  { %v182_v24 = vadd.f32 %v273_v20, %v179_v23 }
  0xa4   :  { %188 = vst [vmem:[%s357_s3] sm:$0xff] %v182_v24 }
  0xa6   :  { %v167_v25 = vpop.f32.mrf.mxu0 }
  0xa7   :  { %v180_v26 = vpop.f32.mrf.mxu1 }

// kernel: latent_language_forward.82
= control target key start
LH: loop header
LB: loop body
LE: loop exit
PB: predicated region body
PF: predicated region fallthrough
CT: control target
= control target key end

     0   :  { %14 = vsyncpa [#allocation4], 0  ;;  %s1377_s30 = smov 0   ;;  %s1379_s10 = smov 0   ;;  %s1483_s0 = inlined_call_operand.vmem [shape: f32[2,4,8], index: 0, kind: input, shape index: {}]   ;;  %s1484_s1 = inlined_call_operand.hbm [shape: bf16[8,256], index: 1, kind: input, shape index: {}]   ;;  %s1485_s2 = inlined_call_operand.vmem [shape: f32[1,256], index: 2, kind: input, shape index: {}]   ;;  %s1486_s3 = inlined_call_operand.vmem [shape: f32[2,1,8,4], index: 3, kind: input, shape index: {}]   ;;  %s1487_s4 = inlined_call_operand.vmem [shape: f32[2,1,8,4], index: 4, kind: input, shape index: {}]   ;;  %s1488_s5 = inlined_call_operand.vmem [shape: f32[2,4,256], index: 5, kind: input, shape index: {}]   ;;  %s1489_s6 = inlined_call_operand.vmem [shape: f32[2,4,256], index: 6, kind: input, shape index: {}]   ;;  %s1490_s7 = inlined_call_operand.vmem [shape: f32[8,256], index: 7, kind: input, shape index: {}]   ;;  %s1491_s8 = inlined_call_operand.vmem [shape: f32[1,256], index: 8, kind: input, shape index: {}]   ;;  %s1492_s9 = inlined_call_operand.vmem [shape: f32[2,4,256], index: 9, kind: output, shape index: {}]  }
   0x1   :  { %s1381_s11 = smov 0  }
   0x2 LB: > { %s1161_s12 = sadd.s32 4294967295, %s1320_s11   ;;  %s39_s13 = sadd.s32 1, %s1316_s10  ;;  %s1320_s11 = sphi %s1381_s11, %s20_s11   ;;  %s1316_s10 = sphi %s1379_s10, %s1496_s10   ;;  %s1312_s30 = sphi %s1377_s30, %s1495_s30  }
   0x3   : > { %p41_p0 = scmp.ge.s32.totalorder %s39_s13, 2  ;;  %p1163_p1 = scmp.ge.s32.totalorder %s1320_s11, 1 }
   0x4   : > { %p322_p2 = scmp.lt.s32.totalorder %s1320_s11, 3  ;;  %p1196_p4 = scmp.eq.s32.totalorder %s1161_s12, 0 }
   0x5   : > { %s1498_s13 = smov (%p41_p0, %s39_s13), 0  ;;  %s337_s16 = sshll.u32 %s1484_s1, 4  ;;  %s338_s16 = int_to_ptr.hbm [resolvable:$true] %s337_s16 }
   0x6   : > { %p323_p3 = pnand %p1163_p1, %p322_p2  ;;  %s1322_s17 = smov [#allocation3]  }
   0x7   : > { %s339_s18 = sshll.u32 %s1322_s17, 4  ;;  %s340_s18 = int_to_ptr.vmem [resolvable:$true] %s339_s18 }
   0x8   : > { %p1192_p5 = pneg %p323_p3  ;;  %441 = sbr.rel (%p323_p3) target bundleno = 230 (0xe6), region = 56 }
   0xa   : > { %p1193_p6 = pnand %p1196_p4, %p1192_p5 }
   0xc   : > { %1195 = dma.hbm_to_vmem [thread:$0]  (!%p1193_p6), %s338_s16, 128, %s340_s18, [#allocation4]  }
   0xd   : > { %1307 = dma.done.wait (%p1196_p4), [#allocation4], 128  }
   0xe   : > { %1309 = vsyncadd (%p1196_p4), [#allocation4], 4294967168  ;;  %p541_p7 = scmp.lt.s32.totalorder %s1312_s30, 1  ;;  %v1323_v0 = vmov 2   ;;  %v1324_v1 = vmov 0   ;;  %v633_v2 = vld [vmem:[#allocation3] sm:$0xff] }
   0xf   : > { %1229 = vset.pattern.permute.xlu1 %v1323_v0  ;;  %1227 = vset.pattern.permute.xlu0 %v1324_v1  ;;  %v647_v4 = vunpack.c.l.b16 %v633_v2  ;;  %v648_v5 = vunpack.c.h.b16 %v633_v2  ;;  %vm655_vm0 = vcmask 1043456   ;;  %vm651_vm1 = vcmask 64512   ;;  %v634_v18 = vld [vmem:[%s1485_s2] sm:$0x3]  ;;  %v629_v60 = vld [vmem:[%s1490_s7 + $0x8] sm:$0xff] }
  0x10   : > { %s1500_s30 = smov (!%p541_p7, %s1312_s30), 1  ;;  %1231 = vset.pattern.permute.xlu2 %v1324_v1  ;;  %v1325_v14 = vmov 3   ;;  %v1326_v15 = vmov 1   ;;  %v642_v21 = vperm.slane %v634_v18, 0  ;;  %v643_v22 = vperm.slane %v634_v18, 1  ;;  %v628_v57 = vld [vmem:[%s1490_s7] sm:$0xff] }
  0x11   : > { %s1171_s19 = sshll.u32 %s1500_s30, 2  ;;  %s1399_s20 = sshll.u32 %s1500_s30, 3  ;;  %v649_v8 = vpack.c.b16 %v647_v4, %v647_v4  ;;  %v650_v9 = vpack.c.b16 %v648_v5, %v648_v5  ;;  %vm868_vm6 = vcmask 1040384   ;;  %vm871_vm7 = vcmask 1041408  }
  0x12   : > { %s580_s23 = scalar_lea.vmem %s1488_s5, %s1399_s20  ;;  %s547_s26 = scalar_lea.vmem %s1483_s0, %s1171_s19  ;;  %vm874_vm8 = vcmask 1042432  }
  0x13   : > { %v637_v3 = vld [vmem:[%s580_s23] sm:$0xff]  ;;  %s560_s29 = scalar_lea.vmem %s1486_s3, %s1399_s20  ;;  %s567_s14 = scalar_lea.vmem %s1487_s4, %s1399_s20  ;;  %v657_v11 = vsel %vm655_vm0, %v649_v8, 0  ;;  %v660_v12 = vsel %vm655_vm0, %v650_v9, 0 }
  0x14   : > { %707 = vst [vmem:[#allocation1] ss:$2 sm:$0xff] %v637_v3  ;;  %v639_v6 = vld [vmem:[%s547_s26] sm:$0xf]  ;;  %669 = vmatpush.bf16.msra.mxu0 %v657_v11  ;;  %682 = vmatpush.bf16.msra.mxu1 %v660_v12  ;;  %s594_s17 = scalar_lea.vmem %s1489_s6, %s1399_s20 }
  0x15   : > { %v631_v7 = vld [vmem:[%s560_s29] sm:$0xff]  ;;  %v640_v13 = vpack.c.bf16 %v639_v6, %v639_v6  ;;  %s619_s29 = scalar_lea.vmem %s1492_s9, %s1399_s20 }
  0x16   : > { %801 = vperm.xlu1 %1229, %v631_v7   ;;  %724 = vperm.xlu0 %1227, %v631_v7   ;;  %v632_v10 = vld [vmem:[%s567_s14] sm:$0xff] }
  0x17   : > { %737 = vperm.xlu2 %1231, %v632_v10   ;;  %1180 = vmatmul.msk.bf16.vlgmr.msra.gmra.mxu0 %vm651_vm1, %v640_v13  ;;  %v1422_v16 = vld [vmem:[%s594_s17] sm:$0xff] }
  0x18   : > { %1181 = vmatmul.msk.bf16.vlgmr.msra.gmra.mxu1 %vm651_vm1, %v640_v13  ;;  %v1182_v17 = vmul.f32 -1.442695, %v1422_v16 }
  0x1a   : > { %1236 = vpow2.f32 %v1182_v17 }
  0x1b   : > { %v708_v19 = vld.sshfl [vmem:[#allocation1] sm:$0xff pattern:$0x75316420]  ;;  %v1428_v20 = vld.sshfl [vmem:[#allocation1 + $0x8] sm:$0xff pattern:$0x75316420] }
  0x1c   : > { %882 = vst [vmem:[#allocation1] ss:$2 sm:$0xff] %v637_v3 }
  0x1e   : > { %1230 = vset.pattern.permute.xlu1 %v1325_v14  ;;  %1228 = vset.pattern.permute.xlu0 %v1326_v15 }
  0x1f   : > { %839 = vperm.xlu1 %1230, %v631_v7   ;;  %763 = vperm.xlu0 %1228, %v631_v7  }
  0x20   : > { %1232 = vset.pattern.permute.xlu2 %v1326_v15  ;;  %v1237_v23 = vpop.eup %1236 }
  0x21   : > { %775 = vperm.xlu2 %1232, %v632_v10   ;;  %v894_v26 = vadd.f32 1.0, %v1237_v23 }
  0x23   : > { %1238 = vrcp.f32 %v894_v26  ;;  %vm900_vm2 = vweird.f32 %v894_v26  ;;  %v906_v47 = vand.u32 2147483648, %v894_v26  ;;  %v904_v51 = vand.u32 2147483647, %v894_v26 }
  0x25   : > { %v907_v58 = vor.u32 1.1754944e-38, %v906_v47  ;;  %vm905_vm5 = vcmp.eq.f32.partialorder %v904_v51, 8.507059e+37 }
  0x27   : > { %1233 = vset.pattern.permute.xlu1 %v1323_v0  ;;  %1235 = vset.pattern.permute.xlu0 %v1325_v14 }
  0x28   : > { %813 = vperm.xlu1 %1233, %v632_v10  }
  0x29   : > { %1234 = vset.pattern.permute.xlu2 %v1325_v14  ;;  %v1239_v37 = vpop.eup %1238 }
  0x2a   : > { %851 = vperm.xlu2 %1234, %v632_v10   ;;  %v896_v38 = vmul.f32 %v1239_v37, %v894_v26  ;;  %vm901_vm3 = vweird.f32 %v1239_v37 }
  0x2b   : > { %vm1430_vm4 = vmor %vm900_vm2, %vm901_vm3 }
  0x2c   : > { %v897_v43 = vsub.f32 1.0, %v896_v38 }
  0x2e   : > { %v898_v44 = vmul.f32 %v1239_v37, %v897_v43 }
  0x30   : > { %v899_v50 = vadd.f32 %v1239_v37, %v898_v44 }
  0x32   : > { %v903_v61 = vsel %vm1430_vm4, %v1239_v37, %v899_v50 }
  0x33   : > { %v908_v4 = vsel %vm905_vm5, %v907_v58, %v903_v61 }
  0x34   : > { %v910_v14 = vmul.f32 %v908_v4, %v1422_v16 }
  0x71   : > { %v738_v13 = vpop.permute.xlu2 %737 }
  0x88   : > { %v1444_v6 = vpop.permute.xlu1 %801  ;;  %v725_v7 = vpop.permute.xlu0 %724 }
  0x91   : > { %v840_v37 = vpop.permute.xlu1 %839 }
  0x94   : > { %v671_v24 = vpop.f32.mrf.mxu0 }
  0x95   : > { %v684_v25 = vpop.f32.mrf.mxu1  ;;  %v672_v27 = vadd.f32 %v671_v24, %v642_v21 }
  0x96   : > { %v685_v28 = vadd.f32 %v684_v25, %v643_v22  ;;  %v1451_v22 = vld.sshfl [vmem:[#allocation1] sm:$0xff pattern:$0x75316420] }
  0x97   : > { %v690_v29 = vand.u32 2147483647, %v672_v27  ;;  %v688_v48 = vmax.f32 %v672_v27, 0.0  ;;  %v1454_v27 = vld.sshfl [vmem:[#allocation1 + $0x8] sm:$0xff pattern:$0x75316420] }
  0x98   : > { %v691_v30 = vand.u32 2147483647, %v685_v28  ;;  %v689_v52 = vmax.f32 %v685_v28, 0.0  ;;  %912 = vst [vmem:[#allocation1] ss:$2 sm:$0xff] %v910_v14 }
  0x99   : > { %v692_v31 = vsub.f32 0.0, %v690_v29 }
  0x9a   : > { %v693_v32 = vsub.f32 0.0, %v691_v30  ;;  %v814_v4 = vpop.permute.xlu1 %813 }
  0x9b   : > { %v694_v33 = vmul.f32 1.442695, %v692_v31 }
  0x9c   : > { %v696_v34 = vmul.f32 1.442695, %v693_v32  ;;  %v673_v35 = vpop.f32.mrf.mxu0 }
  0x9d   : > { %v686_v36 = vpop.f32.mrf.mxu1  ;;  %1240 = vpow2.f32 %v694_v33 }
  0x9e   : > { %1242 = vpow2.f32 %v696_v34 }
  0xa3   : > { %v1241_v39 = vpop.eup %1240 }
  0xa4   : > { %v1243_v40 = vpop.eup %1242  ;;  %v698_v41 = vadd.f32 1.0, %v1241_v39  ;;  %v764_v39 = vpop.permute.xlu0 %763 }
  0xa5   : > { %v699_v42 = vadd.f32 1.0, %v1243_v40 }
  0xa6   : > { %1244 = vlog2.f32 %v698_v41 }
  0xa7   : > { %1246 = vlog2.f32 %v699_v42 }
  0xac   : > { %v1245_v45 = vpop.eup %1244 }
  0xad   : > { %v1247_v46 = vpop.eup %1246  ;;  %v701_v49 = vmul.f32 0.6931472, %v1245_v45 }
  0xae   : > { %v703_v53 = vmul.f32 0.6931472, %v1247_v46  ;;  %v776_v46 = vpop.permute.xlu2 %775 }
  0xaf   : > { %v704_v55 = vadd.f32 %v701_v49, %v688_v48 }
  0xb0   : > { %v705_v56 = vadd.f32 %v703_v53, %v689_v52 }
  0xb1   : > { %v714_v59 = vperm.slane %v704_v55, 0  ;;  %v754_v0 = vperm.slane %v704_v55, 1  ;;  %v792_v3 = vperm.slane %v704_v55, 2  ;;  %v1442_v5 = vmul.f32 %v708_v19, %v704_v55 }
  0xb2   : > { %v715_v62 = vperm.slane %v705_v56, 0  ;;  %v755_v2 = vperm.slane %v705_v56, 1  ;;  %v793_v9 = vperm.slane %v705_v56, 2  ;;  %v1447_v10 = vmul.f32 %v1428_v20, %v705_v56 }
  0xb3   : > { %v716_v63 = vmul.f32 %v714_v59, %v628_v57  ;;  %v756_v12 = vmul.f32 %v754_v0, %v628_v57  ;;  %v794_v17 = vmul.f32 %v792_v3, %v628_v57  ;;  %v727_v18 = vperm.slane %v1442_v5, 0 }
  0xb4   : > { %v717_v1 = vmul.f32 %v715_v62, %v629_v60  ;;  %v757_v15 = vmul.f32 %v755_v2, %v629_v60  ;;  %v795_v21 = vmul.f32 %v793_v9, %v629_v60  ;;  %v728_v23 = vperm.slane %v1447_v10, 0 }
  0xb5   : > { %v718_v8 = vmul.f32 1.442695, %v716_v63  ;;  %v758_v19 = vmul.f32 1.442695, %v756_v12  ;;  %v830_v20 = vperm.slane %v704_v55, 3  ;;  %v831_v25 = vperm.slane %v705_v56, 3 }
  0xb6   : > { %v720_v11 = vmul.f32 1.442695, %v717_v1  ;;  %v760_v24 = vmul.f32 1.442695, %v757_v15  ;;  %v796_v26 = vmul.f32 1.442695, %v794_v17  ;;  %v729_v32 = vmul.f32 %v727_v18, %v725_v7 }
  0xb7   : > { %1248 = vpow2.f32 %v718_v8  ;;  %v798_v16 = vmul.f32 1.442695, %v795_v21  ;;  %v832_v28 = vmul.f32 %v830_v20, %v628_v57  ;;  %v833_v29 = vmul.f32 %v831_v25, %v629_v60  ;;  %v852_v20 = vpop.permute.xlu2 %851 }
  0xb8   : > { %1250 = vpow2.f32 %v720_v11  ;;  %v730_v33 = vmul.f32 %v728_v23, %v725_v7  ;;  %v766_v35 = vperm.slane %v1442_v5, 1  ;;  %v767_v38 = vperm.slane %v1447_v10, 1 }
  0xb9   : > { %1252 = vpow2.f32 %v758_v19  ;;  %v834_v40 = vmul.f32 1.442695, %v832_v28  ;;  %v836_v42 = vmul.f32 1.442695, %v833_v29  ;;  %v804_v44 = vperm.slane %v1442_v5, 2 }
  0xba   : > { %1254 = vpow2.f32 %v760_v24  ;;  %v805_v48 = vperm.slane %v1447_v10, 2  ;;  %v768_v49 = vmul.f32 %v766_v35, %v764_v39  ;;  %v769_v52 = vmul.f32 %v767_v38, %v764_v39 }
  0xbb   : > { %1256 = vpow2.f32 %v796_v26  ;;  %v806_v61 = vmul.f32 %v804_v44, %v1444_v6  ;;  %v842_v62 = vperm.slane %v1442_v5, 3  ;;  %v843_v2 = vperm.slane %v1447_v10, 3 }
  0xbc   : > { %1258 = vpow2.f32 %v798_v16  ;;  %v807_v1 = vmul.f32 %v805_v48, %v1444_v6 }
  0xbd   : > { %v1249_v30 = vpop.eup %1248  ;;  %1260 = vpow2.f32 %v834_v40  ;;  %v844_v18 = vmul.f32 %v842_v62, %v840_v37  ;;  %v845_v23 = vmul.f32 %v843_v2, %v840_v37 }
  0xbe   : > { %v1251_v31 = vpop.eup %1250  ;;  %v731_v34 = vmul.f32 0.0, %v1249_v30  ;;  %1262 = vpow2.f32 %v836_v42 }
  0xbf   : > { %v732_v36 = vmul.f32 0.0, %v1251_v31  ;;  %v1253_v43 = vpop.eup %1252 }
  0xc0   : > { %v733_v41 = vadd.f32 %v731_v34, %v729_v32  ;;  %v1255_v47 = vpop.eup %1254 }
  0xc1   : > { %v734_v45 = vadd.f32 %v732_v36, %v730_v33  ;;  %v1257_v57 = vpop.eup %1256 }
  0xc2   : > { %v770_v50 = vmul.f32 %v1253_v43, %v733_v41  ;;  %v740_v51 = vmul.f32 %v738_v13, %v733_v41  ;;  %v1259_v60 = vpop.eup %1258 }
  0xc3   : > { %v771_v53 = vmul.f32 %v1255_v47, %v734_v45  ;;  %v741_v54 = vmul.f32 %v738_v13, %v734_v45  ;;  %v1261_v12 = vpop.eup %1260 }
  0xc4   : > { %v772_v55 = vadd.f32 %v770_v50, %v768_v49  ;;  %v742_v56 = vrot.slane %v740_v51, 4  ;;  %v1263_v17 = vpop.eup %1262  ;;  %v630_v50 = vld [vmem:[%s1491_s8] sm:$0x3] }
  0xc5   : > { %v773_v58 = vadd.f32 %v771_v53, %v769_v52  ;;  %v748_v59 = vrot.slane %v741_v54, 4 }
  0xc6   : > { %v778_v63 = vmul.f32 %v776_v46, %v772_v55  ;;  %v808_v0 = vmul.f32 %v1257_v57, %v772_v55  ;;  %v743_v8 = vadd.f32 %v742_v56, %v740_v51 }
  0xc7   : > { %v779_v3 = vmul.f32 %v776_v46, %v773_v58  ;;  %v809_v7 = vmul.f32 %v1259_v60, %v773_v58  ;;  %v749_v13 = vadd.f32 %v748_v59, %v741_v54  ;;  %v878_v60 = vperm.slane %v630_v50, 0 }
  0xc8   : > { %v780_v9 = vrot.slane %v778_v63, 4  ;;  %v810_v11 = vadd.f32 %v808_v0, %v806_v61  ;;  %v744_v25 = vrot.slane %v743_v8, 2  ;;  %v879_v61 = vperm.slane %v630_v50, 1 }
  0xc9   : > { %v786_v14 = vrot.slane %v779_v3, 4  ;;  %v811_v15 = vadd.f32 %v809_v7, %v807_v1  ;;  %v750_v29 = vrot.slane %v749_v13, 2 }
  0xca   : > { %v781_v19 = vadd.f32 %v780_v9, %v778_v63  ;;  %v816_v5 = vmul.f32 %v814_v4, %v810_v11  ;;  %v846_v21 = vmul.f32 %v1261_v12, %v810_v11  ;;  %v745_v40 = vadd.f32 %v744_v25, %v743_v8 }
  0xcb   : > { %v787_v24 = vadd.f32 %v786_v14, %v779_v3  ;;  %v817_v6 = vmul.f32 %v814_v4, %v811_v15  ;;  %v847_v10 = vmul.f32 %v1263_v17, %v811_v15  ;;  %v751_v42 = vadd.f32 %v750_v29, %v749_v13 }
  0xcc   : > { %v782_v26 = vrot.slane %v781_v19, 2  ;;  %v818_v16 = vrot.slane %v816_v5, 4  ;;  %v848_v28 = vadd.f32 %v846_v21, %v844_v18  ;;  %v746_v52 = vrot.slane %v745_v40, 1 }
  0xcd   : > { %v788_v30 = vrot.slane %v787_v24, 2  ;;  %v824_v31 = vrot.slane %v817_v6, 4  ;;  %v849_v32 = vadd.f32 %v847_v10, %v845_v23  ;;  %v752_v55 = vrot.slane %v751_v42, 1 }
  0xce   : > { %v783_v33 = vadd.f32 %v782_v26, %v781_v19  ;;  %v819_v34 = vadd.f32 %v818_v16, %v816_v5  ;;  %v854_v35 = vmul.f32 %v852_v20, %v848_v28  ;;  %v747_v1 = vadd.f32 %v746_v52, %v745_v40  ;;  %v914_v19 = vld.sshfl [vmem:[#allocation1 + $0x8] sm:$0xff pattern:$0x75316420] }
  0xcf   : > { %v789_v36 = vadd.f32 %v788_v30, %v787_v24  ;;  %v825_v38 = vadd.f32 %v824_v31, %v817_v6  ;;  %v855_v39 = vmul.f32 %v852_v20, %v849_v32  ;;  %v753_v4 = vadd.f32 %v752_v55, %v751_v42  ;;  %v913_v24 = vld.sshfl [vmem:[#allocation1] sm:$0xff pattern:$0x75316420] }
  0xd0   : > { %v820_v37 = vrot.slane %v819_v34, 2  ;;  %v856_v41 = vrot.slane %v854_v35, 4  ;;  %v784_v45 = vrot.slane %v783_v33, 1  ;;  %v887_v11 = vmul.f32 %v1451_v22, %v878_v60 }
  0xd1   : > { %v826_v43 = vrot.slane %v825_v38, 2  ;;  %v862_v44 = vrot.slane %v855_v39, 4  ;;  %v790_v48 = vrot.slane %v789_v36, 1  ;;  %v888_v12 = vmul.f32 %v1454_v27, %v879_v61 }
  0xd2   : > { %v821_v46 = vadd.f32 %v820_v37, %v819_v34  ;;  %v857_v47 = vadd.f32 %v856_v41, %v854_v35  ;;  %v785_v58 = vadd.f32 %v784_v45, %v783_v33 }
  0xd3   : > { %v827_v49 = vadd.f32 %v826_v43, %v825_v38  ;;  %v863_v51 = vadd.f32 %v862_v44, %v855_v39  ;;  %v791_v62 = vadd.f32 %v790_v48, %v789_v36 }
  0xd4   : > { %v822_v53 = vrot.slane %v821_v46, 1  ;;  %v858_v54 = vrot.slane %v857_v47, 2  ;;  %v869_v8 = vsel %vm868_vm6, %v747_v1, %v785_v58 }
  0xd5   : > { %v828_v56 = vrot.slane %v827_v49, 1  ;;  %v864_v57 = vrot.slane %v863_v51, 2  ;;  %v870_v13 = vsel %vm868_vm6, %v753_v4, %v791_v62 }
  0xd6   : > { %v859_v59 = vadd.f32 %v858_v54, %v857_v47  ;;  %v823_v63 = vadd.f32 %v822_v53, %v821_v46 }
  0xd7   : > { %v865_v0 = vadd.f32 %v864_v57, %v863_v51  ;;  %v829_v2 = vadd.f32 %v828_v56, %v827_v49 }
  0xd8   : > { %v860_v3 = vrot.slane %v859_v59, 1  ;;  %v872_v14 = vsel %vm871_vm7, %v869_v8, %v823_v63 }
  0xd9   : > { %v866_v7 = vrot.slane %v865_v0, 1  ;;  %v873_v17 = vsel %vm871_vm7, %v870_v13, %v829_v2 }
  0xda   : > { %v861_v9 = vadd.f32 %v860_v3, %v859_v59 }
  0xdb   : > { %v867_v15 = vadd.f32 %v866_v7, %v865_v0 }
  0xdc   : > { %v875_v18 = vsel %vm874_vm8, %v872_v14, %v861_v9 }
  0xdd   : > { %v876_v5 = vsel %vm874_vm8, %v873_v17, %v867_v15  ;;  %v889_v21 = vadd.f32 %v887_v11, %v875_v18 }
  0xde   : > { %v890_v23 = vadd.f32 %v888_v12, %v876_v5 }
  0xdf   : > { %v917_v20 = vmul.f32 %v913_v24, %v889_v21 }
  0xe0   : > { %v918_v6 = vmul.f32 %v914_v19, %v890_v23 }
  0xe2   : > { %v921_v10 = vrot.slane %v918_v6, 4 }
  0xe4   : > { %v922_v22 = vsel %vm655_vm0, %v917_v20, %v921_v10 }
  0xe5   : > { %924 = vst [vmem:[%s619_s29] sm:$0xff] %v922_v22 }
  0xe6 PF: > { %s20_s11 = sadd.s32 1, %s1320_s11   ;;  %s1495_s30 = smov %s1316_s10 }
  0xe7   : > { %p17_p8 = scmp.ge.s32.totalorder %s20_s11, 4   ;;  %s1496_s10 = smov %s1498_s13 }
  0xe9   :  { %19 = sbr.rel (!%p17_p8) target bundleno = 2 (0x2), region = 117 }
  0xee   :  { %965 = vsyncpa [#allocation4], 1 }
  0xef   :  { %967 = vsyncpa [#allocation4 + $0x1], 1 }

// kernel: latent_language_forward.84
= control target key start
LH: loop header
LB: loop body
LE: loop exit
PB: predicated region body
PF: predicated region fallthrough
CT: control target
= control target key end

     0   :  { %8 = vsyncpa [#allocation4], 0  ;;  %s321_s15 = smov [#allocation3]   ;;  %s399_s0 = inlined_call_operand.vmem [shape: f32[4,256], index: 0, kind: input, shape index: {}]   ;;  %s400_s1 = inlined_call_operand.vmem [shape: bf16[256,128], index: 1, kind: input, shape index: {}]   ;;  %s401_s2 = inlined_call_operand.hbm [shape: f32[1,128], index: 2, kind: input, shape index: {}]   ;;  %s402_s3 = inlined_call_operand.vmem [shape: f32[4,128], index: 3, kind: output, shape index: {}]  }
   0x1   :  { %s18_s14 = sshll.u32 %s401_s2, 4  ;;  %s20_s16 = sshll.u32 %s321_s15, 4  ;;  %s19_s14 = int_to_ptr.hbm [resolvable:$true] %s18_s14  ;;  %s21_s16 = int_to_ptr.vmem [resolvable:$true] %s20_s16 }
   0x2   :  { %23 = dma.hbm_to_vmem [thread:$0]  %s19_s14, 16, %s21_s16, [#allocation4]  }
   0x3   :  { %319 = dma.done.wait [#allocation4], 16  }
   0x4   :  { %320 = vsyncadd [#allocation4], 4294967280  ;;  %v284_v0 = vld [vmem:[%s400_s1 + $0x38] sm:$0xff]  ;;  %v283_v2 = vld [vmem:[%s400_s1 + $0x30] sm:$0xff] }
   0x5   :  { %v292_v1 = vld [vmem:[%s400_s1 + $0x78] sm:$0xff]  ;;  %175 = vmatpush.bf16.msra.mxu0 %v284_v0  ;;  %v291_v3 = vld [vmem:[%s400_s1 + $0x70] sm:$0xff]  ;;  %v38_v4 = vld [vmem:[%s399_s0] sm:$0xff] }
   0x6   :  { %188 = vmatpush.bf16.msra.mxu1 %v292_v1  ;;  %v282_v5 = vld [vmem:[%s400_s1 + $0x28] sm:$0xff]  ;;  %40 = vst [vmem:[#allocation1] ss:$2 sm:$0xff] %v38_v4  ;;  %v281_v7 = vld [vmem:[%s400_s1 + $0x20] sm:$0xff]  ;;  %v280_v9 = vld [vmem:[%s400_s1 + $0x18] sm:$0xff] }
   0x7   :  { %v290_v6 = vld [vmem:[%s400_s1 + $0x68] sm:$0xff]  ;;  %v289_v8 = vld [vmem:[%s400_s1 + $0x60] sm:$0xff]  ;;  %v288_v10 = vld [vmem:[%s400_s1 + $0x58] sm:$0xff] }
   0x8   :  { %v279_v11 = vld [vmem:[%s400_s1 + $0x10] sm:$0xff]  ;;  %v278_v13 = vld [vmem:[%s400_s1 + $0x8] sm:$0xff]  ;;  %v277_v15 = vld [vmem:[%s400_s1] sm:$0xff] }
   0x9   :  { %176 = vmatpush.bf16.msra.mxu0 %v283_v2  ;;  %v287_v12 = vld [vmem:[%s400_s1 + $0x50] sm:$0xff]  ;;  %v286_v14 = vld [vmem:[%s400_s1 + $0x48] sm:$0xff]  ;;  %v285_v16 = vld [vmem:[%s400_s1 + $0x40] sm:$0xff] }
   0xa   :  { %189 = vmatpush.bf16.msra.mxu1 %v291_v3  ;;  %v294_v21 = vld [vmem:[#allocation3] ss:$0 sm:$0xff] }
   0xb   :  { %36 = vst [vmem:[#allocation2] sm:$0xf] %v294_v21 }
   0xd   :  { %177 = vmatpush.bf16.msra.mxu0 %v282_v5  ;;  %v41_v17 = vld.sshfl [vmem:[#allocation1] sm:$0xff pattern:$0x75316420]  ;;  %v42_v18 = vld.sshfl [vmem:[#allocation1 + $0x8] sm:$0xff pattern:$0x75316420] }
   0xe   :  { %190 = vmatpush.bf16.msra.mxu1 %v290_v6  ;;  %v45_v19 = vpack.c.bf16 %v41_v17, %v41_v17  ;;  %v46_v20 = vpack.c.bf16 %v42_v18, %v42_v18 }
  0x11   :  { %178 = vmatpush.bf16.msra.mxu0 %v281_v7 }
  0x12   :  { %191 = vmatpush.bf16.msra.mxu1 %v289_v8  ;;  %v37_v23 = vld [vmem:[#allocation2] sm:$0xf] }
  0x15   :  { %179 = vmatpush.bf16.msra.mxu0 %v280_v9 }
  0x16   :  { %192 = vmatpush.bf16.msra.mxu1 %v288_v10 }
  0x19   :  { %180 = vmatpush.bf16.msra.mxu0 %v279_v11 }
  0x1a   :  { %193 = vmatpush.bf16.msra.mxu1 %v287_v12 }
  0x1d   :  { %181 = vmatpush.bf16.msra.mxu0 %v278_v13 }
  0x1e   :  { %194 = vmatpush.bf16.msra.mxu1 %v286_v14 }
  0x21   :  { %182 = vmatpush.bf16.msra.mxu0 %v277_v15 }
  0x22   :  { %195 = vmatpush.bf16.msra.mxu1 %v285_v16 }
  0x24   :  { %183 = vmatmul.bf16.vlgmr.msra.gmra.mxu0 %v45_v19 }
  0x25   :  { %196 = vmatmul.bf16.vlgmr.msra.gmra.mxu1 %v46_v20 }
  0xa1   :  { %v184_v22 = vpop.f32.mrf.mxu0 }
  0xa2   :  { %v197_v24 = vpop.f32.mrf.mxu1 }
  0xa3   :  { %v198_v25 = vadd.f32 %v197_v24, %v184_v22 }
  0xa5   :  { %v201_v26 = vadd.f32 %v198_v25, %v37_v23 }
  0xa7   :  { %202 = vst [vmem:[#allocation2] sm:$0xf] %v201_v26 }
  0xa9   :  { %v186_v27 = vpop.f32.mrf.mxu0 }
  0xaa   :  { %v199_v28 = vpop.f32.mrf.mxu1 }
  0xae   :  { %v206_v29 = vld [vmem:[#allocation2] sm:$0xf] }
  0xaf   :  { %207 = vst [vmem:[%s402_s3] sm:$0xf] %v206_v29 }
  0xb0   :  { %212 = vsyncpa [#allocation4], 1 }

// kernel: latent_language_forward.85
= control target key start
LH: loop header
LB: loop body
LE: loop exit
PB: predicated region body
PF: predicated region fallthrough
CT: control target
= control target key end

     0   :  { %vm20_vm0 = vcmask 1043456   ;;  %v479_v10 = vmov 128.0   ;;  %s721_s0 = inlined_call_operand.vmem [shape: f32[4,128], index: 0, kind: input, shape index: {}]   ;;  %s722_s1 = inlined_call_operand.vmem [shape: f32[1,128], index: 1, kind: input, shape index: {}]   ;;  %s723_s2 = inlined_call_operand.vmem [shape: bf16[128,512], index: 2, kind: input, shape index: {}]   ;;  %s724_s3 = inlined_call_operand.vmem [shape: f32[4,512], index: 3, kind: output, shape index: {}]  }
   0x1   :  { %v503_v0 = vld [vmem:[%s721_s0] sm:$0xf]  ;;  %v471_v4 = vld [vmem:[%s723_s2 + $0xec] sm:$0xf0]  ;;  %v469_v5 = vld [vmem:[%s723_s2 + $0xe4] sm:$0xf]  ;;  %475 = vrcp.f32 %v479_v10 }
   0x2   :  { %v19_v1 = vmul.f32 %v503_v0, %v503_v0  ;;  %v427_v3 = vld [vmem:[%s723_s2 + $0xe0] sm:$0xf]  ;;  %v429_v7 = vld [vmem:[%s723_s2 + $0xf0] sm:$0xf0]  ;;  %v435_v8 = vld [vmem:[%s723_s2 + $0xe8] sm:$0xf] }
   0x3   :  { %v428_v6 = vor.u32 %v471_v4, %v427_v3  ;;  %v472_v9 = vld [vmem:[%s723_s2 + $0xf4] sm:$0xf0]  ;;  %v432_v11 = vor.u32 %v469_v5, %v429_v7  ;;  %v470_v13 = vld [vmem:[%s723_s2 + $0xec] sm:$0xf]  ;;  %v437_v14 = vld [vmem:[%s723_s2 + $0xf8] sm:$0xf0] }
   0x4   :  { %v21_v2 = vsel %vm20_vm0, %v19_v1, 0.0  ;;  %v436_v12 = vor.u32 %v472_v9, %v435_v8  ;;  %v440_v15 = vor.u32 %v470_v13, %v437_v14  ;;  %v411_v16 = vld [vmem:[%s723_s2 + $0xc0] sm:$0xf]  ;;  %v467_v17 = vld [vmem:[%s723_s2 + $0xcc] sm:$0xf0] }
   0x5   :  { %22 = vadd.xlane.f32.xlu0 %v21_v2  ;;  %244 = vmatpush.bf16.msra.mxu0 %v428_v6  ;;  %v465_v18 = vld [vmem:[%s723_s2 + $0xc4] sm:$0xf]  ;;  %v412_v19 = vor.u32 %v467_v17, %v411_v16  ;;  %v413_v20 = vld [vmem:[%s723_s2 + $0xd0] sm:$0xf0]  ;;  %v419_v21 = vld [vmem:[%s723_s2 + $0xc8] sm:$0xf] }
   0x6   :  { %257 = vmatpush.bf16.msra.mxu1 %v432_v11  ;;  %270 = vmatpush.bf16.msra.mxu2 %v436_v12  ;;  %v468_v22 = vld [vmem:[%s723_s2 + $0xd4] sm:$0xf0]  ;;  %v416_v23 = vor.u32 %v465_v18, %v413_v20  ;;  %v466_v25 = vld [vmem:[%s723_s2 + $0xcc] sm:$0xf]  ;;  %v421_v26 = vld [vmem:[%s723_s2 + $0xd8] sm:$0xf0] }
   0x7   :  { %283 = vmatpush.bf16.msra.mxu3 %v440_v15  ;;  %v420_v24 = vor.u32 %v468_v22, %v419_v21  ;;  %v424_v27 = vor.u32 %v466_v25, %v421_v26  ;;  %v556_v28 = vpop.eup %475  ;;  %v395_v29 = vld [vmem:[%s723_s2 + $0xa0] sm:$0xf]  ;;  %v463_v30 = vld [vmem:[%s723_s2 + $0xac] sm:$0xf0]  ;;  %v461_v31 = vld [vmem:[%s723_s2 + $0xa4] sm:$0xf] }
   0x8   :  { %v396_v32 = vor.u32 %v463_v30, %v395_v29  ;;  %v397_v33 = vld [vmem:[%s723_s2 + $0xb0] sm:$0xf0]  ;;  %v403_v34 = vld [vmem:[%s723_s2 + $0xa8] sm:$0xf]  ;;  %v464_v35 = vld [vmem:[%s723_s2 + $0xb4] sm:$0xf0]  ;;  %vm29_vm1 = vweird.f32 %v556_v28 }
   0x9   :  { %245 = vmatpush.bf16.msra.mxu0 %v412_v19  ;;  %v400_v36 = vor.u32 %v461_v31, %v397_v33  ;;  %v404_v37 = vor.u32 %v464_v35, %v403_v34  ;;  %v462_v38 = vld [vmem:[%s723_s2 + $0xac] sm:$0xf]  ;;  %v405_v39 = vld [vmem:[%s723_s2 + $0xb8] sm:$0xf0]  ;;  %v25_v40 = vmul.f32 128.0, %v556_v28 }
   0xa   :  { %258 = vmatpush.bf16.msra.mxu1 %v416_v23  ;;  %271 = vmatpush.bf16.msra.mxu2 %v420_v24  ;;  %v408_v41 = vor.u32 %v462_v38, %v405_v39  ;;  %v379_v42 = vld [vmem:[%s723_s2 + $0x80] sm:$0xf]  ;;  %v459_v43 = vld [vmem:[%s723_s2 + $0x8c] sm:$0xf0]  ;;  %v457_v44 = vld [vmem:[%s723_s2 + $0x84] sm:$0xf] }
   0xb   :  { %284 = vmatpush.bf16.msra.mxu3 %v424_v27  ;;  %v380_v45 = vor.u32 %v459_v43, %v379_v42  ;;  %v381_v46 = vld [vmem:[%s723_s2 + $0x90] sm:$0xf0]  ;;  %v387_v47 = vld [vmem:[%s723_s2 + $0x88] sm:$0xf]  ;;  %v460_v48 = vld [vmem:[%s723_s2 + $0x94] sm:$0xf0] }
   0xc   :  { %v384_v49 = vor.u32 %v457_v44, %v381_v46  ;;  %v388_v50 = vor.u32 %v460_v48, %v387_v47  ;;  %v458_v51 = vld [vmem:[%s723_s2 + $0x8c] sm:$0xf]  ;;  %v389_v52 = vld [vmem:[%s723_s2 + $0x98] sm:$0xf0]  ;;  %v26_v53 = vsub.f32 1.0, %v25_v40 }
   0xd   :  { %246 = vmatpush.bf16.msra.mxu0 %v396_v32  ;;  %v392_v54 = vor.u32 %v458_v51, %v389_v52  ;;  %v363_v55 = vld [vmem:[%s723_s2 + $0x60] sm:$0xf]  ;;  %v455_v56 = vld [vmem:[%s723_s2 + $0x6c] sm:$0xf0]  ;;  %v453_v57 = vld [vmem:[%s723_s2 + $0x64] sm:$0xf] }
   0xe   :  { %259 = vmatpush.bf16.msra.mxu1 %v400_v36  ;;  %272 = vmatpush.bf16.msra.mxu2 %v404_v37  ;;  %v364_v58 = vor.u32 %v455_v56, %v363_v55  ;;  %v365_v59 = vld [vmem:[%s723_s2 + $0x70] sm:$0xf0]  ;;  %v371_v60 = vld [vmem:[%s723_s2 + $0x68] sm:$0xf]  ;;  %v456_v61 = vld [vmem:[%s723_s2 + $0x74] sm:$0xf0]  ;;  %v27_v3 = vmul.f32 %v556_v28, %v26_v53 }
   0xf   :  { %285 = vmatpush.bf16.msra.mxu3 %v408_v41  ;;  %v368_v62 = vor.u32 %v453_v57, %v365_v59  ;;  %v372_v63 = vor.u32 %v456_v61, %v371_v60  ;;  %v454_v1 = vld [vmem:[%s723_s2 + $0x6c] sm:$0xf]  ;;  %v373_v2 = vld [vmem:[%s723_s2 + $0x78] sm:$0xf0]  ;;  %v347_v5 = vld [vmem:[%s723_s2 + $0x40] sm:$0xf] }
  0x10   :  { %v376_v4 = vor.u32 %v454_v1, %v373_v2  ;;  %v451_v6 = vld [vmem:[%s723_s2 + $0x4c] sm:$0xf0]  ;;  %v449_v8 = vld [vmem:[%s723_s2 + $0x44] sm:$0xf]  ;;  %v349_v9 = vld [vmem:[%s723_s2 + $0x50] sm:$0xf0]  ;;  %v28_v15 = vadd.f32 %v556_v28, %v27_v3 }
  0x11   :  { %247 = vmatpush.bf16.msra.mxu0 %v380_v45  ;;  %v348_v7 = vor.u32 %v451_v6, %v347_v5  ;;  %v355_v10 = vld [vmem:[%s723_s2 + $0x48] sm:$0xf]  ;;  %v352_v11 = vor.u32 %v449_v8, %v349_v9  ;;  %v452_v12 = vld [vmem:[%s723_s2 + $0x54] sm:$0xf0]  ;;  %v450_v13 = vld [vmem:[%s723_s2 + $0x4c] sm:$0xf] }
  0x12   :  { %260 = vmatpush.bf16.msra.mxu1 %v384_v49  ;;  %273 = vmatpush.bf16.msra.mxu2 %v388_v50  ;;  %v357_v14 = vld [vmem:[%s723_s2 + $0x58] sm:$0xf0]  ;;  %v356_v16 = vor.u32 %v452_v12, %v355_v10  ;;  %v331_v18 = vld [vmem:[%s723_s2 + $0x20] sm:$0xf]  ;;  %v447_v19 = vld [vmem:[%s723_s2 + $0x2c] sm:$0xf0]  ;;  %v30_v31 = vsel %vm29_vm1, %v556_v28, %v28_v15 }
  0x13   :  { %286 = vmatpush.bf16.msra.mxu3 %v392_v54  ;;  %v360_v17 = vor.u32 %v450_v13, %v357_v14  ;;  %v445_v20 = vld [vmem:[%s723_s2 + $0x24] sm:$0xf]  ;;  %v332_v21 = vor.u32 %v447_v19, %v331_v18  ;;  %v333_v22 = vld [vmem:[%s723_s2 + $0x30] sm:$0xf0]  ;;  %v339_v23 = vld [vmem:[%s723_s2 + $0x28] sm:$0xf] }
  0x14   :  { %v448_v24 = vld [vmem:[%s723_s2 + $0x34] sm:$0xf0]  ;;  %v336_v25 = vor.u32 %v445_v20, %v333_v22  ;;  %v446_v27 = vld [vmem:[%s723_s2 + $0x2c] sm:$0xf]  ;;  %v341_v29 = vld [vmem:[%s723_s2 + $0x38] sm:$0xf0] }
  0x15   :  { %248 = vmatpush.bf16.msra.mxu0 %v364_v58  ;;  %v340_v26 = vor.u32 %v448_v24, %v339_v23  ;;  %v315_v30 = vld [vmem:[%s723_s2] sm:$0xf]  ;;  %v344_v32 = vor.u32 %v446_v27, %v341_v29  ;;  %v443_v33 = vld [vmem:[%s723_s2 + $0xc] sm:$0xf0]  ;;  %v441_v34 = vld [vmem:[%s723_s2 + $0x4] sm:$0xf] }
  0x16   :  { %261 = vmatpush.bf16.msra.mxu1 %v368_v62  ;;  %274 = vmatpush.bf16.msra.mxu2 %v372_v63  ;;  %v317_v35 = vld [vmem:[%s723_s2 + $0x10] sm:$0xf0]  ;;  %v316_v36 = vor.u32 %v443_v33, %v315_v30  ;;  %v323_v28 = vld [vmem:[%s723_s2 + $0x8] sm:$0xf]  ;;  %v444_v38 = vld [vmem:[%s723_s2 + $0x14] sm:$0xf0] }
  0x17   :  { %287 = vmatpush.bf16.msra.mxu3 %v376_v4  ;;  %v320_v37 = vor.u32 %v441_v34, %v317_v35  ;;  %v442_v39 = vld [vmem:[%s723_s2 + $0xc] sm:$0xf]  ;;  %v324_v41 = vor.u32 %v444_v38, %v323_v28  ;;  %v325_v42 = vld [vmem:[%s723_s2 + $0x18] sm:$0xf0]  ;;  %v474_v52 = vld [vmem:[%s722_s1] ss:$0 sm:$0xff] }
  0x18   :  { %v328_v44 = vor.u32 %v442_v39, %v325_v42 }
  0x19   :  { %249 = vmatpush.bf16.msra.mxu0 %v348_v7 }
  0x1a   :  { %262 = vmatpush.bf16.msra.mxu1 %v352_v11  ;;  %275 = vmatpush.bf16.msra.mxu2 %v356_v16 }
  0x1b   :  { %288 = vmatpush.bf16.msra.mxu3 %v360_v17 }
  0x1d   :  { %250 = vmatpush.bf16.msra.mxu0 %v332_v21 }
  0x1e   :  { %263 = vmatpush.bf16.msra.mxu1 %v336_v25  ;;  %276 = vmatpush.bf16.msra.mxu2 %v340_v26 }
  0x1f   :  { %289 = vmatpush.bf16.msra.mxu3 %v344_v32 }
  0x21   :  { %251 = vmatpush.bf16.msra.mxu0 %v316_v36 }
  0x22   :  { %264 = vmatpush.bf16.msra.mxu1 %v320_v37  ;;  %277 = vmatpush.bf16.msra.mxu2 %v324_v41 }
  0x23   :  { %290 = vmatpush.bf16.msra.mxu3 %v328_v44 }
  0x78   :  { %v23_v40 = vpop.xlane.xlu0 %22 }
  0x79   :  { %v31_v43 = vmul.f32 %v30_v31, %v23_v40 }
  0x7b   :  { %v32_v45 = vadd.f32 1e-05, %v31_v43 }
  0x7d   :  { %477 = vrsqrt.f32 %v32_v45  ;;  %vm39_vm3 = vweird.f32 %v32_v45 }
  0x83   :  { %v478_v46 = vpop.eup %477 }
  0x84   :  { %v34_v47 = vmul.f32 %v478_v46, %v32_v45  ;;  %vm40_vm2 = vweird.f32 %v478_v46 }
  0x85   :  { %vm41_vm4 = vmor %vm39_vm3, %vm40_vm2 }
  0x86   :  { %v35_v48 = vmul.f32 %v478_v46, %v34_v47 }
  0x88   :  { %v36_v49 = vmul.f32 0.5, %v35_v48 }
  0x8a   :  { %v37_v50 = vsub.f32 1.5, %v36_v49 }
  0x8c   :  { %v38_v51 = vmul.f32 %v478_v46, %v37_v50 }
  0x8e   :  { %v42_v53 = vsel %vm41_vm4, %v478_v46, %v38_v51 }
  0x8f   :  { %v43_v54 = vmul.f32 %v42_v53, %v503_v0 }
  0x91   :  { %v48_v55 = vmul.f32 %v474_v52, %v43_v54 }
  0x93   :  { %v49_v56 = vpack.c.bf16 %v48_v55, %v48_v55 }
  0x95   :  { %50 = vst [vmem:[#allocation2] sm:$0x3] %v49_v56 }
  0x9c   :  { %v51_v57 = vld [vmem:[#allocation2] sm:$0x3] }
  0x9d   :  { %252 = vmatmul.bf16.vlgmr.msra.gmra.mxu0 %v51_v57  ;;  %265 = vmatmul.bf16.vlgmr.msra.gmra.mxu1 %v51_v57 }
  0x9e   :  { %278 = vmatmul.bf16.vlgmr.msra.gmra.mxu2 %v51_v57  ;;  %291 = vmatmul.bf16.vlgmr.msra.gmra.mxu3 %v51_v57 }
 0x11a   :  { %v253_v58 = vpop.f32.mrf.mxu0  ;;  %v266_v59 = vpop.f32.mrf.mxu1 }
 0x11b   :  { %v300_v60 = vrot.slane %v266_v59, 4 }
 0x11d   :  { %v303_v61 = vsel %vm20_vm0, %v253_v58, %v300_v60 }
 0x11e   :  { %307 = vst [vmem:[%s724_s3] sm:$0xff] %v303_v61 }
 0x121   :  { %v279_v62 = vpop.f32.mrf.mxu2  ;;  %v292_v63 = vpop.f32.mrf.mxu3 }
 0x122   :  { %v301_v0 = vrot.slane %v292_v63, 4  ;;  %v255_v1 = vpop.f32.mrf.mxu0  ;;  %v268_v2 = vpop.f32.mrf.mxu1 }
 0x124   :  { %v304_v3 = vsel %vm20_vm0, %v279_v62, %v301_v0 }
 0x125   :  { %308 = vst [vmem:[%s724_s3 + $0x8] sm:$0xff] %v304_v3 }
 0x129   :  { %v281_v4 = vpop.f32.mrf.mxu2  ;;  %v294_v5 = vpop.f32.mrf.mxu3 }

// kernel: latent_language_forward.86
= control target key start
LH: loop header
LB: loop body
LE: loop exit
PB: predicated region body
PF: predicated region fallthrough
CT: control target
= control target key end

     0   :  { %8 = vsyncpa [#allocation4], 0  ;;  %s719_s12 = smov 0   ;;  %s721_s13 = smov 0   ;;  %s772_s0 = inlined_call_operand.vmem [shape: f32[2,2,256], index: 0, kind: input, shape index: {}]   ;;  %s773_s1 = inlined_call_operand.hbm [shape: f32[4,256], index: 1, kind: input, shape index: {}]   ;;  %s774_s2 = inlined_call_operand.vmem [shape: f32[1,256], index: 2, kind: input, shape index: {}]   ;;  %s775_s3 = inlined_call_operand.vmem [shape: f32[2,2,256], index: 3, kind: output, shape index: {}]  }
   0x1   :  { %s723_s14 = smov 0  }
   0x2 LB: > { %s575_s15 = sadd.s32 4294967295, %s695_s14   ;;  %s33_s16 = sadd.s32 1, %s691_s13  ;;  %s695_s14 = sphi %s723_s14, %s14_s14   ;;  %s691_s13 = sphi %s721_s13, %s777_s13   ;;  %s687_s12 = sphi %s719_s12, %s776_s12  }
   0x3   : > { %p35_p0 = scmp.ge.s32.totalorder %s33_s16, 2  ;;  %p577_p1 = scmp.ge.s32.totalorder %s695_s14, 1 }
   0x4   : > { %p150_p2 = scmp.lt.s32.totalorder %s695_s14, 3  ;;  %p603_p4 = scmp.eq.s32.totalorder %s575_s15, 0 }
   0x5   : > { %s779_s16 = smov (%p35_p0, %s33_s16), 0  ;;  %s165_s19 = sshll.u32 %s773_s1, 4  ;;  %s166_s19 = int_to_ptr.hbm [resolvable:$true] %s165_s19 }
   0x6   : > { %p151_p3 = pnand %p577_p1, %p150_p2  ;;  %s697_s20 = smov [#allocation3]  }
   0x7   : > { %s167_s21 = sshll.u32 %s697_s20, 4  ;;  %s168_s21 = int_to_ptr.vmem [resolvable:$true] %s167_s21 }
   0x8   : > { %p599_p5 = pneg %p151_p3  ;;  %205 = sbr.rel (%p151_p3) target bundleno = 88 (0x58), region = 32 }
   0xa   : > { %p600_p6 = pnand %p603_p4, %p599_p5 }
   0xc   : > { %602 = dma.hbm_to_vmem [thread:$0]  (!%p600_p6), %s166_s19, 128, %s168_s21, [#allocation4]  }
   0xd   : > { %682 = dma.done.wait (%p603_p4), [#allocation4], 128  }
   0xe   : > { %684 = vsyncadd (%p603_p4), [#allocation4], 4294967168  ;;  %p251_p7 = scmp.lt.s32.totalorder %s687_s12, 1  ;;  %v698_v0 = vmov 0.0   ;;  %vm305_vm0 = vcmask 1042432   ;;  %vm418_vm1 = vcmask 1041408  }
   0xf   : > { %288 = vst [vmem:[#allocation2] sm:$0x77] %v698_v0  ;;  %v314_v5 = vld [vmem:[#allocation3] ss:$4 sm:$0x3]  ;;  %vm425_vm2 = vcmask 1043456  }
  0x10   : > { %s781_s12 = smov (!%p251_p7, %s687_s12), 1  ;;  %v325_v6 = vld [vmem:[#allocation3 + $0x1] ss:$4 sm:$0x3]  ;;  %v317_v8 = vperm.slane %v314_v5, 1  ;;  %v316_v12 = vperm.slane %v314_v5, 0 }
  0x11   : > { %s593_s22 = sshll.u32 %s781_s12, 2  ;;  %v342_v7 = vld [vmem:[#allocation3 + $0x2] ss:$4 sm:$0x3]  ;;  %v328_v10 = vperm.slane %v325_v6, 1  ;;  %v327_v13 = vperm.slane %v325_v6, 0 }
  0x12   : > { %s262_s25 = scalar_lea.vmem %s772_s0, %s593_s22  ;;  %v359_v9 = vld [vmem:[#allocation3 + $0x3] ss:$4 sm:$0x3]  ;;  %v308_v11 = vld [vmem:[%s774_s2] sm:$0x3]  ;;  %v344_v14 = vperm.slane %v342_v7, 0  ;;  %s282_s30 = scalar_lea.vmem %s775_s3, %s593_s22 }
  0x13   : > { %v289_v2 = vld [vmem:[%s262_s25] sm:$0xf]  ;;  %v345_v19 = vperm.slane %v342_v7, 1  ;;  %v361_v20 = vperm.slane %v359_v9, 0  ;;  %v310_v21 = vperm.slane %v308_v11, 0  ;;  %v311_v22 = vperm.slane %v308_v11, 1 }
  0x14   : > { %vm429_vm3 = vcmask 1045508   ;;  %v362_v25 = vperm.slane %v359_v9, 1 }
  0x15   : > { %vm430_vm4 = vmor %vm418_vm1, %vm429_vm3 }
  0x16   : > { %v290_v1 = vld [vmem:[#allocation2] sm:$0x77] }
  0x17   : > { %292 = vst [vmem:[#allocation1] ss:$2 sm:$0xff] %v290_v1 }
  0x1e   : > { %v293_v3 = vld.sshfl [vmem:[#allocation1] sm:$0xff pattern:$0x75316420]  ;;  %v294_v4 = vld.sshfl [vmem:[#allocation1 + $0x8] sm:$0xff pattern:$0x75316420] }
  0x1f   : > { %298 = vst [vmem:[#allocation1] ss:$4 sm:$0xff] %v289_v2 }
  0x26   : > { %v299_v15 = vld.sshfl [vmem:[#allocation1] sm:$0xff pattern:$0x73625140]  ;;  %v300_v16 = vld.sshfl [vmem:[#allocation1 + $0x8] sm:$0xff pattern:$0x73625140] }
  0x27   : > { %v301_v17 = vrot.slane %v299_v15, 5  ;;  %v302_v18 = vrot.slane %v300_v16, 5 }
  0x29   : > { %v306_v23 = vsel %vm305_vm0, %v293_v3, %v301_v17  ;;  %v307_v24 = vsel %vm305_vm0, %v294_v4, %v302_v18 }
  0x2a   : > { %v321_v26 = vmul.f32 %v317_v8, %v307_v24  ;;  %v332_v27 = vmul.f32 %v328_v10, %v307_v24  ;;  %v424_v28 = vrot.slane %v307_v24, 4  ;;  %v320_v29 = vmul.f32 %v316_v12, %v306_v23 }
  0x2b   : > { %v331_v30 = vmul.f32 %v327_v13, %v306_v23  ;;  %v348_v31 = vmul.f32 %v344_v14, %v306_v23  ;;  %v349_v32 = vmul.f32 %v345_v19, %v307_v24  ;;  %v365_v33 = vmul.f32 %v361_v20, %v306_v23 }
  0x2c   : > { %v426_v34 = vsel %vm425_vm2, %v306_v23, %v424_v28  ;;  %v427_v35 = vsel %vm425_vm2, %v424_v28, %v306_v23  ;;  %v322_v36 = vadd.f32 %v320_v29, %v310_v21  ;;  %v323_v37 = vadd.f32 %v321_v26, %v311_v22 }
  0x2d   : > { %v589_v38 = vrot.slane %v426_v34, 10  ;;  %v590_v39 = vrot.slane %v427_v35, 10  ;;  %v335_v40 = vrot.slane %v331_v30, 1  ;;  %v336_v41 = vrot.slane %v332_v27, 1 }
  0x2e   : > { %v352_v42 = vrot.slane %v348_v31, 2  ;;  %v366_v43 = vmul.f32 %v362_v25, %v307_v24  ;;  %v353_v47 = vrot.slane %v349_v32, 2  ;;  %v369_v50 = vrot.slane %v365_v33, 3 }
  0x2f   : > { %v434_v44 = vsel %vm430_vm4, %v589_v38, %v590_v39  ;;  %v339_v45 = vadd.f32 %v335_v40, %v322_v36  ;;  %v340_v46 = vadd.f32 %v336_v41, %v323_v37 }
  0x30   : > { %436 = vst [vmem:[#allocation2] sm:$0x77] %v434_v44  ;;  %v370_v51 = vrot.slane %v366_v43, 3 }
  0x31   : > { %v356_v48 = vadd.f32 %v352_v42, %v339_v45  ;;  %v357_v49 = vadd.f32 %v353_v47, %v340_v46 }
  0x33   : > { %v373_v52 = vadd.f32 %v369_v50, %v356_v48  ;;  %v374_v53 = vadd.f32 %v370_v51, %v357_v49 }
  0x35   : > { %v587_v54 = vmul.f32 -1.442695, %v373_v52  ;;  %v588_v55 = vmul.f32 -1.442695, %v374_v53 }
  0x37   : > { %631 = vpow2.f32 %v587_v54 }
  0x38   : > { %633 = vpow2.f32 %v588_v55 }
  0x3d   : > { %v632_v56 = vpop.eup %631 }
  0x3e   : > { %v634_v57 = vpop.eup %633  ;;  %v381_v58 = vadd.f32 1.0, %v632_v56 }
  0x3f   : > { %v382_v59 = vadd.f32 1.0, %v634_v57 }
  0x40   : > { %635 = vrcp.f32 %v381_v58  ;;  %v394_v3 = vand.u32 2147483648, %v381_v58  ;;  %v392_v5 = vand.u32 2147483647, %v381_v58  ;;  %vm388_vm7 = vweird.f32 %v381_v58 }
  0x41   : > { %637 = vrcp.f32 %v382_v59  ;;  %v409_v4 = vand.u32 2147483648, %v382_v59  ;;  %v407_v7 = vand.u32 2147483647, %v382_v59  ;;  %vm403_vm9 = vweird.f32 %v382_v59 }
  0x42   : > { %v395_v11 = vor.u32 1.1754944e-38, %v394_v3  ;;  %vm393_vm11 = vcmp.eq.f32.partialorder %v392_v5, 8.507059e+37 }
  0x43   : > { %v410_v12 = vor.u32 1.1754944e-38, %v409_v4  ;;  %vm408_vm12 = vcmp.eq.f32.partialorder %v407_v7, 8.507059e+37 }
  0x46   : > { %v636_v60 = vpop.eup %635 }
  0x47   : > { %v638_v61 = vpop.eup %637  ;;  %v384_v62 = vmul.f32 %v636_v60, %v381_v58  ;;  %vm389_vm5 = vweird.f32 %v636_v60 }
  0x48   : > { %v399_v63 = vmul.f32 %v638_v61, %v382_v59  ;;  %vm404_vm6 = vweird.f32 %v638_v61  ;;  %vm390_vm8 = vmor %vm388_vm7, %vm389_vm5 }
  0x49   : > { %v385_v0 = vsub.f32 1.0, %v384_v62  ;;  %vm405_vm10 = vmor %vm403_vm9, %vm404_vm6 }
  0x4a   : > { %v400_v1 = vsub.f32 1.0, %v399_v63 }
  0x4b   : > { %v386_v2 = vmul.f32 %v636_v60, %v385_v0 }
  0x4c   : > { %v401_v6 = vmul.f32 %v638_v61, %v400_v1 }
  0x4d   : > { %v387_v8 = vadd.f32 %v636_v60, %v386_v2 }
  0x4e   : > { %v402_v9 = vadd.f32 %v638_v61, %v401_v6 }
  0x4f   : > { %v391_v10 = vsel %vm390_vm8, %v636_v60, %v387_v8 }
  0x50   : > { %v406_v13 = vsel %vm405_vm10, %v638_v61, %v402_v9  ;;  %v396_v14 = vsel %vm393_vm11, %v395_v11, %v391_v10 }
  0x51   : > { %v411_v15 = vsel %vm408_vm12, %v410_v12, %v406_v13  ;;  %v413_v17 = vmul.f32 %v396_v14, %v373_v52 }
  0x52   : > { %v414_v16 = vmul.f32 %v411_v15, %v374_v53 }
  0x54   : > { %v417_v18 = vrot.slane %v414_v16, 6 }
  0x56   : > { %v419_v19 = vsel %vm418_vm1, %v413_v17, %v417_v18 }
  0x57   : > { %421 = vst [vmem:[%s282_s30] sm:$0xf] %v419_v19 }
  0x58 PF: > { %s14_s14 = sadd.s32 1, %s695_s14   ;;  %s776_s12 = smov %s691_s13 }
  0x59   : > { %p11_p8 = scmp.ge.s32.totalorder %s14_s14, 4   ;;  %s777_s13 = smov %s779_s16 }
  0x5b   :  { %13 = sbr.rel (!%p11_p8) target bundleno = 2 (0x2), region = 78 }
  0x60   :  { %475 = vsyncpa [#allocation4], 1 }
  0x61   :  { %477 = vsyncpa [#allocation4 + $0x1], 1 }

// kernel: latent_language_forward.87
= control target key start
LH: loop header
LB: loop body
LE: loop exit
PB: predicated region body
PF: predicated region fallthrough
CT: control target
= control target key end

     0   :  { %s356_s1 = inlined_call_operand.vmem [shape: bf16[256,128], index: 1, kind: input, shape index: {}]   ;;  %s357_s0 = inlined_call_operand.vmem [shape: f32[4,256], index: 0, kind: input, shape index: {}]   ;;  %s358_s2 = inlined_call_operand.vmem [shape: f32[1,128], index: 2, kind: input, shape index: {}]   ;;  %s359_s3 = inlined_call_operand.vmem [shape: f32[4,128], index: 3, kind: output, shape index: {}]  }
   0x1   :  { %v269_v0 = vld [vmem:[%s356_s1 + $0x38] sm:$0xff]  ;;  %v268_v2 = vld [vmem:[%s356_s1 + $0x30] sm:$0xff]  ;;  %v24_v4 = vld [vmem:[%s357_s0] sm:$0xff] }
   0x2   :  { %v277_v1 = vld [vmem:[%s356_s1 + $0x78] sm:$0xff]  ;;  %161 = vmatpush.bf16.msra.mxu0 %v269_v0  ;;  %v276_v3 = vld [vmem:[%s356_s1 + $0x70] sm:$0xff]  ;;  %v267_v5 = vld [vmem:[%s356_s1 + $0x28] sm:$0xff]  ;;  %26 = vst [vmem:[#allocation1] ss:$2 sm:$0xff] %v24_v4 }
   0x3   :  { %174 = vmatpush.bf16.msra.mxu1 %v277_v1  ;;  %v275_v6 = vld [vmem:[%s356_s1 + $0x68] sm:$0xff]  ;;  %v266_v7 = vld [vmem:[%s356_s1 + $0x20] sm:$0xff]  ;;  %v265_v9 = vld [vmem:[%s356_s1 + $0x18] sm:$0xff] }
   0x4   :  { %v274_v8 = vld [vmem:[%s356_s1 + $0x60] sm:$0xff]  ;;  %v273_v10 = vld [vmem:[%s356_s1 + $0x58] sm:$0xff]  ;;  %v264_v11 = vld [vmem:[%s356_s1 + $0x10] sm:$0xff] }
   0x5   :  { %v272_v12 = vld [vmem:[%s356_s1 + $0x50] sm:$0xff]  ;;  %v263_v13 = vld [vmem:[%s356_s1 + $0x8] sm:$0xff]  ;;  %v262_v15 = vld [vmem:[%s356_s1] sm:$0xff] }
   0x6   :  { %162 = vmatpush.bf16.msra.mxu0 %v268_v2  ;;  %v271_v14 = vld [vmem:[%s356_s1 + $0x48] sm:$0xff]  ;;  %v270_v16 = vld [vmem:[%s356_s1 + $0x40] sm:$0xff] }
   0x7   :  { %175 = vmatpush.bf16.msra.mxu1 %v276_v3  ;;  %v278_v21 = vld [vmem:[%s358_s2] ss:$0 sm:$0xff] }
   0x8   :  { %22 = vst [vmem:[#allocation2] sm:$0xf] %v278_v21 }
   0x9   :  { %v27_v17 = vld.sshfl [vmem:[#allocation1] sm:$0xff pattern:$0x75316420]  ;;  %v28_v18 = vld.sshfl [vmem:[#allocation1 + $0x8] sm:$0xff pattern:$0x75316420] }
   0xa   :  { %163 = vmatpush.bf16.msra.mxu0 %v267_v5  ;;  %v31_v19 = vpack.c.bf16 %v27_v17, %v27_v17  ;;  %v32_v20 = vpack.c.bf16 %v28_v18, %v28_v18 }
   0xb   :  { %176 = vmatpush.bf16.msra.mxu1 %v275_v6 }
   0xe   :  { %164 = vmatpush.bf16.msra.mxu0 %v266_v7 }
   0xf   :  { %177 = vmatpush.bf16.msra.mxu1 %v274_v8  ;;  %v23_v23 = vld [vmem:[#allocation2] sm:$0xf] }
  0x12   :  { %165 = vmatpush.bf16.msra.mxu0 %v265_v9 }
  0x13   :  { %178 = vmatpush.bf16.msra.mxu1 %v273_v10 }
  0x16   :  { %166 = vmatpush.bf16.msra.mxu0 %v264_v11 }
  0x17   :  { %179 = vmatpush.bf16.msra.mxu1 %v272_v12 }
  0x1a   :  { %167 = vmatpush.bf16.msra.mxu0 %v263_v13 }
  0x1b   :  { %180 = vmatpush.bf16.msra.mxu1 %v271_v14 }
  0x1e   :  { %168 = vmatpush.bf16.msra.mxu0 %v262_v15 }
  0x1f   :  { %181 = vmatpush.bf16.msra.mxu1 %v270_v16 }
  0x21   :  { %169 = vmatmul.bf16.vlgmr.msra.gmra.mxu0 %v31_v19 }
  0x22   :  { %182 = vmatmul.bf16.vlgmr.msra.gmra.mxu1 %v32_v20 }
  0x9e   :  { %v170_v22 = vpop.f32.mrf.mxu0 }
  0x9f   :  { %v183_v24 = vpop.f32.mrf.mxu1 }
  0xa0   :  { %v184_v25 = vadd.f32 %v183_v24, %v170_v22 }
  0xa2   :  { %v187_v26 = vadd.f32 %v184_v25, %v23_v23 }
  0xa4   :  { %188 = vst [vmem:[#allocation2] sm:$0xf] %v187_v26 }
  0xa6   :  { %v172_v27 = vpop.f32.mrf.mxu0 }
  0xa7   :  { %v185_v28 = vpop.f32.mrf.mxu1 }
  0xab   :  { %v192_v29 = vld [vmem:[#allocation2] sm:$0xf] }
  0xac   :  { %193 = vst [vmem:[%s359_s3] sm:$0xf] %v192_v29 }

// kernel: latent_language_forward.91
= control target key start
LH: loop header
LB: loop body
LE: loop exit
PB: predicated region body
PF: predicated region fallthrough
CT: control target
= control target key end

     0   :  { %8 = vsyncpa [#allocation4], 0  ;;  %s237_s15 = smov [#allocation3]   ;;  %s238_s17 = smov 128   ;;  %s273_s0 = inlined_call_operand.vmem [shape: f32[4,64], index: 0, kind: input, shape index: {}]   ;;  %s274_s1 = inlined_call_operand.vmem [shape: f32[1,64], index: 1, kind: input, shape index: {}]   ;;  %s275_s2 = inlined_call_operand.hbm [shape: bf16[64,256], index: 2, kind: input, shape index: {}]   ;;  %s276_s3 = inlined_call_operand.vmem [shape: f32[4,256], index: 3, kind: output, shape index: {}]  }
   0x1   :  { %s17_s14 = sshll.u32 %s275_s2, 4  ;;  %s19_s16 = sshll.u32 %s237_s15, 4  ;;  %s18_s14 = int_to_ptr.hbm [resolvable:$true] %s17_s14  ;;  %s20_s16 = int_to_ptr.vmem [resolvable:$true] %s19_s16 }
   0x2   :  { %s239_s18 = smov 8  }
   0x3   :  { %25 = dma.hbm_to_vmem [thread:$0]  %s18_s14, 1024, %s20_s16, [#allocation4], %s238_s17, %s238_s17, %s239_s18  }
   0x4   :  { %235 = dma.done.wait [#allocation4], 1024  }
   0x5   :  { %236 = vsyncadd [#allocation4], 4294966272  ;;  %v35_v0 = vld [vmem:[%s273_s0] sm:$0xf]  ;;  %vm37_vm0 = vcmask 519168   ;;  %v240_v3 = vmov 64.0  }
   0x6   :  { %v36_v1 = vmul.f32 %v35_v0, %v35_v0  ;;  %207 = vrcp.f32 %v240_v3  ;;  %v186_v7 = vld [vmem:[#allocation3 + $0x30] sm:$0xf]  ;;  %v201_v8 = vld [vmem:[#allocation3 + $0x34] sm:$0xf0]  ;;  %v200_v9 = vld [vmem:[#allocation3 + $0x34] sm:$0xf] }
   0x7   :  { %v187_v10 = vor.u32 %v201_v8, %v186_v7  ;;  %v188_v11 = vld [vmem:[#allocation3 + $0x38] sm:$0xf0]  ;;  %v178_v14 = vld [vmem:[#allocation3 + $0x20] sm:$0xf]  ;;  %v199_v15 = vld [vmem:[#allocation3 + $0x24] sm:$0xf0] }
   0x8   :  { %v38_v2 = vsel %vm37_vm0, %v36_v1, 0.0  ;;  %v191_v12 = vor.u32 %v200_v9, %v188_v11  ;;  %v179_v16 = vor.u32 %v199_v15, %v178_v14  ;;  %v198_v17 = vld [vmem:[#allocation3 + $0x24] sm:$0xf]  ;;  %v180_v18 = vld [vmem:[#allocation3 + $0x28] sm:$0xf0]  ;;  %vm67_vm5 = vcmask 517120  }
   0x9   :  { %39 = vadd.xlane.f32.xlu0 %v38_v2  ;;  %126 = vmatpush.bf16.msra.mxu0 %v187_v10  ;;  %v183_v19 = vor.u32 %v198_v17, %v180_v18  ;;  %v170_v21 = vld [vmem:[#allocation3 + $0x10] sm:$0xf]  ;;  %v197_v22 = vld [vmem:[#allocation3 + $0x14] sm:$0xf0]  ;;  %v196_v24 = vld [vmem:[#allocation3 + $0x14] sm:$0xf] }
   0xa   :  { %139 = vmatpush.bf16.msra.mxu1 %v191_v12  ;;  %v171_v23 = vor.u32 %v197_v22, %v170_v21  ;;  %v172_v25 = vld [vmem:[#allocation3 + $0x18] sm:$0xf0]  ;;  %v162_v27 = vld [vmem:[#allocation3] sm:$0xf]  ;;  %v195_v28 = vld [vmem:[#allocation3 + $0x4] sm:$0xf0] }
   0xb   :  { %v175_v26 = vor.u32 %v196_v24, %v172_v25  ;;  %v194_v29 = vld [vmem:[#allocation3 + $0x4] sm:$0xf]  ;;  %v163_v31 = vor.u32 %v195_v28, %v162_v27  ;;  %v164_v32 = vld [vmem:[#allocation3 + $0x8] sm:$0xf0]  ;;  %v206_v43 = vld [vmem:[%s274_s1] ss:$0 sm:$0xff] }
   0xc   :  { %v208_v4 = vpop.eup %207  ;;  %v167_v33 = vor.u32 %v194_v29, %v164_v32  ;;  %vm118_vm6 = vcmask 523264   ;;  %vm151_vm7 = vcmask 1043456  }
   0xd   :  { %v42_v5 = vmul.f32 64.0, %v208_v4  ;;  %127 = vmatpush.bf16.msra.mxu0 %v179_v16  ;;  %vm46_vm1 = vweird.f32 %v208_v4 }
   0xe   :  { %140 = vmatpush.bf16.msra.mxu1 %v183_v19 }
   0xf   :  { %v43_v6 = vsub.f32 1.0, %v42_v5 }
  0x11   :  { %v44_v13 = vmul.f32 %v208_v4, %v43_v6  ;;  %128 = vmatpush.bf16.msra.mxu0 %v171_v23 }
  0x12   :  { %141 = vmatpush.bf16.msra.mxu1 %v175_v26 }
  0x13   :  { %v45_v20 = vadd.f32 %v208_v4, %v44_v13 }
  0x15   :  { %v47_v30 = vsel %vm46_vm1, %v208_v4, %v45_v20  ;;  %129 = vmatpush.bf16.msra.mxu0 %v163_v31 }
  0x16   :  { %142 = vmatpush.bf16.msra.mxu1 %v167_v33 }
  0x7c   :  { %v40_v34 = vpop.xlane.xlu0 %39 }
  0x7d   :  { %v48_v35 = vmul.f32 %v47_v30, %v40_v34 }
  0x7f   :  { %v49_v36 = vadd.f32 1e-05, %v48_v35 }
  0x81   :  { %209 = vrsqrt.f32 %v49_v36  ;;  %vm56_vm3 = vweird.f32 %v49_v36 }
  0x87   :  { %v210_v37 = vpop.eup %209 }
  0x88   :  { %v51_v38 = vmul.f32 %v210_v37, %v49_v36  ;;  %vm57_vm2 = vweird.f32 %v210_v37 }
  0x89   :  { %vm58_vm4 = vmor %vm56_vm3, %vm57_vm2 }
  0x8a   :  { %v52_v39 = vmul.f32 %v210_v37, %v51_v38 }
  0x8c   :  { %v53_v40 = vmul.f32 0.5, %v52_v39 }
  0x8e   :  { %v54_v41 = vsub.f32 1.5, %v53_v40 }
  0x90   :  { %v55_v42 = vmul.f32 %v210_v37, %v54_v41 }
  0x92   :  { %v59_v44 = vsel %vm58_vm4, %v210_v37, %v55_v42 }
  0x93   :  { %v60_v45 = vmul.f32 %v59_v44, %v35_v0 }
  0x95   :  { %v65_v46 = vmul.f32 %v206_v43, %v60_v45 }
  0x97   :  { %v66_v47 = vpack.c.bf16 %v65_v46, %v65_v46 }
  0x99   :  { %68 = vst.msk [vmem:[#allocation2] sm:$0x3] %vm67_vm5, %v66_v47 }
  0xa0   :  { %v69_v48 = vld [vmem:[#allocation2] sm:$0x3] }
  0xa1   :  { %192 = vmatmul.msk.bf16.vlgmr.msra.gmra.mxu0 %vm118_vm6, %v69_v48  ;;  %193 = vmatmul.msk.bf16.vlgmr.msra.gmra.mxu1 %vm118_vm6, %v69_v48 }
 0x11e   :  { %v131_v49 = vpop.f32.mrf.mxu0  ;;  %v144_v50 = vpop.f32.mrf.mxu1 }
 0x11f   :  { %v150_v51 = vrot.slane %v144_v50, 4 }
 0x121   :  { %v152_v52 = vsel %vm151_vm7, %v131_v49, %v150_v51 }
 0x122   :  { %154 = vst [vmem:[%s276_s3] sm:$0xff] %v152_v52 }
 0x126   :  { %v133_v53 = vpop.f32.mrf.mxu0  ;;  %v146_v54 = vpop.f32.mrf.mxu1 }
 0x127   :  { %159 = vsyncpa [#allocation4], 1 }

// kernel: latent_language_forward.90
= control target key start
LH: loop header
LB: loop body
LE: loop exit
PB: predicated region body
PF: predicated region fallthrough
CT: control target
= control target key end

     0   :  { %8 = vsyncpa [#allocation4], 0  ;;  %s284_s0 = inlined_call_operand.vmem [shape: f32[4,128], index: 0, kind: input, shape index: {}]   ;;  %s285_s1 = inlined_call_operand.hbm [shape: bf16[128,64], index: 1, kind: input, shape index: {}]   ;;  %s286_s2 = inlined_call_operand.hbm [shape: f32[1,64], index: 2, kind: input, shape index: {}]   ;;  %s287_s3 = inlined_call_operand.vmem [shape: f32[4,64], index: 3, kind: output, shape index: {}]  }
   0x1   :  { %s16_s14 = sshll.u32 %s285_s1, 4  ;;  %s17_s14 = int_to_ptr.hbm [resolvable:$true] %s16_s14 }
   0x2   :  { %9 = vsyncpa [#allocation6], 0  ;;  %s245_s15 = smov [#allocation3]   ;;  %s30_s19 = sshll.u32 %s286_s2, 4  ;;  %s31_s19 = int_to_ptr.hbm [resolvable:$true] %s30_s19 }
   0x3   :  { %s18_s16 = sshll.u32 %s245_s15, 4  ;;  %s246_s20 = smov 64   ;;  %s19_s16 = int_to_ptr.vmem [resolvable:$true] %s18_s16 }
   0x4   :  { %s247_s21 = smov 4   ;;  %s248_s22 = smov [#allocation5]  }
   0x5   :  { %24 = dma.hbm_to_vmem [thread:$0]  %s17_s14, 1024, %s19_s16, [#allocation4], %s246_s20, %s246_s20, %s247_s21  }
   0x6   :  { %s32_s23 = sshll.u32 %s248_s22, 4  ;;  %s33_s23 = int_to_ptr.vmem [resolvable:$true] %s32_s23 }
   0x7   :  { %35 = dma.hbm_to_vmem [thread:$0]  %s31_s19, 16, %s33_s23, [#allocation6]  }
   0x8   :  { %241 = dma.done.wait [#allocation4], 1024  }
   0x9   :  { %242 = vsyncadd [#allocation4], 4294966272 }
   0xa   :  { %243 = dma.done.wait [#allocation6], 16  }
   0xb   :  { %244 = vsyncadd [#allocation6], 4294967280  ;;  %v187_v0 = vld [vmem:[#allocation3 + $0x38] sm:$0xff]  ;;  %v186_v1 = vld [vmem:[#allocation3 + $0x30] sm:$0xff]  ;;  %vm52_vm0 = vcmask 519168  }
   0xc   :  { %121 = vmatpush.bf16.msra.mxu0 %v187_v0  ;;  %v192_v2 = vld [vmem:[#allocation5] ss:$0 sm:$0xff]  ;;  %v185_v3 = vld [vmem:[#allocation3 + $0x28] sm:$0xff]  ;;  %v183_v5 = vld [vmem:[#allocation3 + $0x18] sm:$0xff] }
   0xd   :  { %53 = vst.msk [vmem:[#allocation2] sm:$0xf] %vm52_vm0, %v192_v2  ;;  %v184_v4 = vld [vmem:[#allocation3 + $0x20] sm:$0xff]  ;;  %v182_v6 = vld [vmem:[#allocation3 + $0x10] sm:$0xff]  ;;  %v181_v7 = vld [vmem:[#allocation3 + $0x8] sm:$0xff] }
   0xe   :  { %v180_v8 = vld [vmem:[#allocation3] sm:$0xff]  ;;  %v55_v9 = vld [vmem:[%s284_s0] sm:$0xf] }
   0xf   :  { %v56_v10 = vpack.c.bf16 %v55_v9, %v55_v9 }
  0x10   :  { %122 = vmatpush.bf16.msra.mxu0 %v186_v1 }
  0x14   :  { %123 = vmatpush.bf16.msra.mxu0 %v185_v3  ;;  %v54_v11 = vld [vmem:[#allocation2] sm:$0xf] }
  0x18   :  { %124 = vmatpush.bf16.msra.mxu0 %v184_v4 }
  0x1c   :  { %125 = vmatpush.bf16.msra.mxu0 %v183_v5 }
  0x20   :  { %126 = vmatpush.bf16.msra.mxu0 %v182_v6 }
  0x24   :  { %127 = vmatpush.bf16.msra.mxu0 %v181_v7 }
  0x28   :  { %128 = vmatpush.bf16.msra.mxu0 %v180_v8 }
  0x2b   :  { %129 = vmatmul.bf16.vlgmr.msra.gmra.mxu0 %v56_v10 }
  0xa8   :  { %v130_v12 = vpop.f32.mrf.mxu0 }
  0xa9   :  { %v134_v13 = vadd.f32 %v130_v12, %v54_v11 }
  0xab   :  { %136 = vst.msk [vmem:[#allocation2] sm:$0xf] %vm52_vm0, %v134_v13 }
  0xb0   :  { %v132_v14 = vpop.f32.mrf.mxu0 }
  0xb2   :  { %v140_v15 = vld [vmem:[#allocation2] sm:$0xf] }
  0xb3   :  { %141 = vst.msk [vmem:[%s287_s3] sm:$0xf] %vm52_vm0, %v140_v15 }
  0xb4   :  { %146 = vsyncpa [#allocation4], 1 }
  0xb5   :  { %147 = vsyncpa [#allocation6], 1 }

// kernel: latent_language_forward.92
= control target key start
LH: loop header
LB: loop body
LE: loop exit
PB: predicated region body
PF: predicated region fallthrough
CT: control target
= control target key end

     0   :  { %8 = vsyncpa [#allocation4], 0  ;;  %s577_s12 = smov 0   ;;  %s579_s13 = smov 0   ;;  %s624_s0 = inlined_call_operand.vmem [shape: f32[2,2,128], index: 0, kind: input, shape index: {}]   ;;  %s625_s1 = inlined_call_operand.hbm [shape: f32[4,128], index: 1, kind: input, shape index: {}]   ;;  %s626_s2 = inlined_call_operand.vmem [shape: f32[1,128], index: 2, kind: input, shape index: {}]   ;;  %s627_s3 = inlined_call_operand.vmem [shape: f32[2,2,128], index: 3, kind: output, shape index: {}]  }
   0x1   :  { %s581_s14 = smov 0  }
   0x2 LB: > { %s439_s15 = sadd.s32 4294967295, %s553_s14   ;;  %s33_s16 = sadd.s32 1, %s549_s13  ;;  %s553_s14 = sphi %s581_s14, %s14_s14   ;;  %s549_s13 = sphi %s579_s13, %s629_s13   ;;  %s545_s12 = sphi %s577_s12, %s628_s12  }
   0x3   : > { %p35_p0 = scmp.ge.s32.totalorder %s33_s16, 2  ;;  %p441_p1 = scmp.ge.s32.totalorder %s553_s14, 1 }
   0x4   : > { %p150_p2 = scmp.lt.s32.totalorder %s553_s14, 3  ;;  %p460_p4 = scmp.eq.s32.totalorder %s439_s15, 0 }
   0x5   : > { %s631_s16 = smov (%p35_p0, %s33_s16), 0  ;;  %s164_s19 = sshll.u32 %s625_s1, 4  ;;  %s165_s19 = int_to_ptr.hbm [resolvable:$true] %s164_s19 }
   0x6   : > { %p151_p3 = pnand %p441_p1, %p150_p2  ;;  %s555_s20 = smov [#allocation3]  }
   0x7   : > { %s166_s21 = sshll.u32 %s555_s20, 4  ;;  %s167_s21 = int_to_ptr.vmem [resolvable:$true] %s166_s21 }
   0x8   : > { %p456_p5 = pneg %p151_p3  ;;  %198 = sbr.rel (%p151_p3) target bundleno = 65 (0x41), region = 32 }
   0xa   : > { %p457_p6 = pnand %p460_p4, %p456_p5 }
   0xc   : > { %459 = dma.hbm_to_vmem [thread:$0]  (!%p457_p6), %s165_s19, 64, %s167_s21, [#allocation4]  }
   0xd   : > { %540 = dma.done.wait (%p460_p4), [#allocation4], 64  }
   0xe   : > { %542 = vsyncadd (%p460_p4), [#allocation4], 4294967232  ;;  %p236_p7 = scmp.lt.s32.totalorder %s545_s12, 1  ;;  %v556_v0 = vmov 0.0   ;;  %vm269_vm0 = vcmask 1042432  }
   0xf   : > { %263 = vst [vmem:[#allocation2] sm:$0x7] %v556_v0  ;;  %v488_v2 = vld [vmem:[#allocation3] ss:$0 sm:$0xff]  ;;  %v489_v5 = vld [vmem:[#allocation3 + $0x1] ss:$0 sm:$0xff] }
  0x10   : > { %s633_s12 = smov (!%p236_p7, %s545_s12), 1  ;;  %v490_v6 = vld [vmem:[%s626_s2] ss:$0 sm:$0xff]  ;;  %v491_v8 = vld [vmem:[#allocation3 + $0x2] ss:$0 sm:$0xff] }
  0x11   : > { %s447_s22 = sshll.u32 %s633_s12, 1  ;;  %v492_v11 = vld [vmem:[#allocation3 + $0x3] ss:$0 sm:$0xff] }
  0x12   : > { %s245_s25 = scalar_lea.vmem %s624_s0, %s447_s22  ;;  %s258_s30 = scalar_lea.vmem %s627_s3, %s447_s22 }
  0x13   : > { %v264_v1 = vld [vmem:[%s245_s25] sm:$0x3] }
  0x14   : > { %v267_v4 = vrot.slane %v264_v1, 5 }
  0x16   : > { %v265_v3 = vld [vmem:[#allocation2] sm:$0x7] }
  0x17   : > { %v270_v7 = vsel %vm269_vm0, %v265_v3, %v267_v4 }
  0x18   : > { %v277_v9 = vmul.f32 %v488_v2, %v270_v7  ;;  %v281_v10 = vmul.f32 %v489_v5, %v270_v7  ;;  %321 = vst [vmem:[#allocation2 - $0x2] sm:$0x1c] %v270_v7  ;;  %v288_v12 = vmul.f32 %v491_v8, %v270_v7  ;;  %v295_v15 = vmul.f32 %v492_v11, %v270_v7 }
  0x1a   : > { %v278_v13 = vadd.f32 %v490_v6, %v277_v9  ;;  %v283_v14 = vrot.slane %v281_v10, 1  ;;  %v290_v17 = vrot.slane %v288_v12, 2  ;;  %v297_v19 = vrot.slane %v295_v15, 3 }
  0x1c   : > { %v285_v16 = vadd.f32 %v283_v14, %v278_v13 }
  0x1e   : > { %v292_v18 = vadd.f32 %v290_v17, %v285_v16 }
  0x20   : > { %v299_v20 = vadd.f32 %v297_v19, %v292_v18 }
  0x22   : > { %v449_v21 = vmul.f32 -1.442695, %v299_v20 }
  0x24   : > { %493 = vpow2.f32 %v449_v21 }
  0x2a   : > { %v494_v22 = vpop.eup %493 }
  0x2b   : > { %v303_v23 = vadd.f32 1.0, %v494_v22 }
  0x2d   : > { %495 = vrcp.f32 %v303_v23  ;;  %v315_v27 = vand.u32 2147483648, %v303_v23  ;;  %v313_v29 = vand.u32 2147483647, %v303_v23  ;;  %vm309_vm2 = vweird.f32 %v303_v23 }
  0x2f   : > { %v316_v31 = vor.u32 1.1754944e-38, %v315_v27  ;;  %vm314_vm4 = vcmp.eq.f32.partialorder %v313_v29, 8.507059e+37 }
  0x33   : > { %v496_v24 = vpop.eup %495 }
  0x34   : > { %v305_v25 = vmul.f32 %v496_v24, %v303_v23  ;;  %vm310_vm1 = vweird.f32 %v496_v24 }
  0x35   : > { %vm311_vm3 = vmor %vm309_vm2, %vm310_vm1 }
  0x36   : > { %v306_v26 = vsub.f32 1.0, %v305_v25 }
  0x38   : > { %v307_v28 = vmul.f32 %v496_v24, %v306_v26 }
  0x3a   : > { %v308_v30 = vadd.f32 %v496_v24, %v307_v28 }
  0x3c   : > { %v312_v32 = vsel %vm311_vm3, %v496_v24, %v308_v30 }
  0x3d   : > { %v317_v33 = vsel %vm314_vm4, %v316_v31, %v312_v32 }
  0x3e   : > { %v319_v34 = vmul.f32 %v317_v33, %v299_v20 }
  0x40   : > { %320 = vst [vmem:[%s258_s30] sm:$0x3] %v319_v34 }
  0x41 PF: > { %s14_s14 = sadd.s32 1, %s553_s14   ;;  %s628_s12 = smov %s549_s13 }
  0x42   : > { %p11_p8 = scmp.ge.s32.totalorder %s14_s14, 4   ;;  %s629_s13 = smov %s631_s16 }
  0x44   :  { %13 = sbr.rel (!%p11_p8) target bundleno = 2 (0x2), region = 75 }
  0x49   :  { %353 = vsyncpa [#allocation4], 1 }
  0x4a   :  { %355 = vsyncpa [#allocation4 + $0x1], 1 }

// kernel: latent_language_forward.88
= control target key start
LH: loop header
LB: loop body
LE: loop exit
PB: predicated region body
PF: predicated region fallthrough
CT: control target
= control target key end

     0   :  { %14 = vsyncpa [#allocation4], 0  ;;  %s1279_s30 = smov 0   ;;  %s1281_s10 = smov 0   ;;  %s1351_s0 = inlined_call_operand.vmem [shape: f32[2,2,8], index: 0, kind: input, shape index: {}]   ;;  %s1352_s1 = inlined_call_operand.hbm [shape: bf16[8,256], index: 1, kind: input, shape index: {}]   ;;  %s1353_s2 = inlined_call_operand.vmem [shape: f32[1,256], index: 2, kind: input, shape index: {}]   ;;  %s1354_s3 = inlined_call_operand.vmem [shape: f32[2,1,8,2], index: 3, kind: input, shape index: {}]   ;;  %s1355_s4 = inlined_call_operand.vmem [shape: f32[2,1,8,2], index: 4, kind: input, shape index: {}]   ;;  %s1356_s5 = inlined_call_operand.vmem [shape: f32[2,2,256], index: 5, kind: input, shape index: {}]   ;;  %s1357_s6 = inlined_call_operand.vmem [shape: f32[2,2,256], index: 6, kind: input, shape index: {}]   ;;  %s1358_s7 = inlined_call_operand.vmem [shape: f32[8,256], index: 7, kind: input, shape index: {}]   ;;  %s1359_s8 = inlined_call_operand.vmem [shape: f32[1,256], index: 8, kind: input, shape index: {}]   ;;  %s1360_s9 = inlined_call_operand.vmem [shape: f32[2,2,256], index: 9, kind: output, shape index: {}]  }
   0x1   :  { %s1283_s11 = smov 0  }
   0x2 LB: > { %s1080_s12 = sadd.s32 4294967295, %s1224_s11   ;;  %s39_s13 = sadd.s32 1, %s1220_s10  ;;  %s1224_s11 = sphi %s1283_s11, %s20_s11   ;;  %s1220_s10 = sphi %s1281_s10, %s1362_s10   ;;  %s1216_s30 = sphi %s1279_s30, %s1361_s30  }
   0x3   : > { %p41_p0 = scmp.ge.s32.totalorder %s39_s13, 2  ;;  %p1082_p1 = scmp.ge.s32.totalorder %s1224_s11, 1 }
   0x4   : > { %p322_p2 = scmp.lt.s32.totalorder %s1224_s11, 3  ;;  %p1115_p4 = scmp.eq.s32.totalorder %s1080_s12, 0 }
   0x5   : > { %s1364_s13 = smov (%p41_p0, %s39_s13), 0  ;;  %s337_s16 = sshll.u32 %s1352_s1, 4  ;;  %s338_s16 = int_to_ptr.hbm [resolvable:$true] %s337_s16 }
   0x6   : > { %p323_p3 = pnand %p1082_p1, %p322_p2  ;;  %s1226_s17 = smov [#allocation3]  }
   0x7   : > { %s339_s18 = sshll.u32 %s1226_s17, 4  ;;  %s340_s18 = int_to_ptr.vmem [resolvable:$true] %s339_s18 }
   0x8   : > { %p1111_p5 = pneg %p323_p3  ;;  %441 = sbr.rel (%p323_p3) target bundleno = 222 (0xde), region = 56 }
   0xa   : > { %p1112_p6 = pnand %p1115_p4, %p1111_p5 }
   0xc   : > { %1114 = dma.hbm_to_vmem [thread:$0]  (!%p1112_p6), %s338_s16, 128, %s340_s18, [#allocation4]  }
   0xd   : > { %1211 = dma.done.wait (%p1115_p4), [#allocation4], 128  }
   0xe   : > { %1213 = vsyncadd (%p1115_p4), [#allocation4], 4294967168  ;;  %p541_p7 = scmp.lt.s32.totalorder %s1216_s30, 1  ;;  %v1227_v0 = vmov 0   ;;  %v633_v1 = vld [vmem:[#allocation3] sm:$0xff]  ;;  %vm655_vm0 = vcmask 1043456  }
   0xf   : > { %1144 = vset.pattern.permute.xlu0 %v1227_v0  ;;  %1146 = vset.pattern.permute.xlu1 %v1227_v0  ;;  %v647_v3 = vunpack.c.l.b16 %v633_v1  ;;  %v648_v4 = vunpack.c.h.b16 %v633_v1  ;;  %vm651_vm1 = vcmask 64512   ;;  %v1228_v13 = vmov 1   ;;  %v634_v18 = vld [vmem:[%s1353_s2] sm:$0x3]  ;;  %v629_v63 = vld [vmem:[%s1358_s7 + $0x8] sm:$0xff] }
  0x10   : > { %s1366_s30 = smov (!%p541_p7, %s1216_s30), 1  ;;  %v642_v19 = vperm.slane %v634_v18, 0  ;;  %v643_v20 = vperm.slane %v634_v18, 1  ;;  %v628_v59 = vld [vmem:[%s1358_s7] sm:$0xff]  ;;  %vm792_vm6 = vcmask 1040384   ;;  %vm840_vm7 = vcmask 1041408  }
  0x11   : > { %s1090_s19 = sshll.u32 %s1366_s30, 1  ;;  %s1301_s20 = sshll.u32 %s1366_s30, 2  ;;  %v649_v8 = vpack.c.b16 %v647_v3, %v647_v3  ;;  %v650_v9 = vpack.c.b16 %v648_v4, %v648_v4 }
  0x12   : > { %s580_s23 = scalar_lea.vmem %s1356_s5, %s1301_s20  ;;  %s547_s26 = scalar_lea.vmem %s1351_s0, %s1090_s19 }
  0x13   : > { %v637_v2 = vld [vmem:[%s580_s23] sm:$0xf]  ;;  %s1091_s27 = sshll.u32 %s1366_s30, 3  ;;  %v657_v10 = vsel %vm655_vm0, %v649_v8, 0  ;;  %v660_v11 = vsel %vm655_vm0, %v650_v9, 0  ;;  %s594_s18 = scalar_lea.vmem %s1357_s6, %s1301_s20 }
  0x14   : > { %707 = vst [vmem:[#allocation1] ss:$4 sm:$0xff] %v637_v2  ;;  %s560_s12 = scalar_lea.vmem %s1354_s3, %s1091_s27  ;;  %s567_s16 = scalar_lea.vmem %s1355_s4, %s1091_s27  ;;  %v639_v5 = vld [vmem:[%s547_s26] sm:$0x3]  ;;  %669 = vmatpush.bf16.msra.mxu0 %v657_v10  ;;  %682 = vmatpush.bf16.msra.mxu1 %v660_v11 }
  0x15   : > { %v631_v6 = vld [vmem:[%s560_s12] sm:$0xff]  ;;  %v640_v12 = vpack.c.bf16 %v639_v5, %v639_v5  ;;  %s619_s12 = scalar_lea.vmem %s1360_s9, %s1301_s20 }
  0x16   : > { %v632_v7 = vld [vmem:[%s567_s16] sm:$0xff]  ;;  %724 = vperm.xlu0 %1144, %v631_v6  }
  0x17   : > { %737 = vperm.xlu1 %1146, %v632_v7   ;;  %1099 = vmatmul.msk.bf16.vlgmr.msra.gmra.mxu0 %vm651_vm1, %v640_v12  ;;  %v638_v14 = vld [vmem:[%s594_s18] sm:$0xf] }
  0x18   : > { %1100 = vmatmul.msk.bf16.vlgmr.msra.gmra.mxu1 %vm651_vm1, %v640_v12  ;;  %v1101_v15 = vmul.f32 -1.442695, %v638_v14 }
  0x1a   : > { %1148 = vpow2.f32 %v1101_v15 }
  0x1b   : > { %v708_v21 = vld.sshfl [vmem:[#allocation1] sm:$0xff pattern:$0x73625140]  ;;  %v709_v22 = vld.sshfl [vmem:[#allocation1 + $0x8] sm:$0xff pattern:$0x73625140] }
  0x1c   : > { %800 = vst [vmem:[#allocation1] ss:$4 sm:$0xff] %v637_v2 }
  0x1e   : > { %1145 = vset.pattern.permute.xlu0 %v1228_v13 }
  0x1f   : > { %1147 = vset.pattern.permute.xlu1 %v1228_v13  ;;  %763 = vperm.xlu0 %1145, %v631_v6  }
  0x20   : > { %775 = vperm.xlu1 %1147, %v632_v7   ;;  %v1149_v16 = vpop.eup %1148 }
  0x21   : > { %v812_v17 = vadd.f32 1.0, %v1149_v16 }
  0x23   : > { %1150 = vrcp.f32 %v812_v17  ;;  %vm818_vm2 = vweird.f32 %v812_v17  ;;  %v824_v39 = vand.u32 2147483648, %v812_v17  ;;  %v822_v42 = vand.u32 2147483647, %v812_v17  ;;  %v1323_v57 = vld.sshfl [vmem:[#allocation1] sm:$0xff pattern:$0x73625140] }
  0x24   : > { %v1328_v60 = vld.sshfl [vmem:[#allocation1 + $0x8] sm:$0xff pattern:$0x73625140] }
  0x25   : > { %v825_v46 = vor.u32 1.1754944e-38, %v824_v39  ;;  %vm823_vm5 = vcmp.eq.f32.partialorder %v822_v42, 8.507059e+37 }
  0x29   : > { %v1151_v23 = vpop.eup %1150 }
  0x2a   : > { %v814_v28 = vmul.f32 %v1151_v23, %v812_v17  ;;  %vm819_vm3 = vweird.f32 %v1151_v23 }
  0x2b   : > { %vm820_vm4 = vmor %vm818_vm2, %vm819_vm3 }
  0x2c   : > { %v815_v33 = vsub.f32 1.0, %v814_v28 }
  0x2e   : > { %v816_v38 = vmul.f32 %v1151_v23, %v815_v33 }
  0x30   : > { %v817_v41 = vadd.f32 %v1151_v23, %v816_v38 }
  0x32   : > { %v821_v47 = vsel %vm820_vm4, %v1151_v23, %v817_v41 }
  0x33   : > { %v826_v48 = vsel %vm823_vm5, %v825_v46, %v821_v47 }
  0x34   : > { %v828_v51 = vmul.f32 %v826_v48, %v638_v14 }
  0x36   : > { %830 = vst [vmem:[#allocation1] ss:$4 sm:$0xff] %v828_v51  ;;  %v630_v51 = vld [vmem:[%s1359_s8] sm:$0x3] }
  0x88   : > { %v725_v6 = vpop.permute.xlu0 %724 }
  0x89   : > { %v738_v13 = vpop.permute.xlu1 %737 }
  0x94   : > { %v671_v24 = vpop.f32.mrf.mxu0 }
  0x95   : > { %v684_v25 = vpop.f32.mrf.mxu1  ;;  %v672_v26 = vadd.f32 %v671_v24, %v642_v19 }
  0x96   : > { %v685_v27 = vadd.f32 %v684_v25, %v643_v20  ;;  %v764_v25 = vpop.permute.xlu0 %763 }
  0x97   : > { %v690_v29 = vand.u32 2147483647, %v672_v26  ;;  %v688_v52 = vmax.f32 %v672_v26, 0.0 }
  0x98   : > { %v691_v30 = vand.u32 2147483647, %v685_v27  ;;  %v689_v54 = vmax.f32 %v685_v27, 0.0 }
  0x99   : > { %v692_v31 = vsub.f32 0.0, %v690_v29 }
  0x9a   : > { %v693_v32 = vsub.f32 0.0, %v691_v30 }
  0x9b   : > { %v694_v34 = vmul.f32 1.442695, %v692_v31 }
  0x9c   : > { %v696_v35 = vmul.f32 1.442695, %v693_v32  ;;  %v673_v36 = vpop.f32.mrf.mxu0 }
  0x9d   : > { %v686_v37 = vpop.f32.mrf.mxu1  ;;  %1152 = vpow2.f32 %v694_v34  ;;  %v776_v34 = vpop.permute.xlu1 %775 }
  0x9e   : > { %1154 = vpow2.f32 %v696_v35 }
  0xa3   : > { %v1153_v40 = vpop.eup %1152 }
  0xa4   : > { %v1155_v43 = vpop.eup %1154  ;;  %v698_v44 = vadd.f32 1.0, %v1153_v40 }
  0xa5   : > { %v699_v45 = vadd.f32 1.0, %v1155_v43 }
  0xa6   : > { %1156 = vlog2.f32 %v698_v44 }
  0xa7   : > { %1158 = vlog2.f32 %v699_v45 }
  0xac   : > { %v1157_v49 = vpop.eup %1156 }
  0xad   : > { %v1159_v50 = vpop.eup %1158  ;;  %v701_v53 = vmul.f32 0.6931472, %v1157_v49 }
  0xae   : > { %v703_v55 = vmul.f32 0.6931472, %v1159_v50 }
  0xaf   : > { %v704_v56 = vadd.f32 %v701_v53, %v688_v52 }
  0xb0   : > { %v705_v58 = vadd.f32 %v703_v55, %v689_v54 }
  0xb1   : > { %v714_v61 = vperm.slane %v704_v56, 0  ;;  %v754_v62 = vperm.slane %v704_v56, 1  ;;  %v712_v8 = vmul.f32 %v708_v21, %v704_v56 }
  0xb2   : > { %v715_v0 = vperm.slane %v705_v58, 0  ;;  %v755_v1 = vperm.slane %v705_v58, 1  ;;  %v713_v10 = vmul.f32 %v709_v22, %v705_v58  ;;  %v796_v58 = vperm.slane %v630_v51, 0 }
  0xb3   : > { %v716_v2 = vmul.f32 %v714_v61, %v628_v59  ;;  %v756_v3 = vmul.f32 %v754_v62, %v628_v59  ;;  %v727_v14 = vperm.slane %v712_v8, 0  ;;  %v766_v19 = vperm.slane %v712_v8, 1  ;;  %v832_v8 = vld.sshfl [vmem:[#allocation1 + $0x8] sm:$0xff pattern:$0x73625140] }
  0xb4   : > { %v717_v4 = vmul.f32 %v715_v0, %v629_v63  ;;  %v757_v5 = vmul.f32 %v755_v1, %v629_v63  ;;  %v728_v15 = vperm.slane %v713_v10, 0  ;;  %v767_v24 = vperm.slane %v713_v10, 1 }
  0xb5   : > { %v718_v7 = vmul.f32 1.442695, %v716_v2  ;;  %v758_v11 = vmul.f32 1.442695, %v756_v3  ;;  %v729_v18 = vmul.f32 %v727_v14, %v725_v6  ;;  %v768_v29 = vmul.f32 %v766_v19, %v764_v25 }
  0xb6   : > { %v720_v9 = vmul.f32 1.442695, %v717_v4  ;;  %v760_v12 = vmul.f32 1.442695, %v757_v5  ;;  %v730_v23 = vmul.f32 %v728_v15, %v725_v6  ;;  %v769_v32 = vmul.f32 %v767_v24, %v764_v25 }
  0xb7   : > { %1160 = vpow2.f32 %v718_v7  ;;  %v797_v59 = vperm.slane %v630_v51, 1  ;;  %v805_v3 = vmul.f32 %v1323_v57, %v796_v58 }
  0xb8   : > { %1162 = vpow2.f32 %v720_v9 }
  0xb9   : > { %1164 = vpow2.f32 %v758_v11  ;;  %v806_v4 = vmul.f32 %v1328_v60, %v797_v59 }
  0xba   : > { %1166 = vpow2.f32 %v760_v12  ;;  %v831_v12 = vld.sshfl [vmem:[#allocation1] sm:$0xff pattern:$0x73625140] }
  0xbd   : > { %v1161_v16 = vpop.eup %1160 }
  0xbe   : > { %v1163_v17 = vpop.eup %1162  ;;  %v731_v20 = vmul.f32 0.0, %v1161_v16 }
  0xbf   : > { %v732_v21 = vmul.f32 0.0, %v1163_v17  ;;  %v1165_v22 = vpop.eup %1164 }
  0xc0   : > { %v733_v26 = vadd.f32 %v731_v20, %v729_v18  ;;  %v1167_v28 = vpop.eup %1166 }
  0xc1   : > { %v734_v27 = vadd.f32 %v732_v21, %v730_v23 }
  0xc2   : > { %v740_v30 = vmul.f32 %v738_v13, %v733_v26  ;;  %v770_v31 = vmul.f32 %v1165_v22, %v733_v26 }
  0xc3   : > { %v741_v33 = vmul.f32 %v738_v13, %v734_v27  ;;  %v771_v35 = vmul.f32 %v1167_v28, %v734_v27 }
  0xc4   : > { %v742_v36 = vrot.slane %v740_v30, 4  ;;  %v772_v37 = vadd.f32 %v770_v31, %v768_v29 }
  0xc5   : > { %v748_v38 = vrot.slane %v741_v33, 4  ;;  %v773_v39 = vadd.f32 %v771_v35, %v769_v32 }
  0xc6   : > { %v743_v40 = vadd.f32 %v742_v36, %v740_v30  ;;  %v778_v41 = vmul.f32 %v776_v34, %v772_v37 }
  0xc7   : > { %v749_v42 = vadd.f32 %v748_v38, %v741_v33  ;;  %v779_v43 = vmul.f32 %v776_v34, %v773_v39 }
  0xc8   : > { %v744_v44 = vrot.slane %v743_v40, 2  ;;  %v780_v45 = vrot.slane %v778_v41, 4 }
  0xc9   : > { %v750_v46 = vrot.slane %v749_v42, 2  ;;  %v786_v47 = vrot.slane %v779_v43, 4 }
  0xca   : > { %v745_v48 = vadd.f32 %v744_v44, %v743_v40  ;;  %v781_v49 = vadd.f32 %v780_v45, %v778_v41 }
  0xcb   : > { %v751_v50 = vadd.f32 %v750_v46, %v749_v42  ;;  %v787_v52 = vadd.f32 %v786_v47, %v779_v43 }
  0xcc   : > { %v782_v53 = vrot.slane %v781_v49, 2  ;;  %v746_v55 = vrot.slane %v745_v48, 1 }
  0xcd   : > { %v788_v54 = vrot.slane %v787_v52, 2  ;;  %v752_v61 = vrot.slane %v751_v50, 1 }
  0xce   : > { %v783_v56 = vadd.f32 %v782_v53, %v781_v49  ;;  %v747_v1 = vadd.f32 %v746_v55, %v745_v48 }
  0xcf   : > { %v789_v62 = vadd.f32 %v788_v54, %v787_v52  ;;  %v753_v5 = vadd.f32 %v752_v61, %v751_v50 }
  0xd0   : > { %v784_v63 = vrot.slane %v783_v56, 1 }
  0xd1   : > { %v790_v0 = vrot.slane %v789_v62, 1 }
  0xd2   : > { %v785_v2 = vadd.f32 %v784_v63, %v783_v56 }
  0xd3   : > { %v791_v6 = vadd.f32 %v790_v0, %v789_v62 }
  0xd4   : > { %v793_v7 = vsel %vm792_vm6, %v747_v1, %v785_v2 }
  0xd5   : > { %v794_v9 = vsel %vm792_vm6, %v753_v5, %v791_v6  ;;  %v807_v10 = vadd.f32 %v805_v3, %v793_v7 }
  0xd6   : > { %v808_v11 = vadd.f32 %v806_v4, %v794_v9 }
  0xd7   : > { %v835_v14 = vmul.f32 %v831_v12, %v807_v10 }
  0xd8   : > { %v836_v13 = vmul.f32 %v832_v8, %v808_v11 }
  0xda   : > { %v839_v15 = vrot.slane %v836_v13, 6 }
  0xdc   : > { %v841_v16 = vsel %vm840_vm7, %v835_v14, %v839_v15 }
  0xdd   : > { %843 = vst [vmem:[%s619_s12] sm:$0xf] %v841_v16 }
  0xde PF: > { %s20_s11 = sadd.s32 1, %s1224_s11   ;;  %s1361_s30 = smov %s1220_s10 }
  0xdf   : > { %p17_p8 = scmp.ge.s32.totalorder %s20_s11, 4   ;;  %s1362_s10 = smov %s1364_s13 }
  0xe1   :  { %19 = sbr.rel (!%p17_p8) target bundleno = 2 (0x2), region = 117 }
  0xe6   :  { %884 = vsyncpa [#allocation4], 1 }
  0xe7   :  { %886 = vsyncpa [#allocation4 + $0x1], 1 }

// kernel: latent_language_forward.93
= control target key start
LH: loop header
LB: loop body
LE: loop exit
PB: predicated region body
PF: predicated region fallthrough
CT: control target
= control target key end

     0   :  { %8 = vsyncpa [#allocation4], 0  ;;  %s201_s15 = smov [#allocation3]   ;;  %s202_s17 = smov 64   ;;  %s236_s0 = inlined_call_operand.vmem [shape: f32[4,128], index: 0, kind: input, shape index: {}]   ;;  %s237_s1 = inlined_call_operand.hbm [shape: bf16[128,128], index: 1, kind: input, shape index: {}]   ;;  %s238_s2 = inlined_call_operand.vmem [shape: f32[1,128], index: 2, kind: input, shape index: {}]   ;;  %s239_s3 = inlined_call_operand.vmem [shape: f32[4,128], index: 3, kind: output, shape index: {}]  }
   0x1   :  { %s15_s14 = sshll.u32 %s237_s1, 4  ;;  %s17_s16 = sshll.u32 %s201_s15, 4  ;;  %s16_s14 = int_to_ptr.hbm [resolvable:$true] %s15_s14  ;;  %s18_s16 = int_to_ptr.vmem [resolvable:$true] %s17_s16 }
   0x2   :  { %s203_s18 = smov 4  }
   0x3   :  { %23 = dma.hbm_to_vmem [thread:$0]  %s16_s14, 1024, %s18_s16, [#allocation4], %s202_s17, %s202_s17, %s203_s18  }
   0x4   :  { %199 = dma.done.wait [#allocation4], 1024  }
   0x5   :  { %200 = vsyncadd [#allocation4], 4294966272  ;;  %v170_v0 = vld [vmem:[#allocation3 + $0x38] sm:$0xff]  ;;  %v169_v1 = vld [vmem:[#allocation3 + $0x30] sm:$0xff] }
   0x6   :  { %106 = vmatpush.bf16.msra.mxu0 %v170_v0  ;;  %v174_v2 = vld [vmem:[%s238_s2] ss:$0 sm:$0xff]  ;;  %v168_v3 = vld [vmem:[#allocation3 + $0x28] sm:$0xff]  ;;  %v167_v4 = vld [vmem:[#allocation3 + $0x20] sm:$0xff] }
   0x7   :  { %38 = vst [vmem:[#allocation2] sm:$0xf] %v174_v2  ;;  %v166_v5 = vld [vmem:[#allocation3 + $0x18] sm:$0xff]  ;;  %v165_v6 = vld [vmem:[#allocation3 + $0x10] sm:$0xff]  ;;  %v164_v7 = vld [vmem:[#allocation3 + $0x8] sm:$0xff] }
   0x8   :  { %v163_v8 = vld [vmem:[#allocation3] sm:$0xff]  ;;  %v40_v9 = vld [vmem:[%s236_s0] sm:$0xf] }
   0x9   :  { %v41_v10 = vpack.c.bf16 %v40_v9, %v40_v9 }
   0xa   :  { %107 = vmatpush.bf16.msra.mxu0 %v169_v1 }
   0xe   :  { %108 = vmatpush.bf16.msra.mxu0 %v168_v3  ;;  %v39_v11 = vld [vmem:[#allocation2] sm:$0xf] }
  0x12   :  { %109 = vmatpush.bf16.msra.mxu0 %v167_v4 }
  0x16   :  { %110 = vmatpush.bf16.msra.mxu0 %v166_v5 }
  0x1a   :  { %111 = vmatpush.bf16.msra.mxu0 %v165_v6 }
  0x1e   :  { %112 = vmatpush.bf16.msra.mxu0 %v164_v7 }
  0x22   :  { %113 = vmatpush.bf16.msra.mxu0 %v163_v8 }
  0x25   :  { %114 = vmatmul.bf16.vlgmr.msra.gmra.mxu0 %v41_v10 }
  0xa2   :  { %v115_v12 = vpop.f32.mrf.mxu0 }
  0xa3   :  { %v119_v13 = vadd.f32 %v115_v12, %v39_v11 }
  0xa5   :  { %120 = vst [vmem:[#allocation2] sm:$0xf] %v119_v13 }
  0xaa   :  { %v117_v14 = vpop.f32.mrf.mxu0 }
  0xac   :  { %v124_v15 = vld [vmem:[#allocation2] sm:$0xf] }
  0xad   :  { %125 = vst [vmem:[%s239_s3] sm:$0xf] %v124_v15 }
  0xae   :  { %130 = vsyncpa [#allocation4], 1 }

// kernel: latent_language_forward.95
= control target key start
LH: loop header
LB: loop body
LE: loop exit
PB: predicated region body
PF: predicated region fallthrough
CT: control target
= control target key end

     0   :  { %8 = vsyncpa [#allocation4], 0  ;;  %s203_s15 = smov [#allocation3]   ;;  %s204_s17 = smov 64   ;;  %s241_s0 = inlined_call_operand.vmem [shape: f32[4,128], index: 0, kind: input, shape index: {}]   ;;  %s242_s1 = inlined_call_operand.hbm [shape: bf16[128,64], index: 1, kind: input, shape index: {}]   ;;  %s243_s2 = inlined_call_operand.vmem [shape: f32[1,64], index: 2, kind: input, shape index: {}]   ;;  %s244_s3 = inlined_call_operand.vmem [shape: f32[4,64], index: 3, kind: output, shape index: {}]  }
   0x1   :  { %s15_s14 = sshll.u32 %s242_s1, 4  ;;  %s17_s16 = sshll.u32 %s203_s15, 4  ;;  %s16_s14 = int_to_ptr.hbm [resolvable:$true] %s15_s14  ;;  %s18_s16 = int_to_ptr.vmem [resolvable:$true] %s17_s16 }
   0x2   :  { %s205_s18 = smov 4  }
   0x3   :  { %23 = dma.hbm_to_vmem [thread:$0]  %s16_s14, 1024, %s18_s16, [#allocation4], %s204_s17, %s204_s17, %s205_s18  }
   0x4   :  { %201 = dma.done.wait [#allocation4], 1024  }
   0x5   :  { %202 = vsyncadd [#allocation4], 4294966272  ;;  %v172_v0 = vld [vmem:[#allocation3 + $0x38] sm:$0xff]  ;;  %v171_v1 = vld [vmem:[#allocation3 + $0x30] sm:$0xff]  ;;  %vm38_vm0 = vcmask 519168  }
   0x6   :  { %107 = vmatpush.bf16.msra.mxu0 %v172_v0  ;;  %v176_v2 = vld [vmem:[%s243_s2] ss:$0 sm:$0xff]  ;;  %v170_v3 = vld [vmem:[#allocation3 + $0x28] sm:$0xff]  ;;  %v169_v4 = vld [vmem:[#allocation3 + $0x20] sm:$0xff] }
   0x7   :  { %39 = vst.msk [vmem:[#allocation2] sm:$0xf] %vm38_vm0, %v176_v2  ;;  %v168_v5 = vld [vmem:[#allocation3 + $0x18] sm:$0xff]  ;;  %v167_v6 = vld [vmem:[#allocation3 + $0x10] sm:$0xff]  ;;  %v166_v7 = vld [vmem:[#allocation3 + $0x8] sm:$0xff] }
   0x8   :  { %v165_v8 = vld [vmem:[#allocation3] sm:$0xff]  ;;  %v41_v9 = vld [vmem:[%s241_s0] sm:$0xf] }
   0x9   :  { %v42_v10 = vpack.c.bf16 %v41_v9, %v41_v9 }
   0xa   :  { %108 = vmatpush.bf16.msra.mxu0 %v171_v1 }
   0xe   :  { %109 = vmatpush.bf16.msra.mxu0 %v170_v3  ;;  %v40_v11 = vld [vmem:[#allocation2] sm:$0xf] }
  0x12   :  { %110 = vmatpush.bf16.msra.mxu0 %v169_v4 }
  0x16   :  { %111 = vmatpush.bf16.msra.mxu0 %v168_v5 }
  0x1a   :  { %112 = vmatpush.bf16.msra.mxu0 %v167_v6 }
  0x1e   :  { %113 = vmatpush.bf16.msra.mxu0 %v166_v7 }
  0x22   :  { %114 = vmatpush.bf16.msra.mxu0 %v165_v8 }
  0x25   :  { %115 = vmatmul.bf16.vlgmr.msra.gmra.mxu0 %v42_v10 }
  0xa2   :  { %v116_v12 = vpop.f32.mrf.mxu0 }
  0xa3   :  { %v120_v13 = vadd.f32 %v116_v12, %v40_v11 }
  0xa5   :  { %122 = vst.msk [vmem:[#allocation2] sm:$0xf] %vm38_vm0, %v120_v13 }
  0xaa   :  { %v118_v14 = vpop.f32.mrf.mxu0 }
  0xac   :  { %v126_v15 = vld [vmem:[#allocation2] sm:$0xf] }
  0xad   :  { %127 = vst.msk [vmem:[%s244_s3] sm:$0xf] %vm38_vm0, %v126_v15 }
  0xae   :  { %132 = vsyncpa [#allocation4], 1 }

// kernel: latent_language_forward.94
= control target key start
LH: loop header
LB: loop body
LE: loop exit
PB: predicated region body
PF: predicated region fallthrough
CT: control target
= control target key end

     0   :  { %14 = vsyncpa [#allocation4], 0  ;;  %s1239_s0 = inlined_call_operand.vmem [shape: f32[2,2,8], index: 0, kind: input, shape index: {}]   ;;  %s1240_s1 = inlined_call_operand.hbm [shape: bf16[8,128], index: 1, kind: input, shape index: {}]   ;;  %s1241_s2 = inlined_call_operand.vmem [shape: f32[1,128], index: 2, kind: input, shape index: {}]   ;;  %s1242_s3 = inlined_call_operand.vmem [shape: f32[2,1,8,2], index: 3, kind: input, shape index: {}]   ;;  %s1243_s4 = inlined_call_operand.vmem [shape: f32[2,1,8,2], index: 4, kind: input, shape index: {}]   ;;  %s1244_s5 = inlined_call_operand.vmem [shape: f32[2,2,128], index: 5, kind: input, shape index: {}]   ;;  %s1245_s6 = inlined_call_operand.vmem [shape: f32[2,2,128], index: 6, kind: input, shape index: {}]   ;;  %s1246_s7 = inlined_call_operand.hbm [shape: f32[8,128], index: 7, kind: input, shape index: {}]   ;;  %s1247_s8 = inlined_call_operand.vmem [shape: f32[1,128], index: 8, kind: input, shape index: {}]   ;;  %s1248_s9 = inlined_call_operand.vmem [shape: f32[2,2,128], index: 9, kind: output, shape index: {}]  }
   0x1   :  { %15 = vsyncpa [#allocation6], 0  ;;  %s1145_s30 = smov 0   ;;  %s1147_s10 = smov 0  }
   0x2   :  { %s1149_s11 = smov 0  }
   0x3 LB: > { %s913_s12 = sadd.s32 4294967295, %s1089_s11   ;;  %s40_s13 = sadd.s32 1, %s1085_s10  ;;  %s1089_s11 = sphi %s1149_s11, %s21_s11   ;;  %s1085_s10 = sphi %s1147_s10, %s1252_s10   ;;  %s1081_s30 = sphi %s1145_s30, %s1251_s30  }
   0x4   : > { %p42_p0 = scmp.ge.s32.totalorder %s40_s13, 2  ;;  %p915_p1 = scmp.ge.s32.totalorder %s1089_s11, 1 }
   0x5   : > { %p323_p2 = scmp.lt.s32.totalorder %s1089_s11, 3  ;;  %p1170_p4 = scmp.eq.s32.totalorder %s913_s12, 0 }
   0x6   : > { %s1254_s13 = smov (%p42_p0, %s40_s13), 0  ;;  %s337_s18 = sshll.u32 %s1240_s1, 4  ;;  %s338_s18 = int_to_ptr.hbm [resolvable:$true] %s337_s18 }
   0x7   : > { %p1166_p3 = pnand %p915_p1, %p323_p2  ;;  %s1091_s19 = smov [#allocation3]  }
   0x8   : > { %s339_s20 = sshll.u32 %s1091_s19, 4  ;;  %s357_s23 = sshll.u32 %s1246_s7, 4  ;;  %s340_s20 = int_to_ptr.vmem [resolvable:$true] %s339_s20  ;;  %s358_s23 = int_to_ptr.hbm [resolvable:$true] %s357_s23 }
   0x9   : > { %p942_p5 = pneg %p1166_p3  ;;  %s1092_s24 = smov [#allocation5]  }
   0xa   : > { %s359_s25 = sshll.u32 %s1092_s24, 4  ;;  %434 = sbr.rel (%p1166_p3) target bundleno = 221 (0xdd), region = 56  ;;  %s360_s25 = int_to_ptr.vmem [resolvable:$true] %s359_s25 }
   0xb   : > { %p943_p6 = pnand %p1170_p4, %p942_p5 }
   0xd   : > { %945 = dma.hbm_to_vmem [thread:$0]  (!%p943_p6), %s338_s18, 64, %s340_s20, [#allocation4]  }
   0xe   : > { %948 = dma.hbm_to_vmem [thread:$0]  (!%p943_p6), %s358_s23, 128, %s360_s25, [#allocation6]  }
   0xf   : > { %1072 = dma.done.wait (%p1170_p4), [#allocation4], 64  }
  0x10   : > { %1074 = vsyncadd (%p1170_p4), [#allocation4], 4294967232 }
  0x11   : > { %1076 = dma.done.wait (%p1170_p4), [#allocation6], 128  }
  0x12   : > { %1078 = vsyncadd (%p1170_p4), [#allocation6], 4294967168  ;;  %p523_p7 = scmp.lt.s32.totalorder %s1081_s30, 1  ;;  %vm604_vm0 = vcmask 1043456   ;;  %v1093_v0 = vmov 0   ;;  %vm600_vm1 = vcmask 64512  }
  0x13   : > { %981 = vset.pattern.permute.xlu0 %v1093_v0  ;;  %983 = vset.pattern.permute.xlu1 %v1093_v0  ;;  %v590_v1 = vld [vmem:[#allocation3] sm:$0xf]  ;;  %v1094_v7 = vmov 1   ;;  %v586_v25 = vld [vmem:[#allocation5] sm:$0xff]  ;;  %vm679_vm6 = vcmask 1040384  }
  0x14   : > { %s1256_s30 = smov (!%p523_p7, %s1081_s30), 1  ;;  %v606_v3 = vsel %vm604_vm0, %v590_v1, 0  ;;  %v985_v8 = vld [vmem:[%s1241_s2] ss:$0 sm:$0xff] }
  0x15   : > { %s1196_s26 = sshll.u32 %s1256_s30, 1  ;;  %s925_s27 = sshll.u32 %s1256_s30, 3  ;;  %615 = vmatpush.bf16.msra.mxu0 %v606_v3 }
  0x16   : > { %s529_s12 = scalar_lea.vmem %s1239_s0, %s1196_s26  ;;  %s539_s15 = scalar_lea.vmem %s1242_s3, %s925_s27 }
  0x17   : > { %v595_v2 = vld [vmem:[%s529_s12] sm:$0x3]  ;;  %s546_s19 = scalar_lea.vmem %s1243_s4, %s925_s27  ;;  %s566_s23 = scalar_lea.vmem %s1245_s6, %s1196_s26 }
  0x18   : > { %v596_v4 = vpack.c.bf16 %v595_v2, %v595_v2  ;;  %v588_v5 = vld [vmem:[%s539_s15] sm:$0xff]  ;;  %s556_s27 = scalar_lea.vmem %s1244_s5, %s1196_s26  ;;  %s579_s16 = scalar_lea.vmem %s1248_s9, %s1196_s26 }
  0x19   : > { %v589_v6 = vld [vmem:[%s546_s19] sm:$0xff]  ;;  %637 = vperm.xlu0 %981, %v588_v5  }
  0x1a   : > { %646 = vperm.xlu1 %983, %v589_v6   ;;  %930 = vmatmul.msk.bf16.vlgmr.msra.gmra.mxu0 %vm600_vm1, %v596_v4  ;;  %v1215_v15 = vld [vmem:[%s566_s23] sm:$0x3] }
  0x1b   : > { %v931_v17 = vmul.f32 -1.442695, %v1215_v15  ;;  %v593_v28 = vld [vmem:[%s556_s27] sm:$0x3] }
  0x1c   : > { %v986_v2 = vld [vmem:[%s1247_s8] ss:$0 sm:$0xff] }
  0x21   : > { %982 = vset.pattern.permute.xlu0 %v1094_v7 }
  0x22   : > { %661 = vperm.xlu0 %982, %v588_v5   ;;  %984 = vset.pattern.permute.xlu1 %v1094_v7  ;;  %v684_v7 = vmul.f32 %v986_v2, %v593_v28 }
  0x23   : > { %669 = vperm.xlu1 %984, %v589_v6  }
  0x8b   : > { %v638_v31 = vpop.permute.xlu0 %637 }
  0x8c   : > { %v647_v35 = vpop.permute.xlu1 %646 }
  0x94   : > { %v662_v43 = vpop.permute.xlu0 %661 }
  0x95   : > { %v670_v50 = vpop.permute.xlu1 %669 }
  0x97   : > { %v617_v9 = vpop.f32.mrf.mxu0 }
  0x98   : > { %v618_v10 = vadd.f32 %v985_v8, %v617_v9 }
  0x9a   : > { %v622_v11 = vand.u32 2147483647, %v618_v10  ;;  %v621_v21 = vmax.f32 %v618_v10, 0.0 }
  0x9c   : > { %v623_v12 = vsub.f32 0.0, %v622_v11 }
  0x9e   : > { %v624_v13 = vmul.f32 1.442695, %v623_v12 }
  0x9f   : > { %v619_v14 = vpop.f32.mrf.mxu0 }
  0xa0   : > { %987 = vpow2.f32 %v624_v13 }
  0xa6   : > { %v988_v16 = vpop.eup %987 }
  0xa7   : > { %v626_v18 = vadd.f32 1.0, %v988_v16 }
  0xa9   : > { %989 = vlog2.f32 %v626_v18 }
  0xaa   : > { %991 = vpow2.f32 %v931_v17 }
  0xaf   : > { %v990_v19 = vpop.eup %989 }
  0xb0   : > { %v992_v20 = vpop.eup %991  ;;  %v628_v22 = vmul.f32 0.6931472, %v990_v19 }
  0xb1   : > { %v689_v24 = vadd.f32 1.0, %v992_v20 }
  0xb2   : > { %v629_v23 = vadd.f32 %v628_v22, %v621_v21 }
  0xb3   : > { %993 = vrcp.f32 %v689_v24  ;;  %vm695_vm2 = vweird.f32 %v689_v24  ;;  %v701_v56 = vand.u32 2147483648, %v689_v24  ;;  %v699_v60 = vand.u32 2147483647, %v689_v24 }
  0xb4   : > { %v631_v26 = vperm.slane %v629_v23, 0  ;;  %v656_v27 = vperm.slane %v629_v23, 1  ;;  %v630_v33 = vmul.f32 %v629_v23, %v593_v28 }
  0xb5   : > { %v702_v63 = vor.u32 1.1754944e-38, %v701_v56  ;;  %vm700_vm5 = vcmp.eq.f32.partialorder %v699_v60, 8.507059e+37 }
  0xb6   : > { %v632_v29 = vmul.f32 %v631_v26, %v586_v25  ;;  %v657_v30 = vmul.f32 %v656_v27, %v586_v25  ;;  %v640_v37 = vperm.slane %v630_v33, 0  ;;  %v664_v41 = vperm.slane %v630_v33, 1 }
  0xb8   : > { %v633_v32 = vmul.f32 1.442695, %v632_v29  ;;  %v658_v34 = vmul.f32 1.442695, %v657_v30  ;;  %v641_v40 = vmul.f32 %v640_v37, %v638_v31  ;;  %v665_v47 = vmul.f32 %v664_v41, %v662_v43 }
  0xb9   : > { %v994_v36 = vpop.eup %993 }
  0xba   : > { %995 = vpow2.f32 %v633_v32  ;;  %v691_v39 = vmul.f32 %v994_v36, %v689_v24  ;;  %vm696_vm3 = vweird.f32 %v994_v36 }
  0xbb   : > { %997 = vpow2.f32 %v658_v34  ;;  %vm697_vm4 = vmor %vm695_vm2, %vm696_vm3 }
  0xbc   : > { %v692_v46 = vsub.f32 1.0, %v691_v39 }
  0xbe   : > { %v693_v53 = vmul.f32 %v994_v36, %v692_v46 }
  0xc0   : > { %v996_v38 = vpop.eup %995  ;;  %v694_v59 = vadd.f32 %v994_v36, %v693_v53 }
  0xc1   : > { %v642_v42 = vmul.f32 0.0, %v996_v38  ;;  %v998_v45 = vpop.eup %997 }
  0xc2   : > { %v698_v1 = vsel %vm697_vm4, %v994_v36, %v694_v59 }
  0xc3   : > { %v643_v44 = vadd.f32 %v642_v42, %v641_v40  ;;  %v703_v5 = vsel %vm700_vm5, %v702_v63, %v698_v1 }
  0xc4   : > { %v705_v10 = vmul.f32 %v703_v5, %v1215_v15 }
  0xc5   : > { %v649_v48 = vmul.f32 %v647_v35, %v643_v44  ;;  %v666_v49 = vmul.f32 %v998_v45, %v643_v44 }
  0xc7   : > { %v650_v51 = vrot.slane %v649_v48, 4  ;;  %v667_v52 = vadd.f32 %v666_v49, %v665_v47 }
  0xc9   : > { %v651_v54 = vadd.f32 %v650_v51, %v649_v48  ;;  %v672_v55 = vmul.f32 %v670_v50, %v667_v52 }
  0xcb   : > { %v652_v57 = vrot.slane %v651_v54, 2  ;;  %v673_v58 = vrot.slane %v672_v55, 4 }
  0xcd   : > { %v653_v61 = vadd.f32 %v652_v57, %v651_v54  ;;  %v674_v62 = vadd.f32 %v673_v58, %v672_v55 }
  0xcf   : > { %v675_v0 = vrot.slane %v674_v62, 2  ;;  %v654_v3 = vrot.slane %v653_v61, 1 }
  0xd1   : > { %v676_v4 = vadd.f32 %v675_v0, %v674_v62  ;;  %v655_v8 = vadd.f32 %v654_v3, %v653_v61 }
  0xd3   : > { %v677_v6 = vrot.slane %v676_v4, 1 }
  0xd5   : > { %v678_v9 = vadd.f32 %v677_v6, %v676_v4 }
  0xd7   : > { %v680_v11 = vsel %vm679_vm6, %v655_v8, %v678_v9 }
  0xd8   : > { %v685_v12 = vadd.f32 %v684_v7, %v680_v11 }
  0xda   : > { %v706_v13 = vmul.f32 %v705_v10, %v685_v12 }
  0xdc   : > { %707 = vst [vmem:[%s579_s16] sm:$0x3] %v706_v13 }
  0xdd PF: > { %s21_s11 = sadd.s32 1, %s1089_s11   ;;  %s1251_s30 = smov %s1085_s10 }
  0xde   : > { %p18_p8 = scmp.ge.s32.totalorder %s21_s11, 4   ;;  %s1252_s10 = smov %s1254_s13 }
  0xe0   :  { %20 = sbr.rel (!%p18_p8) target bundleno = 3 (0x3), region = 119 }
  0xe5   :  { %740 = vsyncpa [#allocation4], 1 }
  0xe6   :  { %742 = vsyncpa [#allocation4 + $0x1], 1 }
  0xe7   :  { %743 = vsyncpa [#allocation6], 1 }

// kernel: latent_language_forward.111
= control target key start
LH: loop header
LB: loop body
LE: loop exit
PB: predicated region body
PF: predicated region fallthrough
CT: control target
= control target key end

     0   :  { %8 = vsyncpa [#allocation4], 0  ;;  %s233_s0 = inlined_call_operand.vmem [shape: f32[4,64], index: 0, kind: input, shape index: {}]   ;;  %s234_s1 = inlined_call_operand.hbm [shape: bf16[64,128], index: 1, kind: input, shape index: {}]   ;;  %s235_s2 = inlined_call_operand.hbm [shape: f32[1,128], index: 2, kind: input, shape index: {}]   ;;  %s236_s3 = inlined_call_operand.vmem [shape: f32[4,128], index: 3, kind: output, shape index: {}]  }
   0x1   :  { %s16_s14 = sshll.u32 %s234_s1, 4  ;;  %s17_s14 = int_to_ptr.hbm [resolvable:$true] %s16_s14 }
   0x2   :  { %9 = vsyncpa [#allocation6], 0  ;;  %s197_s15 = smov [#allocation3]   ;;  %s30_s19 = sshll.u32 %s235_s2, 4  ;;  %s31_s19 = int_to_ptr.hbm [resolvable:$true] %s30_s19 }
   0x3   :  { %s18_s16 = sshll.u32 %s197_s15, 4  ;;  %s198_s20 = smov 64   ;;  %s19_s16 = int_to_ptr.vmem [resolvable:$true] %s18_s16 }
   0x4   :  { %s199_s21 = smov 4   ;;  %s200_s22 = smov [#allocation5]  }
   0x5   :  { %24 = dma.hbm_to_vmem [thread:$0]  %s17_s14, 512, %s19_s16, [#allocation4], %s198_s20, %s198_s20, %s199_s21  }
   0x6   :  { %s32_s23 = sshll.u32 %s200_s22, 4  ;;  %s33_s23 = int_to_ptr.vmem [resolvable:$true] %s32_s23 }
   0x7   :  { %35 = dma.hbm_to_vmem [thread:$0]  %s31_s19, 16, %s33_s23, [#allocation6]  }
   0x8   :  { %193 = dma.done.wait [#allocation4], 512  }
   0x9   :  { %194 = vsyncadd [#allocation4], 4294966784 }
   0xa   :  { %195 = dma.done.wait [#allocation6], 16  }
   0xb   :  { %196 = vsyncadd [#allocation6], 4294967280  ;;  %v139_v0 = vld [vmem:[#allocation3 + $0x18] sm:$0xff]  ;;  %v138_v1 = vld [vmem:[#allocation3 + $0x10] sm:$0xff]  ;;  %vm89_vm0 = vcmask 523264  }
   0xc   :  { %97 = vmatpush.bf16.msra.mxu0 %v139_v0  ;;  %v144_v2 = vld [vmem:[#allocation5] ss:$0 sm:$0xff]  ;;  %v137_v3 = vld [vmem:[#allocation3 + $0x8] sm:$0xff]  ;;  %v55_v5 = vld [vmem:[%s233_s0] sm:$0xf] }
   0xd   :  { %53 = vst [vmem:[#allocation2] sm:$0xf] %v144_v2  ;;  %v136_v4 = vld [vmem:[#allocation3] sm:$0xff]  ;;  %v56_v6 = vpack.c.bf16 %v55_v5, %v55_v5 }
  0x10   :  { %98 = vmatpush.bf16.msra.mxu0 %v138_v1 }
  0x14   :  { %99 = vmatpush.bf16.msra.mxu0 %v137_v3  ;;  %v54_v7 = vld [vmem:[#allocation2] sm:$0xf] }
  0x18   :  { %100 = vmatpush.bf16.msra.mxu0 %v136_v4 }
  0x1b   :  { %135 = vmatmul.msk.bf16.vlgmr.msra.gmra.mxu0 %vm89_vm0, %v56_v6 }
  0x98   :  { %v102_v8 = vpop.f32.mrf.mxu0 }
  0x99   :  { %v106_v9 = vadd.f32 %v102_v8, %v54_v7 }
  0x9b   :  { %107 = vst [vmem:[#allocation2] sm:$0xf] %v106_v9 }
  0xa0   :  { %v104_v10 = vpop.f32.mrf.mxu0 }
  0xa2   :  { %v111_v11 = vld [vmem:[#allocation2] sm:$0xf] }
  0xa3   :  { %112 = vst [vmem:[%s236_s3] sm:$0xf] %v111_v11 }
  0xa4   :  { %117 = vsyncpa [#allocation4], 1 }
  0xa5   :  { %118 = vsyncpa [#allocation6], 1 }

// kernel: latent_language_forward.117
= control target key start
LH: loop header
LB: loop body
LE: loop exit
PB: predicated region body
PF: predicated region fallthrough
CT: control target
= control target key end

     0   :  { %8 = vsyncpa [#allocation4], 0  ;;  %s291_s15 = smov [#allocation3]   ;;  %s417_s0 = inlined_call_operand.vmem [shape: f32[4,128], index: 0, kind: input, shape index: {}]   ;;  %s418_s1 = inlined_call_operand.vmem [shape: bf16[128,256], index: 1, kind: input, shape index: {}]   ;;  %s419_s2 = inlined_call_operand.hbm [shape: f32[1,256], index: 2, kind: input, shape index: {}]   ;;  %s420_s3 = inlined_call_operand.vmem [shape: f32[4,256], index: 3, kind: output, shape index: {}]  }
   0x1   :  { %s18_s14 = sshll.u32 %s419_s2, 4  ;;  %s20_s16 = sshll.u32 %s291_s15, 4  ;;  %s19_s14 = int_to_ptr.hbm [resolvable:$true] %s18_s14  ;;  %s21_s16 = int_to_ptr.vmem [resolvable:$true] %s20_s16 }
   0x2   :  { %23 = dma.hbm_to_vmem [thread:$0]  %s19_s14, 32, %s21_s16, [#allocation4]  }
   0x3   :  { %289 = dma.done.wait [#allocation4], 32  }
   0x4   :  { %290 = vsyncadd [#allocation4], 4294967264  ;;  %v242_v0 = vld [vmem:[%s418_s1 + $0x70] sm:$0xf]  ;;  %v263_v1 = vld [vmem:[%s418_s1 + $0x74] sm:$0xf0] }
   0x5   :  { %v262_v2 = vld [vmem:[%s418_s1 + $0x74] sm:$0xf]  ;;  %v243_v3 = vor.u32 %v263_v1, %v242_v0  ;;  %v244_v4 = vld [vmem:[%s418_s1 + $0x78] sm:$0xf0]  ;;  %v234_v5 = vld [vmem:[%s418_s1 + $0x60] sm:$0xf] }
   0x6   :  { %v261_v6 = vld [vmem:[%s418_s1 + $0x64] sm:$0xf0]  ;;  %v247_v7 = vor.u32 %v262_v2, %v244_v4  ;;  %v260_v8 = vld [vmem:[%s418_s1 + $0x64] sm:$0xf]  ;;  %v236_v9 = vld [vmem:[%s418_s1 + $0x68] sm:$0xf0] }
   0x7   :  { %140 = vmatpush.bf16.msra.mxu0 %v243_v3  ;;  %v235_v10 = vor.u32 %v261_v6, %v234_v5  ;;  %v239_v11 = vor.u32 %v260_v8, %v236_v9  ;;  %v226_v12 = vld [vmem:[%s418_s1 + $0x50] sm:$0xf]  ;;  %v259_v13 = vld [vmem:[%s418_s1 + $0x54] sm:$0xf0]  ;;  %v258_v14 = vld [vmem:[%s418_s1 + $0x54] sm:$0xf] }
   0x8   :  { %153 = vmatpush.bf16.msra.mxu1 %v247_v7  ;;  %v228_v15 = vld [vmem:[%s418_s1 + $0x58] sm:$0xf0]  ;;  %v227_v16 = vor.u32 %v259_v13, %v226_v12  ;;  %v218_v18 = vld [vmem:[%s418_s1 + $0x40] sm:$0xf]  ;;  %v257_v19 = vld [vmem:[%s418_s1 + $0x44] sm:$0xf0] }
   0x9   :  { %v231_v17 = vor.u32 %v258_v14, %v228_v15  ;;  %v256_v20 = vld [vmem:[%s418_s1 + $0x44] sm:$0xf]  ;;  %v220_v21 = vld [vmem:[%s418_s1 + $0x48] sm:$0xf0]  ;;  %v219_v22 = vor.u32 %v257_v19, %v218_v18  ;;  %v210_v24 = vld [vmem:[%s418_s1 + $0x30] sm:$0xf] }
   0xa   :  { %v223_v23 = vor.u32 %v256_v20, %v220_v21  ;;  %v255_v25 = vld [vmem:[%s418_s1 + $0x34] sm:$0xf0]  ;;  %v254_v26 = vld [vmem:[%s418_s1 + $0x34] sm:$0xf]  ;;  %v212_v27 = vld [vmem:[%s418_s1 + $0x38] sm:$0xf0] }
   0xb   :  { %141 = vmatpush.bf16.msra.mxu0 %v235_v10  ;;  %v211_v28 = vor.u32 %v255_v25, %v210_v24  ;;  %v215_v29 = vor.u32 %v254_v26, %v212_v27  ;;  %v202_v30 = vld [vmem:[%s418_s1 + $0x20] sm:$0xf]  ;;  %v253_v31 = vld [vmem:[%s418_s1 + $0x24] sm:$0xf0]  ;;  %v252_v32 = vld [vmem:[%s418_s1 + $0x24] sm:$0xf] }
   0xc   :  { %154 = vmatpush.bf16.msra.mxu1 %v239_v11  ;;  %v204_v33 = vld [vmem:[%s418_s1 + $0x28] sm:$0xf0]  ;;  %v203_v34 = vor.u32 %v253_v31, %v202_v30  ;;  %v194_v36 = vld [vmem:[%s418_s1 + $0x10] sm:$0xf]  ;;  %v251_v37 = vld [vmem:[%s418_s1 + $0x14] sm:$0xf0] }
   0xd   :  { %v207_v35 = vor.u32 %v252_v32, %v204_v33  ;;  %v250_v38 = vld [vmem:[%s418_s1 + $0x14] sm:$0xf]  ;;  %v196_v39 = vld [vmem:[%s418_s1 + $0x18] sm:$0xf0]  ;;  %v195_v40 = vor.u32 %v251_v37, %v194_v36  ;;  %v186_v42 = vld [vmem:[%s418_s1] sm:$0xf] }
   0xe   :  { %v199_v41 = vor.u32 %v250_v38, %v196_v39  ;;  %v249_v43 = vld [vmem:[%s418_s1 + $0x4] sm:$0xf0]  ;;  %v248_v44 = vld [vmem:[%s418_s1 + $0x4] sm:$0xf]  ;;  %v188_v45 = vld [vmem:[%s418_s1 + $0x8] sm:$0xf0] }
   0xf   :  { %142 = vmatpush.bf16.msra.mxu0 %v227_v16  ;;  %v187_v46 = vor.u32 %v249_v43, %v186_v42  ;;  %v42_v47 = vld [vmem:[%s417_s0] sm:$0xf]  ;;  %v191_v48 = vor.u32 %v248_v44, %v188_v45  ;;  %vm37_vm0 = vcmask 1043456  }
  0x10   :  { %155 = vmatpush.bf16.msra.mxu1 %v231_v17  ;;  %v43_v49 = vpack.c.bf16 %v42_v47, %v42_v47  ;;  %v32_v50 = vld [vmem:[#allocation3] sm:$0x3] }
  0x11   :  { %v35_v51 = vperm.slane %v32_v50, 1  ;;  %v34_v52 = vperm.slane %v32_v50, 0 }
  0x13   :  { %143 = vmatpush.bf16.msra.mxu0 %v219_v22  ;;  %v36_v53 = vrot.slane %v35_v51, 4 }
  0x14   :  { %156 = vmatpush.bf16.msra.mxu1 %v223_v23 }
  0x15   :  { %v38_v56 = vsel %vm37_vm0, %v34_v52, %v36_v53 }
  0x17   :  { %144 = vmatpush.bf16.msra.mxu0 %v211_v28 }
  0x18   :  { %157 = vmatpush.bf16.msra.mxu1 %v215_v29 }
  0x1b   :  { %145 = vmatpush.bf16.msra.mxu0 %v203_v34 }
  0x1c   :  { %158 = vmatpush.bf16.msra.mxu1 %v207_v35 }
  0x1f   :  { %146 = vmatpush.bf16.msra.mxu0 %v195_v40 }
  0x20   :  { %159 = vmatpush.bf16.msra.mxu1 %v199_v41 }
  0x23   :  { %147 = vmatpush.bf16.msra.mxu0 %v187_v46 }
  0x24   :  { %160 = vmatpush.bf16.msra.mxu1 %v191_v48 }
  0x26   :  { %148 = vmatmul.bf16.vlgmr.msra.gmra.mxu0 %v43_v49 }
  0x27   :  { %161 = vmatmul.bf16.vlgmr.msra.gmra.mxu1 %v43_v49 }
  0xa3   :  { %v149_v54 = vpop.f32.mrf.mxu0 }
  0xa4   :  { %v162_v55 = vpop.f32.mrf.mxu1 }
  0xa5   :  { %v168_v57 = vrot.slane %v162_v55, 4 }
  0xa7   :  { %v170_v58 = vsel %vm37_vm0, %v149_v54, %v168_v57 }
  0xa8   :  { %v172_v59 = vadd.f32 %v170_v58, %v38_v56 }
  0xaa   :  { %178 = vst [vmem:[%s420_s3] sm:$0xff] %v172_v59 }
  0xab   :  { %v151_v60 = vpop.f32.mrf.mxu0 }
  0xac   :  { %v164_v61 = vpop.f32.mrf.mxu1 }
  0xad   :  { %183 = vsyncpa [#allocation4], 1 }

// kernel: latent_language_forward.123
= control target key start
LH: loop header
LB: loop body
LE: loop exit
PB: predicated region body
PF: predicated region fallthrough
CT: control target
= control target key end

     0   :  { %8 = vsyncpa [#allocation4], 0  ;;  %s289_s15 = smov [#allocation3]   ;;  %s418_s0 = inlined_call_operand.vmem [shape: f32[8,128], index: 0, kind: input, shape index: {}]   ;;  %s419_s1 = inlined_call_operand.vmem [shape: bf16[128,256], index: 1, kind: input, shape index: {}]   ;;  %s420_s2 = inlined_call_operand.hbm [shape: f32[1,256], index: 2, kind: input, shape index: {}]   ;;  %s421_s3 = inlined_call_operand.vmem [shape: f32[8,256], index: 3, kind: output, shape index: {}]  }
   0x1   :  { %s18_s14 = sshll.u32 %s420_s2, 4  ;;  %s20_s16 = sshll.u32 %s289_s15, 4  ;;  %s19_s14 = int_to_ptr.hbm [resolvable:$true] %s18_s14  ;;  %s21_s16 = int_to_ptr.vmem [resolvable:$true] %s20_s16 }
   0x2   :  { %23 = dma.hbm_to_vmem [thread:$0]  %s19_s14, 32, %s21_s16, [#allocation4]  }
   0x3   :  { %287 = dma.done.wait [#allocation4], 32  }
   0x4   :  { %288 = vsyncadd [#allocation4], 4294967264  ;;  %v240_v0 = vld [vmem:[%s419_s1 + $0x70] sm:$0xf]  ;;  %v261_v1 = vld [vmem:[%s419_s1 + $0x74] sm:$0xf0] }
   0x5   :  { %v260_v2 = vld [vmem:[%s419_s1 + $0x74] sm:$0xf]  ;;  %v241_v3 = vor.u32 %v261_v1, %v240_v0  ;;  %v242_v4 = vld [vmem:[%s419_s1 + $0x78] sm:$0xf0]  ;;  %v232_v5 = vld [vmem:[%s419_s1 + $0x60] sm:$0xf] }
   0x6   :  { %v259_v6 = vld [vmem:[%s419_s1 + $0x64] sm:$0xf0]  ;;  %v245_v7 = vor.u32 %v260_v2, %v242_v4  ;;  %v258_v8 = vld [vmem:[%s419_s1 + $0x64] sm:$0xf]  ;;  %v234_v9 = vld [vmem:[%s419_s1 + $0x68] sm:$0xf0] }
   0x7   :  { %140 = vmatpush.bf16.msra.mxu0 %v241_v3  ;;  %v233_v10 = vor.u32 %v259_v6, %v232_v5  ;;  %v237_v11 = vor.u32 %v258_v8, %v234_v9  ;;  %v224_v12 = vld [vmem:[%s419_s1 + $0x50] sm:$0xf]  ;;  %v257_v13 = vld [vmem:[%s419_s1 + $0x54] sm:$0xf0]  ;;  %v256_v14 = vld [vmem:[%s419_s1 + $0x54] sm:$0xf] }
   0x8   :  { %153 = vmatpush.bf16.msra.mxu1 %v245_v7  ;;  %v226_v15 = vld [vmem:[%s419_s1 + $0x58] sm:$0xf0]  ;;  %v225_v16 = vor.u32 %v257_v13, %v224_v12  ;;  %v216_v18 = vld [vmem:[%s419_s1 + $0x40] sm:$0xf]  ;;  %v255_v19 = vld [vmem:[%s419_s1 + $0x44] sm:$0xf0] }
   0x9   :  { %v229_v17 = vor.u32 %v256_v14, %v226_v15  ;;  %v254_v20 = vld [vmem:[%s419_s1 + $0x44] sm:$0xf]  ;;  %v218_v21 = vld [vmem:[%s419_s1 + $0x48] sm:$0xf0]  ;;  %v217_v22 = vor.u32 %v255_v19, %v216_v18  ;;  %v208_v24 = vld [vmem:[%s419_s1 + $0x30] sm:$0xf] }
   0xa   :  { %v221_v23 = vor.u32 %v254_v20, %v218_v21  ;;  %v253_v25 = vld [vmem:[%s419_s1 + $0x34] sm:$0xf0]  ;;  %v252_v26 = vld [vmem:[%s419_s1 + $0x34] sm:$0xf]  ;;  %v210_v27 = vld [vmem:[%s419_s1 + $0x38] sm:$0xf0] }
   0xb   :  { %141 = vmatpush.bf16.msra.mxu0 %v233_v10  ;;  %v209_v28 = vor.u32 %v253_v25, %v208_v24  ;;  %v213_v29 = vor.u32 %v252_v26, %v210_v27  ;;  %v200_v30 = vld [vmem:[%s419_s1 + $0x20] sm:$0xf]  ;;  %v251_v31 = vld [vmem:[%s419_s1 + $0x24] sm:$0xf0]  ;;  %v250_v32 = vld [vmem:[%s419_s1 + $0x24] sm:$0xf] }
   0xc   :  { %154 = vmatpush.bf16.msra.mxu1 %v237_v11  ;;  %v202_v33 = vld [vmem:[%s419_s1 + $0x28] sm:$0xf0]  ;;  %v201_v34 = vor.u32 %v251_v31, %v200_v30  ;;  %v192_v36 = vld [vmem:[%s419_s1 + $0x10] sm:$0xf]  ;;  %v249_v37 = vld [vmem:[%s419_s1 + $0x14] sm:$0xf0] }
   0xd   :  { %v205_v35 = vor.u32 %v250_v32, %v202_v33  ;;  %v248_v38 = vld [vmem:[%s419_s1 + $0x14] sm:$0xf]  ;;  %v194_v39 = vld [vmem:[%s419_s1 + $0x18] sm:$0xf0]  ;;  %v193_v40 = vor.u32 %v249_v37, %v192_v36  ;;  %v184_v42 = vld [vmem:[%s419_s1] sm:$0xf] }
   0xe   :  { %v197_v41 = vor.u32 %v248_v38, %v194_v39  ;;  %v247_v43 = vld [vmem:[%s419_s1 + $0x4] sm:$0xf0]  ;;  %v246_v44 = vld [vmem:[%s419_s1 + $0x4] sm:$0xf]  ;;  %v186_v45 = vld [vmem:[%s419_s1 + $0x8] sm:$0xf0] }
   0xf   :  { %142 = vmatpush.bf16.msra.mxu0 %v225_v16  ;;  %v185_v46 = vor.u32 %v247_v43, %v184_v42  ;;  %v42_v47 = vld [vmem:[%s418_s0] sm:$0xff]  ;;  %v189_v48 = vor.u32 %v246_v44, %v186_v45 }
  0x10   :  { %155 = vmatpush.bf16.msra.mxu1 %v229_v17  ;;  %v43_v49 = vpack.c.bf16 %v42_v47, %v42_v47  ;;  %v32_v50 = vld [vmem:[#allocation3] sm:$0x3] }
  0x11   :  { %v34_v51 = vperm.slane %v32_v50, 0  ;;  %v35_v52 = vperm.slane %v32_v50, 1 }
  0x13   :  { %143 = vmatpush.bf16.msra.mxu0 %v217_v22 }
  0x14   :  { %156 = vmatpush.bf16.msra.mxu1 %v221_v23 }
  0x17   :  { %144 = vmatpush.bf16.msra.mxu0 %v209_v28 }
  0x18   :  { %157 = vmatpush.bf16.msra.mxu1 %v213_v29 }
  0x1b   :  { %145 = vmatpush.bf16.msra.mxu0 %v201_v34 }
  0x1c   :  { %158 = vmatpush.bf16.msra.mxu1 %v205_v35 }
  0x1f   :  { %146 = vmatpush.bf16.msra.mxu0 %v193_v40 }
  0x20   :  { %159 = vmatpush.bf16.msra.mxu1 %v197_v41 }
  0x23   :  { %147 = vmatpush.bf16.msra.mxu0 %v185_v46 }
  0x24   :  { %160 = vmatpush.bf16.msra.mxu1 %v189_v48 }
  0x26   :  { %148 = vmatmul.bf16.vlgmr.msra.gmra.mxu0 %v43_v49 }
  0x27   :  { %161 = vmatmul.bf16.vlgmr.msra.gmra.mxu1 %v43_v49 }
  0xa3   :  { %v149_v53 = vpop.f32.mrf.mxu0 }
  0xa4   :  { %v166_v54 = vadd.f32 %v149_v53, %v34_v51  ;;  %v162_v55 = vpop.f32.mrf.mxu1 }
  0xa5   :  { %v167_v56 = vadd.f32 %v162_v55, %v35_v52 }
  0xa6   :  { %175 = vst [vmem:[%s421_s3] sm:$0xff] %v166_v54 }
  0xa7   :  { %176 = vst [vmem:[%s421_s3 + $0x8] sm:$0xff] %v167_v56 }
  0xab   :  { %v151_v57 = vpop.f32.mrf.mxu0 }
  0xac   :  { %v164_v58 = vpop.f32.mrf.mxu1 }
  0xad   :  { %181 = vsyncpa [#allocation4], 1 }

// kernel: latent_language_forward.126
= control target key start
LH: loop header
LB: loop body
LE: loop exit
PB: predicated region body
PF: predicated region fallthrough
CT: control target
= control target key end

     0   :  { %s373_s1 = inlined_call_operand.vmem [shape: bf16[256,128], index: 1, kind: input, shape index: {}]   ;;  %s374_s0 = inlined_call_operand.vmem [shape: f32[16,256], index: 0, kind: input, shape index: {}]   ;;  %s375_s2 = inlined_call_operand.vmem [shape: f32[1,128], index: 2, kind: input, shape index: {}]   ;;  %s376_s3 = inlined_call_operand.vmem [shape: f32[16,128], index: 3, kind: output, shape index: {}]  }
   0x1   :  { %v274_v0 = vld [vmem:[%s373_s1 + $0x38] sm:$0xff]  ;;  %v273_v2 = vld [vmem:[%s373_s1 + $0x30] sm:$0xff]  ;;  %v272_v4 = vld [vmem:[%s373_s1 + $0x28] sm:$0xff] }
   0x2   :  { %v282_v1 = vld [vmem:[%s373_s1 + $0x78] sm:$0xff]  ;;  %160 = vmatpush.bf16.msra.mxu0 %v274_v0  ;;  %v281_v3 = vld [vmem:[%s373_s1 + $0x70] sm:$0xff]  ;;  %v280_v5 = vld [vmem:[%s373_s1 + $0x68] sm:$0xff] }
   0x3   :  { %174 = vmatpush.bf16.msra.mxu1 %v282_v1  ;;  %v271_v6 = vld [vmem:[%s373_s1 + $0x20] sm:$0xff]  ;;  %v270_v8 = vld [vmem:[%s373_s1 + $0x18] sm:$0xff]  ;;  %v269_v10 = vld [vmem:[%s373_s1 + $0x10] sm:$0xff] }
   0x4   :  { %v279_v7 = vld [vmem:[%s373_s1 + $0x60] sm:$0xff]  ;;  %v278_v9 = vld [vmem:[%s373_s1 + $0x58] sm:$0xff]  ;;  %v277_v11 = vld [vmem:[%s373_s1 + $0x50] sm:$0xff] }
   0x5   :  { %v268_v12 = vld [vmem:[%s373_s1 + $0x8] sm:$0xff]  ;;  %v267_v14 = vld [vmem:[%s373_s1] sm:$0xff]  ;;  %v28_v17 = vld [vmem:[%s374_s0 + $0x10] sm:$0xff] }
   0x6   :  { %161 = vmatpush.bf16.msra.mxu0 %v273_v2  ;;  %v276_v13 = vld [vmem:[%s373_s1 + $0x48] sm:$0xff]  ;;  %v275_v15 = vld [vmem:[%s373_s1 + $0x40] sm:$0xff]  ;;  %v29_v19 = vld [vmem:[%s374_s0 + $0x18] sm:$0xff] }
   0x7   :  { %175 = vmatpush.bf16.msra.mxu1 %v281_v3  ;;  %v26_v16 = vld [vmem:[%s374_s0] sm:$0xff]  ;;  %v27_v18 = vld [vmem:[%s374_s0 + $0x8] sm:$0xff] }
   0x8   :  { %v30_v20 = vpack.c.bf16 %v28_v17, %v26_v16  ;;  %v31_v21 = vpack.c.bf16 %v29_v19, %v27_v18  ;;  %v283_v22 = vld [vmem:[%s375_s2] ss:$0 sm:$0xff] }
   0xa   :  { %162 = vmatpush.bf16.msra.mxu0 %v272_v4 }
   0xb   :  { %176 = vmatpush.bf16.msra.mxu1 %v280_v5 }
   0xe   :  { %163 = vmatpush.bf16.msra.mxu0 %v271_v6 }
   0xf   :  { %177 = vmatpush.bf16.msra.mxu1 %v279_v7 }
  0x12   :  { %164 = vmatpush.bf16.msra.mxu0 %v270_v8 }
  0x13   :  { %178 = vmatpush.bf16.msra.mxu1 %v278_v9 }
  0x16   :  { %165 = vmatpush.bf16.msra.mxu0 %v269_v10 }
  0x17   :  { %179 = vmatpush.bf16.msra.mxu1 %v277_v11 }
  0x1a   :  { %166 = vmatpush.bf16.msra.mxu0 %v268_v12 }
  0x1b   :  { %180 = vmatpush.bf16.msra.mxu1 %v276_v13 }
  0x1e   :  { %167 = vmatpush.bf16.msra.mxu0 %v267_v14 }
  0x1f   :  { %181 = vmatpush.bf16.msra.mxu1 %v275_v15 }
  0x21   :  { %168 = vmatmul.bf16.vlgmr.msra.gmra.mxu0 %v30_v20 }
  0x22   :  { %182 = vmatmul.bf16.vlgmr.msra.gmra.mxu1 %v31_v21 }
  0x9e   :  { %v169_v23 = vpop.f32.mrf.mxu0 }
  0x9f   :  { %v183_v24 = vpop.f32.mrf.mxu1 }
  0xa0   :  { %v184_v25 = vadd.f32 %v183_v24, %v169_v23 }
  0xa2   :  { %v188_v26 = vadd.f32 %v283_v22, %v184_v25 }
  0xa4   :  { %197 = vst [vmem:[%s376_s3] sm:$0xff] %v188_v26 }
  0xa6   :  { %v171_v27 = vpop.f32.mrf.mxu0 }
  0xa7   :  { %v185_v28 = vpop.f32.mrf.mxu1 }
  0xa8   :  { %v186_v29 = vadd.f32 %v185_v28, %v171_v27 }
  0xaa   :  { %v189_v30 = vadd.f32 %v283_v22, %v186_v29 }
  0xac   :  { %198 = vst [vmem:[%s376_s3 + $0x8] sm:$0xff] %v189_v30 }

// kernel: latent_language_forward.129
= control target key start
LH: loop header
LB: loop body
LE: loop exit
PB: predicated region body
PF: predicated region fallthrough
CT: control target
= control target key end

     0   :  { %s437_s0 = inlined_call_operand.vmem [shape: f32[16,128], index: 0, kind: input, shape index: {}]   ;;  %s438_s1 = inlined_call_operand.vmem [shape: bf16[128,256], index: 1, kind: input, shape index: {}]   ;;  %s439_s2 = inlined_call_operand.vmem [shape: f32[1,256], index: 2, kind: input, shape index: {}]   ;;  %s440_s3 = inlined_call_operand.hbm [shape: f32[16,256], index: 3, kind: output, shape index: {}]  }
   0x1   :  { %v255_v0 = vld [vmem:[%s438_s1 + $0x70] sm:$0xf]  ;;  %v276_v1 = vld [vmem:[%s438_s1 + $0x74] sm:$0xf0]  ;;  %v275_v2 = vld [vmem:[%s438_s1 + $0x74] sm:$0xf] }
   0x2   :  { %v256_v3 = vor.u32 %v276_v1, %v255_v0  ;;  %v257_v4 = vld [vmem:[%s438_s1 + $0x78] sm:$0xf0]  ;;  %v247_v5 = vld [vmem:[%s438_s1 + $0x60] sm:$0xf]  ;;  %v274_v6 = vld [vmem:[%s438_s1 + $0x64] sm:$0xf0] }
   0x3   :  { %v260_v7 = vor.u32 %v275_v2, %v257_v4  ;;  %v273_v8 = vld [vmem:[%s438_s1 + $0x64] sm:$0xf]  ;;  %v249_v9 = vld [vmem:[%s438_s1 + $0x68] sm:$0xf0]  ;;  %v248_v10 = vor.u32 %v274_v6, %v247_v5  ;;  %v239_v12 = vld [vmem:[%s438_s1 + $0x50] sm:$0xf] }
   0x4   :  { %132 = vmatpush.bf16.msra.mxu0 %v256_v3  ;;  %v252_v11 = vor.u32 %v273_v8, %v249_v9  ;;  %v272_v13 = vld [vmem:[%s438_s1 + $0x54] sm:$0xf0]  ;;  %v271_v14 = vld [vmem:[%s438_s1 + $0x54] sm:$0xf]  ;;  %v241_v15 = vld [vmem:[%s438_s1 + $0x58] sm:$0xf0] }
   0x5   :  { %146 = vmatpush.bf16.msra.mxu1 %v260_v7  ;;  %v240_v16 = vor.u32 %v272_v13, %v239_v12  ;;  %v244_v17 = vor.u32 %v271_v14, %v241_v15  ;;  %v231_v18 = vld [vmem:[%s438_s1 + $0x40] sm:$0xf]  ;;  %v270_v19 = vld [vmem:[%s438_s1 + $0x44] sm:$0xf0]  ;;  %v269_v20 = vld [vmem:[%s438_s1 + $0x44] sm:$0xf] }
   0x6   :  { %v233_v21 = vld [vmem:[%s438_s1 + $0x48] sm:$0xf0]  ;;  %v232_v22 = vor.u32 %v270_v19, %v231_v18 }
   0x8   :  { %133 = vmatpush.bf16.msra.mxu0 %v248_v10 }
   0x9   :  { %147 = vmatpush.bf16.msra.mxu1 %v252_v11 }
   0xc   :  { %134 = vmatpush.bf16.msra.mxu0 %v240_v16 }
   0xd   :  { %8 = vsyncpa [#allocation4], 0  ;;  %148 = vmatpush.bf16.msra.mxu1 %v244_v17  ;;  %v236_v23 = vor.u32 %v269_v20, %v233_v21  ;;  %v223_v24 = vld [vmem:[%s438_s1 + $0x30] sm:$0xf]  ;;  %v268_v25 = vld [vmem:[%s438_s1 + $0x34] sm:$0xf0] }
   0xe   :  { %v267_v26 = vld [vmem:[%s438_s1 + $0x34] sm:$0xf]  ;;  %v225_v27 = vld [vmem:[%s438_s1 + $0x38] sm:$0xf0]  ;;  %v224_v28 = vor.u32 %v268_v25, %v223_v24  ;;  %v215_v30 = vld [vmem:[%s438_s1 + $0x20] sm:$0xf] }
   0xf   :  { %v228_v29 = vor.u32 %v267_v26, %v225_v27  ;;  %v266_v31 = vld [vmem:[%s438_s1 + $0x24] sm:$0xf0]  ;;  %v265_v32 = vld [vmem:[%s438_s1 + $0x24] sm:$0xf]  ;;  %v217_v33 = vld [vmem:[%s438_s1 + $0x28] sm:$0xf0] }
  0x10   :  { %135 = vmatpush.bf16.msra.mxu0 %v232_v22  ;;  %v216_v34 = vor.u32 %v266_v31, %v215_v30  ;;  %v220_v35 = vor.u32 %v265_v32, %v217_v33  ;;  %v207_v36 = vld [vmem:[%s438_s1 + $0x10] sm:$0xf]  ;;  %v264_v37 = vld [vmem:[%s438_s1 + $0x14] sm:$0xf0]  ;;  %v263_v38 = vld [vmem:[%s438_s1 + $0x14] sm:$0xf] }
  0x11   :  { %149 = vmatpush.bf16.msra.mxu1 %v236_v23  ;;  %v209_v39 = vld [vmem:[%s438_s1 + $0x18] sm:$0xf0]  ;;  %v208_v40 = vor.u32 %v264_v37, %v207_v36  ;;  %v199_v42 = vld [vmem:[%s438_s1] sm:$0xf]  ;;  %v262_v43 = vld [vmem:[%s438_s1 + $0x4] sm:$0xf0] }
  0x12   :  { %v212_v41 = vor.u32 %v263_v38, %v209_v39  ;;  %v261_v44 = vld [vmem:[%s438_s1 + $0x4] sm:$0xf]  ;;  %v201_v45 = vld [vmem:[%s438_s1 + $0x8] sm:$0xf0]  ;;  %v200_v46 = vor.u32 %v262_v43, %v199_v42  ;;  %v19_v51 = vld [vmem:[%s439_s2] sm:$0x3] }
  0x13   :  { %v33_v47 = vld [vmem:[%s437_s0] sm:$0xff]  ;;  %v34_v48 = vld [vmem:[%s437_s0 + $0x8] sm:$0xff]  ;;  %v204_v49 = vor.u32 %v261_v44, %v201_v45  ;;  %v21_v52 = vperm.slane %v19_v51, 0  ;;  %v22_v53 = vperm.slane %v19_v51, 1  ;;  %s306_s0 = smov [#allocation3]   ;;  %s185_s30 = sshll.u32 %s440_s3, 4  ;;  %s186_s30 = int_to_ptr.hbm [resolvable:$true] %s185_s30 }
  0x14   :  { %136 = vmatpush.bf16.msra.mxu0 %v224_v28  ;;  %v35_v50 = vpack.c.bf16 %v34_v48, %v33_v47  ;;  %s183_s1 = sshll.u32 %s306_s0, 4  ;;  %s307_s2 = smov 256   ;;  %s184_s1 = int_to_ptr.vmem [resolvable:$true] %s183_s1 }
  0x15   :  { %150 = vmatpush.bf16.msra.mxu1 %v228_v29  ;;  %s308_s4 = smov 16  }
  0x18   :  { %137 = vmatpush.bf16.msra.mxu0 %v216_v34 }
  0x19   :  { %151 = vmatpush.bf16.msra.mxu1 %v220_v35 }
  0x1c   :  { %138 = vmatpush.bf16.msra.mxu0 %v208_v40 }
  0x1d   :  { %152 = vmatpush.bf16.msra.mxu1 %v212_v41 }
  0x20   :  { %139 = vmatpush.bf16.msra.mxu0 %v200_v46 }
  0x21   :  { %153 = vmatpush.bf16.msra.mxu1 %v204_v49 }
  0x23   :  { %140 = vmatmul.bf16.vlgmr.msra.gmra.mxu0 %v35_v50 }
  0x24   :  { %154 = vmatmul.bf16.vlgmr.msra.gmra.mxu1 %v35_v50 }
  0xa0   :  { %v141_v54 = vpop.f32.mrf.mxu0 }
  0xa1   :  { %v160_v55 = vadd.f32 %v141_v54, %v21_v52  ;;  %v155_v56 = vpop.f32.mrf.mxu1 }
  0xa2   :  { %v161_v57 = vadd.f32 %v155_v56, %v22_v53 }
  0xa3   :  { %175 = vst [vmem:[#allocation3] sm:$0xff] %v160_v55 }
  0xa4   :  { %176 = vst [vmem:[#allocation3 + $0x8] sm:$0xff] %v161_v57 }
  0xa8   :  { %v143_v58 = vpop.f32.mrf.mxu0 }
  0xa9   :  { %v162_v59 = vadd.f32 %v143_v58, %v21_v52  ;;  %v157_v60 = vpop.f32.mrf.mxu1 }
  0xaa   :  { %v163_v61 = vadd.f32 %v157_v60, %v22_v53 }
  0xab   :  { %177 = vst [vmem:[#allocation3 + $0x10] sm:$0xff] %v162_v59 }
  0xac   :  { %178 = vst [vmem:[#allocation3 + $0x18] sm:$0xff] %v163_v61 }
  0xad   :  { %191 = dma.vmem_to_hbm [thread:$0]  %s184_s1, 512, %s186_s30, [#allocation4], %s307_s2, %s307_s2, %s308_s4  }
  0xae   :  { %304 = dma.done.wait [#allocation4], 512  }
  0xaf   :  { %305 = vsyncadd [#allocation4], 4294966784 }
  0xb0   :  { %196 = vsyncpa [#allocation4], 1 }

</bundles_post_ra>
